<compile_context>
chip_gen: v7x
topology: tpu7x:2x2x1
jax: 0.10.0
libtpu: 0.0.40
codegen_flags: <defaults>
</compile_context>

<pallas_src>
from functools import partial

import jax
import jax.numpy as jnp
from jax.experimental import pallas as pl
from jax.experimental.pallas import tpu as pltpu


def mlp_kernel(x_ref, w1_ref, b1_ref, w2_ref, b2_ref, w3_ref, b3_ref, o_ref):
    # fc1: (tb, 784)f32 -> bf16 at the dot input, f32 MXU accumulation, + bias.
    x_bf = x_ref[...].astype(jnp.bfloat16)
    h1 = jnp.dot(x_bf, w1_ref[...], preferred_element_type=jnp.float32) + b1_ref[...]
    # fc2: cast activations to bf16 only at the dot input; accumulate in f32.
    h2 = jnp.dot(h1.astype(jnp.bfloat16), w2_ref[...],
                 preferred_element_type=jnp.float32) + b2_ref[...]
    # fc3: output padded to 128 lanes -> full-lane (unmasked) stores.
    o_ref[...] = jnp.dot(h2.astype(jnp.bfloat16), w3_ref[...],
                         preferred_element_type=jnp.float32) + b3_ref[...]


def prepare_params(w1, b1, w2, b2, w3, b3, *, lane=128):
    """One-time host-side parameter prep (call once, reuse across forwards).

    Casts the weight matrices to bf16 and pads fc3's output dim to a
    lane-dense multiple of 128. Doing this per-call costs more HBM traffic
    than the kernel itself, so it is hoisted out of `mlp_forward`.
    """
    as2d = lambda b: jnp.asarray(b, jnp.float32).reshape(1, -1)
    n = w3.shape[1]
    n_pad = pl.cdiv(n, lane) * lane
    w3_p = jnp.pad(jnp.asarray(w3, jnp.float32), ((0, 0), (0, n_pad - n)))
    b3_p = jnp.pad(as2d(b3), ((0, 0), (0, n_pad - n)))
    return (
        jnp.asarray(w1, jnp.bfloat16), as2d(b1),
        jnp.asarray(w2, jnp.bfloat16), as2d(b2),
        w3_p.astype(jnp.bfloat16), b3_p,
    )


@partial(jax.jit, static_argnames=("out_features", "tb"))
def mlp_forward(x, w1, b1, w2, b2, w3, b3, *, out_features=10, tb=512):
    """Fused 3-layer MLP forward. Weights must come from `prepare_params`."""
    B, K = x.shape
    n_pad = w3.shape[1]          # already lane-padded (multiple of 128)
    assert tb % 8 == 0

    # Pick the batch tile: cap at the (sublane-aligned) batch for small B so we
    # run a single grid step with no wasted rows; otherwise pad B up to tb.
    b8 = pl.cdiv(B, 8) * 8
    if b8 <= tb:
        tb_eff, bp = b8, b8
    else:
        tb_eff = tb
        bp = pl.cdiv(B, tb) * tb
    if bp != B:
        x = jnp.pad(x, ((0, bp - B), (0, 0)))

    grid = (bp // tb_eff,)

    def resident(arr):
        # Constant block index across the grid -> DMA'd once, stays in VMEM.
        return pl.BlockSpec(arr.shape, lambda i: (0, 0))

    # Megacore gating (v7x): only shard batch tiles across cores when there is
    # enough per-core work to amortize the duplicated resident-weight fetch.
    dim_sem = ("parallel",) if bp >= 2048 else ("arbitrary",)

    flops = 2 * bp * (K * w1.shape[1] + w1.shape[1] * w2.shape[1]
                      + w2.shape[1] * n_pad)
    bytes_accessed = (
        bp * K * 4                                           # x (f32 in)
        + sum(a.size * a.dtype.itemsize for a in (w1, b1, w2, b2, w3, b3))
        + bp * n_pad * 4                                     # out (f32)
    )

    out = pl.pallas_call(
        mlp_kernel,
        out_shape=jax.ShapeDtypeStruct((bp, n_pad), jnp.float32),
        grid_spec=pltpu.PrefetchScalarGridSpec(
            num_scalar_prefetch=0,
            grid=grid,
            in_specs=[
                pl.BlockSpec((tb_eff, K), lambda i: (i, 0)),   # x: tiled batch
                resident(w1), resident(b1),
                resident(w2), resident(b2),
                resident(w3), resident(b3),
            ],
            out_specs=pl.BlockSpec((tb_eff, n_pad), lambda i: (i, 0)),
        ),
        compiler_params=pltpu.CompilerParams(
            dimension_semantics=dim_sem,
            # ~9 MB actual footprint at tb=512; 32 MiB leaves headroom even on
            # v7x (64 MiB physical VMEM).
            vmem_limit_bytes=32 << 20,
        ),
        cost_estimate=pl.CostEstimate(
            flops=flops, transcendentals=0, bytes_accessed=bytes_accessed),
    )(x, w1, b1, w2, b2, w3, b3)

    # Slice off batch padding and the lane padding of the last layer.
    return out[:B, :out_features]


def init_linear(key, fan_in, fan_out):
    # Mirrors PyTorch nn.Linear default init: U(-1/sqrt(fan_in), 1/sqrt(fan_in)).
    kw, kb = jax.random.split(key)
    bound = 1.0 / jnp.sqrt(fan_in)
    w = jax.random.uniform(kw, (fan_in, fan_out), jnp.float32, -bound, bound)
    b = jax.random.uniform(kb, (1, fan_out), jnp.float32, -bound, bound)
    return w, b


if __name__ == "__main__":
    key = jax.random.PRNGKey(0)
    kx, k1, k2, k3 = jax.random.split(key, 4)

    B = 256  # one full 256-row batch tile (no padding, single grid step)
    x = jax.random.normal(kx, (B, 784), jnp.float32)
    w1, b1 = init_linear(k1, 784, 1024)
    w2, b2 = init_linear(k2, 1024, 256)
    w3, b3 = init_linear(k3, 256, 10)

    # One-time parameter prep, hoisted out of the per-call forward.
    params = prepare_params(w1, b1, w2, b2, w3, b3)

    out = mlp_forward(x, *params, out_features=10)
    out = jax.block_until_ready(out)
    assert out.shape == (B, 10)

    # Reference 1: matches the kernel's bf16-input / f32-accumulate dot path.
    bf16 = jnp.bfloat16
    h1 = jnp.dot(x.astype(bf16), w1.astype(bf16),
                 preferred_element_type=jnp.float32) + b1
    h2 = jnp.dot(h1.astype(bf16), w2.astype(bf16),
                 preferred_element_type=jnp.float32) + b2
    ref = jnp.dot(h2.astype(bf16), w3.astype(bf16),
                  preferred_element_type=jnp.float32) + b3
    assert jnp.allclose(out, ref, atol=2e-2, rtol=2e-2), \
        float(jnp.max(jnp.abs(out - ref)))

    # Reference 2: the full-f32 PyTorch-equivalent forward (loose tolerance —
    # bounds the bf16-streaming error against the true f32 model).
    ref32 = ((x @ w1 + b1) @ w2 + b2) @ w3 + b3
    assert jnp.max(jnp.abs(out - ref32)) < 5e-2, \
        float(jnp.max(jnp.abs(out - ref32)))

    print("KERNEL_OK")
</pallas_src>

<mosaic_0001>
module attributes {stable_mosaic.version = 11 : i64} {
  func.func @mlp_kernel(%arg0: i32, %arg1: memref<256x784xf32, #tpu.memory_space<vmem>>, %arg2: memref<784x1024xbf16, #tpu.memory_space<vmem>>, %arg3: memref<1x1024xf32, #tpu.memory_space<vmem>>, %arg4: memref<1024x256xbf16, #tpu.memory_space<vmem>>, %arg5: memref<1x256xf32, #tpu.memory_space<vmem>>, %arg6: memref<256x128xbf16, #tpu.memory_space<vmem>>, %arg7: memref<1x128xf32, #tpu.memory_space<vmem>>, %arg8: memref<256x128xf32, #tpu.memory_space<vmem>>) attributes {dimension_semantics = [#tpu.dimension_semantics<arbitrary>], iteration_bounds = array<i64: 1>, scalar_prefetch = 0 : i64, scratch_operands = 0 : i64, tpu.core_type = #tpu.core_type<tc>, window_params = [{transform_indices = @transform_0, window_bounds = array<i64: 256, 784>}, {pipeline_mode = #tpu.pipeline_mode<synchronous>, transform_indices = @transform_1, window_bounds = array<i64: 784, 1024>}, {pipeline_mode = #tpu.pipeline_mode<synchronous>, transform_indices = @transform_2, window_bounds = array<i64: 1, 1024>}, {pipeline_mode = #tpu.pipeline_mode<synchronous>, transform_indices = @transform_3, window_bounds = array<i64: 1024, 256>}, {pipeline_mode = #tpu.pipeline_mode<synchronous>, transform_indices = @transform_4, window_bounds = array<i64: 1, 256>}, {pipeline_mode = #tpu.pipeline_mode<synchronous>, transform_indices = @transform_5, window_bounds = array<i64: 256, 128>}, {pipeline_mode = #tpu.pipeline_mode<synchronous>, transform_indices = @transform_6, window_bounds = array<i64: 1, 128>}, {transform_indices = @transform_7, window_bounds = array<i64: 256, 128>}]} {
    %c0 = arith.constant 0 : index
    %c0_0 = arith.constant 0 : index
    %0 = vector.load %arg1[%c0, %c0_0] : memref<256x784xf32, #tpu.memory_space<vmem>>, vector<256x784xf32>
    %1 = arith.truncf %0 : vector<256x784xf32> to vector<256x784xbf16>
    %c0_1 = arith.constant 0 : index
    %c0_2 = arith.constant 0 : index
    %2 = vector.load %arg2[%c0_1, %c0_2] : memref<784x1024xbf16, #tpu.memory_space<vmem>>, vector<784x1024xbf16>
    %cst = arith.constant dense<0.000000e+00> : vector<256x1024xf32>
    %3 = tpu.matmul %1, %2, %cst {dimension_numbers = #tpu.dot_dimension_numbers<[1], [0], [0], [1], [0, 0, 1, 1], [], []>} : vector<256x784xbf16>, vector<784x1024xbf16>, vector<256x1024xf32> -> vector<256x1024xf32>
    %c0_3 = arith.constant 0 : index
    %c0_4 = arith.constant 0 : index
    %4 = vector.load %arg3[%c0_3, %c0_4] : memref<1x1024xf32, #tpu.memory_space<vmem>>, vector<1x1024xf32>
    %5 = vector.broadcast %4 : vector<1x1024xf32> to vector<256x1024xf32>
    %6 = arith.addf %3, %5 : vector<256x1024xf32>
    %7 = arith.truncf %6 : vector<256x1024xf32> to vector<256x1024xbf16>
    %c0_5 = arith.constant 0 : index
    %c0_6 = arith.constant 0 : index
    %8 = vector.load %arg4[%c0_5, %c0_6] : memref<1024x256xbf16, #tpu.memory_space<vmem>>, vector<1024x256xbf16>
    %cst_7 = arith.constant dense<0.000000e+00> : vector<256x256xf32>
    %9 = tpu.matmul %7, %8, %cst_7 {dimension_numbers = #tpu.dot_dimension_numbers<[1], [0], [0], [1], [0, 0, 1, 1], [], []>} : vector<256x1024xbf16>, vector<1024x256xbf16>, vector<256x256xf32> -> vector<256x256xf32>
    %c0_8 = arith.constant 0 : index
    %c0_9 = arith.constant 0 : index
    %10 = vector.load %arg5[%c0_8, %c0_9] : memref<1x256xf32, #tpu.memory_space<vmem>>, vector<1x256xf32>
    %11 = vector.broadcast %10 : vector<1x256xf32> to vector<256x256xf32>
    %12 = arith.addf %9, %11 : vector<256x256xf32>
    %13 = arith.truncf %12 : vector<256x256xf32> to vector<256x256xbf16>
    %c0_10 = arith.constant 0 : index
    %c0_11 = arith.constant 0 : index
    %14 = vector.load %arg6[%c0_10, %c0_11] : memref<256x128xbf16, #tpu.memory_space<vmem>>, vector<256x128xbf16>
    %cst_12 = arith.constant dense<0.000000e+00> : vector<256x128xf32>
    %15 = tpu.matmul %13, %14, %cst_12 {dimension_numbers = #tpu.dot_dimension_numbers<[1], [0], [0], [1], [0, 0, 1, 1], [], []>} : vector<256x256xbf16>, vector<256x128xbf16>, vector<256x128xf32> -> vector<256x128xf32>
    %c0_13 = arith.constant 0 : index
    %c0_14 = arith.constant 0 : index
    %16 = vector.load %arg7[%c0_13, %c0_14] : memref<1x128xf32, #tpu.memory_space<vmem>>, vector<1x128xf32>
    %17 = vector.broadcast %16 : vector<1x128xf32> to vector<256x128xf32>
    %18 = arith.addf %15, %17 : vector<256x128xf32>
    %c0_15 = arith.constant 0 : index
    %c0_16 = arith.constant 0 : index
    %19 = vector.load %arg8[%c0_15, %c0_16] : memref<256x128xf32, #tpu.memory_space<vmem>>, vector<256x128xf32>
    tpu.vector_store %arg8[%c0_15, %c0_16], %18 {strides = array<i32>} : memref<256x128xf32, #tpu.memory_space<vmem>>, vector<256x128xf32>,
    return
  }
  func.func @transform_0(%arg0: i32) -> (i32, i32) {
    %c0_i32 = arith.constant 0 : i32
    %c0_i32_0 = arith.constant 0 : i32
    return %arg0, %c0_i32 : i32, i32
  }
  func.func @transform_1(%arg0: i32) -> (i32, i32) {
    %c0_i32 = arith.constant 0 : i32
    %c0_i32_0 = arith.constant 0 : i32
    %c0_i32_1 = arith.constant 0 : i32
    return %c0_i32, %c0_i32_0 : i32, i32
  }
  func.func @transform_2(%arg0: i32) -> (i32, i32) {
    %c0_i32 = arith.constant 0 : i32
    %c0_i32_0 = arith.constant 0 : i32
    %c0_i32_1 = arith.constant 0 : i32
    return %c0_i32, %c0_i32_0 : i32, i32
  }
  func.func @transform_3(%arg0: i32) -> (i32, i32) {
    %c0_i32 = arith.constant 0 : i32
    %c0_i32_0 = arith.constant 0 : i32
    %c0_i32_1 = arith.constant 0 : i32
    return %c0_i32, %c0_i32_0 : i32, i32
  }
  func.func @transform_4(%arg0: i32) -> (i32, i32) {
    %c0_i32 = arith.constant 0 : i32
    %c0_i32_0 = arith.constant 0 : i32
    %c0_i32_1 = arith.constant 0 : i32
    return %c0_i32, %c0_i32_0 : i32, i32
  }
  func.func @transform_5(%arg0: i32) -> (i32, i32) {
    %c0_i32 = arith.constant 0 : i32
    %c0_i32_0 = arith.constant 0 : i32
    %c0_i32_1 = arith.constant 0 : i32
    return %c0_i32, %c0_i32_0 : i32, i32
  }
  func.func @transform_6(%arg0: i32) -> (i32, i32) {
    %c0_i32 = arith.constant 0 : i32
    %c0_i32_0 = arith.constant 0 : i32
    %c0_i32_1 = arith.constant 0 : i32
    return %c0_i32, %c0_i32_0 : i32, i32
  }
  func.func @transform_7(%arg0: i32) -> (i32, i32) {
    %c0_i32 = arith.constant 0 : i32
    %c0_i32_0 = arith.constant 0 : i32
    return %arg0, %c0_i32 : i32, i32
  }
}

</mosaic_0001>

<bundles_post_ra>
// kernel: mlp_forward.1
= control target key start
LH: loop header
LB: loop body
LE: loop exit
PB: predicated region body
PF: predicated region fallthrough
CT: control target
= control target key end

     0   :  { %12 = vsyncpa [#allocation3], 0  ;;  %s10216_s24 = smov [#allocation2]   ;;  %s14771_s0 = inlined_call_operand.vmem [shape: f32[256,784], index: 0, kind: input, shape index: {}]   ;;  %s14772_s1 = inlined_call_operand.vmem [shape: bf16[784,1024], index: 1, kind: input, shape index: {}]   ;;  %s14773_s2 = inlined_call_operand.vmem [shape: f32[1,1024], index: 2, kind: input, shape index: {}]   ;;  %s14774_s3 = inlined_call_operand.hbm [shape: bf16[1024,256], index: 3, kind: input, shape index: {}]   ;;  %s14775_s4 = inlined_call_operand.vmem [shape: f32[1,256], index: 4, kind: input, shape index: {}]   ;;  %s14776_s5 = inlined_call_operand.vmem [shape: bf16[256,128], index: 5, kind: input, shape index: {}]   ;;  %s14777_s6 = inlined_call_operand.vmem [shape: f32[1,128], index: 6, kind: input, shape index: {}]   ;;  %s14778_s7 = inlined_call_operand.vmem [shape: f32[256,128], index: 7, kind: output, shape index: {}]  }
   0x1   :  { %s24_s25 = sshll.u32 %s10216_s24, 4  ;;  %s10192_s28 = scalar_lea.hbm %s14774_s3, 16384  ;;  %s25_s25 = int_to_ptr.vmem [resolvable:$true] %s24_s25 }
   0x2   :  { %p10193_p0 = scmp.ne.s32.totalorder %s14774_s3, %s10192_s28  ;;  %p10196_p1 = scmp.lt.u32.totalorder %s10192_s28, %s14774_s3 }
   0x4   :  { %p10198_p2 = pnand %p10196_p1, %p10193_p0 }
   0x6   :  { %10201 = shalt.err (!%p10198_p2)
}
   0x7   :  { %s10202_s10 = scalar_lea.vmem %s25_s25, 16384  ;;  %p10207_p4 = scmp.lt.s32.totalorder %s25_s25, %s25_s25 }
   0x8   :  { %p10203_p3 = scmp.ne.s32.totalorder %s25_s25, %s10202_s10  ;;  %p10208_p5 = scmp.lt.s32.totalorder %s10202_s10, %s10202_s10 }
   0xa   :  { %p10209_p6 = por %p10208_p5, %p10207_p4 }
   0xc   :  { %p10210_p7 = pnand %p10209_p6, %p10203_p3 }
   0xe   :  { %10213 = shalt.err (!%p10210_p7)
}
   0xf   :  { %s10217_s11 = smov 128   ;;  %s10218_s12 = smov 8  }
  0x10   :  { %30 = dma.hbm_to_vmem [thread:$0]  %s14774_s3, 16384, %s25_s25, [#allocation3], %s10217_s11, %s10217_s11, %s10218_s12  }
  0x11   :  { %10214 = dma.done.wait [#allocation3], 16384  }
  0x12   :  { %10215 = vsyncadd [#allocation3], 4294950912  ;;  %v377_v0 = vld [vmem:[%s14772_s1] sm:$0xff]  ;;  %v42_v54 = vld [vmem:[%s14771_s0 + $0x8] sm:$0xff]  ;;  %vm2771_vm0 = vcmask 130048  }
  0x13   :  { %v381_v1 = vld [vmem:[%s14772_s1 + $0x20] sm:$0xff]  ;;  %v44_v59 = vld [vmem:[%s14771_s0 + $0x18] sm:$0xff]  ;;  %v51_v60 = vld [vmem:[%s14771_s0 + $0x50] sm:$0xff] }
  0x14   :  { %v505_v2 = vld [vmem:[%s14772_s1 + $0x400] sm:$0xff]  ;;  %v7954_v3 = vcombine.high %v377_v0, %v381_v1  ;;  %v7953_v5 = vcombine.low %v377_v0, %v381_v1  ;;  %v10419_v63 = vpack.c.bf16 %v51_v60, %v44_v59 }
  0x15   :  { %v509_v4 = vld [vmem:[%s14772_s1 + $0x420] sm:$0xff] }
  0x16   :  { %v385_v6 = vld [vmem:[%s14772_s1 + $0x40] sm:$0xff]  ;;  %v10290_v8 = vcombine.high %v505_v2, %v509_v4  ;;  %v10292_v9 = vcombine.low %v505_v2, %v509_v4  ;;  %2820 = vmatprep.subr.bf16.mxu1 %v7954_v3  ;;  %3045 = vmatprep.mubr.bf16.mxu0 %v10419_v63 }
  0x17   :  { %v389_v7 = vld [vmem:[%s14772_s1 + $0x60] sm:$0xff]  ;;  %2821 = vmatpush1.bf16.msra.mxu1 %v7953_v5 }
  0x18   :  { %v7962_v10 = vcombine.high %v385_v6, %v389_v7  ;;  %v513_v11 = vld [vmem:[%s14772_s1 + $0x440] sm:$0xff]  ;;  %3013 = vmatprep.subr.bf16.mxu0 %v10290_v8  ;;  %v7961_v18 = vcombine.low %v385_v6, %v389_v7 }
  0x19   :  { %v517_v12 = vld [vmem:[%s14772_s1 + $0x460] sm:$0xff]  ;;  %3014 = vmatpush1.bf16.msra.mxu0 %v10292_v9 }
  0x1a   :  { %v393_v13 = vld [vmem:[%s14772_s1 + $0x80] sm:$0xff]  ;;  %v10303_v14 = vcombine.high %v513_v11, %v517_v12  ;;  %2822 = vmatprep.subr.bf16.mxu1 %v7962_v10  ;;  %v10316_v19 = vcombine.low %v513_v11, %v517_v12 }
  0x1b   :  { %v397_v15 = vld [vmem:[%s14772_s1 + $0xa0] sm:$0xff]  ;;  %2823 = vmatpush1.bf16.msra.mxu1 %v7961_v18 }
  0x1c   :  { %v521_v16 = vld [vmem:[%s14772_s1 + $0x480] sm:$0xff]  ;;  %v7970_v20 = vcombine.high %v393_v13, %v397_v15  ;;  %3015 = vmatprep.subr.bf16.mxu0 %v10303_v14  ;;  %v7969_v26 = vcombine.low %v393_v13, %v397_v15 }
  0x1d   :  { %v525_v17 = vld [vmem:[%s14772_s1 + $0x4a0] sm:$0xff]  ;;  %3016 = vmatpush1.bf16.msra.mxu0 %v10316_v19 }
  0x1e   :  { %v10319_v21 = vcombine.high %v521_v16, %v525_v17  ;;  %v401_v22 = vld [vmem:[%s14772_s1 + $0xc0] sm:$0xff]  ;;  %2824 = vmatprep.subr.bf16.mxu1 %v7970_v20  ;;  %v10334_v27 = vcombine.low %v521_v16, %v525_v17 }
  0x1f   :  { %v405_v23 = vld [vmem:[%s14772_s1 + $0xe0] sm:$0xff]  ;;  %2825 = vmatpush1.bf16.msra.mxu1 %v7969_v26 }
  0x20   :  { %v529_v24 = vld [vmem:[%s14772_s1 + $0x4c0] sm:$0xff]  ;;  %v7978_v28 = vcombine.high %v401_v22, %v405_v23  ;;  %3017 = vmatprep.subr.bf16.mxu0 %v10319_v21  ;;  %v7977_v34 = vcombine.low %v401_v22, %v405_v23 }
  0x21   :  { %v533_v25 = vld [vmem:[%s14772_s1 + $0x4e0] sm:$0xff]  ;;  %3018 = vmatpush1.bf16.msra.mxu0 %v10334_v27 }
  0x22   :  { %v10337_v29 = vcombine.high %v529_v24, %v533_v25  ;;  %v409_v30 = vld [vmem:[%s14772_s1 + $0x100] sm:$0xff]  ;;  %2826 = vmatprep.subr.bf16.mxu1 %v7978_v28  ;;  %v10352_v35 = vcombine.low %v529_v24, %v533_v25 }
  0x23   :  { %v413_v31 = vld [vmem:[%s14772_s1 + $0x120] sm:$0xff]  ;;  %2827 = vmatpush1.bf16.msra.mxu1 %v7977_v34 }
  0x24   :  { %v537_v32 = vld [vmem:[%s14772_s1 + $0x500] sm:$0xff]  ;;  %v7986_v36 = vcombine.high %v409_v30, %v413_v31  ;;  %3019 = vmatprep.subr.bf16.mxu0 %v10337_v29  ;;  %v7985_v42 = vcombine.low %v409_v30, %v413_v31 }
  0x25   :  { %v541_v33 = vld [vmem:[%s14772_s1 + $0x520] sm:$0xff]  ;;  %3020 = vmatpush1.bf16.msra.mxu0 %v10352_v35 }
  0x26   :  { %v10355_v37 = vcombine.high %v537_v32, %v541_v33  ;;  %v417_v38 = vld [vmem:[%s14772_s1 + $0x140] sm:$0xff]  ;;  %2828 = vmatprep.subr.bf16.mxu1 %v7986_v36  ;;  %v10370_v43 = vcombine.low %v537_v32, %v541_v33 }
  0x27   :  { %v421_v39 = vld [vmem:[%s14772_s1 + $0x160] sm:$0xff]  ;;  %2829 = vmatpush1.bf16.msra.mxu1 %v7985_v42 }
  0x28   :  { %v545_v40 = vld [vmem:[%s14772_s1 + $0x540] sm:$0xff]  ;;  %v7994_v44 = vcombine.high %v417_v38, %v421_v39  ;;  %3021 = vmatprep.subr.bf16.mxu0 %v10355_v37  ;;  %v7993_v50 = vcombine.low %v417_v38, %v421_v39 }
  0x29   :  { %v549_v41 = vld [vmem:[%s14772_s1 + $0x560] sm:$0xff]  ;;  %3022 = vmatpush1.bf16.msra.mxu0 %v10370_v43 }
  0x2a   :  { %v10373_v45 = vcombine.high %v545_v40, %v549_v41  ;;  %v425_v46 = vld [vmem:[%s14772_s1 + $0x180] sm:$0xff]  ;;  %2830 = vmatprep.subr.bf16.mxu1 %v7994_v44  ;;  %v10388_v51 = vcombine.low %v545_v40, %v549_v41 }
  0x2b   :  { %v429_v47 = vld [vmem:[%s14772_s1 + $0x1a0] sm:$0xff]  ;;  %2831 = vmatpush1.bf16.msra.mxu1 %v7993_v50 }
  0x2c   :  { %v553_v48 = vld [vmem:[%s14772_s1 + $0x580] sm:$0xff]  ;;  %v8002_v52 = vcombine.high %v425_v46, %v429_v47  ;;  %3023 = vmatprep.subr.bf16.mxu0 %v10373_v45  ;;  %v8001_v0 = vcombine.low %v425_v46, %v429_v47 }
  0x2d   :  { %v557_v49 = vld [vmem:[%s14772_s1 + $0x5a0] sm:$0xff]  ;;  %3024 = vmatpush1.bf16.msra.mxu0 %v10388_v51 }
  0x2e   :  { %v433_v53 = vld [vmem:[%s14772_s1 + $0x1c0] sm:$0xff]  ;;  %v10400_v56 = vcombine.high %v553_v48, %v557_v49  ;;  %2832 = vmatprep.subr.bf16.mxu1 %v8002_v52  ;;  %v10423_v1 = vcombine.low %v553_v48, %v557_v49 }
  0x2f   :  { %v49_v55 = vld [vmem:[%s14771_s0 + $0x40] sm:$0xff]  ;;  %2833 = vmatpush1.bf16.msra.mxu1 %v8001_v0 }
  0x30   :  { %v437_v57 = vld [vmem:[%s14772_s1 + $0x1e0] sm:$0xff]  ;;  %v10405_v58 = vpack.c.bf16 %v49_v55, %v42_v54  ;;  %3025 = vmatprep.subr.bf16.mxu0 %v10400_v56 }
  0x31   :  { %v561_v61 = vld [vmem:[%s14772_s1 + $0x5c0] sm:$0xff]  ;;  %v8010_v2 = vcombine.high %v433_v53, %v437_v57  ;;  %v8009_v10 = vcombine.low %v433_v53, %v437_v57  ;;  %3026 = vmatpush1.bf16.msra.mxu0 %v10423_v1 }
  0x32   :  { %15139 = vst [vmem:[#allocation5_spill] sm:$0xff] %v10405_v58  ;;  %v565_v62 = vld [vmem:[%s14772_s1 + $0x5e0] sm:$0xff]  ;;  %2852 = vmatprep.mubr.bf16.mxu1 %v10405_v58 }
  0x33   :  { %v10426_v3 = vcombine.high %v561_v61, %v565_v62  ;;  %v441_v4 = vld [vmem:[%s14772_s1 + $0x200] sm:$0xff]  ;;  %2834 = vmatprep.subr.bf16.mxu1 %v8010_v2  ;;  %v10442_v11 = vcombine.low %v561_v61, %v565_v62 }
  0x34   :  { %v445_v5 = vld [vmem:[%s14772_s1 + $0x220] sm:$0xff]  ;;  %2835 = vmatpush1.bf16.msra.mxu1 %v8009_v10 }
  0x35   :  { %v569_v6 = vld [vmem:[%s14772_s1 + $0x600] sm:$0xff]  ;;  %v8018_v12 = vcombine.high %v441_v4, %v445_v5  ;;  %3027 = vmatprep.subr.bf16.mxu0 %v10426_v3  ;;  %v8017_v20 = vcombine.low %v441_v4, %v445_v5 }
  0x36   :  { %v573_v7 = vld [vmem:[%s14772_s1 + $0x620] sm:$0xff]  ;;  %3028 = vmatpush1.bf16.msra.mxu0 %v10442_v11 }
  0x37   :  { %v10445_v13 = vcombine.high %v569_v6, %v573_v7  ;;  %v449_v15 = vld [vmem:[%s14772_s1 + $0x240] sm:$0xff]  ;;  %2836 = vmatprep.subr.bf16.mxu1 %v8018_v12  ;;  %v10460_v22 = vcombine.low %v569_v6, %v573_v7 }
  0x38   :  { %v453_v16 = vld [vmem:[%s14772_s1 + $0x260] sm:$0xff]  ;;  %2837 = vmatpush1.bf16.msra.mxu1 %v8017_v20 }
  0x39   :  { %v577_v17 = vld [vmem:[%s14772_s1 + $0x640] sm:$0xff]  ;;  %v8026_v23 = vcombine.high %v449_v15, %v453_v16  ;;  %3029 = vmatprep.subr.bf16.mxu0 %v10445_v13  ;;  %v8025_v31 = vcombine.low %v449_v15, %v453_v16 }
  0x3a   :  { %v581_v18 = vld [vmem:[%s14772_s1 + $0x660] sm:$0xff]  ;;  %3030 = vmatpush1.bf16.msra.mxu0 %v10460_v22 }
  0x3b   :  { %v10463_v24 = vcombine.high %v577_v17, %v581_v18  ;;  %v457_v25 = vld [vmem:[%s14772_s1 + $0x280] sm:$0xff]  ;;  %2838 = vmatprep.subr.bf16.mxu1 %v8026_v23  ;;  %v10478_v32 = vcombine.low %v577_v17, %v581_v18 }
  0x3c   :  { %v461_v26 = vld [vmem:[%s14772_s1 + $0x2a0] sm:$0xff]  ;;  %2839 = vmatpush1.bf16.msra.mxu1 %v8025_v31 }
  0x3d   :  { %v585_v28 = vld [vmem:[%s14772_s1 + $0x680] sm:$0xff]  ;;  %v8034_v33 = vcombine.high %v457_v25, %v461_v26  ;;  %3031 = vmatprep.subr.bf16.mxu0 %v10463_v24  ;;  %v8033_v41 = vcombine.low %v457_v25, %v461_v26 }
  0x3e   :  { %v589_v30 = vld [vmem:[%s14772_s1 + $0x6a0] sm:$0xff]  ;;  %3032 = vmatpush1.bf16.msra.mxu0 %v10478_v32 }
  0x3f   :  { %v10481_v34 = vcombine.high %v585_v28, %v589_v30  ;;  %v465_v36 = vld [vmem:[%s14772_s1 + $0x2c0] sm:$0xff]  ;;  %2840 = vmatprep.subr.bf16.mxu1 %v8034_v33  ;;  %v10496_v42 = vcombine.low %v585_v28, %v589_v30 }
  0x40   :  { %v469_v38 = vld [vmem:[%s14772_s1 + $0x2e0] sm:$0xff]  ;;  %2841 = vmatpush1.bf16.msra.mxu1 %v8033_v41 }
  0x41   :  { %v593_v39 = vld [vmem:[%s14772_s1 + $0x6c0] sm:$0xff]  ;;  %v8042_v44 = vcombine.high %v465_v36, %v469_v38  ;;  %3033 = vmatprep.subr.bf16.mxu0 %v10481_v34  ;;  %v8041_v52 = vcombine.low %v465_v36, %v469_v38 }
  0x42   :  { %v597_v40 = vld [vmem:[%s14772_s1 + $0x6e0] sm:$0xff]  ;;  %3034 = vmatpush1.bf16.msra.mxu0 %v10496_v42 }
  0x43   :  { %v10499_v46 = vcombine.high %v593_v39, %v597_v40  ;;  %v473_v47 = vld [vmem:[%s14772_s1 + $0x300] sm:$0xff]  ;;  %2842 = vmatprep.subr.bf16.mxu1 %v8042_v44  ;;  %v10514_v53 = vcombine.low %v593_v39, %v597_v40  ;;  %v48_v40 = vld [vmem:[%s14771_s0 + $0x38] sm:$0xff]  ;;  %v43_v44 = vld [vmem:[%s14771_s0 + $0x10] sm:$0xff] }
  0x44   :  { %v477_v48 = vld [vmem:[%s14772_s1 + $0x320] sm:$0xff]  ;;  %2843 = vmatpush1.bf16.msra.mxu1 %v8041_v52  ;;  %v63_v52 = vld [vmem:[%s14771_s0 + $0xb0] sm:$0xff] }
  0x45   :  { %v601_v49 = vld [vmem:[%s14772_s1 + $0x700] sm:$0xff]  ;;  %v8050_v54 = vcombine.high %v473_v47, %v477_v48  ;;  %3035 = vmatprep.subr.bf16.mxu0 %v10499_v46  ;;  %v8049_v62 = vcombine.low %v473_v47, %v477_v48  ;;  %v50_v47 = vld [vmem:[%s14771_s0 + $0x48] sm:$0xff] }
  0x46   :  { %v605_v50 = vld [vmem:[%s14772_s1 + $0x720] sm:$0xff]  ;;  %3036 = vmatpush1.bf16.msra.mxu0 %v10514_v53 }
  0x47   :  { %v10517_v55 = vcombine.high %v601_v49, %v605_v50  ;;  %v481_v57 = vld [vmem:[%s14772_s1 + $0x340] sm:$0xff]  ;;  %2844 = vmatprep.subr.bf16.mxu1 %v8050_v54  ;;  %v10532_v0 = vcombine.low %v601_v49, %v605_v50  ;;  %v56_v50 = vld [vmem:[%s14771_s0 + $0x78] sm:$0xff] }
  0x48   :  { %v485_v59 = vld [vmem:[%s14772_s1 + $0x360] sm:$0xff]  ;;  %2845 = vmatpush1.bf16.msra.mxu1 %v8049_v62 }
  0x49   :  { %v609_v60 = vld [vmem:[%s14772_s1 + $0x740] sm:$0xff]  ;;  %v8058_v2 = vcombine.high %v481_v57, %v485_v59  ;;  %3037 = vmatprep.subr.bf16.mxu0 %v10517_v55  ;;  %v8057_v12 = vcombine.low %v481_v57, %v485_v59  ;;  %v58_v59 = vld [vmem:[%s14771_s0 + $0x88] sm:$0xff] }
  0x4a   :  { %v613_v61 = vld [vmem:[%s14772_s1 + $0x760] sm:$0xff]  ;;  %3038 = vmatpush1.bf16.msra.mxu0 %v10532_v0 }
  0x4b   :  { %v10535_v4 = vcombine.high %v609_v60, %v613_v61  ;;  %v489_v5 = vld [vmem:[%s14772_s1 + $0x380] sm:$0xff]  ;;  %2846 = vmatprep.subr.bf16.mxu1 %v8058_v2  ;;  %v10550_v15 = vcombine.low %v609_v60, %v613_v61  ;;  %v10615_v61 = vpack.c.bf16 %v50_v47, %v43_v44  ;;  %v10619_v2 = vpack.c.bf16 %v63_v52, %v56_v50  ;;  %v71_v50 = vld [vmem:[%s14771_s0 + $0xf0] sm:$0xff]  ;;  %v78_v52 = vld [vmem:[%s14771_s0 + $0x128] sm:$0xff] }
  0x4c   :  { %v493_v6 = vld [vmem:[%s14772_s1 + $0x3a0] sm:$0xff]  ;;  %2847 = vmatpush1.bf16.msra.mxu1 %v8057_v12  ;;  %v62_v12 = vld [vmem:[%s14771_s0 + $0xa8] sm:$0xff] }
  0x4d   :  { %v617_v7 = vld [vmem:[%s14772_s1 + $0x780] sm:$0xff]  ;;  %v8066_v16 = vcombine.high %v489_v5, %v493_v6  ;;  %3039 = vmatprep.subr.bf16.mxu0 %v10535_v4  ;;  %v8065_v26 = vcombine.low %v489_v5, %v493_v6  ;;  %15141 = vst [vmem:[#allocation7_spill] sm:$0xff] %v10619_v2 }
  0x4e   :  { %v621_v10 = vld [vmem:[%s14772_s1 + $0x7a0] sm:$0xff]  ;;  %3040 = vmatpush1.bf16.msra.mxu0 %v10550_v15 }
  0x4f   :  { %v10553_v17 = vcombine.high %v617_v7, %v621_v10  ;;  %v497_v18 = vld [vmem:[%s14772_s1 + $0x3c0] sm:$0xff]  ;;  %2848 = vmatprep.subr.bf16.mxu1 %v8066_v16  ;;  %v10568_v28 = vcombine.low %v617_v7, %v621_v10 }
  0x50   :  { %v501_v20 = vld [vmem:[%s14772_s1 + $0x3e0] sm:$0xff]  ;;  %2849 = vmatpush1.bf16.msra.mxu1 %v8065_v26  ;;  %v72_v26 = vld [vmem:[%s14771_s0 + $0xf8] sm:$0xff] }
  0x51   :  { %v625_v23 = vld [vmem:[%s14772_s1 + $0x7c0] sm:$0xff]  ;;  %v8074_v30 = vcombine.high %v497_v18, %v501_v20  ;;  %3041 = vmatprep.subr.bf16.mxu0 %v10553_v17  ;;  %v8073_v38 = vcombine.low %v497_v18, %v501_v20  ;;  %v70_v20 = vld [vmem:[%s14771_s0 + $0xe8] sm:$0xff] }
  0x52   :  { %v629_v25 = vld [vmem:[%s14772_s1 + $0x7e0] sm:$0xff]  ;;  %3042 = vmatpush1.bf16.msra.mxu0 %v10568_v28 }
  0x53   :  { %v10571_v31 = vcombine.high %v625_v23, %v629_v25  ;;  %v633_v33 = vld [vmem:[%s14772_s1 + $0x800] sm:$0xff]  ;;  %2850 = vmatprep.subr.bf16.mxu1 %v8074_v30  ;;  %v10586_v41 = vcombine.low %v625_v23, %v629_v25  ;;  %v79_v30 = vld [vmem:[%s14771_s0 + $0x130] sm:$0xff] }
  0x54   :  { %v637_v36 = vld [vmem:[%s14772_s1 + $0x820] sm:$0xff]  ;;  %2851 = vmatpush1.bf16.msra.mxu1 %v8073_v38  ;;  %v10672_v47 = vpack.c.bf16 %v79_v30, %v72_v26  ;;  %v83_v30 = vld [vmem:[%s14771_s0 + $0x150] sm:$0xff] }
  0x55   :  { %v41_v39 = vld [vmem:[%s14771_s0] sm:$0xff]  ;;  %3043 = vmatprep.subr.bf16.mxu0 %v10571_v31  ;;  %v8210_v48 = vcombine.high %v633_v33, %v637_v36  ;;  %8666 = vmatprep.subr.bf16.mxu1 %v10290_v8  ;;  %v8209_v62 = vcombine.low %v633_v33, %v637_v36  ;;  %v55_v8 = vld [vmem:[%s14771_s0 + $0x70] sm:$0xff] }
  0x56   :  { %v641_v49 = vld [vmem:[%s14772_s1 + $0x840] sm:$0xff]  ;;  %v10604_v54 = vpack.c.bf16 %v48_v40, %v41_v39  ;;  %3044 = vmatpush1.bf16.msra.mxu0 %v10586_v41  ;;  %v10658_v33 = vpack.c.bf16 %v62_v12, %v55_v8  ;;  %15146 = vst [vmem:[#allocation12_spill] sm:$0xff] %v10672_v47 }
  0x57   :  { %v645_v57 = vld [vmem:[%s14772_s1 + $0x860] sm:$0xff]  ;;  %3206 = vmatprep.subr.bf16.mxu0 %v8210_v48 }
  0x58   :  { %15140 = vst [vmem:[#allocation6_spill] sm:$0xff] %v10604_v54  ;;  %v65_v60 = vld [vmem:[%s14771_s0 + $0xc0] sm:$0xff]  ;;  %v8218_v5 = vcombine.high %v641_v49, %v645_v57  ;;  %2853 = vmatmul.mubr.bf16.vlgmr.msra.gmra.mrb[0].mxu1 %v10604_v54  ;;  %v8217_v18 = vcombine.low %v641_v49, %v645_v57  ;;  %15143 = vst [vmem:[#allocation9_spill] sm:$0xff] %v10658_v33  ;;  %v84_v57 = vld [vmem:[%s14771_s0 + $0x158] sm:$0xff] }
  0x59   :  { %v10621_v6 = vpack.c.bf16 %v65_v60, %v58_v59  ;;  %v649_v7 = vld [vmem:[%s14772_s1 + $0x880] sm:$0xff]  ;;  %3046 = vmatmul.mubr.bf16.vlgmr.msra.gmra.mrb[0].mxu0 %v10615_v61  ;;  %8682 = vmatpush1.bf16.msra.mxu1 %v10292_v9  ;;  %v64_v9 = vld [vmem:[%s14771_s0 + $0xb8] sm:$0xff]  ;;  %v91_v60 = vld [vmem:[%s14771_s0 + $0x190] sm:$0xff] }
  0x5a   :  { %v653_v10 = vld [vmem:[%s14772_s1 + $0x8a0] sm:$0xff]  ;;  %3207 = vmatpush1.bf16.msra.mxu0 %v8209_v62  ;;  %2862 = vmatprep.mubr.bf16.mxu1 %v10619_v2  ;;  %v10706_v62 = vld [vmem:[%s14772_s1 + $0x8] sm:$0xff] }
  0x5b   :  { %15142 = vst [vmem:[#allocation8_spill] sm:$0xff] %v10621_v6  ;;  %v57_v16 = vld [vmem:[%s14771_s0 + $0x80] sm:$0xff]  ;;  %3208 = vmatprep.subr.bf16.mxu0 %v8218_v5  ;;  %3055 = vmatprep.mubr.bf16.mxu0 %v10621_v6  ;;  %v8226_v25 = vcombine.high %v649_v7, %v653_v10  ;;  %v8225_v44 = vcombine.low %v649_v7, %v653_v10  ;;  %v10711_v5 = vld [vmem:[%s14772_s1 + $0x28] sm:$0xff] }
  0x5c   :  { %v77_v23 = vld [vmem:[%s14771_s0 + $0x120] sm:$0xff]  ;;  %8667 = vmatprep.subr.bf16.mxu1 %v10303_v14  ;;  %v10667_v39 = vpack.c.bf16 %v64_v9, %v57_v16  ;;  %v86_v10 = vld [vmem:[%s14771_s0 + $0x168] sm:$0xff]  ;;  %v10731_v9 = vpack.c.bf16 %v78_v52, %v71_v50  ;;  %v100_v50 = vld [vmem:[%s14771_s0 + $0x1d8] sm:$0xff] }
  0x5d   :  { %v657_v36 = vld [vmem:[%s14772_s1 + $0x8c0] sm:$0xff]  ;;  %8683 = vmatpush1.bf16.msra.mxu1 %v10316_v19  ;;  %v10670_v40 = vpack.c.bf16 %v77_v23, %v70_v20  ;;  %v76_v19 = vld [vmem:[%s14771_s0 + $0x118] sm:$0xff]  ;;  %v10733_v20 = vpack.c.bf16 %v91_v60, %v84_v57  ;;  %v107_v52 = vld [vmem:[%s14771_s0 + $0x210] sm:$0xff] }
  0x5e   :  { %v661_v38 = vld [vmem:[%s14772_s1 + $0x8e0] sm:$0xff]  ;;  %15144 = vst [vmem:[#allocation10_spill] sm:$0xff] %v10667_v39  ;;  %3209 = vmatpush1.bf16.msra.mxu0 %v8217_v18  ;;  %8668 = vmatprep.subr.bf16.mxu1 %v10319_v21 }
  0x5f   :  { %15145 = vst [vmem:[#allocation11_spill] sm:$0xff] %v10670_v40  ;;  %3210 = vmatprep.subr.bf16.mxu0 %v8226_v25  ;;  %v8234_v14 = vcombine.high %v657_v36, %v661_v38  ;;  %v69_v48 = vld [vmem:[%s14771_s0 + $0xe0] sm:$0xff]  ;;  %v8233_v59 = vcombine.low %v657_v36, %v661_v38  ;;  %15148 = vst [vmem:[#allocation14_spill] sm:$0xff] %v10733_v20 }
  0x60   :  { %2863 = vmatmul.mubr.bf16.gmra.mrb[4].mxu1 %v10658_v33  ;;  %v665_v49 = vld [vmem:[%s14772_s1 + $0x900] sm:$0xff]  ;;  %v10722_v16 = vpack.c.bf16 %v76_v19, %v69_v48  ;;  %v98_v19 = vld [vmem:[%s14771_s0 + $0x1c8] sm:$0xff] }
  0x61   :  { %v669_v21 = vld [vmem:[%s14772_s1 + $0x920] sm:$0xff]  ;;  %3056 = vmatmul.mubr.bf16.gmra.mrb[4].mxu0 %v10667_v39  ;;  %2872 = vmatprep.mubr.bf16.mxu1 %v10670_v40 }
  0x62   :  { %3211 = vmatpush1.bf16.msra.mxu0 %v8225_v44  ;;  %3065 = vmatprep.mubr.bf16.mxu0 %v10672_v47  ;;  %v8242_v7 = vcombine.high %v665_v49, %v669_v21  ;;  %v93_v8 = vld [vmem:[%s14771_s0 + $0x1a0] sm:$0xff]  ;;  %15147 = vst [vmem:[#allocation13_spill] sm:$0xff] %v10722_v16  ;;  %v8241_v23 = vcombine.low %v665_v49, %v669_v21  ;;  %v92_v44 = vld [vmem:[%s14771_s0 + $0x198] sm:$0xff] }
  0x63   :  { %3212 = vmatprep.subr.bf16.mxu0 %v8234_v14  ;;  %8684 = vmatpush1.bf16.msra.mxu1 %v10334_v27  ;;  %v673_v18 = vld [vmem:[%s14772_s1 + $0x940] sm:$0xff]  ;;  %v10735_v25 = vpack.c.bf16 %v93_v8, %v86_v10  ;;  %v10787_v10 = vpack.c.bf16 %v107_v52, %v100_v50  ;;  %v111_v50 = vld [vmem:[%s14771_s0 + $0x230] sm:$0xff] }
  0x64   :  { %v677_v27 = vld [vmem:[%s14772_s1 + $0x960] sm:$0xff]  ;;  %8669 = vmatprep.subr.bf16.mxu1 %v10337_v29 }
  0x65   :  { %15149 = vst [vmem:[#allocation15_spill] sm:$0xff] %v10735_v25  ;;  %v8250_v26 = vcombine.high %v673_v18, %v677_v27  ;;  %v681_v29 = vld [vmem:[%s14772_s1 + $0x980] sm:$0xff]  ;;  %v8249_v14 = vcombine.low %v673_v18, %v677_v27  ;;  %15153 = vst [vmem:[#allocation19_spill] sm:$0xff] %v10787_v10  ;;  %v99_v27 = vld [vmem:[%s14771_s0 + $0x1d0] sm:$0xff] }
  0x66   :  { %3213 = vmatpush1.bf16.msra.mxu0 %v8233_v59  ;;  %v685_v36 = vld [vmem:[%s14772_s1 + $0x9a0] sm:$0xff] }
  0x67   :  { %3214 = vmatprep.subr.bf16.mxu0 %v8242_v7  ;;  %8685 = vmatpush1.bf16.msra.mxu1 %v10352_v35  ;;  %v90_v35 = vld [vmem:[%s14771_s0 + $0x188] sm:$0xff]  ;;  %v85_v38 = vld [vmem:[%s14771_s0 + $0x160] sm:$0xff]  ;;  %v8258_v21 = vcombine.high %v681_v29, %v685_v36  ;;  %v8257_v7 = vcombine.low %v681_v29, %v685_v36 }
  0x68   :  { %2873 = vmatmul.mubr.bf16.gmra.mrb[8].mxu1 %v10722_v16  ;;  %8670 = vmatprep.subr.bf16.mxu1 %v10355_v37  ;;  %v689_v37 = vld [vmem:[%s14772_s1 + $0x9c0] sm:$0xff]  ;;  %v10780_v57 = vpack.c.bf16 %v90_v35, %v83_v30  ;;  %v10783_v59 = vpack.c.bf16 %v92_v44, %v85_v38  ;;  %v119_v30 = vld [vmem:[%s14771_s0 + $0x270] sm:$0xff]  ;;  %v114_v29 = vld [vmem:[%s14771_s0 + $0x248] sm:$0xff] }
  0x69   :  { %3066 = vmatmul.mubr.bf16.gmra.mrb[8].mxu0 %v10731_v9  ;;  %2882 = vmatprep.mubr.bf16.mxu1 %v10733_v20  ;;  %v693_v48 = vld [vmem:[%s14772_s1 + $0x9e0] sm:$0xff] }
  0x6a   :  { %3215 = vmatpush1.bf16.msra.mxu0 %v8241_v23  ;;  %3075 = vmatprep.mubr.bf16.mxu0 %v10735_v25  ;;  %v105_v49 = vld [vmem:[%s14771_s0 + $0x200] sm:$0xff]  ;;  %15150 = vst [vmem:[#allocation16_spill] sm:$0xff] %v10780_v57  ;;  %15151 = vst [vmem:[#allocation17_spill] sm:$0xff] %v10783_v59  ;;  %v8266_v8 = vcombine.high %v689_v37, %v693_v48  ;;  %v106_v23 = vld [vmem:[%s14771_s0 + $0x208] sm:$0xff]  ;;  %v8265_v36 = vcombine.low %v689_v37, %v693_v48 }
  0x6b   :  { %3216 = vmatprep.subr.bf16.mxu0 %v8250_v26  ;;  %8686 = vmatpush1.bf16.msra.mxu1 %v10370_v43  ;;  %v10785_v60 = vpack.c.bf16 %v105_v49, %v98_v19  ;;  %v97_v18 = vld [vmem:[%s14771_s0 + $0x1c0] sm:$0xff]  ;;  %v104_v43 = vld [vmem:[%s14771_s0 + $0x1f8] sm:$0xff]  ;;  %v10835_v37 = vpack.c.bf16 %v106_v23, %v99_v27 }
  0x6c   :  { %8671 = vmatprep.subr.bf16.mxu1 %v10373_v45  ;;  %v697_v45 = vld [vmem:[%s14772_s1 + $0xa00] sm:$0xff] }
  0x6d   :  { %15152 = vst [vmem:[#allocation18_spill] sm:$0xff] %v10785_v60  ;;  %v701_v26 = vld [vmem:[%s14772_s1 + $0xa20] sm:$0xff]  ;;  %15155 = vst [vmem:[#allocation21_spill] sm:$0xff] %v10835_v37 }
  0x6e   :  { %3217 = vmatpush1.bf16.msra.mxu0 %v8249_v14  ;;  %v709_v35 = vld [vmem:[%s14772_s1 + $0xa60] sm:$0xff]  ;;  %v8274_v44 = vcombine.high %v697_v45, %v701_v26  ;;  %v10832_v14 = vpack.c.bf16 %v104_v43, %v97_v18  ;;  %v8273_v19 = vcombine.low %v697_v45, %v701_v26  ;;  %v126_v18 = vld [vmem:[%s14771_s0 + $0x2a8] sm:$0xff]  ;;  %v135_v45 = vld [vmem:[%s14771_s0 + $0x2f0] sm:$0xff] }
  0x6f   :  { %3218 = vmatprep.subr.bf16.mxu0 %v8258_v21  ;;  %8687 = vmatpush1.bf16.msra.mxu1 %v10388_v51  ;;  %v112_v51 = vld [vmem:[%s14771_s0 + $0x238] sm:$0xff]  ;;  %v121_v38 = vld [vmem:[%s14771_s0 + $0x280] sm:$0xff] }
  0x70   :  { %2883 = vmatmul.mubr.bf16.gmra.mrb[12].mxu1 %v10780_v57  ;;  %8672 = vmatprep.subr.bf16.mxu1 %v10400_v56  ;;  %v705_v56 = vld [vmem:[%s14772_s1 + $0xa40] sm:$0xff]  ;;  %15154 = vst [vmem:[#allocation20_spill] sm:$0xff] %v10832_v14  ;;  %v10837_v48 = vpack.c.bf16 %v119_v30, %v112_v51  ;;  %v10839_v49 = vpack.c.bf16 %v121_v38, %v114_v29 }
  0x71   :  { %3076 = vmatmul.mubr.bf16.gmra.mrb[12].mxu0 %v10783_v59  ;;  %2892 = vmatprep.mubr.bf16.mxu1 %v10785_v60  ;;  %v8282_v21 = vcombine.high %v705_v56, %v709_v35  ;;  %v717_v52 = vld [vmem:[%s14772_s1 + $0xaa0] sm:$0xff]  ;;  %v8281_v27 = vcombine.low %v705_v56, %v709_v35 }
  0x72   :  { %3219 = vmatpush1.bf16.msra.mxu0 %v8257_v7  ;;  %3085 = vmatprep.mubr.bf16.mxu0 %v10787_v10  ;;  %15156 = vst [vmem:[#allocation22_spill] sm:$0xff] %v10837_v48  ;;  %15157 = vst [vmem:[#allocation23_spill] sm:$0xff] %v10839_v49  ;;  %v113_v7 = vld [vmem:[%s14771_s0 + $0x240] sm:$0xff] }
  0x73   :  { %3220 = vmatprep.subr.bf16.mxu0 %v8266_v8  ;;  %8688 = vmatpush1.bf16.msra.mxu1 %v10423_v1  ;;  %v118_v1 = vld [vmem:[%s14771_s0 + $0x268] sm:$0xff]  ;;  %v120_v8 = vld [vmem:[%s14771_s0 + $0x278] sm:$0xff]  ;;  %v133_v43 = vld [vmem:[%s14771_s0 + $0x2e0] sm:$0xff] }
  0x74   :  { %8673 = vmatprep.subr.bf16.mxu1 %v10426_v3  ;;  %v713_v3 = vld [vmem:[%s14772_s1 + $0xa80] sm:$0xff]  ;;  %v10884_v51 = vpack.c.bf16 %v118_v1, %v111_v50  ;;  %v10887_v30 = vpack.c.bf16 %v120_v8, %v113_v7  ;;  %v10889_v29 = vpack.c.bf16 %v133_v43, %v126_v18  ;;  %v140_v50 = vld [vmem:[%s14771_s0 + $0x318] sm:$0xff]  ;;  %v147_v1 = vld [vmem:[%s14771_s0 + $0x350] sm:$0xff] }
  0x75   :  { %v725_v23 = vld [vmem:[%s14772_s1 + $0xae0] sm:$0xff]  ;;  %v8290_v26 = vcombine.high %v713_v3, %v717_v52 }
  0x76   :  { %3221 = vmatpush1.bf16.msra.mxu0 %v8265_v36  ;;  %15158 = vst [vmem:[#allocation24_spill] sm:$0xff] %v10884_v51  ;;  %15159 = vst [vmem:[#allocation25_spill] sm:$0xff] %v10887_v30  ;;  %v8289_v36 = vcombine.low %v713_v3, %v717_v52  ;;  %v125_v38 = vld [vmem:[%s14771_s0 + $0x2a0] sm:$0xff] }
  0x77   :  { %3222 = vmatprep.subr.bf16.mxu0 %v8274_v44  ;;  %8689 = vmatpush1.bf16.msra.mxu1 %v10442_v11  ;;  %v128_v11 = vld [vmem:[%s14771_s0 + $0x2b8] sm:$0xff]  ;;  %15160 = vst [vmem:[#allocation26_spill] sm:$0xff] %v10889_v29  ;;  %v733_v44 = vld [vmem:[%s14772_s1 + $0xb20] sm:$0xff] }
  0x78   :  { %2893 = vmatmul.mubr.bf16.gmra.mrb[16].mxu1 %v10832_v14  ;;  %8674 = vmatprep.subr.bf16.mxu1 %v10445_v13  ;;  %v721_v13 = vld [vmem:[%s14772_s1 + $0xac0] sm:$0xff]  ;;  %v10891_v56 = vpack.c.bf16 %v135_v45, %v128_v11  ;;  %v10941_v11 = vpack.c.bf16 %v147_v1, %v140_v50 }
  0x79   :  { %3086 = vmatmul.mubr.bf16.gmra.mrb[16].mxu0 %v10835_v37  ;;  %2902 = vmatprep.mubr.bf16.mxu1 %v10837_v48  ;;  %v8298_v35 = vcombine.high %v721_v13, %v725_v23  ;;  %v149_v3 = vld [vmem:[%s14771_s0 + $0x360] sm:$0xff]  ;;  %v8297_v52 = vcombine.low %v721_v13, %v725_v23  ;;  %v139_v23 = vld [vmem:[%s14771_s0 + $0x310] sm:$0xff] }
  0x7a   :  { %3223 = vmatpush1.bf16.msra.mxu0 %v8273_v19  ;;  %3095 = vmatprep.mubr.bf16.mxu0 %v10839_v49  ;;  %15161 = vst [vmem:[#allocation27_spill] sm:$0xff] %v10891_v56  ;;  %v127_v19 = vld [vmem:[%s14771_s0 + $0x2b0] sm:$0xff]  ;;  %v741_v7 = vld [vmem:[%s14772_s1 + $0xb60] sm:$0xff]  ;;  %15164 = vst [vmem:[#allocation30_spill] sm:$0xff] %v10941_v11 }
  0x7b   :  { %3224 = vmatprep.subr.bf16.mxu0 %v8282_v21  ;;  %8690 = vmatpush1.bf16.msra.mxu1 %v10460_v22  ;;  %v132_v22 = vld [vmem:[%s14771_s0 + $0x2d8] sm:$0xff]  ;;  %v134_v21 = vld [vmem:[%s14771_s0 + $0x2e8] sm:$0xff] }
  0x7c   :  { %8675 = vmatprep.subr.bf16.mxu1 %v10463_v24  ;;  %v729_v24 = vld [vmem:[%s14772_s1 + $0xb00] sm:$0xff]  ;;  %v10936_v18 = vpack.c.bf16 %v132_v22, %v125_v38  ;;  %v10939_v43 = vpack.c.bf16 %v134_v21, %v127_v19  ;;  %v154_v38 = vld [vmem:[%s14771_s0 + $0x388] sm:$0xff] }
  0x7d   :  { %v8306_v8 = vcombine.high %v729_v24, %v733_v44  ;;  %v8305_v45 = vcombine.low %v729_v24, %v733_v44  ;;  %v161_v22 = vld [vmem:[%s14771_s0 + $0x3c0] sm:$0xff] }
  0x7e   :  { %3225 = vmatpush1.bf16.msra.mxu0 %v8281_v27  ;;  %15162 = vst [vmem:[#allocation28_spill] sm:$0xff] %v10936_v18  ;;  %15163 = vst [vmem:[#allocation29_spill] sm:$0xff] %v10939_v43  ;;  %v53_v24 = vld [vmem:[%s14771_s0 + $0x60] sm:$0xff] }
  0x7f   :  { %3226 = vmatprep.subr.bf16.mxu0 %v8290_v26  ;;  %8691 = vmatpush1.bf16.msra.mxu1 %v10478_v32  ;;  %v142_v32 = vld [vmem:[%s14771_s0 + $0x328] sm:$0xff]  ;;  %v749_v26 = vld [vmem:[%s14772_s1 + $0xba0] sm:$0xff] }
  0x80   :  { %2903 = vmatmul.mubr.bf16.gmra.mrb[20].mxu1 %v10884_v51  ;;  %8676 = vmatprep.subr.bf16.mxu1 %v10481_v34  ;;  %v737_v34 = vld [vmem:[%s14772_s1 + $0xb40] sm:$0xff]  ;;  %v10943_v27 = vpack.c.bf16 %v149_v3, %v142_v32  ;;  %v10993_v32 = vpack.c.bf16 %v161_v22, %v154_v38 }
  0x81   :  { %3096 = vmatmul.mubr.bf16.gmra.mrb[20].mxu0 %v10887_v30  ;;  %2912 = vmatprep.mubr.bf16.mxu1 %v10889_v29  ;;  %v8314_v13 = vcombine.high %v737_v34, %v741_v7  ;;  %v8313_v44 = vcombine.low %v737_v34, %v741_v7  ;;  %v757_v19 = vld [vmem:[%s14772_s1 + $0xbe0] sm:$0xff] }
  0x82   :  { %3227 = vmatpush1.bf16.msra.mxu0 %v8289_v36  ;;  %3105 = vmatprep.mubr.bf16.mxu0 %v10891_v56  ;;  %15165 = vst [vmem:[#allocation31_spill] sm:$0xff] %v10943_v27  ;;  %v141_v36 = vld [vmem:[%s14771_s0 + $0x320] sm:$0xff]  ;;  %15168 = vst [vmem:[#allocation34_spill] sm:$0xff] %v10993_v32 }
  0x83   :  { %3228 = vmatprep.subr.bf16.mxu0 %v8298_v35  ;;  %8692 = vmatpush1.bf16.msra.mxu1 %v10496_v42  ;;  %v146_v42 = vld [vmem:[%s14771_s0 + $0x348] sm:$0xff]  ;;  %v148_v35 = vld [vmem:[%s14771_s0 + $0x358] sm:$0xff]  ;;  %v153_v7 = vld [vmem:[%s14771_s0 + $0x380] sm:$0xff] }
  0x84   :  { %8677 = vmatprep.subr.bf16.mxu1 %v10499_v46  ;;  %v745_v46 = vld [vmem:[%s14772_s1 + $0xb80] sm:$0xff]  ;;  %v10988_v50 = vpack.c.bf16 %v146_v42, %v139_v23  ;;  %v10991_v1 = vpack.c.bf16 %v148_v35, %v141_v36  ;;  %v60_v42 = vld [vmem:[%s14771_s0 + $0x98] sm:$0xff]  ;;  %v7956_v35 = vcombine.high %v10706_v62, %v10711_v5 }
  0x85   :  { %v8322_v21 = vcombine.high %v745_v46, %v749_v26  ;;  %v8321_v3 = vcombine.low %v745_v46, %v749_v26  ;;  %v765_v23 = vld [vmem:[%s14772_s1 + $0xc20] sm:$0xff]  ;;  %v67_v46 = vld [vmem:[%s14771_s0 + $0xd0] sm:$0xff] }
  0x86   :  { %3229 = vmatpush1.bf16.msra.mxu0 %v8297_v52  ;;  %15166 = vst [vmem:[#allocation32_spill] sm:$0xff] %v10988_v50  ;;  %15167 = vst [vmem:[#allocation33_spill] sm:$0xff] %v10991_v1 }
  0x87   :  { %3230 = vmatprep.subr.bf16.mxu0 %v8306_v8  ;;  %8693 = vmatpush1.bf16.msra.mxu1 %v10514_v53  ;;  %v46_v53 = vld [vmem:[%s14771_s0 + $0x28] sm:$0xff]  ;;  %v45_v8 = vld [vmem:[%s14771_s0 + $0x20] sm:$0xff] }
  0x88   :  { %2913 = vmatmul.mubr.bf16.gmra.mrb[24].mxu1 %v10936_v18  ;;  %8678 = vmatprep.subr.bf16.mxu1 %v10517_v55  ;;  %v753_v55 = vld [vmem:[%s14772_s1 + $0xbc0] sm:$0xff]  ;;  %v10995_v52 = vpack.c.bf16 %v53_v24, %v46_v53  ;;  %v11043_v53 = vpack.c.bf16 %v67_v46, %v60_v42  ;;  %v203_v42 = vld [vmem:[%s14771_s0 + $0x510] sm:$0xff]  ;;  %v88_v46 = vld [vmem:[%s14771_s0 + $0x178] sm:$0xff] }
  0x89   :  { %3106 = vmatmul.mubr.bf16.gmra.mrb[24].mxu0 %v10939_v43  ;;  %2922 = vmatprep.mubr.bf16.mxu1 %v10941_v11  ;;  %v8330_v34 = vcombine.high %v753_v55, %v757_v19  ;;  %v8329_v26 = vcombine.low %v753_v55, %v757_v19  ;;  %v66_v55 = vld [vmem:[%s14771_s0 + $0xc8] sm:$0xff]  ;;  %v189_v19 = vld [vmem:[%s14771_s0 + $0x4a0] sm:$0xff] }
  0x8a   :  { %3231 = vmatpush1.bf16.msra.mxu0 %v8305_v45  ;;  %3115 = vmatprep.mubr.bf16.mxu0 %v10943_v27  ;;  %15169 = vst [vmem:[#allocation35_spill] sm:$0xff] %v10995_v52  ;;  %v52_v45 = vld [vmem:[%s14771_s0 + $0x58] sm:$0xff]  ;;  %15173 = vst [vmem:[#allocation39_spill] sm:$0xff] %v11043_v53  ;;  %v398_v27 = vld [vmem:[%s14772_s1 + $0xa8] sm:$0xff] }
  0x8b   :  { %3232 = vmatprep.subr.bf16.mxu0 %v8314_v13  ;;  %8694 = vmatpush1.bf16.msra.mxu1 %v10532_v0  ;;  %v160_v0 = vld [vmem:[%s14771_s0 + $0x3b8] sm:$0xff]  ;;  %v11039_v38 = vpack.c.bf16 %v52_v45, %v45_v8  ;;  %v181_v8 = vld [vmem:[%s14771_s0 + $0x460] sm:$0xff] }
  0x8c   :  { %8679 = vmatprep.subr.bf16.mxu1 %v10535_v4  ;;  %v761_v4 = vld [vmem:[%s14772_s1 + $0xc00] sm:$0xff]  ;;  %v168_v13 = vld [vmem:[%s14771_s0 + $0x3f8] sm:$0xff]  ;;  %v11034_v36 = vpack.c.bf16 %v160_v0, %v153_v7 }
  0x8d   :  { %15171 = vst [vmem:[#allocation37_spill] sm:$0xff] %v11039_v38  ;;  %v8337_v24 = vcombine.low %v761_v4, %v765_v23  ;;  %v188_v45 = vld [vmem:[%s14771_s0 + $0x498] sm:$0xff] }
  0x8e   :  { %3233 = vmatpush1.bf16.msra.mxu0 %v8313_v44  ;;  %15170 = vst [vmem:[#allocation36_spill] sm:$0xff] %v11034_v36  ;;  %v174_v44 = vld [vmem:[%s14771_s0 + $0x428] sm:$0xff] }
  0x8f   :  { %3234 = vmatprep.subr.bf16.mxu0 %v8322_v21  ;;  %8695 = vmatpush1.bf16.msra.mxu1 %v10550_v15  ;;  %v175_v15 = vld [vmem:[%s14771_s0 + $0x430] sm:$0xff]  ;;  %v74_v21 = vld [vmem:[%s14771_s0 + $0x108] sm:$0xff] }
  0x90   :  { %2923 = vmatmul.mubr.bf16.gmra.mrb[28].mxu1 %v10988_v50  ;;  %8680 = vmatprep.subr.bf16.mxu1 %v10553_v17  ;;  %v8338_v17 = vcombine.high %v761_v4, %v765_v23  ;;  %v11041_v22 = vpack.c.bf16 %v175_v15, %v168_v13  ;;  %v73_v13 = vld [vmem:[%s14771_s0 + $0x100] sm:$0xff]  ;;  %v80_v15 = vld [vmem:[%s14771_s0 + $0x138] sm:$0xff] }
  0x91   :  { %3116 = vmatmul.mubr.bf16.gmra.mrb[28].mxu0 %v10991_v1  ;;  %2932 = vmatprep.mubr.bf16.mxu1 %v10993_v32  ;;  %v196_v23 = vld [vmem:[%s14771_s0 + $0x4d8] sm:$0xff]  ;;  %v11341_v1 = vld [vmem:[%s14772_s1 + $0x10] sm:$0xff] }
  0x92   :  { %3235 = vmatpush1.bf16.msra.mxu0 %v8321_v3  ;;  %3238 = vmatprep.mubr.bf16.mxu0 %v10995_v52  ;;  %15172 = vst [vmem:[#allocation38_spill] sm:$0xff] %v11041_v22  ;;  %v81_v3 = vld [vmem:[%s14771_s0 + $0x140] sm:$0xff] }
  0x93   :  { %3236 = vmatprep.subr.bf16.mxu0 %v8330_v34  ;;  %8696 = vmatpush1.bf16.msra.mxu1 %v10568_v28  ;;  %v167_v28 = vld [vmem:[%s14771_s0 + $0x3f0] sm:$0xff]  ;;  %v11080_v4 = vpack.c.bf16 %v81_v3, %v74_v21  ;;  %v217_v21 = vld [vmem:[%s14771_s0 + $0x580] sm:$0xff]  ;;  %v102_v3 = vld [vmem:[%s14771_s0 + $0x1e8] sm:$0xff] }
  0x94   :  { %8681 = vmatprep.subr.bf16.mxu1 %v10571_v31  ;;  %v59_v31 = vld [vmem:[%s14771_s0 + $0x90] sm:$0xff]  ;;  %v11074_v34 = vpack.c.bf16 %v174_v44, %v167_v28 }
  0x95   :  { %v11076_v7 = vpack.c.bf16 %v66_v55, %v59_v31  ;;  %15177 = vst [vmem:[#allocation43_spill] sm:$0xff] %v11080_v4  ;;  %v195_v44 = vld [vmem:[%s14771_s0 + $0x4d0] sm:$0xff]  ;;  %v202_v31 = vld [vmem:[%s14771_s0 + $0x508] sm:$0xff] }
  0x96   :  { %3237 = vmatpush1.bf16.msra.mxu0 %v8329_v26  ;;  %15174 = vst [vmem:[#allocation40_spill] sm:$0xff] %v11074_v34  ;;  %v95_v26 = vld [vmem:[%s14771_s0 + $0x1b0] sm:$0xff] }
  0x97   :  { %8697 = vmatpush1.bf16.msra.mxu1 %v10586_v41  ;;  %3399 = vmatprep.subr.bf16.mxu0 %v8338_v17  ;;  %v182_v41 = vld [vmem:[%s14771_s0 + $0x468] sm:$0xff]  ;;  %15175 = vst [vmem:[#allocation41_spill] sm:$0xff] %v11076_v7  ;;  %v11110_v17 = vpack.c.bf16 %v188_v45, %v181_v8  ;;  %v11116_v28 = vpack.c.bf16 %v95_v26, %v88_v46  ;;  %v87_v55 = vld [vmem:[%s14771_s0 + $0x170] sm:$0xff]  ;;  %v109_v8 = vld [vmem:[%s14771_s0 + $0x220] sm:$0xff] }
  0x98   :  { %2933 = vmatmul.mubr.bf16.gmra.mrb[32].mxu1 %v11034_v36  ;;  %3592 = vmatprep.subr.bf16.mxu1 %v7956_v35  ;;  %v11078_v0 = vpack.c.bf16 %v189_v19, %v182_v41  ;;  %v11112_v35 = vpack.c.bf16 %v80_v15, %v73_v13  ;;  %v94_v41 = vld [vmem:[%s14771_s0 + $0x1a8] sm:$0xff]  ;;  %v11146_v45 = vpack.c.bf16 %v202_v31, %v195_v44  ;;  %v216_v46 = vld [vmem:[%s14771_s0 + $0x578] sm:$0xff]  ;;  %v101_v26 = vld [vmem:[%s14771_s0 + $0x1e0] sm:$0xff] }
  0x99   :  { %3239 = vmatmul.mubr.bf16.vlgmr.msra.gmra.mrb[0].mxu0 %v11039_v38  ;;  %2942 = vmatprep.mubr.bf16.mxu1 %v11041_v22  ;;  %15178 = vst [vmem:[#allocation44_spill] sm:$0xff] %v11110_v17  ;;  %15181 = vst [vmem:[#allocation47_spill] sm:$0xff] %v11116_v28  ;;  %v210_v19 = vld [vmem:[%s14771_s0 + $0x548] sm:$0xff]  ;;  %v11148_v13 = vpack.c.bf16 %v94_v41, %v87_v55  ;;  %v108_v44 = vld [vmem:[%s14771_s0 + $0x218] sm:$0xff] }
  0x9a   :  { %3248 = vmatprep.mubr.bf16.mxu0 %v11043_v53  ;;  %3400 = vmatpush1.bf16.msra.mxu0 %v8337_v24  ;;  %15176 = vst [vmem:[#allocation42_spill] sm:$0xff] %v11078_v0  ;;  %15179 = vst [vmem:[#allocation45_spill] sm:$0xff] %v11112_v35  ;;  %v11114_v24 = vpack.c.bf16 %v203_v42, %v196_v23  ;;  %v11150_v15 = vpack.c.bf16 %v217_v21, %v210_v19  ;;  %v209_v42 = vld [vmem:[%s14771_s0 + $0x540] sm:$0xff]  ;;  %v224_v31 = vld [vmem:[%s14771_s0 + $0x5b8] sm:$0xff] }
  0x9b   :  { %15182 = vst [vmem:[#allocation48_spill] sm:$0xff] %v11146_v45  ;;  %15183 = vst [vmem:[#allocation49_spill] sm:$0xff] %v11148_v13  ;;  %v11152_v23 = vpack.c.bf16 %v109_v8, %v102_v3  ;;  %v231_v55 = vld [vmem:[%s14771_s0 + $0x5f0] sm:$0xff]  ;;  %v116_v41 = vld [vmem:[%s14771_s0 + $0x258] sm:$0xff]  ;;  %v11182_v21 = vpack.c.bf16 %v216_v46, %v209_v42  ;;  %v11184_v3 = vpack.c.bf16 %v108_v44, %v101_v26 }
  0x9c   :  { %15180 = vst [vmem:[#allocation46_spill] sm:$0xff] %v11114_v24  ;;  %15184 = vst [vmem:[#allocation50_spill] sm:$0xff] %v11150_v15  ;;  %v123_v19 = vld [vmem:[%s14771_s0 + $0x290] sm:$0xff]  ;;  %v11186_v8 = vpack.c.bf16 %v231_v55, %v224_v31  ;;  %v122_v46 = vld [vmem:[%s14771_s0 + $0x288] sm:$0xff] }
  0x9d   :  { %15185 = vst [vmem:[#allocation51_spill] sm:$0xff] %v11152_v23  ;;  %15186 = vst [vmem:[#allocation52_spill] sm:$0xff] %v11182_v21  ;;  %v11188_v12 = vpack.c.bf16 %v123_v19, %v116_v41  ;;  %v115_v42 = vld [vmem:[%s14771_s0 + $0x250] sm:$0xff]  ;;  %v238_v26 = vld [vmem:[%s14771_s0 + $0x628] sm:$0xff] }
  0x9e   :  { %15187 = vst [vmem:[#allocation53_spill] sm:$0xff] %v11184_v3  ;;  %15188 = vst [vmem:[#allocation54_spill] sm:$0xff] %v11186_v8  ;;  %v245_v44 = vld [vmem:[%s14771_s0 + $0x660] sm:$0xff]  ;;  %v130_v31 = vld [vmem:[%s14771_s0 + $0x2c8] sm:$0xff]  ;;  %v11220_v19 = vpack.c.bf16 %v122_v46, %v115_v42 }
  0x9f   :  { %15189 = vst [vmem:[#allocation55_spill] sm:$0xff] %v11188_v12  ;;  %v137_v55 = vld [vmem:[%s14771_s0 + $0x300] sm:$0xff]  ;;  %v136_v42 = vld [vmem:[%s14771_s0 + $0x2f8] sm:$0xff]  ;;  %v155_v53 = vld [vmem:[%s14771_s0 + $0x390] sm:$0xff] }
  0xa0   :  { %2943 = vmatmul.mubr.bf16.gmra.mrb[36].mxu1 %v11074_v34  ;;  %15191 = vst [vmem:[#allocation57_spill] sm:$0xff] %v11220_v19  ;;  %v252_v46 = vld [vmem:[%s14771_s0 + $0x698] sm:$0xff] }
  0xa1   :  { %3249 = vmatmul.mubr.bf16.gmra.mrb[4].mxu0 %v11076_v7  ;;  %2952 = vmatprep.mubr.bf16.mxu1 %v11078_v0 }
  0xa2   :  { %3258 = vmatprep.mubr.bf16.mxu0 %v11080_v4  ;;  %v251_v4 = vld [vmem:[%s14771_s0 + $0x690] sm:$0xff] }
  0xa8   :  { %2953 = vmatmul.mubr.bf16.gmra.mrb[40].mxu1 %v11110_v17 }
  0xa9   :  { %3259 = vmatmul.mubr.bf16.gmra.mrb[8].mxu0 %v11112_v35  ;;  %2962 = vmatprep.mubr.bf16.mxu1 %v11114_v24  ;;  %v11224_v35 = vpack.c.bf16 %v137_v55, %v130_v31  ;;  %v151_v31 = vld [vmem:[%s14771_s0 + $0x370] sm:$0xff] }
  0xaa   :  { %3268 = vmatprep.mubr.bf16.mxu0 %v11116_v28  ;;  %v230_v28 = vld [vmem:[%s14771_s0 + $0x5e8] sm:$0xff] }
  0xab   :  { %15193 = vst [vmem:[#allocation59_spill] sm:$0xff] %v11224_v35 }
  0xb0   :  { %2963 = vmatmul.mubr.bf16.gmra.mrb[44].mxu1 %v11146_v45 }
  0xb1   :  { %3269 = vmatmul.mubr.bf16.gmra.mrb[12].mxu0 %v11148_v13  ;;  %2972 = vmatprep.mubr.bf16.mxu1 %v11150_v15  ;;  %v223_v13 = vld [vmem:[%s14771_s0 + $0x5b0] sm:$0xff] }
  0xb2   :  { %3278 = vmatprep.mubr.bf16.mxu0 %v11152_v23  ;;  %v11218_v41 = vpack.c.bf16 %v230_v28, %v223_v13  ;;  %v11222_v23 = vpack.c.bf16 %v245_v44, %v238_v26  ;;  %v244_v28 = vld [vmem:[%s14771_s0 + $0x658] sm:$0xff]  ;;  %v129_v13 = vld [vmem:[%s14771_s0 + $0x2c0] sm:$0xff]  ;;  %v259_v26 = vld [vmem:[%s14771_s0 + $0x6d0] sm:$0xff] }
  0xb3   :  { %v144_v44 = vld [vmem:[%s14771_s0 + $0x338] sm:$0xff] }
  0xb4   :  { %15190 = vst [vmem:[#allocation56_spill] sm:$0xff] %v11218_v41  ;;  %15192 = vst [vmem:[#allocation58_spill] sm:$0xff] %v11222_v23 }
  0xb8   :  { %2973 = vmatmul.mubr.bf16.gmra.mrb[48].mxu1 %v11182_v21 }
  0xb9   :  { %3279 = vmatmul.mubr.bf16.gmra.mrb[16].mxu0 %v11184_v3  ;;  %2982 = vmatprep.mubr.bf16.mxu1 %v11186_v8  ;;  %v237_v3 = vld [vmem:[%s14771_s0 + $0x620] sm:$0xff] }
  0xba   :  { %3288 = vmatprep.mubr.bf16.mxu0 %v11188_v12  ;;  %v11254_v55 = vpack.c.bf16 %v244_v28, %v237_v3  ;;  %v11260_v12 = vpack.c.bf16 %v151_v31, %v144_v44  ;;  %v258_v3 = vld [vmem:[%s14771_s0 + $0x6c8] sm:$0xff]  ;;  %v143_v28 = vld [vmem:[%s14771_s0 + $0x330] sm:$0xff]  ;;  %v165_v44 = vld [vmem:[%s14771_s0 + $0x3e0] sm:$0xff] }
  0xbb   :  { %v11290_v31 = vpack.c.bf16 %v258_v3, %v251_v4  ;;  %v162_v4 = vld [vmem:[%s14771_s0 + $0x3c8] sm:$0xff]  ;;  %v157_v3 = vld [vmem:[%s14771_s0 + $0x3a0] sm:$0xff] }
  0xbc   :  { %15195 = vst [vmem:[#allocation61_spill] sm:$0xff] %v11260_v12 }
  0xc0   :  { %2983 = vmatmul.mubr.bf16.gmra.mrb[52].mxu1 %v11218_v41 }
  0xc1   :  { %3289 = vmatmul.mubr.bf16.gmra.mrb[20].mxu0 %v11220_v19  ;;  %2992 = vmatprep.mubr.bf16.mxu1 %v11222_v23  ;;  %v11258_v19 = vpack.c.bf16 %v259_v26, %v252_v46  ;;  %v163_v46 = vld [vmem:[%s14771_s0 + $0x3d0] sm:$0xff]  ;;  %v158_v26 = vld [vmem:[%s14771_s0 + $0x3a8] sm:$0xff] }
  0xc2   :  { %3298 = vmatprep.mubr.bf16.mxu0 %v11224_v35  ;;  %v11256_v35 = vpack.c.bf16 %v136_v42, %v129_v13  ;;  %v150_v13 = vld [vmem:[%s14771_s0 + $0x368] sm:$0xff]  ;;  %v156_v42 = vld [vmem:[%s14771_s0 + $0x398] sm:$0xff]  ;;  %v11296_v7 = vpack.c.bf16 %v165_v44, %v158_v26  ;;  %v177_v26 = vld [vmem:[%s14771_s0 + $0x440] sm:$0xff]  ;;  %v11326_v44 = vpack.c.bf16 %v162_v4, %v155_v53 }
  0xc3   :  { %v394_v4 = vld [vmem:[%s14772_s1 + $0x88] sm:$0xff] }
  0xc4   :  { %15194 = vst [vmem:[#allocation60_spill] sm:$0xff] %v11256_v35  ;;  %15198 = vst [vmem:[#allocation64_spill] sm:$0xff] %v11296_v7  ;;  %v7971_v56 = vcombine.low %v394_v4, %v398_v27 }
  0xc5   :  { %15199 = vst [vmem:[#allocation65_spill] sm:$0xff] %v11326_v44 }
  0xc8   :  { %2993 = vmatmul.mubr.bf16.gmra.mrb[56].mxu1 %v11254_v55 }
  0xc9   :  { %3299 = vmatmul.mubr.bf16.gmra.mrb[24].mxu0 %v11256_v35  ;;  %3002 = vmatprep.mubr.bf16.mxu1 %v11258_v19  ;;  %v11294_v35 = vpack.c.bf16 %v163_v46, %v156_v42  ;;  %v390_v42 = vld [vmem:[%s14772_s1 + $0x68] sm:$0xff] }
  0xca   :  { %3308 = vmatprep.mubr.bf16.mxu0 %v11260_v12  ;;  %v11292_v12 = vpack.c.bf16 %v150_v13, %v143_v28  ;;  %v164_v28 = vld [vmem:[%s14771_s0 + $0x3d8] sm:$0xff]  ;;  %v386_v13 = vld [vmem:[%s14772_s1 + $0x48] sm:$0xff] }
  0xcb   :  { %15197 = vst [vmem:[#allocation63_spill] sm:$0xff] %v11294_v35  ;;  %v170_v46 = vld [vmem:[%s14771_s0 + $0x408] sm:$0xff]  ;;  %v11334_v38 = vpack.c.bf16 %v164_v28, %v157_v3  ;;  %v7964_v52 = vcombine.high %v386_v13, %v390_v42  ;;  %v11354_v3 = vld [vmem:[%s14772_s1 + $0x30] sm:$0xff] }
  0xcc   :  { %15196 = vst [vmem:[#allocation62_spill] sm:$0xff] %v11292_v12  ;;  %v171_v28 = vld [vmem:[%s14771_s0 + $0x410] sm:$0xff] }
  0xcd   :  { %15200 = vst [vmem:[#allocation66_spill] sm:$0xff] %v11334_v38 }
  0xd0   :  { %3003 = vmatmul.mubr.bf16.gmra.mrb[60].mxu1 %v11290_v31 }
  0xd1   :  { %3309 = vmatmul.mubr.bf16.gmra.mrb[28].mxu0 %v11292_v12  ;;  %3125 = vmatprep.mubr.bf16.mxu1 %v11294_v35  ;;  %v179_v12 = vld [vmem:[%s14771_s0 + $0x450] sm:$0xff]  ;;  %v11336_v35 = vpack.c.bf16 %v177_v26, %v170_v46  ;;  %v7963_v46 = vcombine.low %v386_v13, %v390_v42  ;;  %v169_v26 = vld [vmem:[%s14771_s0 + $0x400] sm:$0xff]  ;;  %v402_v13 = vld [vmem:[%s14772_s1 + $0xc8] sm:$0xff] }
  0xd2   :  { %3318 = vmatprep.mubr.bf16.mxu0 %v11296_v7  ;;  %v172_v7 = vld [vmem:[%s14771_s0 + $0x418] sm:$0xff] }
  0xd3   :  { %15201 = vst [vmem:[#allocation67_spill] sm:$0xff] %v11336_v35  ;;  %v11343_v53 = vpack.c.bf16 %v179_v12, %v172_v7  ;;  %v7958_v12 = vcombine.high %v11341_v1, %v11354_v3  ;;  %v15203_v7 = vcombine.low %v10706_v62, %v10711_v5  ;;  %v178_v62 = vld [vmem:[%s14771_s0 + $0x448] sm:$0xff]  ;;  %v7972_v5 = vcombine.high %v394_v4, %v398_v27  ;;  %v184_v42 = vld [vmem:[%s14771_s0 + $0x478] sm:$0xff]  ;;  %v183_v4 = vld [vmem:[%s14771_s0 + $0x470] sm:$0xff] }
  0xd4   :  { %v11399_v43 = vpack.c.bf16 %v178_v62, %v171_v28  ;;  %v205_v62 = vld [vmem:[%s14771_s0 + $0x520] sm:$0xff] }
  0xd5   :  { %15202 = vst [vmem:[#allocation68_spill] sm:$0xff] %v11343_v53  ;;  %4364 = vmatprep.subr.bf16.mxu0 %v7958_v12  ;;  %v414_v12 = vld [vmem:[%s14772_s1 + $0x128] sm:$0xff] }
  0xd6   :  { %15205 = vst [vmem:[#allocation70_spill] sm:$0xff] %v11399_v43 }
  0xd8   :  { %3126 = vmatmul.mubr.bf16.vlgmr.msra.gmra.mrb[32].mxu1 %v11326_v44  ;;  %v176_v44 = vld [vmem:[%s14771_s0 + $0x438] sm:$0xff] }
  0xd9   :  { %3319 = vmatmul.mubr.bf16.gmra.mrb[32].mxu0 %v11334_v38  ;;  %3593 = vmatpush1.bf16.msra.mxu1 %v15203_v7  ;;  %v191_v7 = vld [vmem:[%s14771_s0 + $0x4b0] sm:$0xff]  ;;  %v11391_v38 = vpack.c.bf16 %v176_v44, %v169_v26  ;;  %v410_v44 = vld [vmem:[%s14772_s1 + $0x108] sm:$0xff] }
  0xda   :  { %3594 = vmatprep.subr.bf16.mxu1 %v7964_v52  ;;  %3135 = vmatprep.mubr.bf16.mxu1 %v11336_v35  ;;  %v406_v52 = vld [vmem:[%s14772_s1 + $0xe8] sm:$0xff]  ;;  %v11401_v49 = vpack.c.bf16 %v191_v7, %v184_v42  ;;  %v7988_v28 = vcombine.high %v410_v44, %v414_v12  ;;  %v7987_v7 = vcombine.low %v410_v44, %v414_v12  ;;  %v197_v12 = vld [vmem:[%s14771_s0 + $0x4e0] sm:$0xff] }
  0xdb   :  { %3328 = vmatprep.mubr.bf16.mxu0 %v11343_v53  ;;  %15204 = vst [vmem:[#allocation69_spill] sm:$0xff] %v11391_v38  ;;  %v186_v35 = vld [vmem:[%s14771_s0 + $0x488] sm:$0xff]  ;;  %v193_v53 = vld [vmem:[%s14771_s0 + $0x4c0] sm:$0xff]  ;;  %v7980_v30 = vcombine.high %v402_v13, %v406_v52  ;;  %v7979_v27 = vcombine.low %v402_v13, %v406_v52  ;;  %v200_v13 = vld [vmem:[%s14771_s0 + $0x4f8] sm:$0xff] }
  0xdc   :  { %15206 = vst [vmem:[#allocation71_spill] sm:$0xff] %v11401_v49  ;;  %v11403_v37 = vpack.c.bf16 %v193_v53, %v186_v35  ;;  %v190_v35 = vld [vmem:[%s14771_s0 + $0x4a8] sm:$0xff]  ;;  %v185_v53 = vld [vmem:[%s14771_s0 + $0x480] sm:$0xff]  ;;  %v207_v52 = vld [vmem:[%s14771_s0 + $0x530] sm:$0xff] }
  0xdd   :  { %3595 = vmatpush1.bf16.msra.mxu1 %v7963_v46  ;;  %v418_v46 = vld [vmem:[%s14772_s1 + $0x148] sm:$0xff] }
  0xde   :  { %3596 = vmatprep.subr.bf16.mxu1 %v7972_v5  ;;  %15207 = vst [vmem:[#allocation72_spill] sm:$0xff] %v11403_v37  ;;  %v198_v26 = vld [vmem:[%s14771_s0 + $0x4e8] sm:$0xff]  ;;  %v11439_v5 = vpack.c.bf16 %v190_v35, %v183_v4 }
  0xdf   :  { %v426_v4 = vld [vmem:[%s14772_s1 + $0x188] sm:$0xff] }
  0xe0   :  { %3136 = vmatmul.mubr.bf16.gmra.mrb[36].mxu1 %v11391_v38  ;;  %15208 = vst [vmem:[#allocation73_spill] sm:$0xff] %v11439_v5  ;;  %v430_v35 = vld [vmem:[%s14772_s1 + $0x1a8] sm:$0xff] }
  0xe1   :  { %3329 = vmatmul.mubr.bf16.gmra.mrb[36].mxu0 %v11399_v43  ;;  %3597 = vmatpush1.bf16.msra.mxu1 %v7971_v56  ;;  %v192_v56 = vld [vmem:[%s14771_s0 + $0x4b8] sm:$0xff]  ;;  %v11449_v43 = vpack.c.bf16 %v205_v62, %v198_v26  ;;  %v219_v26 = vld [vmem:[%s14771_s0 + $0x590] sm:$0xff] }
  0xe2   :  { %3598 = vmatprep.subr.bf16.mxu1 %v7980_v30  ;;  %3145 = vmatprep.mubr.bf16.mxu1 %v11401_v49  ;;  %v422_v30 = vld [vmem:[%s14772_s1 + $0x168] sm:$0xff]  ;;  %v11447_v42 = vpack.c.bf16 %v192_v56, %v185_v53  ;;  %v11451_v49 = vpack.c.bf16 %v207_v52, %v200_v13  ;;  %v199_v53 = vld [vmem:[%s14771_s0 + $0x4f0] sm:$0xff]  ;;  %v221_v52 = vld [vmem:[%s14771_s0 + $0x5a0] sm:$0xff] }
  0xe3   :  { %3338 = vmatprep.mubr.bf16.mxu0 %v11403_v37  ;;  %v7996_v37 = vcombine.high %v418_v46, %v422_v30  ;;  %15210 = vst [vmem:[#allocation75_spill] sm:$0xff] %v11449_v43  ;;  %v7995_v44 = vcombine.low %v418_v46, %v422_v30  ;;  %v206_v56 = vld [vmem:[%s14771_s0 + $0x528] sm:$0xff]  ;;  %v212_v30 = vld [vmem:[%s14771_s0 + $0x558] sm:$0xff] }
  0xe4   :  { %15209 = vst [vmem:[#allocation74_spill] sm:$0xff] %v11447_v42  ;;  %15211 = vst [vmem:[#allocation76_spill] sm:$0xff] %v11451_v49  ;;  %v434_v46 = vld [vmem:[%s14772_s1 + $0x1c8] sm:$0xff] }
  0xe5   :  { %3599 = vmatpush1.bf16.msra.mxu1 %v7979_v27  ;;  %v204_v27 = vld [vmem:[%s14771_s0 + $0x518] sm:$0xff]  ;;  %v214_v13 = vld [vmem:[%s14771_s0 + $0x568] sm:$0xff] }
  0xe6   :  { %3600 = vmatprep.subr.bf16.mxu1 %v7988_v28  ;;  %v8004_v28 = vcombine.high %v426_v4, %v430_v35  ;;  %v11487_v62 = vpack.c.bf16 %v204_v27, %v197_v12  ;;  %v442_v12 = vld [vmem:[%s14772_s1 + $0x208] sm:$0xff] }
  0xe7   :  { %v446_v27 = vld [vmem:[%s14772_s1 + $0x228] sm:$0xff] }
  0xe8   :  { %3146 = vmatmul.mubr.bf16.gmra.mrb[40].mxu1 %v11439_v5  ;;  %15212 = vst [vmem:[#allocation77_spill] sm:$0xff] %v11487_v62  ;;  %v11499_v5 = vpack.c.bf16 %v221_v52, %v214_v13  ;;  %v235_v13 = vld [vmem:[%s14771_s0 + $0x610] sm:$0xff] }
  0xe9   :  { %3339 = vmatmul.mubr.bf16.gmra.mrb[40].mxu0 %v11447_v42  ;;  %3601 = vmatpush1.bf16.msra.mxu1 %v7987_v7  ;;  %v11495_v7 = vpack.c.bf16 %v206_v56, %v199_v53  ;;  %v213_v53 = vld [vmem:[%s14771_s0 + $0x560] sm:$0xff]  ;;  %v8020_v56 = vcombine.high %v442_v12, %v446_v27 }
  0xea   :  { %3602 = vmatprep.subr.bf16.mxu1 %v7996_v37  ;;  %3155 = vmatprep.mubr.bf16.mxu1 %v11449_v43  ;;  %v438_v37 = vld [vmem:[%s14772_s1 + $0x1e8] sm:$0xff]  ;;  %v11497_v43 = vpack.c.bf16 %v219_v26, %v212_v30  ;;  %15215 = vst [vmem:[#allocation80_spill] sm:$0xff] %v11499_v5  ;;  %v228_v26 = vld [vmem:[%s14771_s0 + $0x5d8] sm:$0xff] }
  0xeb   :  { %3348 = vmatprep.mubr.bf16.mxu0 %v11451_v49  ;;  %15213 = vst [vmem:[#allocation78_spill] sm:$0xff] %v11495_v7  ;;  %v8003_v49 = vcombine.low %v426_v4, %v430_v35  ;;  %v8012_v42 = vcombine.high %v434_v46, %v438_v37  ;;  %v8011_v4 = vcombine.low %v434_v46, %v438_v37  ;;  %v211_v35 = vld [vmem:[%s14771_s0 + $0x550] sm:$0xff]  ;;  %v226_v46 = vld [vmem:[%s14771_s0 + $0x5c8] sm:$0xff]  ;;  %v233_v37 = vld [vmem:[%s14771_s0 + $0x600] sm:$0xff] }
  0xec   :  { %15214 = vst [vmem:[#allocation79_spill] sm:$0xff] %v11497_v43 }
  0xed   :  { %3603 = vmatpush1.bf16.msra.mxu1 %v7995_v44  ;;  %v218_v44 = vld [vmem:[%s14771_s0 + $0x588] sm:$0xff] }
  0xee   :  { %3604 = vmatprep.subr.bf16.mxu1 %v8004_v28  ;;  %v450_v28 = vld [vmem:[%s14772_s1 + $0x248] sm:$0xff]  ;;  %v11535_v30 = vpack.c.bf16 %v218_v44, %v211_v35 }
  0xef   :  { %v458_v35 = vld [vmem:[%s14772_s1 + $0x288] sm:$0xff] }
  0xf0   :  { %3156 = vmatmul.mubr.bf16.gmra.mrb[44].mxu1 %v11487_v62  ;;  %15216 = vst [vmem:[#allocation81_spill] sm:$0xff] %v11535_v30  ;;  %v11547_v62 = vpack.c.bf16 %v235_v13, %v228_v26  ;;  %v462_v44 = vld [vmem:[%s14772_s1 + $0x2a8] sm:$0xff]  ;;  %v249_v26 = vld [vmem:[%s14771_s0 + $0x680] sm:$0xff] }
  0xf1   :  { %3349 = vmatmul.mubr.bf16.gmra.mrb[44].mxu0 %v11495_v7  ;;  %3605 = vmatpush1.bf16.msra.mxu1 %v8003_v49  ;;  %v220_v49 = vld [vmem:[%s14771_s0 + $0x598] sm:$0xff] }
  0xf2   :  { %3606 = vmatprep.subr.bf16.mxu1 %v8012_v42  ;;  %3165 = vmatprep.mubr.bf16.mxu1 %v11497_v43  ;;  %v454_v42 = vld [vmem:[%s14772_s1 + $0x268] sm:$0xff]  ;;  %v11543_v52 = vpack.c.bf16 %v220_v49, %v213_v53  ;;  %v11545_v43 = vpack.c.bf16 %v233_v37, %v226_v46  ;;  %15219 = vst [vmem:[#allocation84_spill] sm:$0xff] %v11547_v62  ;;  %v227_v53 = vld [vmem:[%s14771_s0 + $0x5d0] sm:$0xff] }
  0xf3   :  { %3358 = vmatprep.mubr.bf16.mxu0 %v11499_v5  ;;  %v8019_v5 = vcombine.low %v442_v12, %v446_v27  ;;  %v8028_v7 = vcombine.high %v450_v28, %v454_v42  ;;  %v8027_v12 = vcombine.low %v450_v28, %v454_v42  ;;  %v225_v27 = vld [vmem:[%s14771_s0 + $0x5c0] sm:$0xff]  ;;  %v8036_v49 = vcombine.high %v458_v35, %v462_v44  ;;  %v240_v28 = vld [vmem:[%s14771_s0 + $0x638] sm:$0xff]  ;;  %v247_v42 = vld [vmem:[%s14771_s0 + $0x670] sm:$0xff] }
  0xf4   :  { %15217 = vst [vmem:[#allocation82_spill] sm:$0xff] %v11543_v52  ;;  %15218 = vst [vmem:[#allocation83_spill] sm:$0xff] %v11545_v43  ;;  %v242_v37 = vld [vmem:[%s14771_s0 + $0x648] sm:$0xff] }
  0xf5   :  { %3607 = vmatpush1.bf16.msra.mxu1 %v8011_v4  ;;  %v232_v4 = vld [vmem:[%s14771_s0 + $0x5f8] sm:$0xff] }
  0xf6   :  { %3608 = vmatprep.subr.bf16.mxu1 %v8020_v56  ;;  %v466_v56 = vld [vmem:[%s14772_s1 + $0x2c8] sm:$0xff]  ;;  %v11583_v46 = vpack.c.bf16 %v232_v4, %v225_v27 }
  0xf7   :  { %v474_v27 = vld [vmem:[%s14772_s1 + $0x308] sm:$0xff] }
  0xf8   :  { %3166 = vmatmul.mubr.bf16.gmra.mrb[48].mxu1 %v11535_v30  ;;  %15220 = vst [vmem:[#allocation85_spill] sm:$0xff] %v11583_v46  ;;  %v11595_v30 = vpack.c.bf16 %v249_v26, %v242_v37  ;;  %v478_v4 = vld [vmem:[%s14772_s1 + $0x328] sm:$0xff]  ;;  %v263_v37 = vld [vmem:[%s14771_s0 + $0x6f0] sm:$0xff] }
  0xf9   :  { %3359 = vmatmul.mubr.bf16.gmra.mrb[48].mxu0 %v11543_v52  ;;  %3609 = vmatpush1.bf16.msra.mxu1 %v8019_v5  ;;  %v234_v5 = vld [vmem:[%s14771_s0 + $0x608] sm:$0xff] }
  0xfa   :  { %3610 = vmatprep.subr.bf16.mxu1 %v8028_v7  ;;  %3175 = vmatprep.mubr.bf16.mxu1 %v11545_v43  ;;  %v470_v7 = vld [vmem:[%s14772_s1 + $0x2e8] sm:$0xff]  ;;  %v11591_v13 = vpack.c.bf16 %v234_v5, %v227_v53  ;;  %v11593_v43 = vpack.c.bf16 %v247_v42, %v240_v28  ;;  %15223 = vst [vmem:[#allocation88_spill] sm:$0xff] %v11595_v30  ;;  %v241_v53 = vld [vmem:[%s14771_s0 + $0x640] sm:$0xff]  ;;  %v256_v42 = vld [vmem:[%s14771_s0 + $0x6b8] sm:$0xff] }
  0xfb   :  { %3368 = vmatprep.mubr.bf16.mxu0 %v11547_v62  ;;  %v8035_v62 = vcombine.low %v458_v35, %v462_v44  ;;  %v8044_v52 = vcombine.high %v466_v56, %v470_v7  ;;  %v8043_v35 = vcombine.low %v466_v56, %v470_v7  ;;  %v239_v44 = vld [vmem:[%s14771_s0 + $0x630] sm:$0xff]  ;;  %v8052_v5 = vcombine.high %v474_v27, %v478_v4  ;;  %v254_v56 = vld [vmem:[%s14771_s0 + $0x6a8] sm:$0xff]  ;;  %v261_v7 = vld [vmem:[%s14771_s0 + $0x6e0] sm:$0xff] }
  0xfc   :  { %15221 = vst [vmem:[#allocation86_spill] sm:$0xff] %v11591_v13  ;;  %15222 = vst [vmem:[#allocation87_spill] sm:$0xff] %v11593_v43 }
  0xfd   :  { %3611 = vmatpush1.bf16.msra.mxu1 %v8027_v12  ;;  %v246_v12 = vld [vmem:[%s14771_s0 + $0x668] sm:$0xff] }
  0xfe   :  { %3612 = vmatprep.subr.bf16.mxu1 %v8036_v49  ;;  %v482_v49 = vld [vmem:[%s14772_s1 + $0x348] sm:$0xff]  ;;  %v11631_v28 = vpack.c.bf16 %v246_v12, %v239_v44 }
  0xff   :  { %v490_v44 = vld [vmem:[%s14772_s1 + $0x388] sm:$0xff] }
 0x100   :  { %3176 = vmatmul.mubr.bf16.gmra.mrb[52].mxu1 %v11583_v46  ;;  %15224 = vst [vmem:[#allocation89_spill] sm:$0xff] %v11631_v28  ;;  %v11643_v46 = vpack.c.bf16 %v263_v37, %v256_v42  ;;  %v494_v12 = vld [vmem:[%s14772_s1 + $0x3a8] sm:$0xff] }
 0x101   :  { %3369 = vmatmul.mubr.bf16.gmra.mrb[52].mxu0 %v11591_v13  ;;  %3613 = vmatpush1.bf16.msra.mxu1 %v8035_v62  ;;  %v248_v62 = vld [vmem:[%s14771_s0 + $0x678] sm:$0xff]  ;;  %v506_v42 = vld [vmem:[%s14772_s1 + $0x408] sm:$0xff] }
 0x102   :  { %3614 = vmatprep.subr.bf16.mxu1 %v8044_v52  ;;  %3185 = vmatprep.mubr.bf16.mxu1 %v11593_v43  ;;  %v486_v52 = vld [vmem:[%s14772_s1 + $0x368] sm:$0xff]  ;;  %v11639_v26 = vpack.c.bf16 %v248_v62, %v241_v53  ;;  %v11641_v43 = vpack.c.bf16 %v261_v7, %v254_v56  ;;  %15227 = vst [vmem:[#allocation92_spill] sm:$0xff] %v11643_v46  ;;  %v255_v53 = vld [vmem:[%s14771_s0 + $0x6b0] sm:$0xff] }
 0x103   :  { %3378 = vmatprep.mubr.bf16.mxu0 %v11595_v30  ;;  %v8051_v30 = vcombine.low %v474_v27, %v478_v4  ;;  %v8060_v13 = vcombine.high %v482_v49, %v486_v52  ;;  %v8059_v27 = vcombine.low %v482_v49, %v486_v52  ;;  %v253_v4 = vld [vmem:[%s14771_s0 + $0x6a0] sm:$0xff]  ;;  %v8068_v62 = vcombine.high %v490_v44, %v494_v12  ;;  %v510_v37 = vld [vmem:[%s14772_s1 + $0x428] sm:$0xff] }
 0x104   :  { %15225 = vst [vmem:[#allocation90_spill] sm:$0xff] %v11639_v26  ;;  %15226 = vst [vmem:[#allocation91_spill] sm:$0xff] %v11641_v43  ;;  %v8067_v56 = vcombine.low %v490_v44, %v494_v12  ;;  %v47_v44 = vld [vmem:[%s14771_s0 + $0x30] sm:$0xff]  ;;  %v54_v12 = vld [vmem:[%s14771_s0 + $0x68] sm:$0xff] }
 0x105   :  { %3615 = vmatpush1.bf16.msra.mxu1 %v8043_v35  ;;  %v260_v35 = vld [vmem:[%s14771_s0 + $0x6d8] sm:$0xff] }
 0x106   :  { %3616 = vmatprep.subr.bf16.mxu1 %v8052_v5  ;;  %v498_v5 = vld [vmem:[%s14772_s1 + $0x3c8] sm:$0xff]  ;;  %v11673_v49 = vpack.c.bf16 %v260_v35, %v253_v4  ;;  %v8084_v35 = vcombine.high %v506_v42, %v510_v37 }
 0x108   :  { %3186 = vmatmul.mubr.bf16.gmra.mrb[56].mxu1 %v11631_v28  ;;  %15228 = vst [vmem:[#allocation93_spill] sm:$0xff] %v11673_v49 }
 0x109   :  { %3379 = vmatmul.mubr.bf16.gmra.mrb[56].mxu0 %v11639_v26  ;;  %3617 = vmatpush1.bf16.msra.mxu1 %v8051_v30  ;;  %v262_v30 = vld [vmem:[%s14771_s0 + $0x6e8] sm:$0xff]  ;;  %v15231_v26 = vmov 0  }
 0x10a   :  { %3618 = vmatprep.subr.bf16.mxu1 %v8060_v13  ;;  %3195 = vmatprep.mubr.bf16.mxu1 %v11641_v43  ;;  %v502_v13 = vld [vmem:[%s14772_s1 + $0x3e8] sm:$0xff]  ;;  %v11675_v52 = vpack.c.bf16 %v262_v30, %v255_v53 }
 0x10b   :  { %3388 = vmatprep.mubr.bf16.mxu0 %v11643_v46  ;;  %v8076_v7 = vcombine.high %v498_v5, %v502_v13  ;;  %v8075_v4 = vcombine.low %v498_v5, %v502_v13  ;;  %v514_v53 = vld [vmem:[%s14772_s1 + $0x448] sm:$0xff]  ;;  %v8083_v5 = vcombine.low %v506_v42, %v510_v37  ;;  %v387_v13 = vld [vmem:[%s14772_s1 + $0x50] sm:$0xff] }
 0x10c   :  { %15229 = vst [vmem:[#allocation94_spill] sm:$0xff] %v11675_v52  ;;  %v518_v30 = vld [vmem:[%s14772_s1 + $0x468] sm:$0xff] }
 0x10d   :  { %3619 = vmatpush1.bf16.msra.mxu1 %v8059_v27  ;;  %v14875_v27 = vmov 0   ;;  %v11717_v37 = vld [vmem:[%s14772_s1 + $0x808] sm:$0xff] }
 0x10e   :  { %3620 = vmatprep.subr.bf16.mxu1 %v8068_v62  ;;  %v11699_v62 = vpack.c.bf16 %v54_v12, %v47_v44  ;;  %v11722_v44 = vld [vmem:[%s14772_s1 + $0x828] sm:$0xff]  ;;  %v8091_v12 = vcombine.low %v514_v53, %v518_v30 }
 0x10f   :  { %v530_v46 = vld [vmem:[%s14772_s1 + $0x4c8] sm:$0xff] }
 0x110   :  { %3196 = vmatmul.mubr.bf16.gmra.mrb[60].mxu1 %v11673_v49  ;;  %15230 = vst [vmem:[#allocation95_spill] sm:$0xff] %v11699_v62  ;;  %v534_v43 = vld [vmem:[%s14772_s1 + $0x4e8] sm:$0xff] }
 0x111   :  { %3389 = vmatmul.mubr.bf16.gmra.mrb[60].mxu0 %v11675_v52  ;;  %3621 = vmatpush1.bf16.msra.mxu1 %v8067_v56  ;;  %v391_v56 = vld [vmem:[%s14772_s1 + $0x70] sm:$0xff] }
 0x112   :  { %3622 = vmatprep.subr.bf16.mxu1 %v8076_v7  ;;  %3431 = vmatprep.mubr.bf16.mxu0 %v14875_v27  ;;  %v8092_v7 = vcombine.high %v514_v53, %v518_v30  ;;  %v522_v27 = vld [vmem:[%s14772_s1 + $0x488] sm:$0xff]  ;;  %v7966_v42 = vcombine.high %v387_v13, %v391_v56  ;;  %v399_v52 = vld [vmem:[%s14772_s1 + $0xb0] sm:$0xff]  ;;  %v68_v53 = vld [vmem:[%s14771_s0 + $0xd8] sm:$0xff]  ;;  %v7965_v49 = vcombine.low %v387_v13, %v391_v56 }
 0x113   :  { %3624 = vmatprep.mubr.bf16.mxu1 %v10405_v58  ;;  %v538_v56 = vld [vmem:[%s14772_s1 + $0x508] sm:$0xff] }
 0x115   :  { %3623 = vmatpush1.bf16.msra.mxu1 %v8075_v4  ;;  %v526_v4 = vld [vmem:[%s14772_s1 + $0x4a8] sm:$0xff] }
 0x116   :  { %3785 = vmatprep.subr.bf16.mxu1 %v8084_v35  ;;  %v395_v35 = vld [vmem:[%s14772_s1 + $0x90] sm:$0xff]  ;;  %v8100_v30 = vcombine.high %v522_v27, %v526_v4 }
 0x117   :  { %v7974_v28 = vcombine.high %v395_v35, %v399_v52  ;;  %v7973_v13 = vcombine.low %v395_v35, %v399_v52  ;;  %v415_v52 = vld [vmem:[%s14772_s1 + $0x130] sm:$0xff] }
 0x118   :  { %3625 = vmatmul.mubr.bf16.vlgmr.msra.gmra.mrb[64].mxu1 %v10604_v54 }
 0x119   :  { %8345 = vmatmul.mubr.msk.bf16.vlgmr.msra.gmra.mrb[0].mxu0 %vm2771_vm0, %v11699_v62  ;;  %3786 = vmatpush1.bf16.msra.mxu1 %v8083_v5  ;;  %v61_v5 = vld [vmem:[%s14771_s0 + $0xa0] sm:$0xff]  ;;  %v15232_v62 = vcombine.low %v11341_v1, %v11354_v3  ;;  %v407_v1 = vld [vmem:[%s14772_s1 + $0xf0] sm:$0xff]  ;;  %v8099_v3 = vcombine.low %v522_v27, %v526_v4  ;;  %v82_v27 = vld [vmem:[%s14771_s0 + $0x148] sm:$0xff]  ;;  %v8107_v4 = vcombine.low %v530_v46, %v534_v43 }
 0x11a   :  { %3441 = vmatprep.mubr.bf16.mxu0 %v15231_v26  ;;  %3634 = vmatprep.mubr.bf16.mxu1 %v10619_v2  ;;  %v11751_v38 = vpack.c.bf16 %v68_v53, %v61_v5  ;;  %v546_v53 = vld [vmem:[%s14772_s1 + $0x548] sm:$0xff] }
 0x11b   :  { %3787 = vmatprep.subr.bf16.mxu1 %v8092_v7  ;;  %4365 = vmatpush1.bf16.msra.mxu0 %v15232_v62  ;;  %v403_v7 = vld [vmem:[%s14772_s1 + $0xd0] sm:$0xff]  ;;  %v8108_v62 = vcombine.high %v530_v46, %v534_v43 }
 0x11c   :  { %4366 = vmatprep.subr.bf16.mxu0 %v7966_v42  ;;  %15233 = vst [vmem:[#allocation96_spill] sm:$0xff] %v11751_v38  ;;  %v542_v42 = vld [vmem:[%s14772_s1 + $0x528] sm:$0xff]  ;;  %v7981_v5 = vcombine.low %v403_v7, %v407_v1  ;;  %v419_v43 = vld [vmem:[%s14772_s1 + $0x150] sm:$0xff] }
 0x11d   :  { %3788 = vmatpush1.bf16.msra.mxu1 %v8091_v12  ;;  %v7982_v12 = vcombine.high %v403_v7, %v407_v1  ;;  %v8116_v35 = vcombine.high %v538_v56, %v542_v42  ;;  %v423_v46 = vld [vmem:[%s14772_s1 + $0x170] sm:$0xff]  ;;  %v8115_v7 = vcombine.low %v538_v56, %v542_v42 }
 0x11e   :  { %3789 = vmatprep.subr.bf16.mxu1 %v8100_v30  ;;  %v550_v30 = vld [vmem:[%s14772_s1 + $0x568] sm:$0xff]  ;;  %v427_v56 = vld [vmem:[%s14772_s1 + $0x190] sm:$0xff] }
 0x11f   :  { %4367 = vmatpush1.bf16.msra.mxu0 %v7965_v49  ;;  %v411_v49 = vld [vmem:[%s14772_s1 + $0x110] sm:$0xff]  ;;  %v8124_v1 = vcombine.high %v546_v53, %v550_v30 }
 0x120   :  { %3635 = vmatmul.mubr.bf16.gmra.mrb[68].mxu1 %v10658_v33  ;;  %4368 = vmatprep.subr.bf16.mxu0 %v7974_v28  ;;  %v75_v28 = vld [vmem:[%s14771_s0 + $0x110] sm:$0xff] }
 0x121   :  { %8346 = vmatmul.mubr.msk.bf16.gmra.mrb[4].mxu0 %vm2771_vm0, %v11751_v38  ;;  %3644 = vmatprep.mubr.bf16.mxu1 %v10670_v40  ;;  %v7990_v38 = vcombine.high %v411_v49, %v415_v52  ;;  %v11788_v10 = vpack.c.bf16 %v82_v27, %v75_v28  ;;  %v431_v42 = vld [vmem:[%s14772_s1 + $0x1b0] sm:$0xff] }
 0x122   :  { %3451 = vmatprep.mubr.bf16.mxu0 %v15231_v26  ;;  %3790 = vmatpush1.bf16.msra.mxu1 %v8099_v3  ;;  %v7989_v3 = vcombine.low %v411_v49, %v415_v52  ;;  %v96_v49 = vld [vmem:[%s14771_s0 + $0x1b8] sm:$0xff]  ;;  %v8123_v52 = vcombine.low %v546_v53, %v550_v30  ;;  %v8006_v59 = vcombine.high %v427_v56, %v431_v42  ;;  %v435_v30 = vld [vmem:[%s14772_s1 + $0x1d0] sm:$0xff] }
 0x123   :  { %3791 = vmatprep.subr.bf16.mxu1 %v8108_v62  ;;  %4369 = vmatpush1.bf16.msra.mxu0 %v7973_v13  ;;  %15234 = vst [vmem:[#allocation97_spill] sm:$0xff] %v11788_v10  ;;  %v554_v62 = vld [vmem:[%s14772_s1 + $0x588] sm:$0xff] }
 0x124   :  { %4370 = vmatprep.subr.bf16.mxu0 %v7982_v12  ;;  %v558_v13 = vld [vmem:[%s14772_s1 + $0x5a8] sm:$0xff]  ;;  %v7998_v12 = vcombine.high %v419_v43, %v423_v46 }
 0x125   :  { %v8132_v27 = vcombine.high %v554_v62, %v558_v13 }
 0x126   :  { %3792 = vmatpush1.bf16.msra.mxu1 %v8107_v4  ;;  %v7997_v4 = vcombine.low %v419_v43, %v423_v46  ;;  %v439_v43 = vld [vmem:[%s14772_s1 + $0x1f0] sm:$0xff] }
 0x127   :  { %3793 = vmatprep.subr.bf16.mxu1 %v8116_v35  ;;  %4371 = vmatpush1.bf16.msra.mxu0 %v7981_v5  ;;  %v562_v5 = vld [vmem:[%s14772_s1 + $0x5c8] sm:$0xff] }
 0x128   :  { %3645 = vmatmul.mubr.bf16.gmra.mrb[72].mxu1 %v10722_v16  ;;  %4372 = vmatprep.subr.bf16.mxu0 %v7990_v38  ;;  %v89_v38 = vld [vmem:[%s14771_s0 + $0x180] sm:$0xff] }
 0x129   :  { %8347 = vmatmul.mubr.msk.bf16.gmra.mrb[8].mxu0 %vm2771_vm0, %v11788_v10  ;;  %3654 = vmatprep.mubr.bf16.mxu1 %v10733_v20  ;;  %v566_v10 = vld [vmem:[%s14772_s1 + $0x5e8] sm:$0xff]  ;;  %v11831_v53 = vpack.c.bf16 %v96_v49, %v89_v38 }
 0x12a   :  { %3461 = vmatprep.mubr.bf16.mxu0 %v15231_v26  ;;  %3794 = vmatpush1.bf16.msra.mxu1 %v8115_v7  ;;  %v570_v38 = vld [vmem:[%s14772_s1 + $0x608] sm:$0xff] }
 0x12b   :  { %v11819_v28 = vpop.f32.mrb[0].mxu1  ;;  %3795 = vmatprep.subr.bf16.mxu1 %v8124_v1  ;;  %4373 = vmatpush1.bf16.msra.mxu0 %v7989_v3  ;;  %15238 = vst [vmem:[#allocation101_spill] sm:$0xff] %v11831_v53  ;;  %v8131_v1 = vcombine.low %v554_v62, %v558_v13  ;;  %v8140_v3 = vcombine.high %v562_v5, %v566_v10  ;;  %v574_v49 = vld [vmem:[%s14772_s1 + $0x628] sm:$0xff]  ;;  %v443_v62 = vld [vmem:[%s14772_s1 + $0x210] sm:$0xff] }
 0x12c   :  { %15235 = vst [vmem:[#allocation98_spill] sm:$0xff] %v11819_v28  ;;  %v11821_v35 = vpop.f32.mrb[1].mxu1  ;;  %4374 = vmatprep.subr.bf16.mxu0 %v7998_v12  ;;  %v8005_v12 = vcombine.low %v427_v56, %v431_v42  ;;  %v447_v13 = vld [vmem:[%s14772_s1 + $0x230] sm:$0xff]  ;;  %v110_v56 = vld [vmem:[%s14771_s0 + $0x228] sm:$0xff]  ;;  %v8139_v42 = vcombine.low %v562_v5, %v566_v10 }
 0x12d   :  { %15236 = vst [vmem:[#allocation99_spill] sm:$0xff] %v11821_v35  ;;  %v11829_v7 = vpop.f32.mrb[2].mxu1  ;;  %v582_v35 = vld [vmem:[%s14772_s1 + $0x668] sm:$0xff]  ;;  %v8022_v28 = vcombine.high %v443_v62, %v447_v13  ;;  %v451_v5 = vld [vmem:[%s14772_s1 + $0x250] sm:$0xff] }
 0x12e   :  { %15237 = vst [vmem:[#allocation100_spill] sm:$0xff] %v11829_v7  ;;  %v11839_v46 = vpop.f32.mrb[3].mxu1  ;;  %3796 = vmatpush1.bf16.msra.mxu1 %v8123_v52  ;;  %v8014_v7 = vcombine.high %v435_v30, %v439_v43 }
 0x12f   :  { %15239 = vst [vmem:[#allocation102_spill] sm:$0xff] %v11839_v46  ;;  %3797 = vmatprep.subr.bf16.mxu1 %v8132_v27  ;;  %4375 = vmatpush1.bf16.msra.mxu0 %v7997_v4  ;;  %v8148_v27 = vcombine.high %v570_v38, %v574_v49  ;;  %v8013_v4 = vcombine.low %v435_v30, %v439_v43  ;;  %v578_v46 = vld [vmem:[%s14772_s1 + $0x648] sm:$0xff]  ;;  %v455_v30 = vld [vmem:[%s14772_s1 + $0x270] sm:$0xff] }
 0x130   :  { %3655 = vmatmul.mubr.bf16.gmra.mrb[76].mxu1 %v10780_v57  ;;  %4376 = vmatprep.subr.bf16.mxu0 %v8006_v59  ;;  %v103_v59 = vld [vmem:[%s14771_s0 + $0x1f0] sm:$0xff] }
 0x131   :  { %8348 = vmatmul.mubr.msk.bf16.gmra.mrb[12].mxu0 %vm2771_vm0, %v11831_v53  ;;  %3664 = vmatprep.mubr.bf16.mxu1 %v10785_v60  ;;  %v11876_v10 = vpack.c.bf16 %v110_v56, %v103_v59  ;;  %v586_v59 = vld [vmem:[%s14772_s1 + $0x688] sm:$0xff] }
 0x132   :  { %3471 = vmatprep.mubr.bf16.mxu0 %v15231_v26  ;;  %3798 = vmatpush1.bf16.msra.mxu1 %v8131_v1  ;;  %v590_v56 = vld [vmem:[%s14772_s1 + $0x6a8] sm:$0xff] }
 0x133   :  { %v11864_v52 = vpop.f32.mrb[4].mxu1  ;;  %3799 = vmatprep.subr.bf16.mxu1 %v8140_v3  ;;  %4377 = vmatpush1.bf16.msra.mxu0 %v8005_v12  ;;  %15243 = vst [vmem:[#allocation106_spill] sm:$0xff] %v11876_v10  ;;  %v8147_v3 = vcombine.low %v570_v38, %v574_v49  ;;  %v8156_v12 = vcombine.high %v578_v46, %v582_v35  ;;  %v459_v38 = vld [vmem:[%s14772_s1 + $0x290] sm:$0xff] }
 0x134   :  { %15240 = vst [vmem:[#allocation103_spill] sm:$0xff] %v11864_v52  ;;  %v11866_v53 = vpop.f32.mrb[5].mxu1  ;;  %4378 = vmatprep.subr.bf16.mxu0 %v8014_v7  ;;  %v8021_v7 = vcombine.low %v443_v62, %v447_v13  ;;  %v463_v49 = vld [vmem:[%s14772_s1 + $0x2b0] sm:$0xff]  ;;  %v124_v62 = vld [vmem:[%s14771_s0 + $0x298] sm:$0xff]  ;;  %v8155_v13 = vcombine.low %v578_v46, %v582_v35 }
 0x135   :  { %15241 = vst [vmem:[#allocation104_spill] sm:$0xff] %v11866_v53  ;;  %v11874_v1 = vpop.f32.mrb[6].mxu1  ;;  %v598_v53 = vld [vmem:[%s14772_s1 + $0x6e8] sm:$0xff]  ;;  %v8038_v52 = vcombine.high %v459_v38, %v463_v49  ;;  %v467_v46 = vld [vmem:[%s14772_s1 + $0x2d0] sm:$0xff] }
 0x136   :  { %15242 = vst [vmem:[#allocation105_spill] sm:$0xff] %v11874_v1  ;;  %v11884_v43 = vpop.f32.mrb[7].mxu1  ;;  %3800 = vmatpush1.bf16.msra.mxu1 %v8139_v42  ;;  %v8030_v1 = vcombine.high %v451_v5, %v455_v30 }
 0x137   :  { %15244 = vst [vmem:[#allocation107_spill] sm:$0xff] %v11884_v43  ;;  %3801 = vmatprep.subr.bf16.mxu1 %v8148_v27  ;;  %4379 = vmatpush1.bf16.msra.mxu0 %v8013_v4  ;;  %v8164_v27 = vcombine.high %v586_v59, %v590_v56  ;;  %v8029_v4 = vcombine.low %v451_v5, %v455_v30  ;;  %v594_v43 = vld [vmem:[%s14772_s1 + $0x6c8] sm:$0xff]  ;;  %v471_v5 = vld [vmem:[%s14772_s1 + $0x2f0] sm:$0xff] }
 0x138   :  { %3665 = vmatmul.mubr.bf16.gmra.mrb[80].mxu1 %v10832_v14  ;;  %4380 = vmatprep.subr.bf16.mxu0 %v8022_v28  ;;  %v117_v28 = vld [vmem:[%s14771_s0 + $0x260] sm:$0xff] }
 0x139   :  { %8349 = vmatmul.mubr.msk.bf16.gmra.mrb[16].mxu0 %vm2771_vm0, %v11876_v10  ;;  %3674 = vmatprep.mubr.bf16.mxu1 %v10837_v48  ;;  %v11921_v35 = vpack.c.bf16 %v124_v62, %v117_v28  ;;  %v602_v28 = vld [vmem:[%s14772_s1 + $0x708] sm:$0xff] }
 0x13a   :  { %3481 = vmatprep.mubr.bf16.mxu0 %v15231_v26  ;;  %3802 = vmatpush1.bf16.msra.mxu1 %v8147_v3  ;;  %v606_v62 = vld [vmem:[%s14772_s1 + $0x728] sm:$0xff] }
 0x13b   :  { %v11909_v42 = vpop.f32.mrb[8].mxu1  ;;  %3803 = vmatprep.subr.bf16.mxu1 %v8156_v12  ;;  %4381 = vmatpush1.bf16.msra.mxu0 %v8021_v7  ;;  %15248 = vst [vmem:[#allocation111_spill] sm:$0xff] %v11921_v35  ;;  %v8163_v12 = vcombine.low %v586_v59, %v590_v56  ;;  %v8172_v7 = vcombine.high %v594_v43, %v598_v53  ;;  %v475_v59 = vld [vmem:[%s14772_s1 + $0x310] sm:$0xff] }
 0x13c   :  { %15245 = vst [vmem:[#allocation108_spill] sm:$0xff] %v11909_v42  ;;  %v11911_v10 = vpop.f32.mrb[9].mxu1  ;;  %4382 = vmatprep.subr.bf16.mxu0 %v8030_v1  ;;  %v8037_v1 = vcombine.low %v459_v38, %v463_v49  ;;  %v479_v56 = vld [vmem:[%s14772_s1 + $0x330] sm:$0xff]  ;;  %v138_v38 = vld [vmem:[%s14771_s0 + $0x308] sm:$0xff]  ;;  %v8171_v49 = vcombine.low %v594_v43, %v598_v53 }
 0x13d   :  { %15246 = vst [vmem:[#allocation109_spill] sm:$0xff] %v11911_v10  ;;  %v11919_v3 = vpop.f32.mrb[10].mxu1  ;;  %v614_v10 = vld [vmem:[%s14772_s1 + $0x768] sm:$0xff]  ;;  %v8054_v42 = vcombine.high %v475_v59, %v479_v56  ;;  %v483_v43 = vld [vmem:[%s14772_s1 + $0x350] sm:$0xff] }
 0x13e   :  { %15247 = vst [vmem:[#allocation110_spill] sm:$0xff] %v11919_v3  ;;  %v11929_v30 = vpop.f32.mrb[11].mxu1  ;;  %3804 = vmatpush1.bf16.msra.mxu1 %v8155_v13  ;;  %v8046_v3 = vcombine.high %v467_v46, %v471_v5 }
 0x13f   :  { %15249 = vst [vmem:[#allocation112_spill] sm:$0xff] %v11929_v30  ;;  %3805 = vmatprep.subr.bf16.mxu1 %v8164_v27  ;;  %4383 = vmatpush1.bf16.msra.mxu0 %v8029_v4  ;;  %v8180_v27 = vcombine.high %v602_v28, %v606_v62  ;;  %v8045_v4 = vcombine.low %v467_v46, %v471_v5  ;;  %v610_v30 = vld [vmem:[%s14772_s1 + $0x748] sm:$0xff]  ;;  %v487_v46 = vld [vmem:[%s14772_s1 + $0x370] sm:$0xff] }
 0x140   :  { %3675 = vmatmul.mubr.bf16.gmra.mrb[84].mxu1 %v10884_v51  ;;  %4384 = vmatprep.subr.bf16.mxu0 %v8038_v52  ;;  %v131_v52 = vld [vmem:[%s14771_s0 + $0x2d0] sm:$0xff] }
 0x141   :  { %8350 = vmatmul.mubr.msk.bf16.gmra.mrb[20].mxu0 %vm2771_vm0, %v11921_v35  ;;  %3684 = vmatprep.mubr.bf16.mxu1 %v10889_v29  ;;  %v11966_v53 = vpack.c.bf16 %v138_v38, %v131_v52  ;;  %v618_v52 = vld [vmem:[%s14772_s1 + $0x788] sm:$0xff] }
 0x142   :  { %3491 = vmatprep.mubr.bf16.mxu0 %v15231_v26  ;;  %3806 = vmatpush1.bf16.msra.mxu1 %v8163_v12  ;;  %v622_v38 = vld [vmem:[%s14772_s1 + $0x7a8] sm:$0xff] }
 0x143   :  { %v11954_v13 = vpop.f32.mrb[12].mxu1  ;;  %3807 = vmatprep.subr.bf16.mxu1 %v8172_v7  ;;  %4385 = vmatpush1.bf16.msra.mxu0 %v8037_v1  ;;  %15253 = vst [vmem:[#allocation116_spill] sm:$0xff] %v11966_v53  ;;  %v8179_v7 = vcombine.low %v602_v28, %v606_v62  ;;  %v8188_v1 = vcombine.high %v610_v30, %v614_v10  ;;  %v491_v28 = vld [vmem:[%s14772_s1 + $0x390] sm:$0xff] }
 0x144   :  { %15250 = vst [vmem:[#allocation113_spill] sm:$0xff] %v11954_v13  ;;  %v11956_v35 = vpop.f32.mrb[13].mxu1  ;;  %4386 = vmatprep.subr.bf16.mxu0 %v8046_v3  ;;  %v8053_v3 = vcombine.low %v475_v59, %v479_v56  ;;  %v495_v62 = vld [vmem:[%s14772_s1 + $0x3b0] sm:$0xff]  ;;  %v152_v59 = vld [vmem:[%s14771_s0 + $0x378] sm:$0xff]  ;;  %v8187_v56 = vcombine.low %v610_v30, %v614_v10 }
 0x145   :  { %15251 = vst [vmem:[#allocation114_spill] sm:$0xff] %v11956_v35  ;;  %v11964_v12 = vpop.f32.mrb[14].mxu1  ;;  %v630_v35 = vld [vmem:[%s14772_s1 + $0x7e8] sm:$0xff]  ;;  %v8070_v13 = vcombine.high %v491_v28, %v495_v62  ;;  %v499_v30 = vld [vmem:[%s14772_s1 + $0x3d0] sm:$0xff] }
 0x146   :  { %15252 = vst [vmem:[#allocation115_spill] sm:$0xff] %v11964_v12  ;;  %v11974_v5 = vpop.f32.mrb[15].mxu1  ;;  %3808 = vmatpush1.bf16.msra.mxu1 %v8171_v49  ;;  %v8062_v12 = vcombine.high %v483_v43, %v487_v46 }
 0x147   :  { %15254 = vst [vmem:[#allocation117_spill] sm:$0xff] %v11974_v5  ;;  %3809 = vmatprep.subr.bf16.mxu1 %v8180_v27  ;;  %4387 = vmatpush1.bf16.msra.mxu0 %v8045_v4  ;;  %v8196_v27 = vcombine.high %v618_v52, %v622_v38  ;;  %v8061_v4 = vcombine.low %v483_v43, %v487_v46  ;;  %v626_v5 = vld [vmem:[%s14772_s1 + $0x7c8] sm:$0xff] }
 0x148   :  { %3685 = vmatmul.mubr.bf16.gmra.mrb[88].mxu1 %v10936_v18  ;;  %4388 = vmatprep.subr.bf16.mxu0 %v8054_v42  ;;  %v145_v42 = vld [vmem:[%s14771_s0 + $0x340] sm:$0xff]  ;;  %v8195_v46 = vcombine.low %v618_v52, %v622_v38  ;;  %v166_v52 = vld [vmem:[%s14771_s0 + $0x3e8] sm:$0xff]  ;;  %v8203_v38 = vcombine.low %v626_v5, %v630_v35 }
 0x149   :  { %8351 = vmatmul.mubr.msk.bf16.gmra.mrb[24].mxu0 %vm2771_vm0, %v11966_v53  ;;  %3694 = vmatprep.mubr.bf16.mxu1 %v10941_v11  ;;  %v12011_v10 = vpack.c.bf16 %v152_v59, %v145_v42  ;;  %v159_v59 = vld [vmem:[%s14771_s0 + $0x3b0] sm:$0xff] }
 0x14a   :  { %3501 = vmatprep.mubr.bf16.mxu0 %v15231_v26  ;;  %3810 = vmatpush1.bf16.msra.mxu1 %v8179_v7 }
 0x14b   :  { %v11999_v49 = vpop.f32.mrb[16].mxu1  ;;  %3811 = vmatprep.subr.bf16.mxu1 %v8188_v1  ;;  %4389 = vmatpush1.bf16.msra.mxu0 %v8053_v3  ;;  %15255 = vst [vmem:[#allocation118_spill] sm:$0xff] %v12011_v10  ;;  %v8204_v1 = vcombine.high %v626_v5, %v630_v35  ;;  %v8069_v3 = vcombine.low %v491_v28, %v495_v62  ;;  %v12047_v35 = vld [vmem:[%s14772_s1 + $0x410] sm:$0xff] }
 0x14c   :  { %v12001_v53 = vpop.f32.mrb[17].mxu1  ;;  %4390 = vmatprep.subr.bf16.mxu0 %v8062_v12  ;;  %v503_v12 = vld [vmem:[%s14772_s1 + $0x3f0] sm:$0xff]  ;;  %v8212_v62 = vcombine.high %v11717_v37, %v11722_v44 }
 0x14d   :  { %v12009_v7 = vpop.f32.mrb[18].mxu1  ;;  %v8078_v42 = vcombine.high %v499_v30, %v503_v12  ;;  %v12052_v5 = vld [vmem:[%s14772_s1 + $0x430] sm:$0xff] }
 0x14e   :  { %v12019_v43 = vpop.f32.mrb[19].mxu1  ;;  %3812 = vmatpush1.bf16.msra.mxu1 %v8187_v56 }
 0x14f   :  { %3813 = vmatprep.subr.bf16.mxu1 %v8196_v27  ;;  %4391 = vmatpush1.bf16.msra.mxu0 %v8061_v4  ;;  %v12040_v4 = vpack.c.bf16 %v166_v52, %v159_v59 }
 0x150   :  { %3695 = vmatmul.mubr.bf16.gmra.mrb[92].mxu1 %v10988_v50  ;;  %4392 = vmatprep.subr.bf16.mxu0 %v8070_v13  ;;  %v8077_v13 = vcombine.low %v499_v30, %v503_v12  ;;  %v8086_v30 = vcombine.high %v12047_v35, %v12052_v5 }
 0x151   :  { %8352 = vmatmul.mubr.msk.bf16.gmra.mrb[28].mxu0 %vm2771_vm0, %v12011_v10  ;;  %3704 = vmatprep.mubr.bf16.mxu1 %v10993_v32  ;;  %15256 = vst [vmem:[#allocation119_spill] sm:$0xff] %v12040_v4 }
 0x152   :  { %3511 = vmatprep.mubr.bf16.mxu0 %v15231_v26  ;;  %3814 = vmatpush1.bf16.msra.mxu1 %v8195_v46  ;;  %v173_v46 = vld [vmem:[%s14771_s0 + $0x420] sm:$0xff] }
 0x153   :  { %v12032_v28 = vpop.f32.mrb[20].mxu1  ;;  %3815 = vmatprep.subr.bf16.mxu1 %v8204_v1  ;;  %4393 = vmatpush1.bf16.msra.mxu0 %v8069_v3  ;;  %v180_v1 = vld [vmem:[%s14771_s0 + $0x458] sm:$0xff] }
 0x154   :  { %v12036_v56 = vpop.f32.mrb[21].mxu1  ;;  %4394 = vmatprep.subr.bf16.mxu0 %v8078_v42  ;;  %v12075_v52 = vpack.c.bf16 %v180_v1, %v173_v46 }
 0x155   :  { %v12038_v27 = vpop.f32.mrb[22].mxu1 }
 0x156   :  { %v12042_v10 = vpop.f32.mrb[23].mxu1  ;;  %3816 = vmatpush1.bf16.msra.mxu1 %v8203_v38  ;;  %15260 = vst [vmem:[#allocation123_spill] sm:$0xff] %v12075_v52 }
 0x157   :  { %4395 = vmatpush1.bf16.msra.mxu0 %v8077_v13  ;;  %3978 = vmatprep.subr.bf16.mxu1 %v8212_v62  ;;  %v187_v13 = vld [vmem:[%s14771_s0 + $0x490] sm:$0xff]  ;;  %v194_v62 = vld [vmem:[%s14771_s0 + $0x4c8] sm:$0xff] }
 0x158   :  { %3705 = vmatmul.mubr.bf16.gmra.mrb[96].mxu1 %v11034_v36  ;;  %4557 = vmatprep.subr.bf16.mxu0 %v8086_v30  ;;  %v12096_v12 = vpack.c.bf16 %v194_v62, %v187_v13  ;;  %v208_v13 = vld [vmem:[%s14771_s0 + $0x538] sm:$0xff] }
 0x159   :  { %8353 = vmatmul.mubr.msk.bf16.gmra.mrb[32].mxu0 %vm2771_vm0, %v12040_v4  ;;  %3714 = vmatprep.mubr.bf16.mxu1 %v11041_v22  ;;  %v201_v4 = vld [vmem:[%s14771_s0 + $0x500] sm:$0xff] }
 0x15a   :  { %3521 = vmatprep.mubr.bf16.mxu0 %v15231_v26  ;;  %15265 = vst [vmem:[#allocation128_spill] sm:$0xff] %v12096_v12  ;;  %v12111_v62 = vpack.c.bf16 %v208_v13, %v201_v4  ;;  %v229_v4 = vld [vmem:[%s14771_s0 + $0x5e0] sm:$0xff]  ;;  %v236_v13 = vld [vmem:[%s14771_s0 + $0x618] sm:$0xff] }
 0x15b   :  { %v12069_v3 = vpop.f32.mrb[24].mxu1 }
 0x15c   :  { %15257 = vst [vmem:[#allocation120_spill] sm:$0xff] %v12069_v3  ;;  %v12071_v42 = vpop.f32.mrb[25].mxu1  ;;  %15267 = vst [vmem:[#allocation130_spill] sm:$0xff] %v12111_v62 }
 0x15d   :  { %15258 = vst [vmem:[#allocation121_spill] sm:$0xff] %v12071_v42  ;;  %v12073_v59 = vpop.f32.mrb[26].mxu1 }
 0x15e   :  { %15259 = vst [vmem:[#allocation122_spill] sm:$0xff] %v12073_v59  ;;  %v12077_v38 = vpop.f32.mrb[27].mxu1  ;;  %v527_v59 = vld [vmem:[%s14772_s1 + $0x4b0] sm:$0xff] }
 0x15f   :  { %15261 = vst [vmem:[#allocation124_spill] sm:$0xff] %v12077_v38  ;;  %v523_v38 = vld [vmem:[%s14772_s1 + $0x490] sm:$0xff] }
 0x160   :  { %3715 = vmatmul.mubr.bf16.gmra.mrb[100].mxu1 %v11074_v34  ;;  %v8102_v3 = vcombine.high %v523_v38, %v527_v59 }
 0x161   :  { %8354 = vmatmul.mubr.msk.bf16.gmra.mrb[36].mxu0 %vm2771_vm0, %v12075_v52  ;;  %3724 = vmatprep.mubr.bf16.mxu1 %v11078_v0 }
 0x162   :  { %3531 = vmatprep.mubr.bf16.mxu0 %v15231_v26 }
 0x163   :  { %v12090_v30 = vpop.f32.mrb[28].mxu1 }
 0x164   :  { %15262 = vst [vmem:[#allocation125_spill] sm:$0xff] %v12090_v30  ;;  %v12092_v46 = vpop.f32.mrb[29].mxu1 }
 0x165   :  { %15263 = vst [vmem:[#allocation126_spill] sm:$0xff] %v12092_v46  ;;  %v12094_v1 = vpop.f32.mrb[30].mxu1  ;;  %v15272_v46 = vcombine.low %v11717_v37, %v11722_v44  ;;  %v12209_v37 = vld [vmem:[%s14772_s1 + $0xc28] sm:$0xff]  ;;  %v15273_v44 = vcombine.low %v12047_v35, %v12052_v5  ;;  %v531_v35 = vld [vmem:[%s14772_s1 + $0x4d0] sm:$0xff] }
 0x166   :  { %15264 = vst [vmem:[#allocation127_spill] sm:$0xff] %v12094_v1  ;;  %v12098_v52 = vpop.f32.mrb[31].mxu1  ;;  %v535_v5 = vld [vmem:[%s14772_s1 + $0x4f0] sm:$0xff] }
 0x167   :  { %15266 = vst [vmem:[#allocation129_spill] sm:$0xff] %v12098_v52  ;;  %v222_v52 = vld [vmem:[%s14771_s0 + $0x5a8] sm:$0xff] }
 0x168   :  { %3725 = vmatmul.mubr.bf16.gmra.mrb[104].mxu1 %v11110_v17 }
 0x169   :  { %8355 = vmatmul.mubr.msk.bf16.gmra.mrb[40].mxu0 %vm2771_vm0, %v12096_v12  ;;  %3734 = vmatprep.mubr.bf16.mxu1 %v11114_v24  ;;  %v215_v12 = vld [vmem:[%s14771_s0 + $0x570] sm:$0xff] }
 0x16a   :  { %3541 = vmatprep.mubr.bf16.mxu0 %v15231_v26  ;;  %v12124_v1 = vpack.c.bf16 %v222_v52, %v215_v12  ;;  %v243_v12 = vld [vmem:[%s14771_s0 + $0x650] sm:$0xff]  ;;  %v250_v52 = vld [vmem:[%s14771_s0 + $0x688] sm:$0xff] }
 0x16c   :  { %15268 = vst [vmem:[#allocation131_spill] sm:$0xff] %v12124_v1 }
 0x170   :  { %3735 = vmatmul.mubr.bf16.gmra.mrb[108].mxu1 %v11146_v45 }
 0x171   :  { %8356 = vmatmul.mubr.msk.bf16.gmra.mrb[44].mxu0 %vm2771_vm0, %v12111_v62  ;;  %3744 = vmatprep.mubr.bf16.mxu1 %v11150_v15  ;;  %v12137_v62 = vpack.c.bf16 %v236_v13, %v229_v4  ;;  %v257_v4 = vld [vmem:[%s14771_s0 + $0x6c0] sm:$0xff]  ;;  %v264_v13 = vld [vmem:[%s14771_s0 + $0x6f8] sm:$0xff] }
 0x172   :  { %3551 = vmatprep.mubr.bf16.mxu0 %v15231_v26 }
 0x173   :  { %15269 = vst [vmem:[#allocation132_spill] sm:$0xff] %v12137_v62 }
 0x178   :  { %3745 = vmatmul.mubr.bf16.gmra.mrb[112].mxu1 %v11182_v21 }
 0x179   :  { %8357 = vmatmul.mubr.msk.bf16.gmra.mrb[48].mxu0 %vm2771_vm0, %v12124_v1  ;;  %3754 = vmatprep.mubr.bf16.mxu1 %v11186_v8  ;;  %v12150_v1 = vpack.c.bf16 %v250_v52, %v243_v12  ;;  %v642_v12 = vld [vmem:[%s14772_s1 + $0x848] sm:$0xff] }
 0x17a   :  { %3561 = vmatprep.mubr.bf16.mxu0 %v15231_v26  ;;  %v646_v52 = vld [vmem:[%s14772_s1 + $0x868] sm:$0xff] }
 0x17b   :  { %15270 = vst [vmem:[#allocation133_spill] sm:$0xff] %v12150_v1  ;;  %v8219_v30 = vcombine.low %v642_v12, %v646_v52 }
 0x180   :  { %3755 = vmatmul.mubr.bf16.gmra.mrb[116].mxu1 %v11218_v41 }
 0x181   :  { %8358 = vmatmul.mubr.msk.bf16.gmra.mrb[52].mxu0 %vm2771_vm0, %v12137_v62  ;;  %3764 = vmatprep.mubr.bf16.mxu1 %v11222_v23  ;;  %v12163_v62 = vpack.c.bf16 %v264_v13, %v257_v4  ;;  %v515_v4 = vld [vmem:[%s14772_s1 + $0x450] sm:$0xff] }
 0x182   :  { %3571 = vmatprep.mubr.bf16.mxu0 %v15231_v26  ;;  %v519_v13 = vld [vmem:[%s14772_s1 + $0x470] sm:$0xff] }
 0x183   :  { %15271 = vst [vmem:[#allocation134_spill] sm:$0xff] %v12163_v62 }
 0x188   :  { %3765 = vmatmul.mubr.bf16.gmra.mrb[120].mxu1 %v11254_v55 }
 0x189   :  { %8359 = vmatmul.mubr.msk.bf16.gmra.mrb[56].mxu0 %vm2771_vm0, %v12150_v1  ;;  %3774 = vmatprep.mubr.bf16.mxu1 %v11258_v19  ;;  %v654_v1 = vld [vmem:[%s14772_s1 + $0x8a8] sm:$0xff] }
 0x18a   :  { %3581 = vmatprep.mubr.bf16.mxu0 %v15231_v26  ;;  %v8094_v26 = vcombine.high %v515_v4, %v519_v13 }
 0x190   :  { %3775 = vmatmul.mubr.bf16.gmra.mrb[124].mxu1 %v11290_v31 }
 0x191   :  { %8360 = vmatmul.mubr.msk.bf16.gmra.mrb[60].mxu0 %vm2771_vm0, %v12163_v62  ;;  %3817 = vmatprep.mubr.bf16.mxu1 %v10419_v63  ;;  %v8220_v62 = vcombine.high %v642_v12, %v646_v52  ;;  %v658_v52 = vld [vmem:[%s14772_s1 + $0x8c8] sm:$0xff] }
 0x192   :  { %4396 = vmatprep.mubr.bf16.mxu0 %v10405_v58  ;;  %v650_v58 = vld [vmem:[%s14772_s1 + $0x888] sm:$0xff] }
 0x193   :  { %v8228_v42 = vcombine.high %v650_v58, %v654_v1 }
 0x198   :  { %3818 = vmatmul.mubr.bf16.vlgmr.msra.gmra.mrb[64].mxu1 %v10615_v61 }
 0x199   :  { %4397 = vmatmul.mubr.bf16.vlgmr.msra.gmra.mrb[64].mxu0 %v10604_v54  ;;  %3979 = vmatpush1.bf16.msra.mxu1 %v15272_v46  ;;  %v12204_v54 = vld [vmem:[%s14772_s1 + $0xc08] sm:$0xff]  ;;  %v8093_v46 = vcombine.low %v515_v4, %v519_v13  ;;  %v8101_v13 = vcombine.low %v523_v38, %v527_v59 }
 0x19a   :  { %3827 = vmatprep.mubr.bf16.mxu1 %v10621_v6  ;;  %4406 = vmatprep.mubr.bf16.mxu0 %v10619_v2  ;;  %v662_v2 = vld [vmem:[%s14772_s1 + $0x8e8] sm:$0xff] }
 0x19b   :  { %3980 = vmatprep.subr.bf16.mxu1 %v8220_v62  ;;  %4558 = vmatpush1.bf16.msra.mxu0 %v15273_v44  ;;  %v8227_v62 = vcombine.low %v650_v58, %v654_v1  ;;  %v8236_v4 = vcombine.high %v658_v52, %v662_v2  ;;  %v8110_v44 = vcombine.high %v531_v35, %v535_v5  ;;  %v539_v58 = vld [vmem:[%s14772_s1 + $0x510] sm:$0xff]  ;;  %v674_v1 = vld [vmem:[%s14772_s1 + $0x948] sm:$0xff] }
 0x19c   :  { %4559 = vmatprep.subr.bf16.mxu0 %v8094_v26  ;;  %v666_v26 = vld [vmem:[%s14772_s1 + $0x908] sm:$0xff]  ;;  %v8235_v59 = vcombine.low %v658_v52, %v662_v2  ;;  %v551_v2 = vld [vmem:[%s14772_s1 + $0x570] sm:$0xff] }
 0x19d   :  { %3981 = vmatpush1.bf16.msra.mxu1 %v8219_v30  ;;  %v670_v30 = vld [vmem:[%s14772_s1 + $0x928] sm:$0xff] }
 0x19e   :  { %3982 = vmatprep.subr.bf16.mxu1 %v8228_v42  ;;  %v543_v42 = vld [vmem:[%s14772_s1 + $0x530] sm:$0xff]  ;;  %v8244_v38 = vcombine.high %v666_v26, %v670_v30  ;;  %v8243_v52 = vcombine.low %v666_v26, %v670_v30 }
 0x19f   :  { %4560 = vmatpush1.bf16.msra.mxu0 %v8093_v46  ;;  %v678_v46 = vld [vmem:[%s14772_s1 + $0x968] sm:$0xff]  ;;  %v8118_v12 = vcombine.high %v539_v58, %v543_v42  ;;  %v555_v26 = vld [vmem:[%s14772_s1 + $0x590] sm:$0xff] }
 0x1a0   :  { %3828 = vmatmul.mubr.bf16.gmra.mrb[68].mxu1 %v10667_v39  ;;  %4561 = vmatprep.subr.bf16.mxu0 %v8102_v3  ;;  %v8109_v3 = vcombine.low %v531_v35, %v535_v5  ;;  %v8252_v35 = vcombine.high %v674_v1, %v678_v46  ;;  %v8117_v5 = vcombine.low %v539_v58, %v543_v42  ;;  %v559_v30 = vld [vmem:[%s14772_s1 + $0x5b0] sm:$0xff] }
 0x1a1   :  { %4407 = vmatmul.mubr.bf16.gmra.mrb[68].mxu0 %v10658_v33  ;;  %3837 = vmatprep.mubr.bf16.mxu1 %v10672_v47  ;;  %v702_v33 = vld [vmem:[%s14772_s1 + $0xa28] sm:$0xff] }
 0x1a2   :  { %4416 = vmatprep.mubr.bf16.mxu0 %v10670_v40  ;;  %3983 = vmatpush1.bf16.msra.mxu1 %v8227_v62  ;;  %v547_v40 = vld [vmem:[%s14772_s1 + $0x550] sm:$0xff]  ;;  %v682_v62 = vld [vmem:[%s14772_s1 + $0x988] sm:$0xff] }
 0x1a3   :  { %3984 = vmatprep.subr.bf16.mxu1 %v8236_v4  ;;  %4562 = vmatpush1.bf16.msra.mxu0 %v8101_v13  ;;  %v686_v4 = vld [vmem:[%s14772_s1 + $0x9a8] sm:$0xff]  ;;  %v8126_v13 = vcombine.high %v547_v40, %v551_v2  ;;  %v8125_v42 = vcombine.low %v547_v40, %v551_v2  ;;  %v567_v40 = vld [vmem:[%s14772_s1 + $0x5f0] sm:$0xff] }
 0x1a4   :  { %4563 = vmatprep.subr.bf16.mxu0 %v8110_v44  ;;  %v8251_v44 = vcombine.low %v674_v1, %v678_v46  ;;  %v563_v1 = vld [vmem:[%s14772_s1 + $0x5d0] sm:$0xff]  ;;  %v8259_v2 = vcombine.low %v682_v62, %v686_v4 }
 0x1a6   :  { %3985 = vmatpush1.bf16.msra.mxu1 %v8235_v59 }
 0x1a7   :  { %3986 = vmatprep.subr.bf16.mxu1 %v8244_v38  ;;  %4564 = vmatpush1.bf16.msra.mxu0 %v8109_v3  ;;  %v690_v38 = vld [vmem:[%s14772_s1 + $0x9c8] sm:$0xff] }
 0x1a8   :  { %3838 = vmatmul.mubr.bf16.gmra.mrb[72].mxu1 %v10731_v9  ;;  %4565 = vmatprep.subr.bf16.mxu0 %v8118_v12  ;;  %v8260_v12 = vcombine.high %v682_v62, %v686_v4  ;;  %v694_v3 = vld [vmem:[%s14772_s1 + $0x9e8] sm:$0xff]  ;;  %v571_v62 = vld [vmem:[%s14772_s1 + $0x610] sm:$0xff] }
 0x1a9   :  { %4417 = vmatmul.mubr.bf16.gmra.mrb[72].mxu0 %v10722_v16  ;;  %3847 = vmatprep.mubr.bf16.mxu1 %v10735_v25  ;;  %v698_v16 = vld [vmem:[%s14772_s1 + $0xa08] sm:$0xff]  ;;  %v575_v4 = vld [vmem:[%s14772_s1 + $0x630] sm:$0xff] }
 0x1aa   :  { %4426 = vmatprep.mubr.bf16.mxu0 %v10733_v20  ;;  %3987 = vmatpush1.bf16.msra.mxu1 %v8243_v52  ;;  %v8134_v20 = vcombine.high %v555_v26, %v559_v30 }
 0x1ab   :  { %v12272_v58 = vpop.f32.mrb[32].mxu1  ;;  %3988 = vmatprep.subr.bf16.mxu1 %v8252_v35  ;;  %4566 = vmatpush1.bf16.msra.mxu0 %v8117_v5  ;;  %v8268_v35 = vcombine.high %v690_v38, %v694_v3  ;;  %v8133_v5 = vcombine.low %v555_v26, %v559_v30  ;;  %v8267_v26 = vcombine.low %v690_v38, %v694_v3  ;;  %v579_v38 = vld [vmem:[%s14772_s1 + $0x650] sm:$0xff] }
 0x1ac   :  { %v12274_v59 = vpop.f32.mrb[33].mxu1  ;;  %4567 = vmatprep.subr.bf16.mxu0 %v8126_v13  ;;  %v15275_v13 = vld [vmem:[#allocation17_spill] sm:$0xff]  ;;  %v583_v3 = vld [vmem:[%s14772_s1 + $0x670] sm:$0xff] }
 0x1ad   :  { %v12282_v52 = vpop.f32.mrb[34].mxu1 }
 0x1ae   :  { %15274 = vst [vmem:[#allocation135_spill] sm:$0xff] %v12282_v52  ;;  %v12290_v46 = vpop.f32.mrb[35].mxu1  ;;  %3989 = vmatpush1.bf16.msra.mxu1 %v8251_v44  ;;  %v8142_v52 = vcombine.high %v563_v1, %v567_v40  ;;  %v15276_v44 = vld [vmem:[#allocation19_spill] sm:$0xff] }
 0x1af   :  { %3990 = vmatprep.subr.bf16.mxu1 %v8260_v12  ;;  %4568 = vmatpush1.bf16.msra.mxu0 %v8125_v42  ;;  %v8141_v12 = vcombine.low %v563_v1, %v567_v40  ;;  %v8275_v40 = vcombine.low %v698_v16, %v702_v33 }
 0x1b0   :  { %3848 = vmatmul.mubr.bf16.gmra.mrb[76].mxu1 %v15275_v13  ;;  %4569 = vmatprep.subr.bf16.mxu0 %v8134_v20  ;;  %v8276_v20 = vcombine.high %v698_v16, %v702_v33  ;;  %v587_v33 = vld [vmem:[%s14772_s1 + $0x690] sm:$0xff] }
 0x1b1   :  { %4427 = vmatmul.mubr.bf16.gmra.mrb[76].mxu0 %v10780_v57  ;;  %3857 = vmatprep.mubr.bf16.mxu1 %v15276_v44  ;;  %v706_v57 = vld [vmem:[%s14772_s1 + $0xa48] sm:$0xff]  ;;  %v591_v16 = vld [vmem:[%s14772_s1 + $0x6b0] sm:$0xff] }
 0x1b2   :  { %4436 = vmatprep.mubr.bf16.mxu0 %v10785_v60  ;;  %3991 = vmatpush1.bf16.msra.mxu1 %v8259_v2  ;;  %v710_v44 = vld [vmem:[%s14772_s1 + $0xa68] sm:$0xff]  ;;  %v8150_v60 = vcombine.high %v571_v62, %v575_v4 }
 0x1b3   :  { %v12308_v30 = vpop.f32.mrb[36].mxu1  ;;  %3992 = vmatprep.subr.bf16.mxu1 %v8268_v35  ;;  %4570 = vmatpush1.bf16.msra.mxu0 %v8133_v5  ;;  %v8284_v35 = vcombine.high %v706_v57, %v710_v44  ;;  %v8149_v5 = vcombine.low %v571_v62, %v575_v4  ;;  %v8283_v62 = vcombine.low %v706_v57, %v710_v44  ;;  %v595_v57 = vld [vmem:[%s14772_s1 + $0x6d0] sm:$0xff] }
 0x1b4   :  { %15277 = vst [vmem:[#allocation136_spill] sm:$0xff] %v12308_v30  ;;  %v12310_v42 = vpop.f32.mrb[37].mxu1  ;;  %4571 = vmatprep.subr.bf16.mxu0 %v8142_v52  ;;  %v15280_v52 = vld [vmem:[#allocation21_spill] sm:$0xff]  ;;  %v8158_v30 = vcombine.high %v579_v38, %v583_v3  ;;  %v599_v44 = vld [vmem:[%s14772_s1 + $0x6f0] sm:$0xff] }
 0x1b5   :  { %15278 = vst [vmem:[#allocation137_spill] sm:$0xff] %v12310_v42  ;;  %v12318_v2 = vpop.f32.mrb[38].mxu1  ;;  %v718_v42 = vld [vmem:[%s14772_s1 + $0xaa8] sm:$0xff] }
 0x1b6   :  { %15279 = vst [vmem:[#allocation138_spill] sm:$0xff] %v12318_v2  ;;  %v12326_v1 = vpop.f32.mrb[39].mxu1  ;;  %3993 = vmatpush1.bf16.msra.mxu1 %v8267_v26  ;;  %v714_v2 = vld [vmem:[%s14772_s1 + $0xa88] sm:$0xff]  ;;  %v15281_v26 = vld [vmem:[#allocation23_spill] sm:$0xff] }
 0x1b7   :  { %3994 = vmatprep.subr.bf16.mxu1 %v8276_v20  ;;  %4572 = vmatpush1.bf16.msra.mxu0 %v8141_v12  ;;  %v8157_v20 = vcombine.low %v579_v38, %v583_v3  ;;  %v8291_v3 = vcombine.low %v714_v2, %v718_v42 }
 0x1b8   :  { %3858 = vmatmul.mubr.bf16.gmra.mrb[80].mxu1 %v15280_v52  ;;  %4573 = vmatprep.subr.bf16.mxu0 %v8150_v60  ;;  %v8292_v60 = vcombine.high %v714_v2, %v718_v42  ;;  %v603_v42 = vld [vmem:[%s14772_s1 + $0x710] sm:$0xff] }
 0x1b9   :  { %4437 = vmatmul.mubr.bf16.gmra.mrb[80].mxu0 %v10832_v14  ;;  %3867 = vmatprep.mubr.bf16.mxu1 %v15281_v26  ;;  %v722_v14 = vld [vmem:[%s14772_s1 + $0xac8] sm:$0xff]  ;;  %v607_v2 = vld [vmem:[%s14772_s1 + $0x730] sm:$0xff] }
 0x1ba   :  { %4446 = vmatprep.mubr.bf16.mxu0 %v10837_v48  ;;  %3995 = vmatpush1.bf16.msra.mxu1 %v8275_v40  ;;  %v726_v26 = vld [vmem:[%s14772_s1 + $0xae8] sm:$0xff]  ;;  %v8166_v48 = vcombine.high %v587_v33, %v591_v16 }
 0x1bb   :  { %v12344_v4 = vpop.f32.mrb[40].mxu1  ;;  %3996 = vmatprep.subr.bf16.mxu1 %v8284_v35  ;;  %4574 = vmatpush1.bf16.msra.mxu0 %v8149_v5  ;;  %v8300_v35 = vcombine.high %v722_v14, %v726_v26  ;;  %v8165_v5 = vcombine.low %v587_v33, %v591_v16  ;;  %v8299_v33 = vcombine.low %v722_v14, %v726_v26  ;;  %v611_v14 = vld [vmem:[%s14772_s1 + $0x750] sm:$0xff] }
 0x1bc   :  { %15282 = vst [vmem:[#allocation139_spill] sm:$0xff] %v12344_v4  ;;  %v12346_v12 = vpop.f32.mrb[41].mxu1  ;;  %4575 = vmatprep.subr.bf16.mxu0 %v8158_v30  ;;  %v15285_v30 = vld [vmem:[#allocation25_spill] sm:$0xff]  ;;  %v8174_v4 = vcombine.high %v595_v57, %v599_v44  ;;  %v615_v26 = vld [vmem:[%s14772_s1 + $0x770] sm:$0xff] }
 0x1bd   :  { %15283 = vst [vmem:[#allocation140_spill] sm:$0xff] %v12346_v12  ;;  %v12354_v40 = vpop.f32.mrb[42].mxu1  ;;  %v734_v12 = vld [vmem:[%s14772_s1 + $0xb28] sm:$0xff] }
 0x1be   :  { %15284 = vst [vmem:[#allocation141_spill] sm:$0xff] %v12354_v40  ;;  %v12362_v38 = vpop.f32.mrb[43].mxu1  ;;  %3997 = vmatpush1.bf16.msra.mxu1 %v8283_v62  ;;  %v730_v40 = vld [vmem:[%s14772_s1 + $0xb08] sm:$0xff]  ;;  %v15286_v62 = vld [vmem:[#allocation27_spill] sm:$0xff] }
 0x1bf   :  { %3998 = vmatprep.subr.bf16.mxu1 %v8292_v60  ;;  %4576 = vmatpush1.bf16.msra.mxu0 %v8157_v20  ;;  %v8173_v60 = vcombine.low %v595_v57, %v599_v44  ;;  %v8307_v44 = vcombine.low %v730_v40, %v734_v12 }
 0x1c0   :  { %3868 = vmatmul.mubr.bf16.gmra.mrb[84].mxu1 %v15285_v30  ;;  %4577 = vmatprep.subr.bf16.mxu0 %v8166_v48  ;;  %v8308_v48 = vcombine.high %v730_v40, %v734_v12  ;;  %v619_v12 = vld [vmem:[%s14772_s1 + $0x790] sm:$0xff] }
 0x1c1   :  { %4447 = vmatmul.mubr.bf16.gmra.mrb[84].mxu0 %v10884_v51  ;;  %3877 = vmatprep.mubr.bf16.mxu1 %v15286_v62  ;;  %v738_v51 = vld [vmem:[%s14772_s1 + $0xb48] sm:$0xff]  ;;  %v623_v40 = vld [vmem:[%s14772_s1 + $0x7b0] sm:$0xff] }
 0x1c2   :  { %4456 = vmatprep.mubr.bf16.mxu0 %v10889_v29  ;;  %3999 = vmatpush1.bf16.msra.mxu1 %v8291_v3  ;;  %v742_v62 = vld [vmem:[%s14772_s1 + $0xb68] sm:$0xff]  ;;  %v8182_v29 = vcombine.high %v603_v42, %v607_v2 }
 0x1c3   :  { %v12380_v16 = vpop.f32.mrb[44].mxu1  ;;  %4000 = vmatprep.subr.bf16.mxu1 %v8300_v35  ;;  %4578 = vmatpush1.bf16.msra.mxu0 %v8165_v5  ;;  %v8316_v35 = vcombine.high %v738_v51, %v742_v62  ;;  %v8181_v5 = vcombine.low %v603_v42, %v607_v2  ;;  %v8315_v42 = vcombine.low %v738_v51, %v742_v62  ;;  %v627_v51 = vld [vmem:[%s14772_s1 + $0x7d0] sm:$0xff] }
 0x1c4   :  { %15287 = vst [vmem:[#allocation142_spill] sm:$0xff] %v12380_v16  ;;  %v12382_v20 = vpop.f32.mrb[45].mxu1  ;;  %4579 = vmatprep.subr.bf16.mxu0 %v8174_v4  ;;  %v15290_v4 = vld [vmem:[#allocation29_spill] sm:$0xff]  ;;  %v8190_v16 = vcombine.high %v611_v14, %v615_v26  ;;  %v631_v62 = vld [vmem:[%s14772_s1 + $0x7f0] sm:$0xff] }
 0x1c5   :  { %15288 = vst [vmem:[#allocation143_spill] sm:$0xff] %v12382_v20  ;;  %v12390_v3 = vpop.f32.mrb[46].mxu1  ;;  %v750_v20 = vld [vmem:[%s14772_s1 + $0xba8] sm:$0xff] }
 0x1c6   :  { %15289 = vst [vmem:[#allocation144_spill] sm:$0xff] %v12390_v3  ;;  %v12398_v57 = vpop.f32.mrb[47].mxu1  ;;  %4001 = vmatpush1.bf16.msra.mxu1 %v8299_v33  ;;  %v746_v3 = vld [vmem:[%s14772_s1 + $0xb88] sm:$0xff]  ;;  %v15291_v33 = vld [vmem:[#allocation31_spill] sm:$0xff] }
 0x1c7   :  { %4002 = vmatprep.subr.bf16.mxu1 %v8308_v48  ;;  %4580 = vmatpush1.bf16.msra.mxu0 %v8173_v60  ;;  %v8189_v48 = vcombine.low %v611_v14, %v615_v26  ;;  %v8323_v14 = vcombine.low %v746_v3, %v750_v20 }
 0x1c8   :  { %3878 = vmatmul.mubr.bf16.gmra.mrb[88].mxu1 %v15290_v4  ;;  %4581 = vmatprep.subr.bf16.mxu0 %v8182_v29  ;;  %v8324_v29 = vcombine.high %v746_v3, %v750_v20  ;;  %v8205_v20 = vcombine.low %v627_v51, %v631_v62  ;;  %v8340_v3 = vcombine.high %v12204_v54, %v12209_v37 }
 0x1c9   :  { %4457 = vmatmul.mubr.bf16.gmra.mrb[88].mxu0 %v10936_v18  ;;  %3887 = vmatprep.mubr.bf16.mxu1 %v15291_v33  ;;  %v754_v18 = vld [vmem:[%s14772_s1 + $0xbc8] sm:$0xff] }
 0x1ca   :  { %4466 = vmatprep.mubr.bf16.mxu0 %v10941_v11  ;;  %4003 = vmatpush1.bf16.msra.mxu1 %v8307_v44  ;;  %v758_v33 = vld [vmem:[%s14772_s1 + $0xbe8] sm:$0xff]  ;;  %v8198_v11 = vcombine.high %v619_v12, %v623_v40 }
 0x1cb   :  { %v12416_v2 = vpop.f32.mrb[48].mxu1  ;;  %4004 = vmatprep.subr.bf16.mxu1 %v8316_v35  ;;  %4582 = vmatpush1.bf16.msra.mxu0 %v8181_v5  ;;  %v8332_v26 = vcombine.high %v754_v18, %v758_v33  ;;  %v8197_v35 = vcombine.low %v619_v12, %v623_v40  ;;  %v15295_v5 = vld [vmem:[#allocation33_spill] sm:$0xff] }
 0x1cc   :  { %15292 = vst [vmem:[#allocation145_spill] sm:$0xff] %v12416_v2  ;;  %v12418_v60 = vpop.f32.mrb[49].mxu1  ;;  %4583 = vmatprep.subr.bf16.mxu0 %v8190_v16  ;;  %v8331_v2 = vcombine.low %v754_v18, %v758_v33  ;;  %v12453_v18 = vld [vmem:[%s14772_s1 + $0x810] sm:$0xff] }
 0x1cd   :  { %15293 = vst [vmem:[#allocation146_spill] sm:$0xff] %v12418_v60  ;;  %v12426_v44 = vpop.f32.mrb[50].mxu1  ;;  %v15296_v60 = vld [vmem:[#allocation63_spill] sm:$0xff] }
 0x1ce   :  { %15294 = vst [vmem:[#allocation147_spill] sm:$0xff] %v12426_v44  ;;  %v12434_v16 = vpop.f32.mrb[51].mxu1  ;;  %4005 = vmatpush1.bf16.msra.mxu1 %v8315_v42  ;;  %v8206_v44 = vcombine.high %v627_v51, %v631_v62  ;;  %v12458_v33 = vld [vmem:[%s14772_s1 + $0x830] sm:$0xff] }
 0x1cf   :  { %4006 = vmatprep.subr.bf16.mxu1 %v8324_v29  ;;  %4584 = vmatpush1.bf16.msra.mxu0 %v8189_v48  ;;  %v8214_v42 = vcombine.high %v12453_v18, %v12458_v33  ;;  %v15297_v29 = vld [vmem:[#allocation65_spill] sm:$0xff]  ;;  %v15298_v48 = vld [vmem:[#allocation67_spill] sm:$0xff] }
 0x1d0   :  { %3888 = vmatmul.mubr.bf16.gmra.mrb[92].mxu1 %v15295_v5  ;;  %4585 = vmatprep.subr.bf16.mxu0 %v8198_v11 }
 0x1d1   :  { %4467 = vmatmul.mubr.bf16.gmra.mrb[92].mxu0 %v10988_v50  ;;  %3897 = vmatprep.mubr.bf16.mxu1 %v15296_v60 }
 0x1d2   :  { %4476 = vmatprep.mubr.bf16.mxu0 %v10993_v32  ;;  %4007 = vmatpush1.bf16.msra.mxu1 %v8323_v14 }
 0x1d3   :  { %v12440_v4 = vpop.f32.mrb[52].mxu1  ;;  %4008 = vmatprep.subr.bf16.mxu1 %v8332_v26  ;;  %4586 = vmatpush1.bf16.msra.mxu0 %v8197_v35 }
 0x1d4   :  { %v12444_v12 = vpop.f32.mrb[53].mxu1  ;;  %4587 = vmatprep.subr.bf16.mxu0 %v8206_v44  ;;  %v771_v44 = vlaneseq }
 0x1d5   :  { %v12446_v11 = vpop.f32.mrb[54].mxu1 }
 0x1d6   :  { %v12448_v40 = vpop.f32.mrb[55].mxu1  ;;  %4009 = vmatpush1.bf16.msra.mxu1 %v8331_v2  ;;  %v12476_v35 = vshrl.u32 %v771_v44, 7 }
 0x1d7   :  { %4588 = vmatpush1.bf16.msra.mxu0 %v8205_v20  ;;  %4171 = vmatprep.subr.bf16.mxu1 %v8340_v3  ;;  %v15304_v20 = vld [vmem:[#allocation69_spill] sm:$0xff]  ;;  %v15305_v3 = vld [vmem:[#allocation71_spill] sm:$0xff] }
 0x1d8   :  { %3898 = vmatmul.mubr.bf16.gmra.mrb[96].mxu1 %v15297_v29  ;;  %4750 = vmatprep.subr.bf16.mxu0 %v8214_v42  ;;  %15303 = vst [vmem:[#allocation148_spill] sm:$0xff] %v12476_v35  ;;  %v14949_v42 = vsub.s32 0, %v12476_v35 }
 0x1d9   :  { %4477 = vmatmul.mubr.bf16.gmra.mrb[96].mxu0 %v11034_v36  ;;  %3907 = vmatprep.mubr.bf16.mxu1 %v15298_v48  ;;  %v14952_v36 = vsub.s32 1, %v12476_v35 }
 0x1da   :  { %4486 = vmatprep.mubr.bf16.mxu0 %v11041_v22  ;;  %v769_v22 = vld [vmem:[%s14773_s2] sm:$0xff] }
 0x1db   :  { %v12468_v51 = vpop.f32.mrb[56].mxu1 }
 0x1dc   :  { %15299 = vst [vmem:[#allocation33_spill] sm:$0xff] %v12468_v51  ;;  %v12470_v62 = vpop.f32.mrb[57].mxu1  ;;  %v15320_v51 = vld [vmem:[#allocation77_spill] sm:$0xff] }
 0x1dd   :  { %15300 = vst [vmem:[#allocation63_spill] sm:$0xff] %v12470_v62  ;;  %v12472_v14 = vpop.f32.mrb[58].mxu1 }
 0x1de   :  { %15301 = vst [vmem:[#allocation65_spill] sm:$0xff] %v12472_v14  ;;  %v12474_v26 = vpop.f32.mrb[59].mxu1 }
 0x1df   :  { %15302 = vst [vmem:[#allocation67_spill] sm:$0xff] %v12474_v26  ;;  %v15314_v26 = vld [vmem:[#allocation100_spill] sm:$0xff] }
 0x1e0   :  { %3908 = vmatmul.mubr.bf16.gmra.mrb[100].mxu1 %v15304_v20 }
 0x1e1   :  { %4487 = vmatmul.mubr.bf16.gmra.mrb[100].mxu0 %v11074_v34  ;;  %3917 = vmatprep.mubr.bf16.mxu1 %v15305_v3  ;;  %v12497_v34 = vrot.slane %v769_v22, %v14949_v42  ;;  %v15311_v3 = vld [vmem:[#allocation75_spill] sm:$0xff] }
 0x1e2   :  { %4496 = vmatprep.mubr.bf16.mxu0 %v11078_v0  ;;  %v12501_v0 = vrot.slane %v769_v22, %v14952_v36 }
 0x1e3   :  { %v12483_v2 = vpop.f32.mrb[60].mxu1  ;;  %v2859_v35 = vadd.f32 %v15314_v26, %v12497_v34  ;;  %v15321_v26 = vld [vmem:[#allocation79_spill] sm:$0xff] }
 0x1e4   :  { %15306 = vst [vmem:[#allocation149_spill] sm:$0xff] %v12483_v2  ;;  %v12489_v44 = vpop.f32.mrb[61].mxu1  ;;  %v15310_v2 = vld [vmem:[#allocation73_spill] sm:$0xff] }
 0x1e5   :  { %15307 = vst [vmem:[#allocation150_spill] sm:$0xff] %v12489_v44  ;;  %v12491_v32 = vpop.f32.mrb[62].mxu1 }
 0x1e6   :  { %15308 = vst [vmem:[#allocation151_spill] sm:$0xff] %v12491_v32  ;;  %v12493_v50 = vpop.f32.mrb[63].mxu1  ;;  %v15312_v32 = vld [vmem:[#allocation98_spill] sm:$0xff] }
 0x1e7   :  { %15309 = vst [vmem:[#allocation152_spill] sm:$0xff] %v12493_v50  ;;  %v2855_v44 = vadd.f32 %v15312_v32, %v12497_v34  ;;  %v15313_v50 = vld [vmem:[#allocation99_spill] sm:$0xff] }
 0x1e8   :  { %3918 = vmatmul.mubr.bf16.gmra.mrb[104].mxu1 %v15310_v2  ;;  %v2857_v20 = vadd.f32 %v15313_v50, %v12501_v0  ;;  %v15316_v2 = vld [vmem:[#allocation102_spill] sm:$0xff] }
 0x1e9   :  { %4497 = vmatmul.mubr.bf16.gmra.mrb[104].mxu0 %v11110_v17  ;;  %3927 = vmatprep.mubr.bf16.mxu1 %v15311_v3  ;;  %v2861_v17 = vadd.f32 %v15316_v2, %v12501_v0 }
 0x1ea   :  { %4506 = vmatprep.mubr.bf16.mxu0 %v11114_v24 }
 0x1ec   :  { %v3433_v42 = vpop.f32.mrb[0].mxu0 }
 0x1ed   :  { %v12513_v22 = vadd.f32 %v3433_v42, %v2855_v44  ;;  %v3435_v36 = vpop.f32.mrb[1].mxu0 }
 0x1ee   :  { %v12517_v14 = vadd.f32 %v3435_v36, %v2857_v20  ;;  %v3437_v3 = vpop.f32.mrb[2].mxu0  ;;  %v15322_v36 = vld [vmem:[#allocation103_spill] sm:$0xff] }
 0x1ef   :  { %15315 = vst [vmem:[#allocation98_spill] sm:$0xff] %v12513_v22  ;;  %v12519_v24 = vadd.f32 %v3437_v3, %v2859_v35  ;;  %v3439_v62 = vpop.f32.mrb[3].mxu0  ;;  %v2865_v35 = vadd.f32 %v15322_v36, %v12497_v34  ;;  %v15324_v3 = vld [vmem:[#allocation105_spill] sm:$0xff]  ;;  %v15326_v22 = vld [vmem:[#allocation107_spill] sm:$0xff] }
 0x1f0   :  { %15317 = vst [vmem:[#allocation99_spill] sm:$0xff] %v12517_v14  ;;  %v12521_v32 = vadd.f32 %v3439_v62, %v2861_v17  ;;  %3928 = vmatmul.mubr.bf16.gmra.mrb[108].mxu1 %v15320_v51  ;;  %v15323_v17 = vld [vmem:[#allocation104_spill] sm:$0xff]  ;;  %v2869_v42 = vadd.f32 %v15324_v3, %v12497_v34 }
 0x1f1   :  { %15318 = vst [vmem:[#allocation100_spill] sm:$0xff] %v12519_v24  ;;  %4507 = vmatmul.mubr.bf16.gmra.mrb[108].mxu0 %v11146_v45  ;;  %3937 = vmatprep.mubr.bf16.mxu1 %v15321_v26  ;;  %v2867_v62 = vadd.f32 %v15323_v17, %v12501_v0  ;;  %v2871_v24 = vadd.f32 %v15326_v22, %v12501_v0 }
 0x1f2   :  { %15319 = vst [vmem:[#allocation102_spill] sm:$0xff] %v12521_v32  ;;  %4516 = vmatprep.mubr.bf16.mxu0 %v11150_v15  ;;  %v15330_v15 = vld [vmem:[#allocation81_spill] sm:$0xff] }
 0x1f4   :  { %v3443_v20 = vpop.f32.mrb[4].mxu0 }
 0x1f5   :  { %v12537_v44 = vadd.f32 %v3443_v20, %v2865_v35  ;;  %v3445_v50 = vpop.f32.mrb[5].mxu0  ;;  %v15331_v35 = vld [vmem:[#allocation83_spill] sm:$0xff]  ;;  %v15334_v20 = vld [vmem:[#allocation110_spill] sm:$0xff] }
 0x1f6   :  { %v12541_v45 = vadd.f32 %v3445_v50, %v2867_v62  ;;  %v3447_v2 = vpop.f32.mrb[6].mxu0  ;;  %v15332_v50 = vld [vmem:[#allocation108_spill] sm:$0xff]  ;;  %v2879_v3 = vadd.f32 %v15334_v20, %v12497_v34 }
 0x1f7   :  { %15325 = vst [vmem:[#allocation77_spill] sm:$0xff] %v12537_v44  ;;  %v12543_v14 = vadd.f32 %v3447_v2, %v2869_v42  ;;  %v3449_v32 = vpop.f32.mrb[7].mxu0  ;;  %v2875_v2 = vadd.f32 %v15332_v50, %v12497_v34  ;;  %v15336_v44 = vld [vmem:[#allocation112_spill] sm:$0xff] }
 0x1f8   :  { %15327 = vst [vmem:[#allocation79_spill] sm:$0xff] %v12541_v45  ;;  %v12545_v36 = vadd.f32 %v3449_v32, %v2871_v24  ;;  %3938 = vmatmul.mubr.bf16.gmra.mrb[112].mxu1 %v15330_v15  ;;  %v15333_v24 = vld [vmem:[#allocation109_spill] sm:$0xff] }
 0x1f9   :  { %15328 = vst [vmem:[#allocation103_spill] sm:$0xff] %v12543_v14  ;;  %4517 = vmatmul.mubr.bf16.gmra.mrb[112].mxu0 %v11182_v21  ;;  %3947 = vmatprep.mubr.bf16.mxu1 %v15331_v35  ;;  %v2877_v32 = vadd.f32 %v15333_v24, %v12501_v0  ;;  %v2881_v14 = vadd.f32 %v15336_v44, %v12501_v0 }
 0x1fa   :  { %15329 = vst [vmem:[#allocation104_spill] sm:$0xff] %v12545_v36  ;;  %4526 = vmatprep.mubr.bf16.mxu0 %v11186_v8  ;;  %v15340_v8 = vld [vmem:[#allocation85_spill] sm:$0xff] }
 0x1fc   :  { %v3453_v62 = vpop.f32.mrb[8].mxu0 }
 0x1fd   :  { %v12561_v42 = vadd.f32 %v3453_v62, %v2875_v2  ;;  %v3455_v17 = vpop.f32.mrb[9].mxu0  ;;  %v15341_v2 = vld [vmem:[#allocation87_spill] sm:$0xff] }
 0x1fe   :  { %v12565_v21 = vadd.f32 %v3455_v17, %v2877_v32  ;;  %v3457_v22 = vpop.f32.mrb[10].mxu0  ;;  %v15342_v17 = vld [vmem:[#allocation113_spill] sm:$0xff]  ;;  %v15344_v62 = vld [vmem:[#allocation115_spill] sm:$0xff] }
 0x1ff   :  { %15335 = vst [vmem:[#allocation105_spill] sm:$0xff] %v12561_v42  ;;  %v12567_v45 = vadd.f32 %v3457_v22, %v2879_v3  ;;  %v3459_v36 = vpop.f32.mrb[11].mxu0  ;;  %v2885_v22 = vadd.f32 %v15342_v17, %v12497_v34  ;;  %v2889_v20 = vadd.f32 %v15344_v62, %v12497_v34  ;;  %v15346_v42 = vld [vmem:[#allocation117_spill] sm:$0xff]  ;;  %v2901_v62 = vadd.f32 %v12019_v43, %v12501_v0 }
 0x200   :  { %15337 = vst [vmem:[#allocation107_spill] sm:$0xff] %v12565_v21  ;;  %v12569_v50 = vadd.f32 %v3459_v36, %v2881_v14  ;;  %3948 = vmatmul.mubr.bf16.gmra.mrb[116].mxu1 %v15340_v8  ;;  %v15343_v14 = vld [vmem:[#allocation114_spill] sm:$0xff] }
 0x201   :  { %15338 = vst [vmem:[#allocation108_spill] sm:$0xff] %v12567_v45  ;;  %4527 = vmatmul.mubr.bf16.gmra.mrb[116].mxu0 %v11218_v41  ;;  %3957 = vmatprep.mubr.bf16.mxu1 %v15341_v2  ;;  %v2887_v36 = vadd.f32 %v15343_v14, %v12501_v0  ;;  %v2891_v45 = vadd.f32 %v15346_v42, %v12501_v0 }
 0x202   :  { %15339 = vst [vmem:[#allocation109_spill] sm:$0xff] %v12569_v50  ;;  %4536 = vmatprep.mubr.bf16.mxu0 %v11222_v23  ;;  %v15350_v23 = vld [vmem:[#allocation89_spill] sm:$0xff] }
 0x204   :  { %v3463_v32 = vpop.f32.mrb[12].mxu0 }
 0x205   :  { %v12585_v3 = vadd.f32 %v3463_v32, %v2885_v22  ;;  %v3465_v24 = vpop.f32.mrb[13].mxu0  ;;  %v15351_v22 = vld [vmem:[#allocation91_spill] sm:$0xff] }
 0x206   :  { %v12589_v41 = vadd.f32 %v3465_v24, %v2887_v36  ;;  %v3467_v44 = vpop.f32.mrb[14].mxu0  ;;  %v2895_v24 = vadd.f32 %v11999_v49, %v12497_v34 }
 0x207   :  { %15345 = vst [vmem:[#allocation110_spill] sm:$0xff] %v12585_v3  ;;  %v12591_v21 = vadd.f32 %v3467_v44, %v2889_v20  ;;  %v3469_v50 = vpop.f32.mrb[15].mxu0  ;;  %v2899_v44 = vadd.f32 %v12009_v7, %v12497_v34  ;;  %v15357_v7 = vld [vmem:[#allocation35_spill] sm:$0xff] }
 0x208   :  { %15347 = vst [vmem:[#allocation112_spill] sm:$0xff] %v12589_v41  ;;  %v12593_v17 = vadd.f32 %v3469_v50, %v2891_v45  ;;  %3958 = vmatmul.mubr.bf16.gmra.mrb[120].mxu1 %v15350_v23  ;;  %v2897_v45 = vadd.f32 %v12001_v53, %v12501_v0 }
 0x209   :  { %15348 = vst [vmem:[#allocation113_spill] sm:$0xff] %v12591_v21  ;;  %4537 = vmatmul.mubr.bf16.gmra.mrb[120].mxu0 %v11254_v55  ;;  %3967 = vmatprep.mubr.bf16.mxu1 %v15351_v22  ;;  %v15356_v21 = vld [vmem:[#allocation93_spill] sm:$0xff] }
 0x20a   :  { %15349 = vst [vmem:[#allocation114_spill] sm:$0xff] %v12593_v17  ;;  %4546 = vmatprep.mubr.bf16.mxu0 %v11258_v19 }
 0x20c   :  { %v3473_v50 = vpop.f32.mrb[16].mxu0 }
 0x20d   :  { %v12609_v36 = vadd.f32 %v3473_v50, %v2895_v24  ;;  %v3475_v32 = vpop.f32.mrb[17].mxu0 }
 0x20e   :  { %v12613_v20 = vadd.f32 %v3475_v32, %v2897_v45  ;;  %v3477_v14 = vpop.f32.mrb[18].mxu0  ;;  %v2909_v45 = vadd.f32 %v12038_v27, %v12497_v34  ;;  %v643_v32 = vld [vmem:[%s14772_s1 + $0x850] sm:$0xff] }
 0x20f   :  { %15352 = vst [vmem:[#allocation115_spill] sm:$0xff] %v12609_v36  ;;  %v12615_v42 = vadd.f32 %v3477_v14, %v2899_v44  ;;  %v3479_v3 = vpop.f32.mrb[19].mxu0  ;;  %v2905_v14 = vadd.f32 %v12032_v28, %v12497_v34  ;;  %v2911_v28 = vadd.f32 %v12042_v10, %v12501_v0  ;;  %v15363_v10 = vcombine.low %v12204_v54, %v12209_v37  ;;  %v15368_v54 = vld [vmem:[#allocation122_spill] sm:$0xff] }
 0x210   :  { %15353 = vst [vmem:[#allocation117_spill] sm:$0xff] %v12613_v20  ;;  %v12617_v49 = vadd.f32 %v3479_v3, %v2901_v62  ;;  %3968 = vmatmul.mubr.bf16.gmra.mrb[124].mxu1 %v15356_v21  ;;  %v2907_v3 = vadd.f32 %v12036_v56, %v12501_v0  ;;  %v647_v62 = vld [vmem:[%s14772_s1 + $0x870] sm:$0xff]  ;;  %v15366_v20 = vcombine.low %v12453_v18, %v12458_v33  ;;  %v15370_v33 = vld [vmem:[#allocation124_spill] sm:$0xff] }
 0x211   :  { %15354 = vst [vmem:[#allocation153_spill] sm:$0xff] %v12615_v42  ;;  %4547 = vmatmul.mubr.bf16.gmra.mrb[124].mxu0 %v11290_v31  ;;  %4010 = vmatprep.mubr.bf16.mxu1 %v15357_v7  ;;  %v8222_v36 = vcombine.high %v643_v32, %v647_v62  ;;  %v651_v42 = vld [vmem:[%s14772_s1 + $0x890] sm:$0xff] }
 0x212   :  { %15355 = vst [vmem:[#allocation154_spill] sm:$0xff] %v12617_v49  ;;  %4589 = vmatprep.mubr.bf16.mxu0 %v10419_v63  ;;  %v2919_v49 = vadd.f32 %v15368_v54, %v12497_v34  ;;  %v663_v18 = vld [vmem:[%s14772_s1 + $0x8f0] sm:$0xff] }
 0x214   :  { %v3483_v24 = vpop.f32.mrb[20].mxu0 }
 0x215   :  { %v12633_v50 = vadd.f32 %v3483_v24, %v2905_v14  ;;  %v3485_v44 = vpop.f32.mrb[21].mxu0  ;;  %v15362_v24 = vld [vmem:[#allocation37_spill] sm:$0xff] }
 0x216   :  { %v12643_v53 = vadd.f32 %v3485_v44, %v2907_v3  ;;  %v3487_v56 = vpop.f32.mrb[22].mxu0  ;;  %v655_v3 = vld [vmem:[%s14772_s1 + $0x8b0] sm:$0xff]  ;;  %v12670_v44 = vld [vmem:[%s14772_s1 + $0x38] sm:$0xff] }
 0x217   :  { %15358 = vst [vmem:[#allocation155_spill] sm:$0xff] %v12633_v50  ;;  %v12645_v43 = vadd.f32 %v3487_v56, %v2909_v45  ;;  %v3489_v27 = vpop.f32.mrb[23].mxu0  ;;  %v12665_v45 = vld [vmem:[%s14772_s1 + $0x18] sm:$0xff]  ;;  %v15364_v56 = vld [vmem:[#allocation39_spill] sm:$0xff]  ;;  %v8221_v50 = vcombine.low %v643_v32, %v647_v62 }
 0x218   :  { %15359 = vst [vmem:[#allocation156_spill] sm:$0xff] %v12643_v53  ;;  %v12647_v14 = vadd.f32 %v3489_v27, %v2911_v28  ;;  %4011 = vmatmul.mubr.bf16.vlgmr.msra.gmra.mrb[64].mxu1 %v15362_v24  ;;  %v7960_v37 = vcombine.high %v12665_v45, %v12670_v44  ;;  %v15365_v27 = vld [vmem:[#allocation120_spill] sm:$0xff]  ;;  %v15367_v28 = vld [vmem:[#allocation121_spill] sm:$0xff] }
 0x219   :  { %15360 = vst [vmem:[#allocation157_spill] sm:$0xff] %v12645_v43  ;;  %4590 = vmatmul.mubr.bf16.vlgmr.msra.gmra.mrb[64].mxu0 %v10615_v61  ;;  %4172 = vmatpush1.bf16.msra.mxu1 %v15363_v10  ;;  %v2915_v10 = vadd.f32 %v15365_v27, %v12497_v34  ;;  %v2917_v43 = vadd.f32 %v15367_v28, %v12501_v0  ;;  %v659_v27 = vld [vmem:[%s14772_s1 + $0x8d0] sm:$0xff] }
 0x21a   :  { %15361 = vst [vmem:[#allocation158_spill] sm:$0xff] %v12647_v14  ;;  %4020 = vmatprep.mubr.bf16.mxu1 %v15364_v56  ;;  %4599 = vmatprep.mubr.bf16.mxu0 %v10621_v6  ;;  %v8230_v14 = vcombine.high %v651_v42, %v655_v3  ;;  %v15378_v6 = vld [vmem:[#allocation127_spill] sm:$0xff] }
 0x21b   :  { %4751 = vmatpush1.bf16.msra.mxu0 %v15366_v20  ;;  %5136 = vmatprep.subr.bf16.mxu1 %v7960_v37  ;;  %v2921_v20 = vadd.f32 %v15370_v33, %v12501_v0  ;;  %v15374_v37 = vld [vmem:[#allocation41_spill] sm:$0xff]  ;;  %v15375_v33 = vld [vmem:[#allocation43_spill] sm:$0xff] }
 0x21c   :  { %v3493_v53 = vpop.f32.mrb[24].mxu0  ;;  %4752 = vmatprep.subr.bf16.mxu0 %v8222_v36 }
 0x21d   :  { %v12689_v41 = vadd.f32 %v3493_v53, %v2915_v10  ;;  %v3495_v17 = vpop.f32.mrb[25].mxu0  ;;  %v8229_v53 = vcombine.low %v651_v42, %v655_v3  ;;  %v8238_v10 = vcombine.high %v659_v27, %v663_v18  ;;  %v671_v42 = vld [vmem:[%s14772_s1 + $0x930] sm:$0xff]  ;;  %v15377_v3 = vld [vmem:[#allocation126_spill] sm:$0xff] }
 0x21e   :  { %v12699_v36 = vadd.f32 %v3495_v17, %v2917_v43  ;;  %v3497_v32 = vpop.f32.mrb[26].mxu0  ;;  %v667_v17 = vld [vmem:[%s14772_s1 + $0x910] sm:$0xff]  ;;  %v15376_v43 = vld [vmem:[#allocation125_spill] sm:$0xff] }
 0x21f   :  { %15369 = vst [vmem:[#allocation37_spill] sm:$0xff] %v12689_v41  ;;  %v12701_v62 = vadd.f32 %v3497_v32, %v2919_v49  ;;  %v3499_v28 = vpop.f32.mrb[27].mxu0  ;;  %4753 = vmatpush1.bf16.msra.mxu0 %v8221_v50  ;;  %v2925_v50 = vadd.f32 %v15376_v43, %v12497_v34  ;;  %v2929_v41 = vadd.f32 %v15378_v6, %v12497_v34  ;;  %v675_v49 = vld [vmem:[%s14772_s1 + $0x950] sm:$0xff] }
 0x220   :  { %15371 = vst [vmem:[#allocation120_spill] sm:$0xff] %v12699_v36  ;;  %v12703_v54 = vadd.f32 %v3499_v28, %v2921_v20  ;;  %4021 = vmatmul.mubr.bf16.gmra.mrb[68].mxu1 %v15374_v37  ;;  %4754 = vmatprep.subr.bf16.mxu0 %v8230_v14  ;;  %v8237_v14 = vcombine.low %v659_v27, %v663_v18  ;;  %v679_v27 = vld [vmem:[%s14772_s1 + $0x970] sm:$0xff]  ;;  %v15380_v18 = vld [vmem:[#allocation129_spill] sm:$0xff] }
 0x221   :  { %15372 = vst [vmem:[#allocation121_spill] sm:$0xff] %v12701_v62  ;;  %4600 = vmatmul.mubr.bf16.gmra.mrb[68].mxu0 %v10667_v39  ;;  %4030 = vmatprep.mubr.bf16.mxu1 %v15375_v33  ;;  %v2927_v20 = vadd.f32 %v15377_v3, %v12501_v0  ;;  %v8246_v28 = vcombine.high %v667_v17, %v671_v42  ;;  %v15384_v36 = vld [vmem:[#allocation45_spill] sm:$0xff] }
 0x222   :  { %15373 = vst [vmem:[#allocation122_spill] sm:$0xff] %v12703_v54  ;;  %4609 = vmatprep.mubr.bf16.mxu0 %v10672_v47  ;;  %v8254_v54 = vcombine.high %v675_v49, %v679_v27 }
 0x223   :  { %4755 = vmatpush1.bf16.msra.mxu0 %v8229_v53  ;;  %v2931_v53 = vadd.f32 %v15380_v18, %v12501_v0  ;;  %v15385_v18 = vld [vmem:[#allocation47_spill] sm:$0xff] }
 0x224   :  { %v3503_v32 = vpop.f32.mrb[28].mxu0  ;;  %4756 = vmatprep.subr.bf16.mxu0 %v8238_v10 }
 0x225   :  { %v12725_v62 = vadd.f32 %v3503_v32, %v2925_v50  ;;  %v3505_v39 = vpop.f32.mrb[29].mxu0  ;;  %v8245_v50 = vcombine.low %v667_v17, %v671_v42  ;;  %v8762_v42 = vadd.f32 %v12272_v58, %v12497_v34  ;;  %v691_v17 = vld [vmem:[%s14772_s1 + $0x9d0] sm:$0xff] }
 0x226   :  { %v12735_v43 = vadd.f32 %v3505_v39, %v2927_v20  ;;  %v3507_v10 = vpop.f32.mrb[30].mxu0  ;;  %v683_v39 = vld [vmem:[%s14772_s1 + $0x990] sm:$0xff]  ;;  %v8764_v20 = vadd.f32 %v12274_v59, %v12501_v0  ;;  %v8768_v59 = vadd.f32 %v12290_v46, %v12501_v0 }
 0x227   :  { %15379 = vst [vmem:[#allocation124_spill] sm:$0xff] %v12725_v62  ;;  %v12737_v3 = vadd.f32 %v3507_v10, %v2929_v41  ;;  %v3509_v6 = vpop.f32.mrb[31].mxu0  ;;  %4757 = vmatpush1.bf16.msra.mxu0 %v8237_v14  ;;  %v687_v41 = vld [vmem:[%s14772_s1 + $0x9b0] sm:$0xff]  ;;  %v8253_v14 = vcombine.low %v675_v49, %v679_v27 }
 0x228   :  { %15381 = vst [vmem:[#allocation43_spill] sm:$0xff] %v12735_v43  ;;  %v12739_v32 = vadd.f32 %v3509_v6, %v2931_v53  ;;  %4031 = vmatmul.mubr.bf16.gmra.mrb[72].mxu1 %v15384_v36  ;;  %4758 = vmatprep.subr.bf16.mxu0 %v8246_v28  ;;  %v8262_v53 = vcombine.high %v683_v39, %v687_v41  ;;  %v15386_v10 = vld [vmem:[#allocation135_spill] sm:$0xff] }
 0x229   :  { %15382 = vst [vmem:[#allocation125_spill] sm:$0xff] %v12737_v3  ;;  %4610 = vmatmul.mubr.bf16.gmra.mrb[72].mxu0 %v10731_v9  ;;  %4040 = vmatprep.mubr.bf16.mxu1 %v15385_v18  ;;  %v8766_v6 = vadd.f32 %v15386_v10, %v12497_v34  ;;  %v695_v58 = vld [vmem:[%s14772_s1 + $0x9f0] sm:$0xff]  ;;  %v15391_v10 = vld [vmem:[#allocation49_spill] sm:$0xff] }
 0x22a   :  { %15383 = vst [vmem:[#allocation126_spill] sm:$0xff] %v12739_v32  ;;  %4619 = vmatprep.mubr.bf16.mxu0 %v10735_v25  ;;  %v8270_v3 = vcombine.high %v691_v17, %v695_v58  ;;  %v15392_v46 = vld [vmem:[#allocation51_spill] sm:$0xff] }
 0x22b   :  { %4759 = vmatpush1.bf16.msra.mxu0 %v8245_v50 }
 0x22c   :  { %v3513_v28 = vpop.f32.mrb[32].mxu0  ;;  %4760 = vmatprep.subr.bf16.mxu0 %v8254_v54 }
 0x22d   :  { %v12761_v47 = vadd.f32 %v8762_v42, %v3513_v28  ;;  %v3515_v62 = vpop.f32.mrb[33].mxu0  ;;  %v8261_v42 = vcombine.low %v683_v39, %v687_v41  ;;  %v703_v39 = vld [vmem:[%s14772_s1 + $0xa30] sm:$0xff] }
 0x22e   :  { %v12771_v49 = vadd.f32 %v8764_v20, %v3515_v62  ;;  %v3517_v54 = vpop.f32.mrb[34].mxu0  ;;  %v699_v62 = vld [vmem:[%s14772_s1 + $0xa10] sm:$0xff]  ;;  %v15394_v20 = vld [vmem:[#allocation136_spill] sm:$0xff] }
 0x22f   :  { %15387 = vst [vmem:[#allocation127_spill] sm:$0xff] %v12761_v47  ;;  %v12773_v27 = vadd.f32 %v8766_v6, %v3517_v54  ;;  %v3519_v50 = vpop.f32.mrb[35].mxu0  ;;  %4761 = vmatpush1.bf16.msra.mxu0 %v8253_v14  ;;  %v15393_v14 = vld [vmem:[#allocation19_spill] sm:$0xff]  ;;  %v8269_v6 = vcombine.low %v691_v17, %v695_v58  ;;  %v8278_v43 = vcombine.high %v699_v62, %v703_v39  ;;  %v15396_v47 = vld [vmem:[#allocation138_spill] sm:$0xff] }
 0x230   :  { %15388 = vst [vmem:[#allocation129_spill] sm:$0xff] %v12771_v49  ;;  %v12775_v28 = vadd.f32 %v8768_v59, %v3519_v50  ;;  %4041 = vmatmul.mubr.bf16.gmra.mrb[76].mxu1 %v15391_v10  ;;  %4762 = vmatprep.subr.bf16.mxu0 %v8262_v53  ;;  %v8770_v53 = vadd.f32 %v15394_v20, %v12497_v34  ;;  %v15395_v59 = vld [vmem:[#allocation137_spill] sm:$0xff]  ;;  %v707_v41 = vld [vmem:[%s14772_s1 + $0xa50] sm:$0xff] }
 0x231   :  { %15389 = vst [vmem:[#allocation47_spill] sm:$0xff] %v12773_v27  ;;  %4620 = vmatmul.mubr.bf16.gmra.mrb[76].mxu0 %v15275_v13  ;;  %4050 = vmatprep.mubr.bf16.mxu1 %v15392_v46  ;;  %v8772_v54 = vadd.f32 %v15395_v59, %v12501_v0  ;;  %v8774_v27 = vadd.f32 %v15396_v47, %v12497_v34  ;;  %v711_v17 = vld [vmem:[%s14772_s1 + $0xa70] sm:$0xff] }
 0x232   :  { %15390 = vst [vmem:[#allocation135_spill] sm:$0xff] %v12775_v28  ;;  %4629 = vmatprep.mubr.bf16.mxu0 %v15393_v14  ;;  %v8776_v58 = vadd.f32 %v12326_v1, %v12501_v0  ;;  %v8286_v49 = vcombine.high %v707_v41, %v711_v17  ;;  %v15402_v1 = vld [vmem:[#allocation55_spill] sm:$0xff] }
 0x233   :  { %4763 = vmatpush1.bf16.msra.mxu0 %v8261_v42 }
 0x234   :  { %v3523_v50 = vpop.f32.mrb[36].mxu0  ;;  %4764 = vmatprep.subr.bf16.mxu0 %v8270_v3 }
 0x235   :  { %v12797_v32 = vadd.f32 %v8770_v53, %v3523_v50  ;;  %v3525_v13 = vpop.f32.mrb[37].mxu0  ;;  %v8277_v53 = vcombine.low %v699_v62, %v703_v39  ;;  %v15401_v50 = vld [vmem:[#allocation53_spill] sm:$0xff]  ;;  %v15404_v39 = vld [vmem:[#allocation139_spill] sm:$0xff] }
 0x236   :  { %v12807_v42 = vadd.f32 %v8772_v54, %v3525_v13  ;;  %v3527_v3 = vpop.f32.mrb[38].mxu0  ;;  %v715_v13 = vld [vmem:[%s14772_s1 + $0xa90] sm:$0xff]  ;;  %v8285_v54 = vcombine.low %v707_v41, %v711_v17  ;;  %v8784_v17 = vadd.f32 %v12362_v38, %v12501_v0 }
 0x237   :  { %15397 = vst [vmem:[#allocation51_spill] sm:$0xff] %v12797_v32  ;;  %v12809_v20 = vadd.f32 %v8774_v27, %v3527_v3  ;;  %v3529_v47 = vpop.f32.mrb[39].mxu0  ;;  %4765 = vmatpush1.bf16.msra.mxu0 %v8269_v6  ;;  %v719_v27 = vld [vmem:[%s14772_s1 + $0xab0] sm:$0xff]  ;;  %v8778_v6 = vadd.f32 %v15404_v39, %v12497_v34  ;;  %v15406_v32 = vld [vmem:[#allocation141_spill] sm:$0xff] }
 0x238   :  { %15398 = vst [vmem:[#allocation136_spill] sm:$0xff] %v12807_v42  ;;  %v12811_v59 = vadd.f32 %v8776_v58, %v3529_v47  ;;  %4051 = vmatmul.mubr.bf16.gmra.mrb[80].mxu1 %v15401_v50  ;;  %4766 = vmatprep.subr.bf16.mxu0 %v8278_v43  ;;  %v15403_v43 = vld [vmem:[#allocation23_spill] sm:$0xff]  ;;  %v15405_v58 = vld [vmem:[#allocation140_spill] sm:$0xff]  ;;  %v8294_v28 = vcombine.high %v715_v13, %v719_v27 }
 0x239   :  { %15399 = vst [vmem:[#allocation137_spill] sm:$0xff] %v12809_v20  ;;  %4630 = vmatmul.mubr.bf16.gmra.mrb[80].mxu0 %v15280_v52  ;;  %4060 = vmatprep.mubr.bf16.mxu1 %v15402_v1  ;;  %v8780_v3 = vadd.f32 %v15405_v58, %v12501_v0  ;;  %v8782_v20 = vadd.f32 %v15406_v32, %v12497_v34  ;;  %v723_v62 = vld [vmem:[%s14772_s1 + $0xad0] sm:$0xff] }
 0x23a   :  { %15400 = vst [vmem:[#allocation138_spill] sm:$0xff] %v12811_v59  ;;  %4639 = vmatprep.mubr.bf16.mxu0 %v15403_v43  ;;  %v727_v41 = vld [vmem:[%s14772_s1 + $0xaf0] sm:$0xff] }
 0x23b   :  { %4767 = vmatpush1.bf16.msra.mxu0 %v8277_v53  ;;  %v8302_v42 = vcombine.high %v723_v62, %v727_v41  ;;  %v15412_v38 = vld [vmem:[#allocation59_spill] sm:$0xff] }
 0x23c   :  { %v3533_v47 = vpop.f32.mrb[40].mxu0  ;;  %4768 = vmatprep.subr.bf16.mxu0 %v8286_v49 }
 0x23d   :  { %v12833_v52 = vadd.f32 %v8778_v6, %v3533_v47  ;;  %v3535_v14 = vpop.f32.mrb[41].mxu0  ;;  %v8293_v6 = vcombine.low %v715_v13, %v719_v27  ;;  %v15411_v47 = vld [vmem:[#allocation57_spill] sm:$0xff]  ;;  %v15414_v27 = vld [vmem:[#allocation142_spill] sm:$0xff]  ;;  %v739_v13 = vld [vmem:[%s14772_s1 + $0xb50] sm:$0xff] }
 0x23e   :  { %v12843_v53 = vadd.f32 %v8780_v3, %v3535_v14  ;;  %v3537_v49 = vpop.f32.mrb[42].mxu0  ;;  %v731_v14 = vld [vmem:[%s14772_s1 + $0xb10] sm:$0xff]  ;;  %v8301_v3 = vcombine.low %v723_v62, %v727_v41  ;;  %v8792_v41 = vadd.f32 %v12398_v57, %v12501_v0  ;;  %v15423_v57 = vld [vmem:[#allocation61_spill] sm:$0xff] }
 0x23f   :  { %15407 = vst [vmem:[#allocation139_spill] sm:$0xff] %v12833_v52  ;;  %v12845_v39 = vadd.f32 %v8782_v20, %v3537_v49  ;;  %v3539_v32 = vpop.f32.mrb[43].mxu0  ;;  %4769 = vmatpush1.bf16.msra.mxu0 %v8285_v54  ;;  %v735_v20 = vld [vmem:[%s14772_s1 + $0xb30] sm:$0xff]  ;;  %v8786_v54 = vadd.f32 %v15414_v27, %v12497_v34  ;;  %v15416_v52 = vld [vmem:[#allocation144_spill] sm:$0xff] }
 0x240   :  { %15408 = vst [vmem:[#allocation140_spill] sm:$0xff] %v12843_v53  ;;  %v12847_v58 = vadd.f32 %v8784_v17, %v3539_v32  ;;  %4061 = vmatmul.mubr.bf16.gmra.mrb[84].mxu1 %v15411_v47  ;;  %4770 = vmatprep.subr.bf16.mxu0 %v8294_v28  ;;  %v15413_v28 = vld [vmem:[#allocation27_spill] sm:$0xff]  ;;  %v8310_v59 = vcombine.high %v731_v14, %v735_v20 }
 0x241   :  { %15409 = vst [vmem:[#allocation141_spill] sm:$0xff] %v12845_v39  ;;  %4640 = vmatmul.mubr.bf16.gmra.mrb[84].mxu0 %v15285_v30  ;;  %4070 = vmatprep.mubr.bf16.mxu1 %v15412_v38  ;;  %v15415_v17 = vld [vmem:[#allocation143_spill] sm:$0xff]  ;;  %v8790_v39 = vadd.f32 %v15416_v52, %v12497_v34 }
 0x242   :  { %15410 = vst [vmem:[#allocation159_spill] sm:$0xff] %v12847_v58  ;;  %4649 = vmatprep.mubr.bf16.mxu0 %v15413_v28  ;;  %v8788_v49 = vadd.f32 %v15415_v17, %v12501_v0  ;;  %v743_v62 = vld [vmem:[%s14772_s1 + $0xb70] sm:$0xff]  ;;  %v15422_v28 = vld [vmem:[#allocation29_spill] sm:$0xff] }
 0x243   :  { %4771 = vmatpush1.bf16.msra.mxu0 %v8293_v6  ;;  %v8318_v53 = vcombine.high %v739_v13, %v743_v62 }
 0x244   :  { %v3543_v32 = vpop.f32.mrb[44].mxu0  ;;  %4772 = vmatprep.subr.bf16.mxu0 %v8302_v42 }
 0x245   :  { %v12869_v30 = vadd.f32 %v8786_v54, %v3543_v32  ;;  %v3545_v43 = vpop.f32.mrb[45].mxu0  ;;  %v8309_v54 = vcombine.low %v731_v14, %v735_v20  ;;  %v15421_v32 = vld [vmem:[#allocation60_spill] sm:$0xff]  ;;  %v15425_v20 = vld [vmem:[#allocation145_spill] sm:$0xff]  ;;  %v755_v14 = vld [vmem:[%s14772_s1 + $0xbd0] sm:$0xff] }
 0x246   :  { %v12879_v6 = vadd.f32 %v8788_v49, %v3545_v43  ;;  %v3547_v42 = vpop.f32.mrb[46].mxu0  ;;  %v747_v43 = vld [vmem:[%s14772_s1 + $0xb90] sm:$0xff]  ;;  %v8317_v49 = vcombine.low %v739_v13, %v743_v62  ;;  %v8800_v62 = vadd.f32 %v12434_v16, %v12501_v0  ;;  %v15433_v16 = vld [vmem:[#allocation64_spill] sm:$0xff] }
 0x247   :  { %15417 = vst [vmem:[#allocation142_spill] sm:$0xff] %v12869_v30  ;;  %v12881_v27 = vadd.f32 %v8790_v39, %v3547_v42  ;;  %v3549_v52 = vpop.f32.mrb[47].mxu0  ;;  %4773 = vmatpush1.bf16.msra.mxu0 %v8301_v3  ;;  %v751_v39 = vld [vmem:[%s14772_s1 + $0xbb0] sm:$0xff]  ;;  %v8794_v3 = vadd.f32 %v15425_v20, %v12497_v34 }
 0x248   :  { %15418 = vst [vmem:[#allocation143_spill] sm:$0xff] %v12879_v6  ;;  %v12883_v17 = vadd.f32 %v8792_v41, %v3549_v52  ;;  %4071 = vmatmul.mubr.bf16.gmra.mrb[88].mxu1 %v15421_v32  ;;  %4774 = vmatprep.subr.bf16.mxu0 %v8310_v59  ;;  %v15424_v59 = vld [vmem:[#allocation31_spill] sm:$0xff]  ;;  %v15426_v41 = vld [vmem:[#allocation146_spill] sm:$0xff]  ;;  %v8326_v58 = vcombine.high %v747_v43, %v751_v39 }
 0x249   :  { %15419 = vst [vmem:[#allocation144_spill] sm:$0xff] %v12881_v27  ;;  %4650 = vmatmul.mubr.bf16.gmra.mrb[88].mxu0 %v15422_v28  ;;  %4080 = vmatprep.mubr.bf16.mxu1 %v15423_v57  ;;  %v8796_v42 = vadd.f32 %v15426_v41, %v12501_v0  ;;  %v15427_v30 = vld [vmem:[#allocation147_spill] sm:$0xff] }
 0x24a   :  { %15420 = vst [vmem:[#allocation160_spill] sm:$0xff] %v12883_v17  ;;  %4659 = vmatprep.mubr.bf16.mxu0 %v15424_v59  ;;  %v8798_v27 = vadd.f32 %v15427_v30, %v12497_v34  ;;  %v759_v13 = vld [vmem:[%s14772_s1 + $0xbf0] sm:$0xff] }
 0x24b   :  { %4775 = vmatpush1.bf16.msra.mxu0 %v8309_v54  ;;  %v8334_v6 = vcombine.high %v755_v14, %v759_v13 }
 0x24c   :  { %v3553_v52 = vpop.f32.mrb[48].mxu0  ;;  %4776 = vmatprep.subr.bf16.mxu0 %v8318_v53 }
 0x24d   :  { %v12905_v28 = vadd.f32 %v8794_v3, %v3553_v52  ;;  %v3555_v25 = vpop.f32.mrb[49].mxu0  ;;  %v8325_v3 = vcombine.low %v747_v43, %v751_v39  ;;  %v15432_v52 = vld [vmem:[#allocation62_spill] sm:$0xff]  ;;  %v8333_v43 = vcombine.low %v755_v14, %v759_v13 }
 0x24e   :  { %v12915_v54 = vadd.f32 %v8796_v42, %v3555_v25  ;;  %v3557_v53 = vpop.f32.mrb[50].mxu0 }
 0x24f   :  { %15428 = vst [vmem:[#allocation31_spill] sm:$0xff] %v12905_v28  ;;  %v12917_v20 = vadd.f32 %v8798_v27, %v3557_v53  ;;  %v3559_v30 = vpop.f32.mrb[51].mxu0  ;;  %4777 = vmatpush1.bf16.msra.mxu0 %v8317_v49  ;;  %v8802_v27 = vadd.f32 %v12440_v4, %v12497_v34  ;;  %v8806_v49 = vadd.f32 %v12446_v11, %v12497_v34 }
 0x250   :  { %15429 = vst [vmem:[#allocation145_spill] sm:$0xff] %v12915_v54  ;;  %v12919_v41 = vadd.f32 %v8800_v62, %v3559_v30  ;;  %4081 = vmatmul.mubr.bf16.gmra.mrb[92].mxu1 %v15432_v52  ;;  %4778 = vmatprep.subr.bf16.mxu0 %v8326_v58  ;;  %v8804_v58 = vadd.f32 %v12444_v12, %v12501_v0  ;;  %v15438_v12 = vld [vmem:[#allocation66_spill] sm:$0xff] }
 0x251   :  { %15430 = vst [vmem:[#allocation146_spill] sm:$0xff] %v12917_v20  ;;  %4660 = vmatmul.mubr.bf16.gmra.mrb[92].mxu0 %v15295_v5  ;;  %4090 = vmatprep.mubr.bf16.mxu1 %v15433_v16  ;;  %v8808_v53 = vadd.f32 %v12448_v40, %v12501_v0  ;;  %v15460_v54 = vld [vmem:[#allocation74_spill] sm:$0xff] }
 0x252   :  { %15431 = vst [vmem:[#allocation147_spill] sm:$0xff] %v12919_v41  ;;  %4669 = vmatprep.mubr.bf16.mxu0 %v15296_v60  ;;  %v13053_v41 = vld [vmem:[%s14772_s1 + $0x438] sm:$0xff] }
 0x253   :  { %4779 = vmatpush1.bf16.msra.mxu0 %v8325_v3 }
 0x254   :  { %v3563_v39 = vpop.f32.mrb[52].mxu0  ;;  %4780 = vmatprep.subr.bf16.mxu0 %v8334_v6  ;;  %v15439_v6 = vld [vmem:[#allocation68_spill] sm:$0xff] }
 0x255   :  { %v12935_v42 = vadd.f32 %v8802_v27, %v3563_v39  ;;  %v3565_v62 = vpop.f32.mrb[53].mxu0  ;;  %v15441_v27 = vld [vmem:[#allocation63_spill] sm:$0xff]  ;;  %v15442_v39 = vld [vmem:[#allocation65_spill] sm:$0xff] }
 0x256   :  { %v12939_v30 = vadd.f32 %v8804_v58, %v3565_v62  ;;  %v3567_v17 = vpop.f32.mrb[54].mxu0 }
 0x257   :  { %15434 = vst [vmem:[#allocation161_spill] sm:$0xff] %v12935_v42  ;;  %v12941_v4 = vadd.f32 %v8806_v49, %v3567_v17  ;;  %v3569_v14 = vpop.f32.mrb[55].mxu0  ;;  %4781 = vmatpush1.bf16.msra.mxu0 %v8333_v43  ;;  %v15440_v17 = vld [vmem:[#allocation33_spill] sm:$0xff]  ;;  %v8812_v43 = vadd.f32 %v15441_v27, %v12501_v0  ;;  %v8814_v49 = vadd.f32 %v15442_v39, %v12497_v34 }
 0x258   :  { %15435 = vst [vmem:[#allocation162_spill] sm:$0xff] %v12939_v30  ;;  %v12943_v13 = vadd.f32 %v8808_v53, %v3569_v14  ;;  %4091 = vmatmul.mubr.bf16.gmra.mrb[96].mxu1 %v15438_v12  ;;  %v8810_v3 = vadd.f32 %v15440_v17, %v12497_v34  ;;  %v15444_v14 = vld [vmem:[#allocation67_spill] sm:$0xff]  ;;  %v15448_v30 = vld [vmem:[#allocation70_spill] sm:$0xff]  ;;  %v15449_v39 = vld [vmem:[#allocation69_spill] sm:$0xff] }
 0x259   :  { %15436 = vst [vmem:[#allocation163_spill] sm:$0xff] %v12941_v4  ;;  %4670 = vmatmul.mubr.bf16.gmra.mrb[96].mxu0 %v15297_v29  ;;  %4100 = vmatprep.mubr.bf16.mxu1 %v15439_v6  ;;  %v8816_v11 = vadd.f32 %v15444_v14, %v12501_v0  ;;  %v15454_v14 = vld [vmem:[#allocation151_spill] sm:$0xff] }
 0x25a   :  { %15437 = vst [vmem:[#allocation164_spill] sm:$0xff] %v12943_v13  ;;  %4679 = vmatprep.mubr.bf16.mxu0 %v15298_v48  ;;  %v8822_v13 = vadd.f32 %v15454_v14, %v12497_v34  ;;  %v15468_v14 = vld [vmem:[#allocation86_spill] sm:$0xff] }
 0x25c   :  { %v3573_v58 = vpop.f32.mrb[56].mxu0 }
 0x25d   :  { %v12959_v62 = vadd.f32 %v8810_v3, %v3573_v58  ;;  %v3575_v53 = vpop.f32.mrb[57].mxu0  ;;  %v15450_v3 = vld [vmem:[#allocation72_spill] sm:$0xff] }
 0x25e   :  { %v12963_v25 = vadd.f32 %v8812_v43, %v3575_v53  ;;  %v3577_v40 = vpop.f32.mrb[58].mxu0  ;;  %v15451_v43 = vld [vmem:[#allocation71_spill] sm:$0xff] }
 0x25f   :  { %15443 = vst [vmem:[#allocation33_spill] sm:$0xff] %v12959_v62  ;;  %v12965_v42 = vadd.f32 %v8814_v49, %v3577_v40  ;;  %v3579_v4 = vpop.f32.mrb[59].mxu0  ;;  %v15452_v40 = vld [vmem:[#allocation149_spill] sm:$0xff] }
 0x260   :  { %15445 = vst [vmem:[#allocation63_spill] sm:$0xff] %v12963_v25  ;;  %v12967_v17 = vadd.f32 %v8816_v11, %v3579_v4  ;;  %4101 = vmatmul.mubr.bf16.gmra.mrb[100].mxu1 %v15448_v30  ;;  %v8818_v49 = vadd.f32 %v15452_v40, %v12497_v34  ;;  %v15453_v4 = vld [vmem:[#allocation150_spill] sm:$0xff]  ;;  %v15461_v34 = vld [vmem:[#allocation73_spill] sm:$0xff] }
 0x261   :  { %15446 = vst [vmem:[#allocation65_spill] sm:$0xff] %v12965_v42  ;;  %4680 = vmatmul.mubr.bf16.gmra.mrb[100].mxu0 %v15449_v39  ;;  %4110 = vmatprep.mubr.bf16.mxu1 %v15450_v3  ;;  %v8820_v11 = vadd.f32 %v15453_v4, %v12501_v0  ;;  %v15456_v42 = vld [vmem:[#allocation152_spill] sm:$0xff] }
 0x262   :  { %15447 = vst [vmem:[#allocation67_spill] sm:$0xff] %v12967_v17  ;;  %4689 = vmatprep.mubr.bf16.mxu0 %v15451_v43  ;;  %v8824_v28 = vadd.f32 %v15456_v42, %v12501_v0  ;;  %v15463_v42 = vld [vmem:[#allocation75_spill] sm:$0xff]  ;;  %v15469_v4 = vld [vmem:[#allocation88_spill] sm:$0xff]  ;;  %v15470_v0 = vld [vmem:[#allocation90_spill] sm:$0xff] }
 0x264   :  { %v3583_v53 = vpop.f32.mrb[60].mxu0 }
 0x265   :  { %v12983_v27 = vadd.f32 %v8818_v49, %v3583_v53  ;;  %v3585_v62 = vpop.f32.mrb[61].mxu0  ;;  %v15462_v49 = vld [vmem:[#allocation76_spill] sm:$0xff] }
 0x266   :  { %v12987_v20 = vadd.f32 %v8820_v11, %v3585_v62  ;;  %v3587_v58 = vpop.f32.mrb[62].mxu0  ;;  %v15464_v62 = vld [vmem:[#allocation78_spill] sm:$0xff]  ;;  %v15467_v53 = vld [vmem:[#allocation84_spill] sm:$0xff] }
 0x267   :  { %15455 = vst [vmem:[#allocation69_spill] sm:$0xff] %v12983_v27  ;;  %v12989_v25 = vadd.f32 %v8822_v13, %v3587_v58  ;;  %v3589_v17 = vpop.f32.mrb[63].mxu0  ;;  %v763_v13 = vld [vmem:[%s14772_s1 + $0xc10] sm:$0xff]  ;;  %v15466_v11 = vld [vmem:[#allocation82_spill] sm:$0xff] }
 0x268   :  { %15457 = vst [vmem:[#allocation71_spill] sm:$0xff] %v12987_v20  ;;  %v12991_v40 = vadd.f32 %v8824_v28, %v3589_v17  ;;  %4111 = vmatmul.mubr.bf16.gmra.mrb[104].mxu1 %v15460_v54  ;;  %v15465_v28 = vld [vmem:[#allocation80_spill] sm:$0xff]  ;;  %v767_v17 = vld [vmem:[%s14772_s1 + $0xc30] sm:$0xff]  ;;  %v15472_v27 = vld [vmem:[#allocation94_spill] sm:$0xff] }
 0x269   :  { %15458 = vst [vmem:[#allocation149_spill] sm:$0xff] %v12989_v25  ;;  %4690 = vmatmul.mubr.bf16.gmra.mrb[104].mxu0 %v15461_v34  ;;  %4120 = vmatprep.mubr.bf16.mxu1 %v15462_v49  ;;  %v8342_v58 = vcombine.high %v763_v13, %v767_v17  ;;  %v15473_v25 = vmov 0   ;;  %v388_v20 = vld [vmem:[%s14772_s1 + $0x58] sm:$0xff] }
 0x26a   :  { %15459 = vst [vmem:[#allocation150_spill] sm:$0xff] %v12991_v40  ;;  %4699 = vmatprep.mubr.bf16.mxu0 %v15463_v42  ;;  %v392_v40 = vld [vmem:[%s14772_s1 + $0x78] sm:$0xff] }
 0x26b   :  { %4943 = vmatprep.subr.bf16.mxu0 %v8342_v58  ;;  %v15471_v58 = vld [vmem:[#allocation92_spill] sm:$0xff] }
 0x270   :  { %4121 = vmatmul.mubr.bf16.gmra.mrb[108].mxu1 %v15464_v62 }
 0x271   :  { %4700 = vmatmul.mubr.bf16.gmra.mrb[108].mxu0 %v15320_v51  ;;  %4130 = vmatprep.mubr.bf16.mxu1 %v15465_v28 }
 0x272   :  { %4709 = vmatprep.mubr.bf16.mxu0 %v15321_v26 }
 0x278   :  { %4131 = vmatmul.mubr.bf16.gmra.mrb[112].mxu1 %v15466_v11 }
 0x279   :  { %4710 = vmatmul.mubr.bf16.gmra.mrb[112].mxu0 %v15330_v15  ;;  %4140 = vmatprep.mubr.bf16.mxu1 %v15467_v53  ;;  %v13048_v15 = vld [vmem:[%s14772_s1 + $0x418] sm:$0xff] }
 0x27a   :  { %4719 = vmatprep.mubr.bf16.mxu0 %v15331_v35  ;;  %v7967_v35 = vcombine.low %v388_v20, %v392_v40 }
 0x280   :  { %4141 = vmatmul.mubr.bf16.gmra.mrb[116].mxu1 %v15468_v14 }
 0x281   :  { %4720 = vmatmul.mubr.bf16.gmra.mrb[116].mxu0 %v15340_v8  ;;  %4150 = vmatprep.mubr.bf16.mxu1 %v15469_v4  ;;  %v15474_v8 = vld [vmem:[#allocation95_spill] sm:$0xff] }
 0x282   :  { %4729 = vmatprep.mubr.bf16.mxu0 %v15341_v2  ;;  %v8341_v2 = vcombine.low %v763_v13, %v767_v17  ;;  %v15476_v17 = vld [vmem:[#allocation96_spill] sm:$0xff] }
 0x288   :  { %4151 = vmatmul.mubr.bf16.gmra.mrb[120].mxu1 %v15470_v0 }
 0x289   :  { %4730 = vmatmul.mubr.bf16.gmra.mrb[120].mxu0 %v15350_v23  ;;  %4160 = vmatprep.mubr.bf16.mxu1 %v15471_v58  ;;  %v7968_v23 = vcombine.high %v388_v20, %v392_v40 }
 0x28a   :  { %4739 = vmatprep.mubr.bf16.mxu0 %v15351_v22  ;;  %v396_v22 = vld [vmem:[%s14772_s1 + $0x98] sm:$0xff] }
 0x290   :  { %4161 = vmatmul.mubr.bf16.gmra.mrb[124].mxu1 %v15472_v27 }
 0x291   :  { %4740 = vmatmul.mubr.bf16.gmra.mrb[124].mxu0 %v15356_v21  ;;  %4203 = vmatprep.mubr.bf16.mxu1 %v15473_v25  ;;  %v400_v21 = vld [vmem:[%s14772_s1 + $0xb8] sm:$0xff] }
 0x292   :  { %4782 = vmatprep.mubr.bf16.mxu0 %v15357_v7  ;;  %v15475_v7 = vcombine.low %v12665_v45, %v12670_v44  ;;  %v7976_v13 = vcombine.high %v396_v22, %v400_v21  ;;  %v408_v44 = vld [vmem:[%s14772_s1 + $0xf8] sm:$0xff]  ;;  %v7975_v20 = vcombine.low %v396_v22, %v400_v21 }
 0x293   :  { %v420_v22 = vld [vmem:[%s14772_s1 + $0x158] sm:$0xff] }
 0x298   :  { %8361 = vmatmul.mubr.msk.bf16.vlgmr.msra.gmra.mrb[64].mxu1 %vm2771_vm0, %v15474_v8 }
 0x299   :  { %4783 = vmatmul.mubr.bf16.vlgmr.msra.gmra.mrb[64].mxu0 %v15362_v24  ;;  %5137 = vmatpush1.bf16.msra.mxu1 %v15475_v7  ;;  %v404_v7 = vld [vmem:[%s14772_s1 + $0xd8] sm:$0xff] }
 0x29a   :  { %4213 = vmatprep.mubr.bf16.mxu1 %v15473_v25  ;;  %4792 = vmatprep.mubr.bf16.mxu0 %v15364_v56  ;;  %v7984_v40 = vcombine.high %v404_v7, %v408_v44  ;;  %v7983_v21 = vcombine.low %v404_v7, %v408_v44  ;;  %v15477_v56 = vld [vmem:[#allocation97_spill] sm:$0xff]  ;;  %v428_v7 = vld [vmem:[%s14772_s1 + $0x198] sm:$0xff] }
 0x29b   :  { %5138 = vmatprep.subr.bf16.mxu1 %v7968_v23  ;;  %4944 = vmatpush1.bf16.msra.mxu0 %v8341_v2  ;;  %v412_v23 = vld [vmem:[%s14772_s1 + $0x118] sm:$0xff] }
 0x29c   :  { %v416_v2 = vld [vmem:[%s14772_s1 + $0x138] sm:$0xff] }
 0x29d   :  { %5139 = vmatpush1.bf16.msra.mxu1 %v7967_v35  ;;  %v7992_v35 = vcombine.high %v412_v23, %v416_v2  ;;  %v7991_v45 = vcombine.low %v412_v23, %v416_v2  ;;  %v432_v44 = vld [vmem:[%s14772_s1 + $0x1b8] sm:$0xff] }
 0x29e   :  { %5140 = vmatprep.subr.bf16.mxu1 %v7976_v13  ;;  %v424_v13 = vld [vmem:[%s14772_s1 + $0x178] sm:$0xff] }
 0x29f   :  { %v436_v23 = vld [vmem:[%s14772_s1 + $0x1d8] sm:$0xff] }
 0x2a0   :  { %8362 = vmatmul.mubr.msk.bf16.gmra.mrb[68].mxu1 %vm2771_vm0, %v15476_v17  ;;  %v440_v2 = vld [vmem:[%s14772_s1 + $0x1f8] sm:$0xff] }
 0x2a1   :  { %4793 = vmatmul.mubr.bf16.gmra.mrb[68].mxu0 %v15374_v37  ;;  %4223 = vmatprep.mubr.bf16.mxu1 %v15473_v25  ;;  %v8000_v37 = vcombine.high %v420_v22, %v424_v13 }
 0x2a2   :  { %4802 = vmatprep.mubr.bf16.mxu0 %v15375_v33  ;;  %5141 = vmatpush1.bf16.msra.mxu1 %v7975_v20  ;;  %v7999_v20 = vcombine.low %v420_v22, %v424_v13  ;;  %v8015_v22 = vcombine.low %v436_v23, %v440_v2 }
 0x2a3   :  { %5142 = vmatprep.subr.bf16.mxu1 %v7984_v40  ;;  %v8008_v40 = vcombine.high %v428_v7, %v432_v44 }
 0x2a6   :  { %5143 = vmatpush1.bf16.msra.mxu1 %v7983_v21  ;;  %v8007_v21 = vcombine.low %v428_v7, %v432_v44  ;;  %v452_v7 = vld [vmem:[%s14772_s1 + $0x258] sm:$0xff] }
 0x2a7   :  { %5144 = vmatprep.subr.bf16.mxu1 %v7992_v35  ;;  %v8016_v35 = vcombine.high %v436_v23, %v440_v2  ;;  %v456_v44 = vld [vmem:[%s14772_s1 + $0x278] sm:$0xff] }
 0x2a8   :  { %8363 = vmatmul.mubr.msk.bf16.gmra.mrb[72].mxu1 %vm2771_vm0, %v15477_v56  ;;  %v460_v23 = vld [vmem:[%s14772_s1 + $0x298] sm:$0xff] }
 0x2a9   :  { %4803 = vmatmul.mubr.bf16.gmra.mrb[72].mxu0 %v15384_v36  ;;  %4233 = vmatprep.mubr.bf16.mxu1 %v15473_v25  ;;  %v15478_v36 = vld [vmem:[#allocation101_spill] sm:$0xff]  ;;  %v464_v2 = vld [vmem:[%s14772_s1 + $0x2b8] sm:$0xff] }
 0x2aa   :  { %4812 = vmatprep.mubr.bf16.mxu0 %v15385_v18  ;;  %5145 = vmatpush1.bf16.msra.mxu1 %v7991_v45  ;;  %v448_v45 = vld [vmem:[%s14772_s1 + $0x238] sm:$0xff] }
 0x2ab   :  { %5146 = vmatprep.subr.bf16.mxu1 %v8000_v37  ;;  %v444_v37 = vld [vmem:[%s14772_s1 + $0x218] sm:$0xff] }
 0x2ac   :  { %v8024_v13 = vcombine.high %v444_v37, %v448_v45 }
 0x2ae   :  { %5147 = vmatpush1.bf16.msra.mxu1 %v7999_v20  ;;  %v8023_v20 = vcombine.low %v444_v37, %v448_v45  ;;  %v468_v37 = vld [vmem:[%s14772_s1 + $0x2d8] sm:$0xff] }
 0x2af   :  { %5148 = vmatprep.subr.bf16.mxu1 %v8008_v40  ;;  %v8032_v40 = vcombine.high %v452_v7, %v456_v44  ;;  %v472_v45 = vld [vmem:[%s14772_s1 + $0x2f8] sm:$0xff] }
 0x2b0   :  { %8364 = vmatmul.mubr.msk.bf16.gmra.mrb[76].mxu1 %vm2771_vm0, %v15478_v36 }
 0x2b1   :  { %4813 = vmatmul.mubr.bf16.gmra.mrb[76].mxu0 %v15391_v10  ;;  %4243 = vmatprep.mubr.bf16.mxu1 %v15473_v25  ;;  %v15479_v10 = vld [vmem:[#allocation106_spill] sm:$0xff] }
 0x2b2   :  { %4822 = vmatprep.mubr.bf16.mxu0 %v15392_v46  ;;  %5149 = vmatpush1.bf16.msra.mxu1 %v8007_v21  ;;  %v8031_v21 = vcombine.low %v452_v7, %v456_v44  ;;  %v476_v7 = vld [vmem:[%s14772_s1 + $0x318] sm:$0xff] }
 0x2b3   :  { %5150 = vmatprep.subr.bf16.mxu1 %v8016_v35  ;;  %v8040_v35 = vcombine.high %v460_v23, %v464_v2  ;;  %v480_v44 = vld [vmem:[%s14772_s1 + $0x338] sm:$0xff] }
 0x2b6   :  { %5151 = vmatpush1.bf16.msra.mxu1 %v8015_v22  ;;  %v8039_v22 = vcombine.low %v460_v23, %v464_v2  ;;  %v484_v23 = vld [vmem:[%s14772_s1 + $0x358] sm:$0xff] }
 0x2b7   :  { %5152 = vmatprep.subr.bf16.mxu1 %v8024_v13  ;;  %v8048_v13 = vcombine.high %v468_v37, %v472_v45  ;;  %v488_v2 = vld [vmem:[%s14772_s1 + $0x378] sm:$0xff] }
 0x2b8   :  { %8365 = vmatmul.mubr.msk.bf16.gmra.mrb[80].mxu1 %vm2771_vm0, %v15479_v10 }
 0x2b9   :  { %4823 = vmatmul.mubr.bf16.gmra.mrb[80].mxu0 %v15401_v50  ;;  %4253 = vmatprep.mubr.bf16.mxu1 %v15473_v25  ;;  %v15480_v50 = vld [vmem:[#allocation111_spill] sm:$0xff] }
 0x2ba   :  { %4832 = vmatprep.mubr.bf16.mxu0 %v15402_v1  ;;  %5153 = vmatpush1.bf16.msra.mxu1 %v8023_v20  ;;  %v8047_v20 = vcombine.low %v468_v37, %v472_v45  ;;  %v492_v37 = vld [vmem:[%s14772_s1 + $0x398] sm:$0xff] }
 0x2bb   :  { %5154 = vmatprep.subr.bf16.mxu1 %v8032_v40  ;;  %v8056_v40 = vcombine.high %v476_v7, %v480_v44  ;;  %v496_v45 = vld [vmem:[%s14772_s1 + $0x3b8] sm:$0xff] }
 0x2be   :  { %5155 = vmatpush1.bf16.msra.mxu1 %v8031_v21  ;;  %v8055_v21 = vcombine.low %v476_v7, %v480_v44  ;;  %v500_v7 = vld [vmem:[%s14772_s1 + $0x3d8] sm:$0xff] }
 0x2bf   :  { %5156 = vmatprep.subr.bf16.mxu1 %v8040_v35  ;;  %v8064_v35 = vcombine.high %v484_v23, %v488_v2  ;;  %v504_v44 = vld [vmem:[%s14772_s1 + $0x3f8] sm:$0xff] }
 0x2c0   :  { %8366 = vmatmul.mubr.msk.bf16.gmra.mrb[84].mxu1 %vm2771_vm0, %v15480_v50 }
 0x2c1   :  { %4833 = vmatmul.mubr.bf16.gmra.mrb[84].mxu0 %v15411_v47  ;;  %4263 = vmatprep.mubr.bf16.mxu1 %v15473_v25  ;;  %v15481_v47 = vld [vmem:[#allocation116_spill] sm:$0xff] }
 0x2c2   :  { %4842 = vmatprep.mubr.bf16.mxu0 %v15412_v38  ;;  %5157 = vmatpush1.bf16.msra.mxu1 %v8039_v22  ;;  %v8063_v22 = vcombine.low %v484_v23, %v488_v2  ;;  %v8079_v23 = vcombine.low %v500_v7, %v504_v44  ;;  %v8088_v2 = vcombine.high %v13048_v15, %v13053_v41  ;;  %v15535_v38 = vld [vmem:[#allocation79_spill] sm:$0xff] }
 0x2c3   :  { %5158 = vmatprep.subr.bf16.mxu1 %v8048_v13  ;;  %v8072_v13 = vcombine.high %v492_v37, %v496_v45 }
 0x2c6   :  { %5159 = vmatpush1.bf16.msra.mxu1 %v8047_v20  ;;  %v8071_v20 = vcombine.low %v492_v37, %v496_v45  ;;  %v15484_v37 = vld [vmem:[#allocation123_spill] sm:$0xff]  ;;  %v15485_v45 = vld [vmem:[#allocation128_spill] sm:$0xff] }
 0x2c7   :  { %5160 = vmatprep.subr.bf16.mxu1 %v8056_v40  ;;  %v8080_v40 = vcombine.high %v500_v7, %v504_v44  ;;  %v15488_v7 = vld [vmem:[#allocation132_spill] sm:$0xff]  ;;  %v15489_v44 = vld [vmem:[#allocation133_spill] sm:$0xff] }
 0x2c8   :  { %8367 = vmatmul.mubr.msk.bf16.gmra.mrb[88].mxu1 %vm2771_vm0, %v15481_v47 }
 0x2c9   :  { %4843 = vmatmul.mubr.bf16.gmra.mrb[88].mxu0 %v15421_v32  ;;  %4273 = vmatprep.mubr.bf16.mxu1 %v15473_v25  ;;  %v15482_v32 = vld [vmem:[#allocation118_spill] sm:$0xff] }
 0x2ca   :  { %4852 = vmatprep.mubr.bf16.mxu0 %v15423_v57  ;;  %5161 = vmatpush1.bf16.msra.mxu1 %v8055_v21  ;;  %v9984_v21 = vld [vmem:[#allocation2 + $0x4] ss:$8 sps:$4 sm:$0xff]   ;;  %v15534_v57 = vld [vmem:[#allocation104_spill] sm:$0xff] }
 0x2cb   :  { %5162 = vmatprep.subr.bf16.mxu1 %v8064_v35  ;;  %v15483_v35 = vld [vmem:[#allocation119_spill] sm:$0xff]  ;;  %6816 = vmatprep.subr.bf16.mxu0 %v9984_v21  ;;  %v15536_v1 = vpack.c.bf16 %v15534_v57, %v15535_v38  ;;  %v660_v57 = vld [vmem:[%s14772_s1 + $0x8d8] sm:$0xff] }
 0x2ce   :  { %5163 = vmatpush1.bf16.msra.mxu1 %v8063_v22  ;;  %v15486_v22 = vld [vmem:[#allocation130_spill] sm:$0xff] }
 0x2cf   :  { %5164 = vmatprep.subr.bf16.mxu1 %v8072_v13  ;;  %v15487_v13 = vld [vmem:[#allocation131_spill] sm:$0xff] }
 0x2d0   :  { %8368 = vmatmul.mubr.msk.bf16.gmra.mrb[92].mxu1 %vm2771_vm0, %v15482_v32 }
 0x2d1   :  { %4853 = vmatmul.mubr.bf16.gmra.mrb[92].mxu0 %v15432_v52  ;;  %4283 = vmatprep.mubr.bf16.mxu1 %v15473_v25 }
 0x2d2   :  { %4862 = vmatprep.mubr.bf16.mxu0 %v15433_v16  ;;  %5165 = vmatpush1.bf16.msra.mxu1 %v8071_v20  ;;  %v15490_v20 = vld [vmem:[#allocation134_spill] sm:$0xff] }
 0x2d3   :  { %5166 = vmatprep.subr.bf16.mxu1 %v8080_v40  ;;  %v15491_v40 = vld [vmem:[#allocation5_spill] sm:$0xff] }
 0x2d6   :  { %5167 = vmatpush1.bf16.msra.mxu1 %v8079_v23  ;;  %v516_v23 = vld [vmem:[%s14772_s1 + $0x458] sm:$0xff] }
 0x2d7   :  { %5329 = vmatprep.subr.bf16.mxu1 %v8088_v2  ;;  %v520_v2 = vld [vmem:[%s14772_s1 + $0x478] sm:$0xff] }
 0x2d8   :  { %8369 = vmatmul.mubr.msk.bf16.gmra.mrb[96].mxu1 %vm2771_vm0, %v15483_v35  ;;  %v8096_v21 = vcombine.high %v516_v23, %v520_v2 }
 0x2d9   :  { %4863 = vmatmul.mubr.bf16.gmra.mrb[96].mxu0 %v15438_v12  ;;  %4293 = vmatprep.mubr.bf16.mxu1 %v15473_v25 }
 0x2da   :  { %4872 = vmatprep.mubr.bf16.mxu0 %v15439_v6  ;;  %v15531_v6 = vld [vmem:[#allocation98_spill] sm:$0xff] }
 0x2e0   :  { %8370 = vmatmul.mubr.msk.bf16.gmra.mrb[100].mxu1 %vm2771_vm0, %v15484_v37 }
 0x2e1   :  { %4873 = vmatmul.mubr.bf16.gmra.mrb[100].mxu0 %v15448_v30  ;;  %4303 = vmatprep.mubr.bf16.mxu1 %v15473_v25  ;;  %v15530_v30 = vld [vmem:[#allocation100_spill] sm:$0xff] }
 0x2e2   :  { %4882 = vmatprep.mubr.bf16.mxu0 %v15450_v3  ;;  %v10030_v3 = vld [vmem:[#allocation2 + $0x100] ss:$8 sps:$4 sm:$0xff]   ;;  %v15532_v12 = vpack.c.bf16 %v15530_v30, %v15531_v6  ;;  %v13543_v30 = vld [vmem:[%s14772_s1 + $0xc38] sm:$0xff] }
 0x2e3   :  { %v664_v6 = vld [vmem:[%s14772_s1 + $0x8f8] sm:$0xff] }
 0x2e8   :  { %8371 = vmatmul.mubr.msk.bf16.gmra.mrb[104].mxu1 %vm2771_vm0, %v15485_v45 }
 0x2e9   :  { %4883 = vmatmul.mubr.bf16.gmra.mrb[104].mxu0 %v15460_v54  ;;  %4313 = vmatprep.mubr.bf16.mxu1 %v15473_v25  ;;  %v9993_v54 = vld [vmem:[#allocation2 + $0x34] ss:$8 sps:$4 sm:$0xff]  }
 0x2ea   :  { %4892 = vmatprep.mubr.bf16.mxu0 %v15462_v49  ;;  %v9988_v49 = vld [vmem:[#allocation2 + $0x20] ss:$8 sps:$4 sm:$0xff]  }
 0x2f0   :  { %8372 = vmatmul.mubr.msk.bf16.gmra.mrb[108].mxu1 %vm2771_vm0, %v15486_v22 }
 0x2f1   :  { %4893 = vmatmul.mubr.bf16.gmra.mrb[108].mxu0 %v15464_v62  ;;  %4323 = vmatprep.mubr.bf16.mxu1 %v15473_v25 }
 0x2f2   :  { %4902 = vmatprep.mubr.bf16.mxu0 %v15465_v28  ;;  %v13240_v28 = vld [vmem:[%s14772_s1 + $0x838] sm:$0xff] }
 0x2f8   :  { %8373 = vmatmul.mubr.msk.bf16.gmra.mrb[112].mxu1 %vm2771_vm0, %v15487_v13 }
 0x2f9   :  { %4903 = vmatmul.mubr.bf16.gmra.mrb[112].mxu0 %v15466_v11  ;;  %4333 = vmatprep.mubr.bf16.mxu1 %v15473_v25  ;;  %v13235_v11 = vld [vmem:[%s14772_s1 + $0x818] sm:$0xff] }
 0x2fa   :  { %4912 = vmatprep.mubr.bf16.mxu0 %v15467_v53  ;;  %v8095_v53 = vcombine.low %v516_v23, %v520_v2  ;;  %v536_v23 = vld [vmem:[%s14772_s1 + $0x4f8] sm:$0xff]  ;;  %v9990_v2 = vld [vmem:[#allocation2 + $0x24] ss:$8 sps:$4 sm:$0xff]   ;;  %v15533_v16 = vcombine.low %v13235_v11, %v13240_v28 }
 0x300   :  { %8374 = vmatmul.mubr.msk.bf16.gmra.mrb[116].mxu1 %vm2771_vm0, %v15488_v7 }
 0x301   :  { %4913 = vmatmul.mubr.bf16.gmra.mrb[116].mxu0 %v15468_v14  ;;  %4343 = vmatprep.mubr.bf16.mxu1 %v15473_v25  ;;  %v15493_v14 = vcombine.low %v13048_v15, %v13053_v41  ;;  %v9985_v41 = vld [vmem:[#allocation2 + $0x10] ss:$8 sps:$4 sm:$0xff]   ;;  %v15495_v15 = vld [vmem:[#allocation9_spill] sm:$0xff] }
 0x302   :  { %4922 = vmatprep.mubr.bf16.mxu0 %v15469_v4  ;;  %v9987_v4 = vld [vmem:[#allocation2 + $0x14] ss:$8 sps:$4 sm:$0xff]  }
 0x308   :  { %8375 = vmatmul.mubr.msk.bf16.gmra.mrb[120].mxu1 %vm2771_vm0, %v15489_v44 }
 0x309   :  { %4923 = vmatmul.mubr.bf16.gmra.mrb[120].mxu0 %v15470_v0  ;;  %4353 = vmatprep.mubr.bf16.mxu1 %v15473_v25  ;;  %v15492_v0 = vld [vmem:[#allocation6_spill] sm:$0xff] }
 0x30a   :  { %4932 = vmatprep.mubr.bf16.mxu0 %v15471_v58  ;;  %v524_v58 = vld [vmem:[%s14772_s1 + $0x498] sm:$0xff] }
 0x310   :  { %8376 = vmatmul.mubr.msk.bf16.gmra.mrb[124].mxu1 %vm2771_vm0, %v15490_v20 }
 0x311   :  { %4933 = vmatmul.mubr.bf16.gmra.mrb[124].mxu0 %v15472_v27  ;;  %5168 = vmatprep.mubr.bf16.mxu1 %v15491_v40  ;;  %v528_v27 = vld [vmem:[%s14772_s1 + $0x4b8] sm:$0xff]  ;;  %v9982_v40 = vld [vmem:[#allocation2] ss:$8 sps:$4 sm:$0xff]  }
 0x312   :  { %4975 = vmatprep.mubr.bf16.mxu0 %v15473_v25  ;;  %v8103_v62 = vcombine.low %v524_v58, %v528_v27 }
 0x318   :  { %5169 = vmatmul.mubr.bf16.vlgmr.msra.gmra.mrb[128].mxu1 %v15492_v0  ;;  %v15494_v0 = vld [vmem:[#allocation7_spill] sm:$0xff] }
 0x319   :  { %8377 = vmatmul.mubr.msk.bf16.vlgmr.msra.gmra.mrb[64].mxu0 %vm2771_vm0, %v15474_v8  ;;  %5330 = vmatpush1.bf16.msra.mxu1 %v15493_v14  ;;  %v8104_v8 = vcombine.high %v524_v58, %v528_v27  ;;  %v532_v14 = vld [vmem:[%s14772_s1 + $0x4d8] sm:$0xff]  ;;  %v15496_v27 = vld [vmem:[#allocation11_spill] sm:$0xff] }
 0x31a   :  { %4985 = vmatprep.mubr.bf16.mxu0 %v15473_v25  ;;  %5178 = vmatprep.mubr.bf16.mxu1 %v15494_v0  ;;  %v8112_v0 = vcombine.high %v532_v14, %v536_v23  ;;  %v548_v58 = vld [vmem:[%s14772_s1 + $0x558] sm:$0xff] }
 0x31b   :  { %5331 = vmatprep.subr.bf16.mxu1 %v8096_v21  ;;  %6817 = vmatpush1.bf16.msra.mxu0 %v9982_v40  ;;  %v540_v21 = vld [vmem:[%s14772_s1 + $0x518] sm:$0xff] }
 0x31c   :  { %6818 = vmatprep.subr.bf16.mxu0 %v9987_v4  ;;  %v544_v40 = vld [vmem:[%s14772_s1 + $0x538] sm:$0xff] }
 0x31d   :  { %5332 = vmatpush1.bf16.msra.mxu1 %v8095_v53  ;;  %v8120_v4 = vcombine.high %v540_v21, %v544_v40  ;;  %v9991_v53 = vld [vmem:[#allocation2 + $0x30] ss:$8 sps:$4 sm:$0xff]  }
 0x31e   :  { %5333 = vmatprep.subr.bf16.mxu1 %v8104_v8  ;;  %v8111_v8 = vcombine.low %v532_v14, %v536_v23  ;;  %v15497_v14 = vld [vmem:[#allocation13_spill] sm:$0xff]  ;;  %v560_v23 = vld [vmem:[%s14772_s1 + $0x5b8] sm:$0xff] }
 0x31f   :  { %6819 = vmatpush1.bf16.msra.mxu0 %v9985_v41  ;;  %v9996_v41 = vld [vmem:[#allocation2 + $0x44] ss:$8 sps:$4 sm:$0xff]  }
 0x320   :  { %5179 = vmatmul.mubr.bf16.gmra.mrb[132].mxu1 %v15495_v15  ;;  %6820 = vmatprep.subr.bf16.mxu0 %v9990_v2  ;;  %v552_v15 = vld [vmem:[%s14772_s1 + $0x578] sm:$0xff]  ;;  %v8119_v2 = vcombine.low %v540_v21, %v544_v40 }
 0x321   :  { %8378 = vmatmul.mubr.msk.bf16.gmra.mrb[68].mxu0 %vm2771_vm0, %v15476_v17  ;;  %5188 = vmatprep.mubr.bf16.mxu1 %v15496_v27  ;;  %v8128_v27 = vcombine.high %v548_v58, %v552_v15  ;;  %v8127_v21 = vcombine.low %v548_v58, %v552_v15  ;;  %v10000_v58 = vld [vmem:[#allocation2 + $0x60] ss:$8 sps:$4 sm:$0xff]   ;;  %v15499_v15 = vld [vmem:[#allocation16_spill] sm:$0xff] }
 0x322   :  { %4995 = vmatprep.mubr.bf16.mxu0 %v15473_v25  ;;  %5334 = vmatpush1.bf16.msra.mxu1 %v8103_v62  ;;  %v9994_v62 = vld [vmem:[#allocation2 + $0x40] ss:$8 sps:$4 sm:$0xff]  }
 0x323   :  { %5335 = vmatprep.subr.bf16.mxu1 %v8112_v0  ;;  %6821 = vmatpush1.bf16.msra.mxu0 %v9988_v49  ;;  %v556_v49 = vld [vmem:[%s14772_s1 + $0x598] sm:$0xff] }
 0x324   :  { %6822 = vmatprep.subr.bf16.mxu0 %v9993_v54  ;;  %v9999_v0 = vld [vmem:[#allocation2 + $0x54] ss:$8 sps:$4 sm:$0xff]   ;;  %v15498_v54 = vld [vmem:[#allocation14_spill] sm:$0xff]  ;;  %v8136_v40 = vcombine.high %v556_v49, %v560_v23 }
 0x326   :  { %5336 = vmatpush1.bf16.msra.mxu1 %v8111_v8  ;;  %v9997_v8 = vld [vmem:[#allocation2 + $0x50] ss:$8 sps:$4 sm:$0xff]  }
 0x327   :  { %5337 = vmatprep.subr.bf16.mxu1 %v8120_v4  ;;  %6823 = vmatpush1.bf16.msra.mxu0 %v9991_v53  ;;  %v564_v4 = vld [vmem:[%s14772_s1 + $0x5d8] sm:$0xff] }
 0x328   :  { %5189 = vmatmul.mubr.bf16.gmra.mrb[136].mxu1 %v15497_v14  ;;  %6824 = vmatprep.subr.bf16.mxu0 %v9996_v41  ;;  %v568_v53 = vld [vmem:[%s14772_s1 + $0x5f8] sm:$0xff]  ;;  %v10002_v41 = vld [vmem:[#allocation2 + $0x64] ss:$8 sps:$4 sm:$0xff]   ;;  %v8135_v14 = vcombine.low %v556_v49, %v560_v23 }
 0x329   :  { %8379 = vmatmul.mubr.msk.bf16.gmra.mrb[72].mxu0 %vm2771_vm0, %v15477_v56  ;;  %5198 = vmatprep.mubr.bf16.mxu1 %v15498_v54  ;;  %v8144_v54 = vcombine.high %v564_v4, %v568_v53  ;;  %v15500_v49 = vld [vmem:[#allocation18_spill] sm:$0xff]  ;;  %v8143_v23 = vcombine.low %v564_v4, %v568_v53  ;;  %v15501_v53 = vld [vmem:[#allocation20_spill] sm:$0xff] }
 0x32a   :  { %5005 = vmatprep.mubr.bf16.mxu0 %v15473_v25  ;;  %5338 = vmatpush1.bf16.msra.mxu1 %v8119_v2  ;;  %v572_v2 = vld [vmem:[%s14772_s1 + $0x618] sm:$0xff]  ;;  %v10006_v4 = vld [vmem:[#allocation2 + $0x80] ss:$8 sps:$4 sm:$0xff]  }
 0x32b   :  { %5339 = vmatprep.subr.bf16.mxu1 %v8128_v27  ;;  %6825 = vmatpush1.bf16.msra.mxu0 %v9994_v62  ;;  %v576_v27 = vld [vmem:[%s14772_s1 + $0x638] sm:$0xff] }
 0x32c   :  { %6826 = vmatprep.subr.bf16.mxu0 %v9999_v0  ;;  %v10005_v62 = vld [vmem:[#allocation2 + $0x74] ss:$8 sps:$4 sm:$0xff]   ;;  %v8152_v0 = vcombine.high %v572_v2, %v576_v27 }
 0x32e   :  { %5340 = vmatpush1.bf16.msra.mxu1 %v8127_v21  ;;  %v10003_v21 = vld [vmem:[#allocation2 + $0x70] ss:$8 sps:$4 sm:$0xff]  }
 0x32f   :  { %5341 = vmatprep.subr.bf16.mxu1 %v8136_v40  ;;  %6827 = vmatpush1.bf16.msra.mxu0 %v9997_v8  ;;  %v580_v40 = vld [vmem:[%s14772_s1 + $0x658] sm:$0xff] }
 0x330   :  { %5199 = vmatmul.mubr.bf16.gmra.mrb[140].mxu1 %v15499_v15  ;;  %6828 = vmatprep.subr.bf16.mxu0 %v10002_v41  ;;  %v584_v8 = vld [vmem:[%s14772_s1 + $0x678] sm:$0xff]  ;;  %v10008_v41 = vld [vmem:[#allocation2 + $0x84] ss:$8 sps:$4 sm:$0xff]   ;;  %v8151_v15 = vcombine.low %v572_v2, %v576_v27 }
 0x331   :  { %8380 = vmatmul.mubr.msk.bf16.gmra.mrb[76].mxu0 %vm2771_vm0, %v15478_v36  ;;  %5208 = vmatprep.mubr.bf16.mxu1 %v15500_v49  ;;  %v8160_v49 = vcombine.high %v580_v40, %v584_v8  ;;  %v15502_v2 = vld [vmem:[#allocation22_spill] sm:$0xff]  ;;  %v8159_v27 = vcombine.low %v580_v40, %v584_v8  ;;  %v15503_v8 = vld [vmem:[#allocation24_spill] sm:$0xff] }
 0x332   :  { %5015 = vmatprep.mubr.bf16.mxu0 %v15473_v25  ;;  %5342 = vmatpush1.bf16.msra.mxu1 %v8135_v14  ;;  %v588_v14 = vld [vmem:[%s14772_s1 + $0x698] sm:$0xff]  ;;  %v10012_v40 = vld [vmem:[#allocation2 + $0xa0] ss:$8 sps:$4 sm:$0xff]  }
 0x333   :  { %5343 = vmatprep.subr.bf16.mxu1 %v8144_v54  ;;  %6829 = vmatpush1.bf16.msra.mxu0 %v10000_v58  ;;  %v592_v54 = vld [vmem:[%s14772_s1 + $0x6b8] sm:$0xff] }
 0x334   :  { %6830 = vmatprep.subr.bf16.mxu0 %v10005_v62  ;;  %v10011_v58 = vld [vmem:[#allocation2 + $0x94] ss:$8 sps:$4 sm:$0xff]   ;;  %v8168_v62 = vcombine.high %v588_v14, %v592_v54 }
 0x336   :  { %5344 = vmatpush1.bf16.msra.mxu1 %v8143_v23  ;;  %v10009_v23 = vld [vmem:[#allocation2 + $0x90] ss:$8 sps:$4 sm:$0xff]  }
 0x337   :  { %5345 = vmatprep.subr.bf16.mxu1 %v8152_v0  ;;  %6831 = vmatpush1.bf16.msra.mxu0 %v10003_v21  ;;  %v596_v0 = vld [vmem:[%s14772_s1 + $0x6d8] sm:$0xff] }
 0x338   :  { %5209 = vmatmul.mubr.bf16.gmra.mrb[144].mxu1 %v15501_v53  ;;  %6832 = vmatprep.subr.bf16.mxu0 %v10008_v41  ;;  %v600_v21 = vld [vmem:[%s14772_s1 + $0x6f8] sm:$0xff]  ;;  %v10014_v41 = vld [vmem:[#allocation2 + $0xa4] ss:$8 sps:$4 sm:$0xff]   ;;  %v8167_v53 = vcombine.low %v588_v14, %v592_v54 }
 0x339   :  { %8381 = vmatmul.mubr.msk.bf16.gmra.mrb[80].mxu0 %vm2771_vm0, %v15479_v10  ;;  %5218 = vmatprep.mubr.bf16.mxu1 %v15502_v2  ;;  %v8176_v2 = vcombine.high %v596_v0, %v600_v21  ;;  %v15504_v14 = vld [vmem:[#allocation26_spill] sm:$0xff]  ;;  %v8175_v54 = vcombine.low %v596_v0, %v600_v21  ;;  %v15505_v21 = vld [vmem:[#allocation28_spill] sm:$0xff] }
 0x33a   :  { %5025 = vmatprep.mubr.bf16.mxu0 %v15473_v25  ;;  %5346 = vmatpush1.bf16.msra.mxu1 %v8151_v15  ;;  %v604_v15 = vld [vmem:[%s14772_s1 + $0x718] sm:$0xff]  ;;  %v10018_v0 = vld [vmem:[#allocation2 + $0xc0] ss:$8 sps:$4 sm:$0xff]  }
 0x33b   :  { %5347 = vmatprep.subr.bf16.mxu1 %v8160_v49  ;;  %6833 = vmatpush1.bf16.msra.mxu0 %v10006_v4  ;;  %v608_v49 = vld [vmem:[%s14772_s1 + $0x738] sm:$0xff] }
 0x33c   :  { %6834 = vmatprep.subr.bf16.mxu0 %v10011_v58  ;;  %v10017_v4 = vld [vmem:[#allocation2 + $0xb4] ss:$8 sps:$4 sm:$0xff]   ;;  %v8184_v58 = vcombine.high %v604_v15, %v608_v49 }
 0x33e   :  { %5348 = vmatpush1.bf16.msra.mxu1 %v8159_v27  ;;  %v10015_v27 = vld [vmem:[#allocation2 + $0xb0] ss:$8 sps:$4 sm:$0xff]  }
 0x33f   :  { %5349 = vmatprep.subr.bf16.mxu1 %v8168_v62  ;;  %6835 = vmatpush1.bf16.msra.mxu0 %v10009_v23  ;;  %v612_v62 = vld [vmem:[%s14772_s1 + $0x758] sm:$0xff] }
 0x340   :  { %5219 = vmatmul.mubr.bf16.gmra.mrb[148].mxu1 %v15503_v8  ;;  %6836 = vmatprep.subr.bf16.mxu0 %v10014_v41  ;;  %v616_v23 = vld [vmem:[%s14772_s1 + $0x778] sm:$0xff]  ;;  %v10020_v41 = vld [vmem:[#allocation2 + $0xc4] ss:$8 sps:$4 sm:$0xff]   ;;  %v8183_v8 = vcombine.low %v604_v15, %v608_v49 }
 0x341   :  { %8382 = vmatmul.mubr.msk.bf16.gmra.mrb[84].mxu0 %vm2771_vm0, %v15480_v50  ;;  %5228 = vmatprep.mubr.bf16.mxu1 %v15504_v14  ;;  %v8192_v14 = vcombine.high %v612_v62, %v616_v23  ;;  %v15506_v15 = vld [vmem:[#allocation30_spill] sm:$0xff]  ;;  %v8191_v49 = vcombine.low %v612_v62, %v616_v23  ;;  %v15507_v23 = vld [vmem:[#allocation32_spill] sm:$0xff] }
 0x342   :  { %5035 = vmatprep.mubr.bf16.mxu0 %v15473_v25  ;;  %5350 = vmatpush1.bf16.msra.mxu1 %v8167_v53  ;;  %v620_v53 = vld [vmem:[%s14772_s1 + $0x798] sm:$0xff]  ;;  %v10024_v62 = vld [vmem:[#allocation2 + $0xe0] ss:$8 sps:$4 sm:$0xff]  }
 0x343   :  { %5351 = vmatprep.subr.bf16.mxu1 %v8176_v2  ;;  %6837 = vmatpush1.bf16.msra.mxu0 %v10012_v40  ;;  %v624_v2 = vld [vmem:[%s14772_s1 + $0x7b8] sm:$0xff] }
 0x344   :  { %6838 = vmatprep.subr.bf16.mxu0 %v10017_v4  ;;  %v10023_v40 = vld [vmem:[#allocation2 + $0xd4] ss:$8 sps:$4 sm:$0xff]   ;;  %v8200_v4 = vcombine.high %v620_v53, %v624_v2 }
 0x346   :  { %5352 = vmatpush1.bf16.msra.mxu1 %v8175_v54  ;;  %v10021_v54 = vld [vmem:[#allocation2 + $0xd0] ss:$8 sps:$4 sm:$0xff]  }
 0x347   :  { %5353 = vmatprep.subr.bf16.mxu1 %v8184_v58  ;;  %6839 = vmatpush1.bf16.msra.mxu0 %v10015_v27  ;;  %v628_v58 = vld [vmem:[%s14772_s1 + $0x7d8] sm:$0xff] }
 0x348   :  { %5229 = vmatmul.mubr.bf16.gmra.mrb[152].mxu1 %v15505_v21  ;;  %6840 = vmatprep.subr.bf16.mxu0 %v10020_v41  ;;  %v632_v27 = vld [vmem:[%s14772_s1 + $0x7f8] sm:$0xff]  ;;  %v10026_v41 = vld [vmem:[#allocation2 + $0xe4] ss:$8 sps:$4 sm:$0xff]   ;;  %v8199_v21 = vcombine.low %v620_v53, %v624_v2  ;;  %v8216_v2 = vcombine.high %v13235_v11, %v13240_v28 }
 0x349   :  { %8383 = vmatmul.mubr.msk.bf16.gmra.mrb[88].mxu0 %vm2771_vm0, %v15481_v47  ;;  %5238 = vmatprep.mubr.bf16.mxu1 %v15506_v15  ;;  %v10027_v53 = vld [vmem:[#allocation2 + $0xf0] ss:$8 sps:$4 sm:$0xff]   ;;  %v10032_v15 = vld [vmem:[#allocation2 + $0x104] ss:$8 sps:$4 sm:$0xff]  }
 0x34a   :  { %5045 = vmatprep.mubr.bf16.mxu0 %v15473_v25  ;;  %5354 = vmatpush1.bf16.msra.mxu1 %v8183_v8  ;;  %v8208_v8 = vcombine.high %v628_v58, %v632_v27  ;;  %v10038_v28 = vld [vmem:[#allocation2 + $0x124] ss:$8 sps:$4 sm:$0xff]  }
 0x34b   :  { %5355 = vmatprep.subr.bf16.mxu1 %v8192_v14  ;;  %6841 = vmatpush1.bf16.msra.mxu0 %v10018_v0  ;;  %v10029_v14 = vld [vmem:[#allocation2 + $0xf4] ss:$8 sps:$4 sm:$0xff]   ;;  %v15508_v0 = vld [vmem:[#allocation34_spill] sm:$0xff] }
 0x34c   :  { %6842 = vmatprep.subr.bf16.mxu0 %v10023_v40  ;;  %v8207_v40 = vcombine.low %v628_v58, %v632_v27  ;;  %v15512_v58 = vld [vmem:[#allocation42_spill] sm:$0xff]  ;;  %v15513_v27 = vld [vmem:[#allocation148_spill] sm:$0xff] }
 0x34e   :  { %5356 = vmatpush1.bf16.msra.mxu1 %v8191_v49  ;;  %v15509_v49 = vld [vmem:[#allocation36_spill] sm:$0xff] }
 0x34f   :  { %5357 = vmatprep.subr.bf16.mxu1 %v8200_v4  ;;  %6843 = vmatpush1.bf16.msra.mxu0 %v10021_v54  ;;  %v15510_v4 = vld [vmem:[#allocation38_spill] sm:$0xff]  ;;  %v15511_v54 = vld [vmem:[#allocation40_spill] sm:$0xff] }
 0x350   :  { %5239 = vmatmul.mubr.bf16.gmra.mrb[156].mxu1 %v15507_v23  ;;  %6844 = vmatprep.subr.bf16.mxu0 %v10026_v41  ;;  %v781_v41 = vsub.s32 2, %v15513_v27  ;;  %v13380_v23 = vld [vmem:[%s14773_s2] sm:$0xff] }
 0x351   :  { %8384 = vmatmul.mubr.msk.bf16.gmra.mrb[92].mxu0 %vm2771_vm0, %v15482_v32  ;;  %5248 = vmatprep.mubr.bf16.mxu1 %v15508_v0 }
 0x352   :  { %5055 = vmatprep.mubr.bf16.mxu0 %v15473_v25  ;;  %5358 = vmatpush1.bf16.msra.mxu1 %v8199_v21  ;;  %v785_v21 = vsub.s32 3, %v15513_v27 }
 0x353   :  { %5359 = vmatprep.subr.bf16.mxu1 %v8208_v8  ;;  %6845 = vmatpush1.bf16.msra.mxu0 %v10024_v62  ;;  %v15514_v8 = vld [vmem:[#allocation44_spill] sm:$0xff]  ;;  %v15515_v62 = vld [vmem:[#allocation46_spill] sm:$0xff] }
 0x354   :  { %6846 = vmatprep.subr.bf16.mxu0 %v10029_v14  ;;  %v13383_v14 = vrot.slane %v13380_v23, %v781_v41 }
 0x356   :  { %5360 = vmatpush1.bf16.msra.mxu1 %v8207_v40  ;;  %v13387_v40 = vrot.slane %v13380_v23, %v785_v21  ;;  %v15516_v21 = vld [vmem:[#allocation48_spill] sm:$0xff] }
 0x357   :  { %6847 = vmatpush1.bf16.msra.mxu0 %v10027_v53  ;;  %5522 = vmatprep.subr.bf16.mxu1 %v8216_v2 }
 0x358   :  { %5249 = vmatmul.mubr.bf16.gmra.mrb[160].mxu1 %v15509_v49  ;;  %7009 = vmatprep.subr.bf16.mxu0 %v10032_v15 }
 0x359   :  { %8385 = vmatmul.mubr.msk.bf16.gmra.mrb[96].mxu0 %vm2771_vm0, %v15483_v35  ;;  %5258 = vmatprep.mubr.bf16.mxu1 %v15510_v4 }
 0x35a   :  { %5065 = vmatprep.mubr.bf16.mxu0 %v15473_v25 }
 0x360   :  { %5259 = vmatmul.mubr.bf16.gmra.mrb[164].mxu1 %v15511_v54 }
 0x361   :  { %8386 = vmatmul.mubr.msk.bf16.gmra.mrb[100].mxu0 %vm2771_vm0, %v15484_v37  ;;  %5268 = vmatprep.mubr.bf16.mxu1 %v15512_v58 }
 0x362   :  { %5075 = vmatprep.mubr.bf16.mxu0 %v15473_v25 }
 0x368   :  { %5269 = vmatmul.mubr.bf16.gmra.mrb[168].mxu1 %v15514_v8 }
 0x369   :  { %8387 = vmatmul.mubr.msk.bf16.gmra.mrb[104].mxu0 %vm2771_vm0, %v15485_v45  ;;  %5278 = vmatprep.mubr.bf16.mxu1 %v15515_v62  ;;  %v15517_v62 = vld [vmem:[#allocation50_spill] sm:$0xff] }
 0x36a   :  { %5085 = vmatprep.mubr.bf16.mxu0 %v15473_v25 }
 0x36b   :  { %v4205_v0 = vpop.f32.mrb[64].mxu1 }
 0x36c   :  { %v4207_v53 = vpop.f32.mrb[65].mxu1  ;;  %v13390_v15 = vadd.f32 %v4205_v0, %v13383_v14 }
 0x36d   :  { %v4209_v2 = vpop.f32.mrb[66].mxu1  ;;  %v13396_v54 = vadd.f32 %v4207_v53, %v13387_v40 }
 0x36e   :  { %v13393_v49 = vadd.f32 %v4209_v2, %v13383_v14  ;;  %v4211_v4 = vpop.f32.mrb[67].mxu1 }
 0x36f   :  { %v13399_v58 = vadd.f32 %v4211_v4, %v13387_v40 }
 0x370   :  { %5279 = vmatmul.mubr.bf16.gmra.mrb[172].mxu1 %v15516_v21 }
 0x371   :  { %8388 = vmatmul.mubr.msk.bf16.gmra.mrb[108].mxu0 %vm2771_vm0, %v15486_v22  ;;  %5288 = vmatprep.mubr.bf16.mxu1 %v15517_v62  ;;  %v15518_v22 = vld [vmem:[#allocation52_spill] sm:$0xff] }
 0x372   :  { %5095 = vmatprep.mubr.bf16.mxu0 %v15473_v25 }
 0x373   :  { %v4215_v0 = vpop.f32.mrb[68].mxu1 }
 0x374   :  { %v4217_v53 = vpop.f32.mrb[69].mxu1  ;;  %v13411_v4 = vadd.f32 %v4215_v0, %v13383_v14  ;;  %v15519_v0 = vld [vmem:[#allocation54_spill] sm:$0xff] }
 0x375   :  { %v4219_v2 = vpop.f32.mrb[70].mxu1  ;;  %v13417_v45 = vadd.f32 %v4217_v53, %v13387_v40 }
 0x376   :  { %v13414_v41 = vadd.f32 %v4219_v2, %v13383_v14  ;;  %v4221_v21 = vpop.f32.mrb[71].mxu1 }
 0x377   :  { %v13420_v8 = vadd.f32 %v4221_v21, %v13387_v40 }
 0x378   :  { %5289 = vmatmul.mubr.bf16.gmra.mrb[176].mxu1 %v15518_v22 }
 0x379   :  { %8389 = vmatmul.mubr.msk.bf16.gmra.mrb[112].mxu0 %vm2771_vm0, %v15487_v13  ;;  %5298 = vmatprep.mubr.bf16.mxu1 %v15519_v0  ;;  %v15520_v13 = vld [vmem:[#allocation56_spill] sm:$0xff] }
 0x37a   :  { %5105 = vmatprep.mubr.bf16.mxu0 %v15473_v25 }
 0x37b   :  { %v4225_v53 = vpop.f32.mrb[72].mxu1 }
 0x37c   :  { %v4227_v2 = vpop.f32.mrb[73].mxu1  ;;  %v13432_v21 = vadd.f32 %v4225_v53, %v13383_v14 }
 0x37d   :  { %v4229_v35 = vpop.f32.mrb[74].mxu1  ;;  %v13438_v32 = vadd.f32 %v4227_v2, %v13387_v40 }
 0x37e   :  { %v13435_v62 = vadd.f32 %v4229_v35, %v13383_v14  ;;  %v4231_v22 = vpop.f32.mrb[75].mxu1  ;;  %v15521_v35 = vld [vmem:[#allocation58_spill] sm:$0xff] }
 0x37f   :  { %v13441_v37 = vadd.f32 %v4231_v22, %v13387_v40 }
 0x380   :  { %5299 = vmatmul.mubr.bf16.gmra.mrb[180].mxu1 %v15520_v13 }
 0x381   :  { %8390 = vmatmul.mubr.msk.bf16.gmra.mrb[116].mxu0 %vm2771_vm0, %v15488_v7  ;;  %5308 = vmatprep.mubr.bf16.mxu1 %v15521_v35 }
 0x382   :  { %5115 = vmatprep.mubr.bf16.mxu0 %v15473_v25 }
 0x383   :  { %v4235_v53 = vpop.f32.mrb[76].mxu1 }
 0x384   :  { %v4237_v2 = vpop.f32.mrb[77].mxu1  ;;  %v13453_v22 = vadd.f32 %v4235_v53, %v13383_v14 }
 0x385   :  { %v4239_v50 = vpop.f32.mrb[78].mxu1  ;;  %v13459_v10 = vadd.f32 %v4237_v2, %v13387_v40 }
 0x386   :  { %v13456_v0 = vadd.f32 %v4239_v50, %v13383_v14  ;;  %v4241_v13 = vpop.f32.mrb[79].mxu1 }
 0x387   :  { %v13462_v47 = vadd.f32 %v4241_v13, %v13387_v40 }
 0x388   :  { %5309 = vmatmul.mubr.bf16.gmra.mrb[184].mxu1 %v11254_v55 }
 0x389   :  { %8391 = vmatmul.mubr.msk.bf16.gmra.mrb[120].mxu0 %vm2771_vm0, %v15489_v44  ;;  %5318 = vmatprep.mubr.bf16.mxu1 %v11258_v19  ;;  %v644_v19 = vld [vmem:[%s14772_s1 + $0x858] sm:$0xff] }
 0x38a   :  { %5125 = vmatprep.mubr.bf16.mxu0 %v15473_v25  ;;  %v652_v25 = vld [vmem:[%s14772_s1 + $0x898] sm:$0xff] }
 0x38b   :  { %v4245_v50 = vpop.f32.mrb[80].mxu1 }
 0x38c   :  { %v4247_v53 = vpop.f32.mrb[81].mxu1  ;;  %v13474_v13 = vadd.f32 %v4245_v50, %v13383_v14  ;;  %v15523_v50 = vld [vmem:[#allocation102_spill] sm:$0xff] }
 0x38d   :  { %v4249_v2 = vpop.f32.mrb[82].mxu1  ;;  %v13480_v36 = vadd.f32 %v4247_v53, %v13387_v40 }
 0x38e   :  { %15522 = vst [vmem:[#allocation151_spill] sm:$0xff] %v13474_v13  ;;  %v13477_v35 = vadd.f32 %v4249_v2, %v13383_v14  ;;  %v4251_v55 = vpop.f32.mrb[83].mxu1  ;;  %v15524_v2 = vld [vmem:[#allocation99_spill] sm:$0xff] }
 0x38f   :  { %v13483_v7 = vadd.f32 %v4251_v55, %v13387_v40  ;;  %v15525_v53 = vpack.c.bf16 %v15523_v50, %v15524_v2 }
 0x390   :  { %5319 = vmatmul.mubr.bf16.gmra.mrb[188].mxu1 %v11290_v31  ;;  %v648_v31 = vld [vmem:[%s14772_s1 + $0x878] sm:$0xff] }
 0x391   :  { %8392 = vmatmul.mubr.msk.bf16.gmra.mrb[124].mxu0 %vm2771_vm0, %v15490_v20  ;;  %5361 = vmatprep.mubr.bf16.mxu1 %v10419_v63  ;;  %v8223_v52 = vcombine.low %v644_v19, %v648_v31 }
 0x392   :  { %6848 = vmatprep.mubr.bf16.mxu0 %v15525_v53  ;;  %v8224_v53 = vcombine.high %v644_v19, %v648_v31 }
 0x393   :  { %v4255_v56 = vpop.f32.mrb[84].mxu1 }
 0x394   :  { %v4257_v55 = vpop.f32.mrb[85].mxu1  ;;  %v13503_v17 = vadd.f32 %v4255_v56, %v13383_v14  ;;  %v656_v56 = vld [vmem:[%s14772_s1 + $0x8b8] sm:$0xff] }
 0x395   :  { %v4259_v44 = vpop.f32.mrb[86].mxu1  ;;  %v13509_v50 = vadd.f32 %v4257_v55, %v13387_v40  ;;  %v10035_v55 = vld [vmem:[#allocation2 + $0x114] ss:$8 sps:$4 sm:$0xff]  }
 0x396   :  { %15526 = vst [vmem:[#allocation152_spill] sm:$0xff] %v13503_v17  ;;  %v13506_v63 = vadd.f32 %v4259_v44, %v13383_v14  ;;  %v4261_v20 = vpop.f32.mrb[87].mxu1  ;;  %v15537_v44 = vld [vmem:[#allocation8_spill] sm:$0xff]  ;;  %v8240_v17 = vcombine.high %v660_v57, %v664_v6 }
 0x397   :  { %15528 = vst [vmem:[#allocation75_spill] sm:$0xff] %v13509_v50  ;;  %v13512_v2 = vadd.f32 %v4261_v20, %v13387_v40  ;;  %v13538_v20 = vld [vmem:[%s14772_s1 + $0xc18] sm:$0xff] }
 0x398   :  { %15527 = vst [vmem:[#allocation73_spill] sm:$0xff] %v13506_v63  ;;  %5362 = vmatmul.mubr.bf16.vlgmr.msra.gmra.mrb[128].mxu1 %v10615_v61  ;;  %v8232_v61 = vcombine.high %v652_v25, %v656_v56  ;;  %v8239_v63 = vcombine.low %v660_v57, %v664_v6 }
 0x399   :  { %15529 = vst [vmem:[#allocation5_spill] sm:$0xff] %v13512_v2  ;;  %6849 = vmatmul.mubr.bf16.vlgmr.msra.gmra.mrb[128].mxu0 %v15532_v12  ;;  %5523 = vmatpush1.bf16.msra.mxu1 %v15533_v16  ;;  %v10033_v16 = vld [vmem:[#allocation2 + $0x110] ss:$8 sps:$4 sm:$0xff]  }
 0x39a   :  { %6858 = vmatprep.mubr.bf16.mxu0 %v15536_v1  ;;  %5371 = vmatprep.mubr.bf16.mxu1 %v15537_v44 }
 0x39b   :  { %v4265_v12 = vpop.f32.mrb[88].mxu1  ;;  %5524 = vmatprep.subr.bf16.mxu1 %v8224_v53  ;;  %7010 = vmatpush1.bf16.msra.mxu0 %v10030_v3  ;;  %v8231_v53 = vcombine.low %v652_v25, %v656_v56  ;;  %v672_v25 = vld [vmem:[%s14772_s1 + $0x938] sm:$0xff] }
 0x39c   :  { %v4267_v38 = vpop.f32.mrb[89].mxu1  ;;  %7011 = vmatprep.subr.bf16.mxu0 %v10035_v55  ;;  %v13554_v19 = vadd.f32 %v4265_v12, %v13383_v14  ;;  %v10036_v55 = vld [vmem:[#allocation2 + $0x120] ss:$8 sps:$4 sm:$0xff]   ;;  %v10041_v56 = vld [vmem:[#allocation2 + $0x134] ss:$8 sps:$4 sm:$0xff]  }
 0x39d   :  { %v4269_v11 = vpop.f32.mrb[90].mxu1  ;;  %5525 = vmatpush1.bf16.msra.mxu1 %v8223_v52  ;;  %v13560_v44 = vadd.f32 %v4267_v38, %v13387_v40  ;;  %v15541_v12 = vld [vmem:[#allocation10_spill] sm:$0xff]  ;;  %v15543_v38 = vld [vmem:[#allocation77_spill] sm:$0xff]  ;;  %v15545_v52 = vld [vmem:[#allocation12_spill] sm:$0xff] }
 0x39e   :  { %15538 = vst [vmem:[#allocation6_spill] sm:$0xff] %v13554_v19  ;;  %v13557_v3 = vadd.f32 %v4269_v11, %v13383_v14  ;;  %v4271_v31 = vpop.f32.mrb[91].mxu1  ;;  %5526 = vmatprep.subr.bf16.mxu1 %v8232_v61  ;;  %v668_v11 = vld [vmem:[%s14772_s1 + $0x918] sm:$0xff]  ;;  %v15547_v19 = vld [vmem:[#allocation107_spill] sm:$0xff] }
 0x39f   :  { %15540 = vst [vmem:[#allocation9_spill] sm:$0xff] %v13560_v44  ;;  %v13563_v1 = vadd.f32 %v4271_v31, %v13387_v40  ;;  %7012 = vmatpush1.bf16.msra.mxu0 %v10033_v16  ;;  %v15542_v16 = vld [vmem:[#allocation103_spill] sm:$0xff]  ;;  %v8248_v2 = vcombine.high %v668_v11, %v672_v25  ;;  %v676_v61 = vld [vmem:[%s14772_s1 + $0x958] sm:$0xff]  ;;  %v8247_v6 = vcombine.low %v668_v11, %v672_v25 }
 0x3a0   :  { %15539 = vst [vmem:[#allocation7_spill] sm:$0xff] %v13557_v3  ;;  %5372 = vmatmul.mubr.bf16.gmra.mrb[132].mxu1 %v15541_v12  ;;  %7013 = vmatprep.subr.bf16.mxu0 %v10038_v28  ;;  %v15544_v31 = vpack.c.bf16 %v15542_v16, %v15543_v38  ;;  %v15546_v12 = vld [vmem:[#allocation109_spill] sm:$0xff]  ;;  %v10039_v28 = vld [vmem:[#allocation2 + $0x130] ss:$8 sps:$4 sm:$0xff]   ;;  %v10047_v11 = vld [vmem:[#allocation2 + $0x154] ss:$8 sps:$4 sm:$0xff]  }
 0x3a1   :  { %5381 = vmatprep.mubr.bf16.mxu1 %v15545_v52  ;;  %v15548_v3 = vpack.c.bf16 %v15546_v12, %v15547_v19  ;;  %5527 = vmatpush1.bf16.msra.mxu1 %v8231_v53  ;;  %v680_v52 = vld [vmem:[%s14772_s1 + $0x978] sm:$0xff]  ;;  %v10044_v16 = vld [vmem:[#allocation2 + $0x144] ss:$8 sps:$4 sm:$0xff]  }
 0x3a2   :  { %6859 = vmatmul.mubr.bf16.gmra.mrb[132].mxu0 %v15544_v31  ;;  %5528 = vmatprep.subr.bf16.mxu1 %v8240_v17  ;;  %v8256_v38 = vcombine.high %v676_v61, %v680_v52  ;;  %v15553_v25 = vld [vmem:[#allocation108_spill] sm:$0xff]  ;;  %v15554_v31 = vld [vmem:[#allocation105_spill] sm:$0xff] }
 0x3a3   :  { %6868 = vmatprep.mubr.bf16.mxu0 %v15548_v3  ;;  %v4275_v50 = vpop.f32.mrb[92].mxu1  ;;  %7014 = vmatpush1.bf16.msra.mxu0 %v10036_v55  ;;  %v15555_v12 = vpack.c.bf16 %v15553_v25, %v15554_v31  ;;  %v696_v25 = vld [vmem:[%s14772_s1 + $0x9f8] sm:$0xff]  ;;  %v10050_v31 = vld [vmem:[#allocation2 + $0x164] ss:$8 sps:$4 sm:$0xff]  }
 0x3a4   :  { %v4277_v13 = vpop.f32.mrb[93].mxu1  ;;  %7015 = vmatprep.subr.bf16.mxu0 %v10041_v56  ;;  %v13590_v3 = vadd.f32 %v4275_v50, %v13383_v14  ;;  %v10042_v56 = vld [vmem:[#allocation2 + $0x140] ss:$8 sps:$4 sm:$0xff]   ;;  %v8255_v50 = vcombine.low %v676_v61, %v680_v52 }
 0x3a5   :  { %v4279_v19 = vpop.f32.mrb[94].mxu1  ;;  %5529 = vmatpush1.bf16.msra.mxu1 %v8239_v63  ;;  %v13596_v53 = vadd.f32 %v4277_v13, %v13387_v40  ;;  %v684_v63 = vld [vmem:[%s14772_s1 + $0x998] sm:$0xff] }
 0x3a6   :  { %15549 = vst [vmem:[#allocation11_spill] sm:$0xff] %v13590_v3  ;;  %v13593_v17 = vadd.f32 %v4279_v19, %v13383_v14  ;;  %v4281_v57 = vpop.f32.mrb[95].mxu1  ;;  %5530 = vmatprep.subr.bf16.mxu1 %v8248_v2  ;;  %v688_v13 = vld [vmem:[%s14772_s1 + $0x9b8] sm:$0xff] }
 0x3a7   :  { %15551 = vst [vmem:[#allocation14_spill] sm:$0xff] %v13596_v53  ;;  %v13599_v55 = vadd.f32 %v4281_v57, %v13387_v40  ;;  %7016 = vmatpush1.bf16.msra.mxu0 %v10039_v28  ;;  %v15556_v28 = vld [vmem:[#allocation15_spill] sm:$0xff]  ;;  %v15558_v19 = vld [vmem:[#allocation112_spill] sm:$0xff] }
 0x3a8   :  { %15550 = vst [vmem:[#allocation13_spill] sm:$0xff] %v13593_v17  ;;  %5382 = vmatmul.mubr.bf16.gmra.mrb[136].mxu1 %v10731_v9  ;;  %7017 = vmatprep.subr.bf16.mxu0 %v10044_v16  ;;  %v15557_v9 = vld [vmem:[#allocation114_spill] sm:$0xff]  ;;  %v8264_v17 = vcombine.high %v684_v63, %v688_v13  ;;  %v10045_v16 = vld [vmem:[#allocation2 + $0x150] ss:$8 sps:$4 sm:$0xff]  }
 0x3a9   :  { %15552 = vst [vmem:[#allocation16_spill] sm:$0xff] %v13599_v55  ;;  %5391 = vmatprep.mubr.bf16.mxu1 %v15556_v28  ;;  %v15559_v57 = vpack.c.bf16 %v15557_v9, %v15558_v19  ;;  %5531 = vmatpush1.bf16.msra.mxu1 %v8247_v6  ;;  %v692_v2 = vld [vmem:[%s14772_s1 + $0x9d8] sm:$0xff]  ;;  %v15564_v19 = vld [vmem:[#allocation17_spill] sm:$0xff] }
 0x3aa   :  { %6869 = vmatmul.mubr.bf16.gmra.mrb[136].mxu0 %v15555_v12  ;;  %5532 = vmatprep.subr.bf16.mxu1 %v8256_v38  ;;  %v8263_v38 = vcombine.low %v684_v63, %v688_v13  ;;  %v8272_v9 = vcombine.high %v692_v2, %v696_v25  ;;  %v10053_v63 = vld [vmem:[#allocation2 + $0x174] ss:$8 sps:$4 sm:$0xff]   ;;  %v15565_v13 = vld [vmem:[#allocation113_spill] sm:$0xff] }
 0x3ab   :  { %6878 = vmatprep.mubr.bf16.mxu0 %v15559_v57  ;;  %v4285_v3 = vpop.f32.mrb[96].mxu1  ;;  %7018 = vmatpush1.bf16.msra.mxu0 %v10042_v56  ;;  %v15566_v57 = vld [vmem:[#allocation110_spill] sm:$0xff] }
 0x3ac   :  { %v4287_v44 = vpop.f32.mrb[97].mxu1  ;;  %7019 = vmatprep.subr.bf16.mxu0 %v10047_v11  ;;  %v13626_v6 = vadd.f32 %v4285_v3, %v13383_v14  ;;  %v10048_v11 = vld [vmem:[#allocation2 + $0x160] ss:$8 sps:$4 sm:$0xff]  }
 0x3ad   :  { %v4289_v12 = vpop.f32.mrb[98].mxu1  ;;  %5533 = vmatpush1.bf16.msra.mxu1 %v8255_v50  ;;  %v13632_v56 = vadd.f32 %v4287_v44, %v13387_v40  ;;  %v700_v50 = vld [vmem:[%s14772_s1 + $0xa18] sm:$0xff] }
 0x3ae   :  { %15560 = vst [vmem:[#allocation18_spill] sm:$0xff] %v13626_v6  ;;  %v13629_v61 = vadd.f32 %v4289_v12, %v13383_v14  ;;  %v4291_v52 = vpop.f32.mrb[99].mxu1  ;;  %5534 = vmatprep.subr.bf16.mxu1 %v8264_v17  ;;  %v704_v44 = vld [vmem:[%s14772_s1 + $0xa38] sm:$0xff]  ;;  %v15568_v12 = vld [vmem:[#allocation19_spill] sm:$0xff]  ;;  %v8271_v6 = vcombine.low %v692_v2, %v696_v25 }
 0x3af   :  { %15562 = vst [vmem:[#allocation22_spill] sm:$0xff] %v13632_v56  ;;  %v13635_v28 = vadd.f32 %v4291_v52, %v13387_v40  ;;  %7020 = vmatpush1.bf16.msra.mxu0 %v10045_v16  ;;  %v15567_v16 = vpack.c.bf16 %v15565_v13, %v15566_v57  ;;  %v15569_v52 = vld [vmem:[#allocation154_spill] sm:$0xff]  ;;  %v8280_v53 = vcombine.high %v700_v50, %v704_v44  ;;  %v708_v17 = vld [vmem:[%s14772_s1 + $0xa58] sm:$0xff] }
 0x3b0   :  { %15561 = vst [vmem:[#allocation20_spill] sm:$0xff] %v13629_v61  ;;  %5392 = vmatmul.mubr.bf16.gmra.mrb[140].mxu1 %v15564_v19  ;;  %7021 = vmatprep.subr.bf16.mxu0 %v10050_v31  ;;  %v15570_v19 = vld [vmem:[#allocation117_spill] sm:$0xff]  ;;  %v10051_v31 = vld [vmem:[#allocation2 + $0x170] ss:$8 sps:$4 sm:$0xff]  }
 0x3b1   :  { %15563 = vst [vmem:[#allocation24_spill] sm:$0xff] %v13635_v28  ;;  %5401 = vmatprep.mubr.bf16.mxu1 %v15568_v12  ;;  %v15571_v3 = vpack.c.bf16 %v15569_v52, %v15570_v19  ;;  %5535 = vmatpush1.bf16.msra.mxu1 %v8263_v38  ;;  %v712_v13 = vld [vmem:[%s14772_s1 + $0xa78] sm:$0xff]  ;;  %v10056_v57 = vld [vmem:[#allocation2 + $0x184] ss:$8 sps:$4 sm:$0xff]   ;;  %v15578_v19 = vld [vmem:[#allocation115_spill] sm:$0xff] }
 0x3b2   :  { %6879 = vmatmul.mubr.bf16.gmra.mrb[140].mxu0 %v15567_v16  ;;  %5536 = vmatprep.subr.bf16.mxu1 %v8272_v9  ;;  %v8279_v9 = vcombine.low %v700_v50, %v704_v44  ;;  %v8288_v12 = vcombine.high %v708_v17, %v712_v13  ;;  %v15576_v52 = vld [vmem:[#allocation21_spill] sm:$0xff]  ;;  %v10059_v50 = vld [vmem:[#allocation2 + $0x194] ss:$8 sps:$4 sm:$0xff]  }
 0x3b3   :  { %6888 = vmatprep.mubr.bf16.mxu0 %v15571_v3  ;;  %v4295_v61 = vpop.f32.mrb[100].mxu1  ;;  %7022 = vmatpush1.bf16.msra.mxu0 %v10048_v11  ;;  %v15577_v44 = vld [vmem:[#allocation153_spill] sm:$0xff] }
 0x3b4   :  { %v4297_v55 = vpop.f32.mrb[101].mxu1  ;;  %7023 = vmatprep.subr.bf16.mxu0 %v10053_v63  ;;  %v13662_v38 = vadd.f32 %v4295_v61, %v13383_v14  ;;  %v10054_v63 = vld [vmem:[#allocation2 + $0x180] ss:$8 sps:$4 sm:$0xff]  }
 0x3b5   :  { %v4299_v16 = vpop.f32.mrb[102].mxu1  ;;  %5537 = vmatpush1.bf16.msra.mxu1 %v8271_v6  ;;  %v13668_v11 = vadd.f32 %v4297_v55, %v13387_v40  ;;  %v716_v6 = vld [vmem:[%s14772_s1 + $0xa98] sm:$0xff] }
 0x3b6   :  { %15572 = vst [vmem:[#allocation26_spill] sm:$0xff] %v13662_v38  ;;  %v13665_v2 = vadd.f32 %v4299_v16, %v13383_v14  ;;  %v4301_v25 = vpop.f32.mrb[103].mxu1  ;;  %5538 = vmatprep.subr.bf16.mxu1 %v8280_v53  ;;  %v720_v55 = vld [vmem:[%s14772_s1 + $0xab8] sm:$0xff]  ;;  %v15580_v16 = vld [vmem:[#allocation23_spill] sm:$0xff]  ;;  %v8287_v38 = vcombine.low %v708_v17, %v712_v13 }
 0x3b7   :  { %15574 = vst [vmem:[#allocation30_spill] sm:$0xff] %v13668_v11  ;;  %v13671_v3 = vadd.f32 %v4301_v25, %v13387_v40  ;;  %7024 = vmatpush1.bf16.msra.mxu0 %v10051_v31  ;;  %v15579_v31 = vpack.c.bf16 %v15577_v44, %v15578_v19  ;;  %v15581_v25 = vld [vmem:[#allocation158_spill] sm:$0xff]  ;;  %v8296_v56 = vcombine.high %v716_v6, %v720_v55  ;;  %v724_v53 = vld [vmem:[%s14772_s1 + $0xad8] sm:$0xff] }
 0x3b8   :  { %15573 = vst [vmem:[#allocation28_spill] sm:$0xff] %v13665_v2  ;;  %5402 = vmatmul.mubr.bf16.gmra.mrb[144].mxu1 %v15576_v52  ;;  %7025 = vmatprep.subr.bf16.mxu0 %v10056_v57  ;;  %v15582_v52 = vld [vmem:[#allocation156_spill] sm:$0xff]  ;;  %v10062_v19 = vld [vmem:[#allocation2 + $0x1a4] ss:$8 sps:$4 sm:$0xff]  }
 0x3b9   :  { %15575 = vst [vmem:[#allocation32_spill] sm:$0xff] %v13671_v3  ;;  %5411 = vmatprep.mubr.bf16.mxu1 %v15580_v16  ;;  %v15583_v61 = vpack.c.bf16 %v15581_v25, %v15582_v52  ;;  %5539 = vmatpush1.bf16.msra.mxu1 %v8279_v9  ;;  %v10057_v57 = vld [vmem:[#allocation2 + $0x190] ss:$8 sps:$4 sm:$0xff]   ;;  %v15587_v25 = vld [vmem:[#allocation25_spill] sm:$0xff] }
 0x3ba   :  { %6889 = vmatmul.mubr.bf16.gmra.mrb[144].mxu0 %v15579_v31  ;;  %5540 = vmatprep.subr.bf16.mxu1 %v8288_v12  ;;  %v728_v44 = vld [vmem:[%s14772_s1 + $0xaf8] sm:$0xff]  ;;  %v8295_v12 = vcombine.low %v716_v6, %v720_v55  ;;  %v15588_v55 = vld [vmem:[#allocation157_spill] sm:$0xff]  ;;  %v15589_v52 = vld [vmem:[#allocation155_spill] sm:$0xff] }
 0x3bb   :  { %6898 = vmatprep.mubr.bf16.mxu0 %v15583_v61  ;;  %v4305_v2 = vpop.f32.mrb[104].mxu1  ;;  %7026 = vmatpush1.bf16.msra.mxu0 %v10054_v63  ;;  %v8304_v16 = vcombine.high %v724_v53, %v728_v44  ;;  %v10065_v6 = vld [vmem:[#allocation2 + $0x1b4] ss:$8 sps:$4 sm:$0xff]  }
 0x3bc   :  { %v4307_v28 = vpop.f32.mrb[105].mxu1  ;;  %7027 = vmatprep.subr.bf16.mxu0 %v10059_v50  ;;  %v13698_v9 = vadd.f32 %v4305_v2, %v13383_v14  ;;  %v10060_v50 = vld [vmem:[#allocation2 + $0x1a0] ss:$8 sps:$4 sm:$0xff]  }
 0x3bd   :  { %v4309_v31 = vpop.f32.mrb[106].mxu1  ;;  %5541 = vmatpush1.bf16.msra.mxu1 %v8287_v38  ;;  %v13704_v63 = vadd.f32 %v4307_v28, %v13387_v40  ;;  %v732_v38 = vld [vmem:[%s14772_s1 + $0xb18] sm:$0xff] }
 0x3be   :  { %15584 = vst [vmem:[#allocation34_spill] sm:$0xff] %v13698_v9  ;;  %v13701_v17 = vadd.f32 %v4309_v31, %v13383_v14  ;;  %v4311_v13 = vpop.f32.mrb[107].mxu1  ;;  %5542 = vmatprep.subr.bf16.mxu1 %v8296_v56  ;;  %v736_v28 = vld [vmem:[%s14772_s1 + $0xb38] sm:$0xff]  ;;  %v15591_v31 = vld [vmem:[#allocation27_spill] sm:$0xff]  ;;  %v8303_v9 = vcombine.low %v724_v53, %v728_v44 }
 0x3bf   :  { %15586 = vst [vmem:[#allocation38_spill] sm:$0xff] %v13704_v63  ;;  %v13707_v61 = vadd.f32 %v4311_v13, %v13387_v40  ;;  %7028 = vmatpush1.bf16.msra.mxu0 %v10057_v57  ;;  %v15590_v57 = vpack.c.bf16 %v15588_v55, %v15589_v52  ;;  %v15592_v13 = vld [vmem:[#allocation122_spill] sm:$0xff]  ;;  %v8312_v11 = vcombine.high %v732_v38, %v736_v28  ;;  %v740_v56 = vld [vmem:[%s14772_s1 + $0xb58] sm:$0xff] }
 0x3c0   :  { %15585 = vst [vmem:[#allocation36_spill] sm:$0xff] %v13701_v17  ;;  %5412 = vmatmul.mubr.bf16.gmra.mrb[148].mxu1 %v15587_v25  ;;  %7029 = vmatprep.subr.bf16.mxu0 %v10062_v19  ;;  %v15593_v25 = vld [vmem:[#allocation120_spill] sm:$0xff]  ;;  %v10068_v52 = vld [vmem:[#allocation2 + $0x1c4] ss:$8 sps:$4 sm:$0xff]  }
 0x3c1   :  { %5421 = vmatprep.mubr.bf16.mxu1 %v15591_v31  ;;  %v15594_v2 = vpack.c.bf16 %v15592_v13, %v15593_v25  ;;  %5543 = vmatpush1.bf16.msra.mxu1 %v8295_v12  ;;  %v10063_v19 = vld [vmem:[#allocation2 + $0x1b0] ss:$8 sps:$4 sm:$0xff]   ;;  %v15597_v13 = vld [vmem:[#allocation29_spill] sm:$0xff] }
 0x3c2   :  { %6899 = vmatmul.mubr.bf16.gmra.mrb[148].mxu0 %v15590_v57  ;;  %5544 = vmatprep.subr.bf16.mxu1 %v8304_v16  ;;  %v744_v55 = vld [vmem:[%s14772_s1 + $0xb78] sm:$0xff]  ;;  %v8311_v16 = vcombine.low %v732_v38, %v736_v28  ;;  %v15598_v28 = vld [vmem:[#allocation121_spill] sm:$0xff] }
 0x3c3   :  { %6908 = vmatprep.mubr.bf16.mxu0 %v15594_v2  ;;  %v4315_v17 = vpop.f32.mrb[108].mxu1  ;;  %7030 = vmatpush1.bf16.msra.mxu0 %v10060_v50  ;;  %v8320_v31 = vcombine.high %v740_v56, %v744_v55  ;;  %v10071_v38 = vld [vmem:[#allocation2 + $0x1d4] ss:$8 sps:$4 sm:$0xff]   ;;  %v15599_v25 = vld [vmem:[#allocation37_spill] sm:$0xff] }
 0x3c4   :  { %v4317_v3 = vpop.f32.mrb[109].mxu1  ;;  %7031 = vmatprep.subr.bf16.mxu0 %v10065_v6  ;;  %v13734_v12 = vadd.f32 %v4315_v17, %v13383_v14  ;;  %v10066_v6 = vld [vmem:[#allocation2 + $0x1c0] ss:$8 sps:$4 sm:$0xff]   ;;  %v8319_v17 = vcombine.low %v740_v56, %v744_v55 }
 0x3c5   :  { %v4319_v57 = vpop.f32.mrb[110].mxu1  ;;  %5545 = vmatpush1.bf16.msra.mxu1 %v8303_v9  ;;  %v13740_v50 = vadd.f32 %v4317_v3, %v13387_v40  ;;  %v748_v9 = vld [vmem:[%s14772_s1 + $0xb98] sm:$0xff] }
 0x3c6   :  { %15595 = vst [vmem:[#allocation40_spill] sm:$0xff] %v13734_v12  ;;  %v13737_v53 = vadd.f32 %v4319_v57, %v13383_v14  ;;  %v4321_v44 = vpop.f32.mrb[111].mxu1  ;;  %5546 = vmatprep.subr.bf16.mxu1 %v8312_v11  ;;  %v752_v3 = vld [vmem:[%s14772_s1 + $0xbb8] sm:$0xff]  ;;  %v15601_v57 = vld [vmem:[#allocation126_spill] sm:$0xff] }
 0x3c7   :  { %v13743_v2 = vadd.f32 %v4321_v44, %v13387_v40  ;;  %7032 = vmatpush1.bf16.msra.mxu0 %v10063_v19  ;;  %v15600_v19 = vpack.c.bf16 %v15598_v28, %v15599_v25  ;;  %v15602_v44 = vld [vmem:[#allocation43_spill] sm:$0xff]  ;;  %v756_v28 = vld [vmem:[%s14772_s1 + $0xbd8] sm:$0xff]  ;;  %v10074_v25 = vld [vmem:[#allocation2 + $0x1e4] ss:$8 sps:$4 sm:$0xff]  }
 0x3c8   :  { %15596 = vst [vmem:[#allocation42_spill] sm:$0xff] %v13737_v53  ;;  %5422 = vmatmul.mubr.bf16.gmra.mrb[152].mxu1 %v15597_v13  ;;  %7033 = vmatprep.subr.bf16.mxu0 %v10068_v52  ;;  %v15603_v13 = vpack.c.bf16 %v15601_v57, %v15602_v44  ;;  %v8328_v53 = vcombine.high %v748_v9, %v752_v3  ;;  %v10069_v52 = vld [vmem:[#allocation2 + $0x1d0] ss:$8 sps:$4 sm:$0xff]   ;;  %v10072_v44 = vld [vmem:[#allocation2 + $0x1e0] ss:$8 sps:$4 sm:$0xff]  }
 0x3c9   :  { %5431 = vmatprep.mubr.bf16.mxu1 %v15424_v59  ;;  %5547 = vmatpush1.bf16.msra.mxu1 %v8311_v16  ;;  %v760_v59 = vld [vmem:[%s14772_s1 + $0xbf8] sm:$0xff] }
 0x3ca   :  { %6909 = vmatmul.mubr.bf16.gmra.mrb[152].mxu0 %v15600_v19  ;;  %5548 = vmatprep.subr.bf16.mxu1 %v8320_v31  ;;  %v8327_v31 = vcombine.low %v748_v9, %v752_v3  ;;  %v8336_v57 = vcombine.high %v756_v28, %v760_v59  ;;  %v15604_v9 = vld [vmem:[#allocation125_spill] sm:$0xff] }
 0x3cb   :  { %6918 = vmatprep.mubr.bf16.mxu0 %v15603_v13  ;;  %v4325_v12 = vpop.f32.mrb[112].mxu1  ;;  %7034 = vmatpush1.bf16.msra.mxu0 %v10066_v6  ;;  %v10077_v13 = vld [vmem:[#allocation2 + $0x1f4] ss:$8 sps:$4 sm:$0xff]  }
 0x3cc   :  { %v4327_v63 = vpop.f32.mrb[113].mxu1  ;;  %7035 = vmatprep.subr.bf16.mxu0 %v10071_v38  ;;  %v13770_v16 = vadd.f32 %v4325_v12, %v13383_v14 }
 0x3cd   :  { %v4329_v19 = vpop.f32.mrb[114].mxu1  ;;  %5549 = vmatpush1.bf16.msra.mxu1 %v8319_v17  ;;  %v13776_v6 = vadd.f32 %v4327_v63, %v13387_v40  ;;  %v15605_v63 = vld [vmem:[#allocation124_spill] sm:$0xff] }
 0x3ce   :  { %v13773_v56 = vadd.f32 %v4329_v19, %v13383_v14  ;;  %v4331_v55 = vpop.f32.mrb[115].mxu1  ;;  %5550 = vmatprep.subr.bf16.mxu1 %v8328_v53  ;;  %v15606_v3 = vpack.c.bf16 %v15604_v9, %v15605_v63  ;;  %v15607_v53 = vld [vmem:[#allocation135_spill] sm:$0xff] }
 0x3cf   :  { %v13779_v38 = vadd.f32 %v4331_v55, %v13387_v40  ;;  %7036 = vmatpush1.bf16.msra.mxu0 %v10069_v52  ;;  %v15608_v52 = vld [vmem:[#allocation129_spill] sm:$0xff]  ;;  %v8335_v55 = vcombine.low %v756_v28, %v760_v59 }
 0x3d0   :  { %5432 = vmatmul.mubr.bf16.gmra.mrb[156].mxu1 %v15295_v5  ;;  %7037 = vmatprep.subr.bf16.mxu0 %v10074_v25  ;;  %v15609_v19 = vpack.c.bf16 %v15607_v53, %v15608_v52  ;;  %v10075_v5 = vld [vmem:[#allocation2 + $0x1f0] ss:$8 sps:$4 sm:$0xff]   ;;  %v8344_v25 = vcombine.high %v13538_v20, %v13543_v30 }
 0x3d1   :  { %5441 = vmatprep.mubr.bf16.mxu1 %v15296_v60  ;;  %5551 = vmatpush1.bf16.msra.mxu1 %v8327_v31  ;;  %v10080_v31 = vld [vmem:[#allocation2 + $0x204] ss:$8 sps:$4 sm:$0xff]  }
 0x3d2   :  { %6919 = vmatmul.mubr.bf16.gmra.mrb[156].mxu0 %v15606_v3  ;;  %5552 = vmatprep.subr.bf16.mxu1 %v8336_v57  ;;  %v15614_v3 = vld [vmem:[#allocation136_spill] sm:$0xff] }
 0x3d3   :  { %6928 = vmatprep.mubr.bf16.mxu0 %v15609_v19  ;;  %v4335_v12 = vpop.f32.mrb[116].mxu1  ;;  %7038 = vmatpush1.bf16.msra.mxu0 %v10072_v44  ;;  %v15610_v44 = vld [vmem:[#allocation47_spill] sm:$0xff] }
 0x3d4   :  { %v4337_v17 = vpop.f32.mrb[117].mxu1  ;;  %7039 = vmatprep.subr.bf16.mxu0 %v10077_v13  ;;  %v13796_v9 = vadd.f32 %v4335_v12, %v13383_v14  ;;  %v15611_v12 = vld [vmem:[#allocation127_spill] sm:$0xff] }
 0x3d5   :  { %v4339_v11 = vpop.f32.mrb[118].mxu1  ;;  %5553 = vmatpush1.bf16.msra.mxu1 %v8335_v55  ;;  %v13802_v28 = vadd.f32 %v4337_v17, %v13387_v40  ;;  %v15612_v13 = vpack.c.bf16 %v15610_v44, %v15611_v12  ;;  %v15613_v17 = vld [vmem:[#allocation138_spill] sm:$0xff]  ;;  %v15616_v12 = vld [vmem:[#allocation137_spill] sm:$0xff] }
 0x3d6   :  { %v13799_v60 = vadd.f32 %v4339_v11, %v13383_v14  ;;  %v4341_v63 = vpop.f32.mrb[119].mxu1  ;;  %5715 = vmatprep.subr.bf16.mxu1 %v8344_v25  ;;  %v15615_v53 = vpack.c.bf16 %v15613_v17, %v15614_v3  ;;  %v15619_v3 = vld [vmem:[#allocation159_spill] sm:$0xff] }
 0x3d7   :  { %v13805_v59 = vadd.f32 %v4341_v63, %v13387_v40  ;;  %7040 = vmatpush1.bf16.msra.mxu0 %v10075_v5 }
 0x3d8   :  { %5442 = vmatmul.mubr.bf16.gmra.mrb[160].mxu1 %v15297_v29  ;;  %7202 = vmatprep.subr.bf16.mxu0 %v10080_v31 }
 0x3d9   :  { %5451 = vmatprep.mubr.bf16.mxu1 %v15298_v48 }
 0x3da   :  { %6929 = vmatmul.mubr.bf16.gmra.mrb[160].mxu0 %v15612_v13  ;;  %v15617_v13 = vld [vmem:[#allocation51_spill] sm:$0xff] }
 0x3db   :  { %6938 = vmatprep.mubr.bf16.mxu0 %v15615_v53  ;;  %v4345_v52 = vpop.f32.mrb[120].mxu1  ;;  %v15618_v17 = vpack.c.bf16 %v15616_v12, %v15617_v13  ;;  %v15620_v53 = vld [vmem:[#allocation140_spill] sm:$0xff] }
 0x3dc   :  { %v4347_v19 = vpop.f32.mrb[121].mxu1  ;;  %v13820_v5 = vadd.f32 %v4345_v52, %v13383_v14  ;;  %v15621_v52 = vpack.c.bf16 %v15619_v3, %v15620_v53  ;;  %v15622_v3 = vld [vmem:[#allocation141_spill] sm:$0xff]  ;;  %v15623_v53 = vld [vmem:[#allocation139_spill] sm:$0xff] }
 0x3dd   :  { %v4349_v55 = vpop.f32.mrb[122].mxu1  ;;  %v13826_v63 = vadd.f32 %v4347_v19, %v13387_v40 }
 0x3de   :  { %v13823_v29 = vadd.f32 %v4349_v55, %v13383_v14  ;;  %v4351_v25 = vpop.f32.mrb[123].mxu1 }
 0x3df   :  { %v13829_v48 = vadd.f32 %v4351_v25, %v13387_v40 }
 0x3e0   :  { %5452 = vmatmul.mubr.bf16.gmra.mrb[164].mxu1 %v15449_v39 }
 0x3e1   :  { %5461 = vmatprep.mubr.bf16.mxu1 %v15451_v43  ;;  %v789_v43 = vsub.s32 4, %v15513_v27 }
 0x3e2   :  { %6939 = vmatmul.mubr.bf16.gmra.mrb[164].mxu0 %v15618_v17  ;;  %v793_v17 = vsub.s32 5, %v15513_v27 }
 0x3e3   :  { %6948 = vmatprep.mubr.bf16.mxu0 %v15621_v52  ;;  %v4355_v19 = vpop.f32.mrb[124].mxu1  ;;  %v15624_v52 = vpack.c.bf16 %v15622_v3, %v15623_v53 }
 0x3e4   :  { %v4357_v55 = vpop.f32.mrb[125].mxu1  ;;  %v13844_v44 = vadd.f32 %v4355_v19, %v13383_v14 }
 0x3e5   :  { %v4359_v25 = vpop.f32.mrb[126].mxu1  ;;  %v13850_v57 = vadd.f32 %v4357_v55, %v13387_v40  ;;  %v13870_v55 = vrot.slane %v13380_v23, %v789_v43  ;;  %v15632_v43 = vld [vmem:[#allocation144_spill] sm:$0xff] }
 0x3e6   :  { %v13847_v39 = vadd.f32 %v4359_v25, %v13383_v14  ;;  %v4361_v31 = vpop.f32.mrb[127].mxu1 }
 0x3e7   :  { %v13853_v12 = vadd.f32 %v4361_v31, %v13387_v40  ;;  %v15625_v40 = vld [vmem:[#allocation160_spill] sm:$0xff]  ;;  %v15626_v31 = vld [vmem:[#allocation143_spill] sm:$0xff] }
 0x3e8   :  { %5462 = vmatmul.mubr.bf16.gmra.mrb[168].mxu1 %v15461_v34  ;;  %v15627_v19 = vpack.c.bf16 %v15625_v40, %v15626_v31  ;;  %v13873_v34 = vrot.slane %v13380_v23, %v793_v17  ;;  %v15633_v17 = vld [vmem:[#allocation142_spill] sm:$0xff]  ;;  %v15635_v31 = vld [vmem:[#allocation147_spill] sm:$0xff] }
 0x3e9   :  { %5471 = vmatprep.mubr.bf16.mxu1 %v15463_v42  ;;  %v15634_v40 = vpack.c.bf16 %v15632_v43, %v15633_v17 }
 0x3ea   :  { %6949 = vmatmul.mubr.bf16.gmra.mrb[168].mxu0 %v15624_v52 }
 0x3eb   :  { %6958 = vmatprep.mubr.bf16.mxu0 %v15627_v19 }
 0x3ec   :  { %v4977_v25 = vpop.f32.mrb[64].mxu0 }
 0x3ed   :  { %v4979_v13 = vpop.f32.mrb[65].mxu0  ;;  %v13876_v14 = vadd.f32 %v4977_v25, %v13870_v55 }
 0x3ee   :  { %v4981_v11 = vpop.f32.mrb[66].mxu0  ;;  %v13882_v53 = vadd.f32 %v4979_v13, %v13873_v34  ;;  %v15636_v13 = vld [vmem:[#allocation145_spill] sm:$0xff] }
 0x3ef   :  { %15628 = vst [vmem:[#allocation44_spill] sm:$0xff] %v13876_v14  ;;  %v13879_v3 = vadd.f32 %v4981_v11, %v13870_v55  ;;  %v4983_v42 = vpop.f32.mrb[67].mxu0  ;;  %v15637_v19 = vpack.c.bf16 %v15635_v31, %v15636_v13  ;;  %v15643_v13 = vld [vmem:[#allocation146_spill] sm:$0xff]  ;;  %v15647_v14 = vld [vmem:[#allocation164_spill] sm:$0xff] }
 0x3f0   :  { %15630 = vst [vmem:[#allocation48_spill] sm:$0xff] %v13882_v53  ;;  %v13885_v52 = vadd.f32 %v4983_v42, %v13873_v34  ;;  %5472 = vmatmul.mubr.bf16.gmra.mrb[172].mxu1 %v15320_v51 }
 0x3f1   :  { %15629 = vst [vmem:[#allocation46_spill] sm:$0xff] %v13879_v3  ;;  %5481 = vmatprep.mubr.bf16.mxu1 %v15321_v26 }
 0x3f2   :  { %15631 = vst [vmem:[#allocation50_spill] sm:$0xff] %v13885_v52  ;;  %6959 = vmatmul.mubr.bf16.gmra.mrb[172].mxu0 %v15634_v40  ;;  %v15642_v40 = vld [vmem:[#allocation81_spill] sm:$0xff] }
 0x3f3   :  { %6968 = vmatprep.mubr.bf16.mxu0 %v15637_v19  ;;  %v15644_v19 = vld [vmem:[#allocation31_spill] sm:$0xff] }
 0x3f4   :  { %v4987_v25 = vpop.f32.mrb[68].mxu0  ;;  %v15645_v11 = vpack.c.bf16 %v15643_v13, %v15644_v19 }
 0x3f5   :  { %v4989_v42 = vpop.f32.mrb[69].mxu0  ;;  %v13900_v51 = vadd.f32 %v4987_v25, %v13870_v55  ;;  %v15646_v25 = vld [vmem:[#allocation83_spill] sm:$0xff] }
 0x3f6   :  { %v4991_v27 = vpop.f32.mrb[70].mxu0  ;;  %v13906_v17 = vadd.f32 %v4989_v42, %v13873_v34  ;;  %v15648_v42 = vld [vmem:[#allocation162_spill] sm:$0xff] }
 0x3f7   :  { %15638 = vst [vmem:[#allocation52_spill] sm:$0xff] %v13900_v51  ;;  %v13903_v23 = vadd.f32 %v4991_v27, %v13870_v55  ;;  %v4993_v43 = vpop.f32.mrb[71].mxu0  ;;  %v15649_v3 = vpack.c.bf16 %v15647_v14, %v15648_v42  ;;  %v15656_v42 = vld [vmem:[#allocation161_spill] sm:$0xff]  ;;  %v15659_v51 = vld [vmem:[#allocation67_spill] sm:$0xff] }
 0x3f8   :  { %15640 = vst [vmem:[#allocation56_spill] sm:$0xff] %v13906_v17  ;;  %v13909_v26 = vadd.f32 %v4993_v43, %v13873_v34  ;;  %5482 = vmatmul.mubr.bf16.gmra.mrb[176].mxu1 %v15642_v40 }
 0x3f9   :  { %15639 = vst [vmem:[#allocation54_spill] sm:$0xff] %v13903_v23  ;;  %5491 = vmatprep.mubr.bf16.mxu1 %v15646_v25  ;;  %v15654_v25 = vld [vmem:[#allocation85_spill] sm:$0xff] }
 0x3fa   :  { %15641 = vst [vmem:[#allocation58_spill] sm:$0xff] %v13909_v26  ;;  %6969 = vmatmul.mubr.bf16.gmra.mrb[176].mxu0 %v15645_v11 }
 0x3fb   :  { %6978 = vmatprep.mubr.bf16.mxu0 %v15649_v3  ;;  %v15655_v3 = vld [vmem:[#allocation163_spill] sm:$0xff] }
 0x3fc   :  { %v4997_v43 = vpop.f32.mrb[72].mxu0  ;;  %v15657_v27 = vpack.c.bf16 %v15655_v3, %v15656_v42 }
 0x3fd   :  { %v4999_v53 = vpop.f32.mrb[73].mxu0  ;;  %v13924_v40 = vadd.f32 %v4997_v43, %v13870_v55  ;;  %v15658_v43 = vld [vmem:[#allocation87_spill] sm:$0xff] }
 0x3fe   :  { %v5001_v52 = vpop.f32.mrb[74].mxu0  ;;  %v13930_v11 = vadd.f32 %v4999_v53, %v13873_v34  ;;  %v15660_v53 = vld [vmem:[#allocation63_spill] sm:$0xff] }
 0x3ff   :  { %15650 = vst [vmem:[#allocation102_spill] sm:$0xff] %v13924_v40  ;;  %v13927_v31 = vadd.f32 %v5001_v52, %v13870_v55  ;;  %v5003_v13 = vpop.f32.mrb[75].mxu0  ;;  %v15661_v23 = vpack.c.bf16 %v15659_v51, %v15660_v53  ;;  %v15665_v51 = vld [vmem:[#allocation65_spill] sm:$0xff]  ;;  %v15669_v40 = vld [vmem:[#allocation150_spill] sm:$0xff] }
 0x400   :  { %15652 = vst [vmem:[#allocation100_spill] sm:$0xff] %v13930_v11  ;;  %v13933_v19 = vadd.f32 %v5003_v13, %v13873_v34  ;;  %5492 = vmatmul.mubr.bf16.gmra.mrb[180].mxu1 %v15654_v25  ;;  %v15666_v53 = vld [vmem:[#allocation33_spill] sm:$0xff] }
 0x401   :  { %15651 = vst [vmem:[#allocation99_spill] sm:$0xff] %v13927_v31  ;;  %5501 = vmatprep.mubr.bf16.mxu1 %v15658_v43  ;;  %v15664_v43 = vld [vmem:[#allocation89_spill] sm:$0xff]  ;;  %v15667_v52 = vpack.c.bf16 %v15665_v51, %v15666_v53 }
 0x402   :  { %15653 = vst [vmem:[#allocation98_spill] sm:$0xff] %v13933_v19  ;;  %6979 = vmatmul.mubr.bf16.gmra.mrb[180].mxu0 %v15657_v27 }
 0x403   :  { %6988 = vmatprep.mubr.bf16.mxu0 %v15661_v23 }
 0x404   :  { %v5007_v13 = vpop.f32.mrb[76].mxu0 }
 0x405   :  { %v5009_v17 = vpop.f32.mrb[77].mxu0  ;;  %v13948_v25 = vadd.f32 %v5007_v13, %v13870_v55  ;;  %v15668_v13 = vld [vmem:[#allocation91_spill] sm:$0xff] }
 0x406   :  { %v5011_v26 = vpop.f32.mrb[78].mxu0  ;;  %v13954_v27 = vadd.f32 %v5009_v17, %v13873_v34  ;;  %v15670_v17 = vld [vmem:[#allocation71_spill] sm:$0xff] }
 0x407   :  { %15662 = vst [vmem:[#allocation104_spill] sm:$0xff] %v13948_v25  ;;  %v13951_v14 = vadd.f32 %v5011_v26, %v13870_v55  ;;  %v5013_v3 = vpop.f32.mrb[79].mxu0  ;;  %v15671_v31 = vpack.c.bf16 %v15669_v40, %v15670_v17  ;;  %v15673_v40 = vld [vmem:[#allocation149_spill] sm:$0xff] }
 0x408   :  { %v13957_v42 = vadd.f32 %v5013_v3, %v13873_v34  ;;  %5502 = vmatmul.mubr.bf16.gmra.mrb[184].mxu1 %v15664_v43  ;;  %v15674_v17 = vld [vmem:[#allocation69_spill] sm:$0xff] }
 0x409   :  { %15663 = vst [vmem:[#allocation79_spill] sm:$0xff] %v13951_v14  ;;  %5511 = vmatprep.mubr.bf16.mxu1 %v15668_v13  ;;  %v15672_v13 = vld [vmem:[#allocation93_spill] sm:$0xff]  ;;  %v15675_v26 = vpack.c.bf16 %v15673_v40, %v15674_v17 }
 0x40a   :  { %6989 = vmatmul.mubr.bf16.gmra.mrb[184].mxu0 %v15667_v52 }
 0x40b   :  { %6998 = vmatprep.mubr.bf16.mxu0 %v15671_v31 }
 0x40c   :  { %v5017_v3 = vpop.f32.mrb[80].mxu0 }
 0x40d   :  { %v5019_v11 = vpop.f32.mrb[81].mxu0  ;;  %v13972_v43 = vadd.f32 %v5017_v3, %v13870_v55  ;;  %v15676_v3 = vld [vmem:[#allocation35_spill] sm:$0xff] }
 0x40e   :  { %v5021_v19 = vpop.f32.mrb[82].mxu0  ;;  %v13978_v52 = vadd.f32 %v5019_v11, %v13873_v34  ;;  %v15677_v11 = vpack.c.bf16 %v13399_v58, %v13396_v54  ;;  %v10083_v54 = vld [vmem:[#allocation2 + $0x214] ss:$8 sps:$4 sm:$0xff]  }
 0x40f   :  { %v13975_v23 = vadd.f32 %v5021_v19, %v13870_v55  ;;  %v5023_v51 = vpop.f32.mrb[83].mxu0  ;;  %v10086_v19 = vld [vmem:[#allocation2 + $0x224] ss:$8 sps:$4 sm:$0xff]  }
 0x410   :  { %v13981_v53 = vadd.f32 %v5023_v51, %v13873_v34  ;;  %5512 = vmatmul.mubr.bf16.gmra.mrb[188].mxu1 %v15672_v13 }
 0x411   :  { %5554 = vmatprep.mubr.bf16.mxu1 %v15676_v3 }
 0x412   :  { %6999 = vmatmul.mubr.bf16.gmra.mrb[188].mxu0 %v15675_v26  ;;  %v10078_v26 = vld [vmem:[#allocation2 + $0x200] ss:$8 sps:$4 sm:$0xff]  }
 0x413   :  { %7041 = vmatprep.mubr.bf16.mxu0 %v15677_v11  ;;  %v15678_v11 = vpack.c.bf16 %v13393_v49, %v13390_v15 }
 0x414   :  { %v5027_v51 = vpop.f32.mrb[84].mxu0 }
 0x415   :  { %v5029_v25 = vpop.f32.mrb[85].mxu0  ;;  %v13996_v13 = vadd.f32 %v5027_v51, %v13870_v55  ;;  %v15680_v51 = vpack.c.bf16 %v13420_v8, %v13417_v45 }
 0x416   :  { %v5031_v14 = vpop.f32.mrb[86].mxu0  ;;  %v14002_v17 = vadd.f32 %v5029_v25, %v13873_v34 }
 0x417   :  { %v13999_v31 = vadd.f32 %v5031_v14, %v13870_v55  ;;  %v5033_v40 = vpop.f32.mrb[87].mxu0  ;;  %v15679_v14 = vcombine.low %v13538_v20, %v13543_v30 }
 0x418   :  { %v14005_v3 = vadd.f32 %v5033_v40, %v13873_v34  ;;  %5555 = vmatmul.mubr.bf16.vlgmr.msra.gmra.mrb[128].mxu1 %v15362_v24  ;;  %v15681_v24 = vld [vmem:[#allocation39_spill] sm:$0xff] }
 0x419   :  { %5716 = vmatpush1.bf16.msra.mxu1 %v15679_v14  ;;  %5564 = vmatprep.mubr.bf16.mxu1 %v15681_v24  ;;  %v10081_v40 = vld [vmem:[#allocation2 + $0x210] ss:$8 sps:$4 sm:$0xff]   ;;  %v10084_v14 = vld [vmem:[#allocation2 + $0x220] ss:$8 sps:$4 sm:$0xff]  }
 0x41a   :  { %7042 = vmatmul.mubr.bf16.vlgmr.msra.gmra.mrb[128].mxu0 %v15678_v11 }
 0x41b   :  { %7051 = vmatprep.mubr.bf16.mxu0 %v15680_v51  ;;  %7203 = vmatpush1.bf16.msra.mxu0 %v10078_v26  ;;  %v15682_v26 = vld [vmem:[#allocation41_spill] sm:$0xff]  ;;  %v15683_v51 = vpack.c.bf16 %v13414_v41, %v13411_v4 }
 0x41c   :  { %v5037_v58 = vpop.f32.mrb[88].mxu0  ;;  %7204 = vmatprep.subr.bf16.mxu0 %v10083_v54  ;;  %v10089_v54 = vld [vmem:[#allocation2 + $0x234] ss:$8 sps:$4 sm:$0xff]   ;;  %v10090_v4 = vld [vmem:[#allocation2 + $0x240] ss:$8 sps:$4 sm:$0xff]  }
 0x41d   :  { %v5039_v15 = vpop.f32.mrb[89].mxu0  ;;  %v14023_v11 = vadd.f32 %v5037_v58, %v13870_v55 }
 0x41e   :  { %v5041_v49 = vpop.f32.mrb[90].mxu0  ;;  %v14029_v45 = vadd.f32 %v5039_v15, %v13873_v34  ;;  %v10087_v15 = vld [vmem:[#allocation2 + $0x230] ss:$8 sps:$4 sm:$0xff]  }
 0x41f   :  { %v14026_v20 = vadd.f32 %v5041_v49, %v13870_v55  ;;  %v5043_v30 = vpop.f32.mrb[91].mxu0  ;;  %7205 = vmatpush1.bf16.msra.mxu0 %v10081_v40  ;;  %v15684_v40 = vpack.c.bf16 %v13441_v37, %v13438_v32  ;;  %v10092_v49 = vld [vmem:[#allocation2 + $0x244] ss:$8 sps:$4 sm:$0xff]  }
 0x420   :  { %v14032_v8 = vadd.f32 %v5043_v30, %v13873_v34  ;;  %5565 = vmatmul.mubr.bf16.gmra.mrb[132].mxu1 %v15682_v26  ;;  %7206 = vmatprep.subr.bf16.mxu0 %v10086_v19  ;;  %v15685_v37 = vld [vmem:[#allocation45_spill] sm:$0xff] }
 0x421   :  { %5574 = vmatprep.mubr.bf16.mxu1 %v15375_v33 }
 0x422   :  { %7052 = vmatmul.mubr.bf16.gmra.mrb[132].mxu0 %v15683_v51 }
 0x423   :  { %7061 = vmatprep.mubr.bf16.mxu0 %v15684_v40  ;;  %7207 = vmatpush1.bf16.msra.mxu0 %v10084_v14  ;;  %v10095_v14 = vld [vmem:[#allocation2 + $0x254] ss:$8 sps:$4 sm:$0xff]   ;;  %v15686_v40 = vpack.c.bf16 %v13435_v62, %v13432_v21  ;;  %v10096_v21 = vld [vmem:[#allocation2 + $0x260] ss:$8 sps:$4 sm:$0xff]  }
 0x424   :  { %v5047_v19 = vpop.f32.mrb[92].mxu0  ;;  %7208 = vmatprep.subr.bf16.mxu0 %v10089_v54 }
 0x425   :  { %v5049_v30 = vpop.f32.mrb[93].mxu0  ;;  %v14047_v58 = vadd.f32 %v5047_v19, %v13870_v55  ;;  %v15687_v19 = vpack.c.bf16 %v13462_v47, %v13459_v10  ;;  %v15688_v47 = vld [vmem:[#allocation49_spill] sm:$0xff] }
 0x426   :  { %v5051_v26 = vpop.f32.mrb[94].mxu0  ;;  %v14053_v51 = vadd.f32 %v5049_v30, %v13873_v34  ;;  %v10093_v30 = vld [vmem:[#allocation2 + $0x250] ss:$8 sps:$4 sm:$0xff]  }
 0x427   :  { %v14050_v41 = vadd.f32 %v5051_v26, %v13870_v55  ;;  %v5053_v33 = vpop.f32.mrb[95].mxu0  ;;  %7209 = vmatpush1.bf16.msra.mxu0 %v10087_v15  ;;  %v10098_v26 = vld [vmem:[#allocation2 + $0x264] ss:$8 sps:$4 sm:$0xff]  }
 0x428   :  { %v14056_v32 = vadd.f32 %v5053_v33, %v13873_v34  ;;  %5575 = vmatmul.mubr.bf16.gmra.mrb[136].mxu1 %v15685_v37  ;;  %7210 = vmatprep.subr.bf16.mxu0 %v10092_v49  ;;  %v10110_v15 = vld [vmem:[#allocation2 + $0x2a4] ss:$8 sps:$4 sm:$0xff]  }
 0x429   :  { %5584 = vmatprep.mubr.bf16.mxu1 %v15385_v18 }
 0x42a   :  { %7062 = vmatmul.mubr.bf16.gmra.mrb[136].mxu0 %v15686_v40 }
 0x42b   :  { %7071 = vmatprep.mubr.bf16.mxu0 %v15687_v19  ;;  %7211 = vmatpush1.bf16.msra.mxu0 %v10090_v4  ;;  %v10101_v4 = vld [vmem:[#allocation2 + $0x274] ss:$8 sps:$4 sm:$0xff]   ;;  %v15689_v19 = vpack.c.bf16 %v13456_v0, %v13453_v22  ;;  %v10102_v22 = vld [vmem:[#allocation2 + $0x280] ss:$8 sps:$4 sm:$0xff]  }
 0x42c   :  { %v5057_v49 = vpop.f32.mrb[96].mxu0  ;;  %7212 = vmatprep.subr.bf16.mxu0 %v10095_v14 }
 0x42d   :  { %v5059_v33 = vpop.f32.mrb[97].mxu0  ;;  %v14071_v54 = vadd.f32 %v5057_v49, %v13870_v55  ;;  %v15690_v49 = vpack.c.bf16 %v13483_v7, %v13480_v36  ;;  %v15693_v7 = vld [vmem:[#allocation53_spill] sm:$0xff] }
 0x42e   :  { %v5061_v37 = vpop.f32.mrb[98].mxu0  ;;  %v14077_v40 = vadd.f32 %v5059_v33, %v13873_v34  ;;  %v10099_v33 = vld [vmem:[#allocation2 + $0x270] ss:$8 sps:$4 sm:$0xff]  }
 0x42f   :  { %v14074_v62 = vadd.f32 %v5061_v37, %v13870_v55  ;;  %v5063_v18 = vpop.f32.mrb[99].mxu0  ;;  %7213 = vmatpush1.bf16.msra.mxu0 %v10093_v30  ;;  %v10104_v37 = vld [vmem:[#allocation2 + $0x284] ss:$8 sps:$4 sm:$0xff]   ;;  %v15698_v30 = vld [vmem:[#allocation75_spill] sm:$0xff] }
 0x430   :  { %v14080_v10 = vadd.f32 %v5063_v18, %v13873_v34  ;;  %5585 = vmatmul.mubr.bf16.gmra.mrb[140].mxu1 %v15688_v47  ;;  %7214 = vmatprep.subr.bf16.mxu0 %v10098_v26 }
 0x431   :  { %5594 = vmatprep.mubr.bf16.mxu1 %v15392_v46 }
 0x432   :  { %7072 = vmatmul.mubr.bf16.gmra.mrb[140].mxu0 %v15689_v19 }
 0x433   :  { %7081 = vmatprep.mubr.bf16.mxu0 %v15690_v49  ;;  %7215 = vmatpush1.bf16.msra.mxu0 %v10096_v21  ;;  %v10107_v21 = vld [vmem:[#allocation2 + $0x294] ss:$8 sps:$4 sm:$0xff]  }
 0x434   :  { %v5067_v26 = vpop.f32.mrb[100].mxu0  ;;  %7216 = vmatprep.subr.bf16.mxu0 %v10101_v4  ;;  %v15694_v49 = vld [vmem:[#allocation151_spill] sm:$0xff] }
 0x435   :  { %v5069_v18 = vpop.f32.mrb[101].mxu0  ;;  %v14095_v14 = vadd.f32 %v5067_v26, %v13870_v55  ;;  %v15695_v26 = vpack.c.bf16 %v13477_v35, %v15694_v49 }
 0x436   :  { %v5071_v47 = vpop.f32.mrb[102].mxu0  ;;  %v14101_v19 = vadd.f32 %v5069_v18, %v13873_v34  ;;  %v15697_v18 = vld [vmem:[#allocation5_spill] sm:$0xff] }
 0x437   :  { %15691 = vst [vmem:[#allocation8_spill] sm:$0xff] %v14095_v14  ;;  %v14098_v0 = vadd.f32 %v5071_v47, %v13870_v55  ;;  %v5073_v46 = vpop.f32.mrb[103].mxu0  ;;  %7217 = vmatpush1.bf16.msra.mxu0 %v10099_v33  ;;  %v15696_v47 = vld [vmem:[#allocation55_spill] sm:$0xff]  ;;  %v10116_v14 = vld [vmem:[#allocation2 + $0x2c4] ss:$8 sps:$4 sm:$0xff]  }
 0x438   :  { %v14104_v36 = vadd.f32 %v5073_v46, %v13873_v34  ;;  %5595 = vmatmul.mubr.bf16.gmra.mrb[144].mxu1 %v15693_v7  ;;  %7218 = vmatprep.subr.bf16.mxu0 %v10104_v37  ;;  %v15699_v46 = vpack.c.bf16 %v15697_v18, %v15698_v30  ;;  %v10105_v7 = vld [vmem:[#allocation2 + $0x290] ss:$8 sps:$4 sm:$0xff]  }
 0x439   :  { %15692 = vst [vmem:[#allocation10_spill] sm:$0xff] %v14098_v0  ;;  %5604 = vmatprep.mubr.bf16.mxu1 %v15696_v47  ;;  %v15708_v33 = vld [vmem:[#allocation59_spill] sm:$0xff] }
 0x43a   :  { %7082 = vmatmul.mubr.bf16.gmra.mrb[144].mxu0 %v15695_v26  ;;  %v10108_v26 = vld [vmem:[#allocation2 + $0x2a0] ss:$8 sps:$4 sm:$0xff]  }
 0x43b   :  { %7091 = vmatprep.mubr.bf16.mxu0 %v15699_v46  ;;  %7219 = vmatpush1.bf16.msra.mxu0 %v10102_v22  ;;  %v15704_v22 = vld [vmem:[#allocation57_spill] sm:$0xff] }
 0x43c   :  { %v5077_v37 = vpop.f32.mrb[104].mxu0  ;;  %7220 = vmatprep.subr.bf16.mxu0 %v10107_v21  ;;  %v10113_v21 = vld [vmem:[#allocation2 + $0x2b4] ss:$8 sps:$4 sm:$0xff]   ;;  %v15705_v46 = vld [vmem:[#allocation73_spill] sm:$0xff] }
 0x43d   :  { %v5079_v24 = vpop.f32.mrb[105].mxu0  ;;  %v14119_v25 = vadd.f32 %v5077_v37, %v13870_v55  ;;  %v15706_v37 = vld [vmem:[#allocation152_spill] sm:$0xff] }
 0x43e   :  { %v5081_v4 = vpop.f32.mrb[106].mxu0  ;;  %v14125_v47 = vadd.f32 %v5079_v24, %v13873_v34  ;;  %v15719_v24 = vld [vmem:[#allocation61_spill] sm:$0xff] }
 0x43f   :  { %15700 = vst [vmem:[#allocation103_spill] sm:$0xff] %v14119_v25  ;;  %v14122_v35 = vadd.f32 %v5081_v4, %v13870_v55  ;;  %v5083_v49 = vpop.f32.mrb[107].mxu0  ;;  %7221 = vmatpush1.bf16.msra.mxu0 %v10105_v7  ;;  %v15707_v4 = vpack.c.bf16 %v15705_v46, %v15706_v37  ;;  %v15709_v7 = vld [vmem:[#allocation9_spill] sm:$0xff] }
 0x440   :  { %15702 = vst [vmem:[#allocation12_spill] sm:$0xff] %v14125_v47  ;;  %v14128_v30 = vadd.f32 %v5083_v49, %v13873_v34  ;;  %5605 = vmatmul.mubr.bf16.gmra.mrb[148].mxu1 %v15704_v22  ;;  %7222 = vmatprep.subr.bf16.mxu0 %v10110_v15  ;;  %v15710_v49 = vpack.c.bf16 %v13563_v1, %v15709_v7  ;;  %v10111_v22 = vld [vmem:[#allocation2 + $0x2b0] ss:$8 sps:$4 sm:$0xff]   ;;  %v10114_v37 = vld [vmem:[#allocation2 + $0x2c0] ss:$8 sps:$4 sm:$0xff]  }
 0x441   :  { %15701 = vst [vmem:[#allocation77_spill] sm:$0xff] %v14122_v35  ;;  %5614 = vmatprep.mubr.bf16.mxu1 %v15708_v33  ;;  %v15721_v35 = vld [vmem:[#allocation14_spill] sm:$0xff] }
 0x442   :  { %15703 = vst [vmem:[#allocation109_spill] sm:$0xff] %v14128_v30  ;;  %7092 = vmatmul.mubr.bf16.gmra.mrb[148].mxu0 %v15707_v4  ;;  %v10122_v47 = vld [vmem:[#allocation2 + $0x2e4] ss:$8 sps:$4 sm:$0xff]  }
 0x443   :  { %7101 = vmatprep.mubr.bf16.mxu0 %v15710_v49  ;;  %7223 = vmatpush1.bf16.msra.mxu0 %v10108_v26  ;;  %v15715_v26 = vld [vmem:[#allocation60_spill] sm:$0xff]  ;;  %v15716_v49 = vld [vmem:[#allocation7_spill] sm:$0xff] }
 0x444   :  { %v5087_v15 = vpop.f32.mrb[108].mxu0  ;;  %7224 = vmatprep.subr.bf16.mxu0 %v10113_v21  ;;  %v10119_v21 = vld [vmem:[#allocation2 + $0x2d4] ss:$8 sps:$4 sm:$0xff]  }
 0x445   :  { %v5089_v0 = vpop.f32.mrb[109].mxu0  ;;  %v14143_v25 = vadd.f32 %v5087_v15, %v13870_v55  ;;  %v15717_v15 = vld [vmem:[#allocation6_spill] sm:$0xff] }
 0x446   :  { %v5091_v18 = vpop.f32.mrb[110].mxu0  ;;  %v14149_v4 = vadd.f32 %v5089_v0, %v13873_v34  ;;  %v15729_v0 = vld [vmem:[#allocation64_spill] sm:$0xff] }
 0x447   :  { %15711 = vst [vmem:[#allocation107_spill] sm:$0xff] %v14143_v25  ;;  %v14146_v46 = vadd.f32 %v5091_v18, %v13870_v55  ;;  %v5093_v33 = vpop.f32.mrb[111].mxu0  ;;  %7225 = vmatpush1.bf16.msra.mxu0 %v10111_v22  ;;  %v15718_v18 = vpack.c.bf16 %v15716_v49, %v15717_v15  ;;  %v15720_v22 = vld [vmem:[#allocation16_spill] sm:$0xff]  ;;  %v10120_v15 = vld [vmem:[#allocation2 + $0x2e0] ss:$8 sps:$4 sm:$0xff]  }
 0x448   :  { %15713 = vst [vmem:[#allocation105_spill] sm:$0xff] %v14149_v4  ;;  %v14152_v1 = vadd.f32 %v5093_v33, %v13873_v34  ;;  %5615 = vmatmul.mubr.bf16.gmra.mrb[152].mxu1 %v15715_v26  ;;  %7226 = vmatprep.subr.bf16.mxu0 %v10116_v14  ;;  %v15722_v33 = vpack.c.bf16 %v15720_v22, %v15721_v35  ;;  %v10117_v26 = vld [vmem:[#allocation2 + $0x2d0] ss:$8 sps:$4 sm:$0xff]  }
 0x449   :  { %15712 = vst [vmem:[#allocation108_spill] sm:$0xff] %v14146_v46  ;;  %5624 = vmatprep.mubr.bf16.mxu1 %v15719_v24  ;;  %v15731_v46 = vld [vmem:[#allocation22_spill] sm:$0xff] }
 0x44a   :  { %15714 = vst [vmem:[#allocation15_spill] sm:$0xff] %v14152_v1  ;;  %7102 = vmatmul.mubr.bf16.gmra.mrb[152].mxu0 %v15718_v18 }
 0x44b   :  { %7111 = vmatprep.mubr.bf16.mxu0 %v15722_v33  ;;  %7227 = vmatpush1.bf16.msra.mxu0 %v10114_v37  ;;  %v15725_v37 = vld [vmem:[#allocation62_spill] sm:$0xff]  ;;  %v15726_v33 = vld [vmem:[#allocation13_spill] sm:$0xff] }
 0x44c   :  { %v5097_v14 = vpop.f32.mrb[112].mxu0  ;;  %7228 = vmatprep.subr.bf16.mxu0 %v10119_v21  ;;  %v10125_v21 = vld [vmem:[#allocation2 + $0x2f4] ss:$8 sps:$4 sm:$0xff]  }
 0x44d   :  { %v5099_v30 = vpop.f32.mrb[113].mxu0  ;;  %v14167_v25 = vadd.f32 %v5097_v14, %v13870_v55  ;;  %v15727_v14 = vld [vmem:[#allocation11_spill] sm:$0xff] }
 0x44e   :  { %v5101_v7 = vpop.f32.mrb[114].mxu0  ;;  %v14173_v18 = vadd.f32 %v5099_v30, %v13873_v34 }
 0x44f   :  { %15723 = vst [vmem:[#allocation114_spill] sm:$0xff] %v14167_v25  ;;  %v14170_v49 = vadd.f32 %v5101_v7, %v13870_v55  ;;  %v5103_v24 = vpop.f32.mrb[115].mxu0  ;;  %7229 = vmatpush1.bf16.msra.mxu0 %v10117_v26  ;;  %v15728_v7 = vpack.c.bf16 %v15726_v33, %v15727_v14  ;;  %v15730_v26 = vld [vmem:[#allocation24_spill] sm:$0xff] }
 0x450   :  { %v14176_v35 = vadd.f32 %v5103_v24, %v13873_v34  ;;  %5625 = vmatmul.mubr.bf16.gmra.mrb[156].mxu1 %v15725_v37  ;;  %7230 = vmatprep.subr.bf16.mxu0 %v10122_v47  ;;  %v15732_v24 = vpack.c.bf16 %v15730_v26, %v15731_v46  ;;  %v10123_v37 = vld [vmem:[#allocation2 + $0x2f0] ss:$8 sps:$4 sm:$0xff]   ;;  %v15738_v26 = vld [vmem:[#allocation18_spill] sm:$0xff] }
 0x451   :  { %15724 = vst [vmem:[#allocation112_spill] sm:$0xff] %v14170_v49  ;;  %5634 = vmatprep.mubr.bf16.mxu1 %v15729_v0 }
 0x452   :  { %7112 = vmatmul.mubr.bf16.gmra.mrb[156].mxu0 %v15728_v7  ;;  %v15737_v7 = vld [vmem:[#allocation20_spill] sm:$0xff] }
 0x453   :  { %7121 = vmatprep.mubr.bf16.mxu0 %v15732_v24  ;;  %7231 = vmatpush1.bf16.msra.mxu0 %v10120_v15  ;;  %v15736_v15 = vld [vmem:[#allocation66_spill] sm:$0xff]  ;;  %v15739_v24 = vpack.c.bf16 %v15737_v7, %v15738_v26 }
 0x454   :  { %v5107_v47 = vpop.f32.mrb[116].mxu0  ;;  %7232 = vmatprep.subr.bf16.mxu0 %v10125_v21 }
 0x455   :  { %v5109_v4 = vpop.f32.mrb[117].mxu0  ;;  %v14191_v22 = vadd.f32 %v5107_v47, %v13870_v55  ;;  %v15740_v47 = vld [vmem:[#allocation68_spill] sm:$0xff] }
 0x456   :  { %v5111_v1 = vpop.f32.mrb[118].mxu0  ;;  %v14197_v14 = vadd.f32 %v5109_v4, %v13873_v34  ;;  %v15742_v4 = vld [vmem:[#allocation30_spill] sm:$0xff] }
 0x457   :  { %15733 = vst [vmem:[#allocation17_spill] sm:$0xff] %v14191_v22  ;;  %v14194_v33 = vadd.f32 %v5111_v1, %v13870_v55  ;;  %v5113_v0 = vpop.f32.mrb[119].mxu0  ;;  %7233 = vmatpush1.bf16.msra.mxu0 %v10123_v37  ;;  %v15741_v37 = vld [vmem:[#allocation32_spill] sm:$0xff] }
 0x458   :  { %15735 = vst [vmem:[#allocation110_spill] sm:$0xff] %v14197_v14  ;;  %v14200_v46 = vadd.f32 %v5113_v0, %v13873_v34  ;;  %5635 = vmatmul.mubr.bf16.gmra.mrb[160].mxu1 %v15736_v15  ;;  %v15743_v30 = vpack.c.bf16 %v15741_v37, %v15742_v4  ;;  %v15745_v37 = vld [vmem:[#allocation28_spill] sm:$0xff]  ;;  %v15746_v4 = vld [vmem:[#allocation26_spill] sm:$0xff] }
 0x459   :  { %15734 = vst [vmem:[#allocation113_spill] sm:$0xff] %v14194_v33  ;;  %5644 = vmatprep.mubr.bf16.mxu1 %v15740_v47  ;;  %v15744_v47 = vld [vmem:[#allocation70_spill] sm:$0xff]  ;;  %v15747_v1 = vpack.c.bf16 %v15745_v37, %v15746_v4 }
 0x45a   :  { %7122 = vmatmul.mubr.bf16.gmra.mrb[160].mxu0 %v15739_v24 }
 0x45b   :  { %7131 = vmatprep.mubr.bf16.mxu0 %v15743_v30 }
 0x45c   :  { %v5117_v0 = vpop.f32.mrb[120].mxu0 }
 0x45d   :  { %v5119_v25 = vpop.f32.mrb[121].mxu0  ;;  %v14215_v15 = vadd.f32 %v5117_v0, %v13870_v55  ;;  %v15748_v0 = vld [vmem:[#allocation72_spill] sm:$0xff] }
 0x45e   :  { %v5121_v49 = vpop.f32.mrb[122].mxu0  ;;  %v14221_v26 = vadd.f32 %v5119_v25, %v13873_v34  ;;  %v15749_v25 = vld [vmem:[#allocation38_spill] sm:$0xff] }
 0x45f   :  { %v14218_v21 = vadd.f32 %v5121_v49, %v13870_v55  ;;  %v5123_v7 = vpop.f32.mrb[123].mxu0  ;;  %v15750_v22 = vpack.c.bf16 %v13707_v61, %v15749_v25  ;;  %v15753_v25 = vld [vmem:[#allocation34_spill] sm:$0xff]  ;;  %v15761_v61 = vld [vmem:[#allocation80_spill] sm:$0xff] }
 0x460   :  { %v14224_v24 = vadd.f32 %v5123_v7, %v13873_v34  ;;  %5645 = vmatmul.mubr.bf16.gmra.mrb[164].mxu1 %v15744_v47 }
 0x461   :  { %5654 = vmatprep.mubr.bf16.mxu1 %v15748_v0  ;;  %v15751_v0 = vld [vmem:[#allocation74_spill] sm:$0xff] }
 0x462   :  { %7132 = vmatmul.mubr.bf16.gmra.mrb[164].mxu0 %v15747_v1 }
 0x463   :  { %7141 = vmatprep.mubr.bf16.mxu0 %v15750_v22  ;;  %v15752_v22 = vld [vmem:[#allocation36_spill] sm:$0xff] }
 0x464   :  { %v5127_v7 = vpop.f32.mrb[124].mxu0  ;;  %v15754_v49 = vpack.c.bf16 %v15752_v22, %v15753_v25  ;;  %v10128_v22 = vld [vmem:[#allocation2 + $0x304] ss:$8 sps:$4 sm:$0xff]  }
 0x465   :  { %v5129_v33 = vpop.f32.mrb[125].mxu0  ;;  %v14239_v47 = vadd.f32 %v5127_v7, %v13870_v55  ;;  %v15755_v7 = vld [vmem:[#allocation76_spill] sm:$0xff]  ;;  %7395 = vmatprep.subr.bf16.mxu0 %v10128_v22  ;;  %v15763_v25 = vld [vmem:[#allocation82_spill] sm:$0xff] }
 0x466   :  { %v5131_v14 = vpop.f32.mrb[126].mxu0  ;;  %v14245_v1 = vadd.f32 %v5129_v33, %v13873_v34  ;;  %v15756_v33 = vpack.c.bf16 %v13743_v2, %v13740_v50  ;;  %v15764_v50 = vpack.c.bf16 %v13773_v56, %v13770_v16  ;;  %v15765_v2 = vld [vmem:[#allocation84_spill] sm:$0xff]  ;;  %v15771_v16 = vld [vmem:[#allocation90_spill] sm:$0xff]  ;;  %v15772_v56 = vpack.c.bf16 %v13823_v29, %v13820_v5 }
 0x467   :  { %v14242_v30 = vadd.f32 %v5131_v14, %v13870_v55  ;;  %v5133_v37 = vpop.f32.mrb[127].mxu0  ;;  %v15758_v14 = vld [vmem:[#allocation42_spill] sm:$0xff]  ;;  %v10131_v29 = vld [vmem:[#allocation2 + $0x314] ss:$8 sps:$4 sm:$0xff]   ;;  %v10129_v22 = vld [vmem:[#allocation2 + $0x310] ss:$8 sps:$4 sm:$0xff]  }
 0x468   :  { %v14248_v4 = vadd.f32 %v5133_v37, %v13873_v34  ;;  %5655 = vmatmul.mubr.bf16.gmra.mrb[168].mxu1 %v15751_v0  ;;  %v15757_v34 = vld [vmem:[#allocation78_spill] sm:$0xff]  ;;  %v15759_v37 = vld [vmem:[#allocation40_spill] sm:$0xff] }
 0x469   :  { %5664 = vmatprep.mubr.bf16.mxu1 %v15755_v7  ;;  %v15760_v0 = vpack.c.bf16 %v15758_v14, %v15759_v37  ;;  %v15766_v7 = vpack.c.bf16 %v13805_v59, %v13802_v28  ;;  %v15773_v28 = vld [vmem:[#allocation92_spill] sm:$0xff]  ;;  %v15774_v59 = vpack.c.bf16 %v13853_v12, %v13850_v57  ;;  %v10126_v5 = vld [vmem:[#allocation2 + $0x300] ss:$8 sps:$4 sm:$0xff]   ;;  %v15781_v37 = vld [vmem:[#allocation95_spill] sm:$0xff] }
 0x46a   :  { %7142 = vmatmul.mubr.bf16.gmra.mrb[168].mxu0 %v15754_v49  ;;  %v6033_v55 = vpack.c.bf16 %v14248_v4, %v14245_v1  ;;  %v15762_v49 = vpack.c.bf16 %v13779_v38, %v13776_v6  ;;  %v15768_v6 = vpack.c.bf16 %v13799_v60, %v13796_v9  ;;  %v15769_v38 = vld [vmem:[#allocation88_spill] sm:$0xff]  ;;  %v15775_v9 = vld [vmem:[#allocation94_spill] sm:$0xff]  ;;  %v15776_v60 = vpack.c.bf16 %v13847_v39, %v13844_v44 }
 0x46b   :  { %7151 = vmatprep.mubr.bf16.mxu0 %v15756_v33  ;;  %v15767_v33 = vld [vmem:[#allocation86_spill] sm:$0xff]  ;;  %v15783_v57 = vld [vmem:[#allocation44_spill] sm:$0xff] }
 0x46c   :  { %v15786_v44 = vld [vmem:[#allocation56_spill] sm:$0xff]  ;;  %v10177_v1 = vld [vmem:[%s14776_s5 + $0x8] sm:$0xff]  }
 0x470   :  { %5665 = vmatmul.mubr.bf16.gmra.mrb[172].mxu1 %v15757_v34  ;;  %v15779_v34 = vld [vmem:[#allocation48_spill] sm:$0xff] }
 0x471   :  { %5674 = vmatprep.mubr.bf16.mxu1 %v15761_v61  ;;  %v15770_v61 = vpack.c.bf16 %v13829_v48, %v13826_v63  ;;  %v15777_v63 = vmov 0   ;;  %v15778_v48 = vld [vmem:[#allocation50_spill] sm:$0xff] }
 0x472   :  { %7152 = vmatmul.mubr.bf16.gmra.mrb[172].mxu0 %v15760_v0  ;;  %v15780_v14 = vpack.c.bf16 %v15778_v48, %v15779_v34  ;;  %v15782_v0 = vld [vmem:[#allocation46_spill] sm:$0xff]  ;;  %v15795_v48 = vld [vmem:[#allocation97_spill] sm:$0xff]  ;;  %v15796_v34 = vld [vmem:[#allocation99_spill] sm:$0xff] }
 0x473   :  { %7161 = vmatprep.mubr.bf16.mxu0 %v15762_v49  ;;  %v15784_v12 = vpack.c.bf16 %v15782_v0, %v15783_v57  ;;  %v15785_v49 = vld [vmem:[#allocation58_spill] sm:$0xff] }
 0x474   :  { %v15787_v39 = vpack.c.bf16 %v15785_v49, %v15786_v44  ;;  %v10146_v0 = vld [vmem:[#allocation2 + $0x364] ss:$8 sps:$4 sm:$0xff]   ;;  %v10144_v57 = vld [vmem:[#allocation2 + $0x360] ss:$8 sps:$4 sm:$0xff]   ;;  %v15801_v44 = vld [vmem:[#allocation79_spill] sm:$0xff] }
 0x475   :  { %v15800_v49 = vld [vmem:[#allocation101_spill] sm:$0xff] }
 0x478   :  { %5675 = vmatmul.mubr.bf16.gmra.mrb[176].mxu1 %v15763_v25  ;;  %v10134_v25 = vld [vmem:[#allocation2 + $0x324] ss:$8 sps:$4 sm:$0xff]  }
 0x479   :  { %5684 = vmatprep.mubr.bf16.mxu1 %v15765_v2  ;;  %v10137_v2 = vld [vmem:[#allocation2 + $0x334] ss:$8 sps:$4 sm:$0xff]  }
 0x47a   :  { %7162 = vmatmul.mubr.bf16.gmra.mrb[176].mxu0 %v15764_v50  ;;  %v10132_v50 = vld [vmem:[#allocation2 + $0x320] ss:$8 sps:$4 sm:$0xff]  }
 0x47b   :  { %7171 = vmatprep.mubr.bf16.mxu0 %v15766_v7  ;;  %v15788_v7 = vld [vmem:[#allocation96_spill] sm:$0xff] }
 0x480   :  { %5685 = vmatmul.mubr.bf16.gmra.mrb[180].mxu1 %v15767_v33  ;;  %v15789_v33 = vld [vmem:[#allocation54_spill] sm:$0xff] }
 0x481   :  { %5694 = vmatprep.mubr.bf16.mxu1 %v15769_v38 }
 0x482   :  { %7172 = vmatmul.mubr.bf16.gmra.mrb[180].mxu0 %v15768_v6  ;;  %v15790_v6 = vld [vmem:[#allocation52_spill] sm:$0xff] }
 0x483   :  { %7181 = vmatprep.mubr.bf16.mxu0 %v15770_v61  ;;  %v15791_v38 = vpack.c.bf16 %v15789_v33, %v15790_v6  ;;  %v15792_v61 = vld [vmem:[#allocation98_spill] sm:$0xff]  ;;  %v15806_v33 = vpack.c.bf16 %v13975_v23, %v13972_v43  ;;  %v15809_v23 = vpack.c.bf16 %v13999_v31, %v13996_v13  ;;  %v15810_v43 = vpack.c.bf16 %v14032_v8, %v14029_v45  ;;  %v10165_v45 = vld [vmem:[#allocation2 + $0x3d0] ss:$8 sps:$4 sm:$0xff]  }
 0x484   :  { %v10158_v6 = vld [vmem:[#allocation2 + $0x3a4] ss:$8 sps:$4 sm:$0xff]   ;;  %v15812_v31 = vpack.c.bf16 %v14026_v20, %v14023_v11  ;;  %v15813_v13 = vpack.c.bf16 %v14056_v32, %v14053_v51  ;;  %v15815_v11 = vpack.c.bf16 %v14050_v41, %v14047_v58  ;;  %v15816_v20 = vpack.c.bf16 %v14080_v10, %v14077_v40  ;;  %v15817_v51 = vld [vmem:[#allocation119_spill] sm:$0xff]  ;;  %v15822_v40 = vld [vmem:[#allocation8_spill] sm:$0xff] }
 0x485   :  { %v10170_v8 = vld [vmem:[#allocation2 + $0x3e4] ss:$8 sps:$4 sm:$0xff]   ;;  %v15818_v32 = vpack.c.bf16 %v14074_v62, %v14071_v54  ;;  %v15819_v58 = vpack.c.bf16 %v14104_v36, %v14101_v19  ;;  %v15820_v41 = vld [vmem:[#allocation123_spill] sm:$0xff]  ;;  %v15827_v54 = vld [vmem:[#allocation128_spill] sm:$0xff] }
 0x486   :  { %v15828_v62 = vld [vmem:[#allocation77_spill] sm:$0xff]  ;;  %v15831_v36 = vld [vmem:[#allocation15_spill] sm:$0xff] }
 0x488   :  { %5695 = vmatmul.mubr.bf16.gmra.mrb[184].mxu1 %v15771_v16  ;;  %v15793_v16 = vld [vmem:[#allocation100_spill] sm:$0xff] }
 0x489   :  { %5704 = vmatprep.mubr.bf16.mxu1 %v15773_v28  ;;  %v10135_v28 = vld [vmem:[#allocation2 + $0x330] ss:$8 sps:$4 sm:$0xff]  }
 0x48a   :  { %7182 = vmatmul.mubr.bf16.gmra.mrb[184].mxu0 %v15772_v56  ;;  %v15794_v56 = vpack.c.bf16 %v15792_v61, %v15793_v16  ;;  %v10161_v61 = vld [vmem:[#allocation2 + $0x3b4] ss:$8 sps:$4 sm:$0xff]  }
 0x48b   :  { %7191 = vmatprep.mubr.bf16.mxu0 %v15774_v59  ;;  %v10140_v59 = vld [vmem:[#allocation2 + $0x344] ss:$8 sps:$4 sm:$0xff]   ;;  %v15808_v16 = vld [vmem:[#allocation111_spill] sm:$0xff] }
 0x490   :  { %5705 = vmatmul.mubr.bf16.gmra.mrb[188].mxu1 %v15775_v9  ;;  %v10138_v9 = vld [vmem:[#allocation2 + $0x340] ss:$8 sps:$4 sm:$0xff]  }
 0x491   :  { %5747 = vmatprep.mubr.bf16.mxu1 %v15777_v63 }
 0x492   :  { %7192 = vmatmul.mubr.bf16.gmra.mrb[188].mxu0 %v15776_v60  ;;  %v10143_v60 = vld [vmem:[#allocation2 + $0x354] ss:$8 sps:$4 sm:$0xff]  }
 0x493   :  { %7234 = vmatprep.mubr.bf16.mxu0 %v15780_v14  ;;  %v15797_v14 = vld [vmem:[#allocation102_spill] sm:$0xff] }
 0x498   :  { %8393 = vmatmul.mubr.msk.bf16.vlgmr.msra.gmra.mrb[128].mxu1 %vm2771_vm0, %v15781_v37  ;;  %v10141_v37 = vld [vmem:[#allocation2 + $0x350] ss:$8 sps:$4 sm:$0xff]  }
 0x499   :  { %5757 = vmatprep.mubr.bf16.mxu1 %v15777_v63 }
 0x49a   :  { %7235 = vmatmul.mubr.bf16.vlgmr.msra.gmra.mrb[128].mxu0 %v15784_v12  ;;  %v10149_v12 = vld [vmem:[#allocation2 + $0x374] ss:$8 sps:$4 sm:$0xff]  }
 0x49b   :  { %7244 = vmatprep.mubr.bf16.mxu0 %v15787_v39  ;;  %7396 = vmatpush1.bf16.msra.mxu0 %v10126_v5  ;;  %v15798_v5 = vpack.c.bf16 %v15796_v34, %v15797_v14  ;;  %v15802_v39 = vld [vmem:[#allocation104_spill] sm:$0xff]  ;;  %v15824_v34 = vld [vmem:[#allocation109_spill] sm:$0xff] }
 0x49c   :  { %7397 = vmatprep.subr.bf16.mxu0 %v10131_v29  ;;  %v15799_v29 = vpack.c.bf16 %v13957_v42, %v13954_v27  ;;  %v15804_v27 = vpack.c.bf16 %v13981_v53, %v13978_v52  ;;  %v10147_v42 = vld [vmem:[#allocation2 + $0x370] ss:$8 sps:$4 sm:$0xff]   ;;  %v15807_v52 = vpack.c.bf16 %v14005_v3, %v14002_v17  ;;  %v10164_v3 = vld [vmem:[#allocation2 + $0x3c4] ss:$8 sps:$4 sm:$0xff]  }
 0x49d   :  { %v10153_v53 = vld [vmem:[#allocation2 + $0x390] ss:$8 sps:$4 sm:$0xff]  }
 0x49e   :  { %v10159_v17 = vld [vmem:[#allocation2 + $0x3b0] ss:$8 sps:$4 sm:$0xff]  }
 0x49f   :  { %7398 = vmatpush1.bf16.msra.mxu0 %v10129_v22  ;;  %v15803_v22 = vpack.c.bf16 %v15801_v44, %v15802_v39  ;;  %v15825_v14 = vld [vmem:[#allocation12_spill] sm:$0xff]  ;;  %v15836_v39 = vld [vmem:[#allocation107_spill] sm:$0xff] }
 0x4a0   :  { %7399 = vmatprep.subr.bf16.mxu0 %v10134_v25  ;;  %8394 = vmatmul.mubr.msk.bf16.gmra.mrb[132].mxu1 %vm2771_vm0, %v15788_v7  ;;  %v10152_v25 = vld [vmem:[#allocation2 + $0x384] ss:$8 sps:$4 sm:$0xff]   ;;  %v15835_v44 = vld [vmem:[#allocation108_spill] sm:$0xff] }
 0x4a1   :  { %5767 = vmatprep.mubr.bf16.mxu1 %v15777_v63  ;;  %v15805_v7 = vld [vmem:[#allocation106_spill] sm:$0xff] }
 0x4a2   :  { %7245 = vmatmul.mubr.bf16.gmra.mrb[132].mxu0 %v15791_v38  ;;  %v10156_v38 = vld [vmem:[#allocation2 + $0x3a0] ss:$8 sps:$4 sm:$0xff]  }
 0x4a3   :  { %7254 = vmatprep.mubr.bf16.mxu0 %v15794_v56  ;;  %7400 = vmatpush1.bf16.msra.mxu0 %v10132_v50  ;;  %v10150_v50 = vld [vmem:[#allocation2 + $0x380] ss:$8 sps:$4 sm:$0xff]  }
 0x4a4   :  { %7401 = vmatprep.subr.bf16.mxu0 %v10137_v2  ;;  %v10155_v2 = vld [vmem:[#allocation2 + $0x394] ss:$8 sps:$4 sm:$0xff]   ;;  %v10162_v56 = vld [vmem:[#allocation2 + $0x3c0] ss:$8 sps:$4 sm:$0xff]  }
 0x4a7   :  { %7402 = vmatpush1.bf16.msra.mxu0 %v10135_v28  ;;  %v10167_v28 = vld [vmem:[#allocation2 + $0x3d4] ss:$8 sps:$4 sm:$0xff]  }
 0x4a8   :  { %7403 = vmatprep.subr.bf16.mxu0 %v10140_v59  ;;  %8395 = vmatmul.mubr.msk.bf16.gmra.mrb[136].mxu1 %vm2771_vm0, %v15795_v48  ;;  %v15811_v59 = vld [vmem:[#allocation116_spill] sm:$0xff]  ;;  %v15821_v48 = vld [vmem:[#allocation10_spill] sm:$0xff] }
 0x4a9   :  { %5777 = vmatprep.mubr.bf16.mxu1 %v15777_v63  ;;  %v15823_v10 = vpack.c.bf16 %v15821_v48, %v15822_v40 }
 0x4aa   :  { %7255 = vmatmul.mubr.bf16.gmra.mrb[136].mxu0 %v15798_v5  ;;  %v15826_v5 = vpack.c.bf16 %v15824_v34, %v15825_v14 }
 0x4ab   :  { %7264 = vmatprep.mubr.bf16.mxu0 %v15799_v29  ;;  %7404 = vmatpush1.bf16.msra.mxu0 %v10138_v9  ;;  %v10168_v9 = vld [vmem:[#allocation2 + $0x3e0] ss:$8 sps:$4 sm:$0xff]   ;;  %v15829_v29 = vld [vmem:[#allocation103_spill] sm:$0xff] }
 0x4ac   :  { %7405 = vmatprep.subr.bf16.mxu0 %v10143_v60  ;;  %v15814_v60 = vld [vmem:[#allocation118_spill] sm:$0xff]  ;;  %v15830_v19 = vpack.c.bf16 %v15828_v62, %v15829_v29  ;;  %v10186_v29 = vld [vmem:[%s14776_s5 + $0x70] sm:$0xff]  }
 0x4af   :  { %7406 = vmatpush1.bf16.msra.mxu0 %v10141_v37  ;;  %v15832_v37 = vld [vmem:[#allocation105_spill] sm:$0xff] }
 0x4b0   :  { %7407 = vmatprep.subr.bf16.mxu0 %v10146_v0  ;;  %8396 = vmatmul.mubr.msk.bf16.gmra.mrb[140].mxu1 %vm2771_vm0, %v15800_v49  ;;  %v15833_v0 = vpack.c.bf16 %v15831_v36, %v15832_v37  ;;  %v15834_v49 = vld [vmem:[#allocation130_spill] sm:$0xff]  ;;  %v10187_v37 = vld [vmem:[%s14776_s5 + $0x30] sm:$0xff]  }
 0x4b1   :  { %5787 = vmatprep.mubr.bf16.mxu1 %v15777_v63 }
 0x4b2   :  { %7265 = vmatmul.mubr.bf16.gmra.mrb[140].mxu0 %v15803_v22  ;;  %v15837_v22 = vpack.c.bf16 %v15835_v44, %v15836_v39 }
 0x4b3   :  { %7274 = vmatprep.mubr.bf16.mxu0 %v15804_v27  ;;  %7408 = vmatpush1.bf16.msra.mxu0 %v10144_v57  ;;  %v10171_v57 = vld [vmem:[#allocation2 + $0x3f0] ss:$8 sps:$4 sm:$0xff]   ;;  %v15838_v27 = vpack.c.bf16 %v14176_v35, %v14173_v18  ;;  %v15849_v35 = vpack.c.bf16 %v14224_v24, %v14221_v26  ;;  %v15853_v26 = vpack.c.bf16 %v14242_v30, %v14239_v47  ;;  %v10174_v24 = vld [vmem:[%s14776_s5 + $0x40] sm:$0xff]  }
 0x4b4   :  { %7409 = vmatprep.subr.bf16.mxu0 %v10149_v12  ;;  %v10173_v12 = vld [vmem:[#allocation2 + $0x3f4] ss:$8 sps:$4 sm:$0xff]   ;;  %8554 = vmatprep.subr.bf16.mxu1 %v10174_v24 }
 0x4b5   :  { %v15854_v30 = vld [vmem:[#allocation148_spill] sm:$0xff] }
 0x4b6   :  { %v797_v47 = vsub.s32 6, %v15854_v30  ;;  %v801_v4 = vsub.s32 7, %v15854_v30 }
 0x4b7   :  { %7410 = vmatpush1.bf16.msra.mxu0 %v10147_v42  ;;  %v15839_v42 = vld [vmem:[#allocation131_spill] sm:$0xff] }
 0x4b8   :  { %7411 = vmatprep.subr.bf16.mxu0 %v10152_v25  ;;  %8397 = vmatmul.mubr.msk.bf16.gmra.mrb[144].mxu1 %vm2771_vm0, %v15805_v7  ;;  %v15840_v25 = vld [vmem:[#allocation112_spill] sm:$0xff]  ;;  %v15843_v7 = vld [vmem:[#allocation110_spill] sm:$0xff] }
 0x4b9   :  { %5797 = vmatprep.mubr.bf16.mxu1 %v15777_v63 }
 0x4ba   :  { %7275 = vmatmul.mubr.bf16.gmra.mrb[144].mxu0 %v15806_v33  ;;  %v15844_v33 = vpack.c.bf16 %v14200_v46, %v15843_v7  ;;  %v15851_v46 = vpack.c.bf16 %v14218_v21, %v14215_v15  ;;  %v10175_v21 = vld [vmem:[%s14776_s5] sm:$0xff]   ;;  %v10176_v15 = vld [vmem:[%s14776_s5 + $0x48] sm:$0xff]  }
 0x4bb   :  { %7284 = vmatprep.mubr.bf16.mxu0 %v15807_v52  ;;  %7412 = vmatpush1.bf16.msra.mxu0 %v10150_v50  ;;  %v15841_v50 = vld [vmem:[#allocation114_spill] sm:$0xff]  ;;  %v15845_v52 = vld [vmem:[#allocation132_spill] sm:$0xff] }
 0x4bc   :  { %7413 = vmatprep.subr.bf16.mxu0 %v10155_v2  ;;  %v15842_v2 = vpack.c.bf16 %v15840_v25, %v15841_v50  ;;  %8555 = vmatpush3.bf16.msra.mxu1 %v10175_v21 }
 0x4bd   :  { %8556 = vmatprep.subr.bf16.mxu1 %v10176_v15 }
 0x4bf   :  { %7414 = vmatpush1.bf16.msra.mxu0 %v10153_v53  ;;  %v15846_v53 = vld [vmem:[#allocation113_spill] sm:$0xff] }
 0x4c0   :  { %7415 = vmatprep.subr.bf16.mxu0 %v10158_v6  ;;  %8398 = vmatmul.mubr.msk.bf16.gmra.mrb[148].mxu1 %vm2771_vm0, %v15808_v16  ;;  %v15847_v6 = vld [vmem:[#allocation17_spill] sm:$0xff] }
 0x4c1   :  { %5807 = vmatprep.mubr.bf16.mxu1 %v15777_v63  ;;  %v15848_v18 = vpack.c.bf16 %v15846_v53, %v15847_v6  ;;  %8557 = vmatpush3.bf16.msra.mxu1 %v10177_v1 }
 0x4c2   :  { %7285 = vmatmul.mubr.bf16.gmra.mrb[148].mxu0 %v15809_v23 }
 0x4c3   :  { %7294 = vmatprep.mubr.bf16.mxu0 %v15810_v43  ;;  %7416 = vmatpush1.bf16.msra.mxu0 %v10156_v38  ;;  %v15850_v38 = vld [vmem:[#allocation133_spill] sm:$0xff] }
 0x4c4   :  { %7417 = vmatprep.subr.bf16.mxu0 %v10161_v61  ;;  %v15852_v61 = vld [vmem:[#allocation134_spill] sm:$0xff] }
 0x4c7   :  { %7418 = vmatpush1.bf16.msra.mxu0 %v10159_v17  ;;  %v10178_v17 = vld [vmem:[%s14776_s5 + $0x50] sm:$0xff]  }
 0x4c8   :  { %7419 = vmatprep.subr.bf16.mxu0 %v10164_v3  ;;  %8399 = vmatmul.mubr.msk.bf16.gmra.mrb[152].mxu1 %vm2771_vm0, %v15811_v59  ;;  %v10179_v3 = vld [vmem:[%s14776_s5 + $0x10] sm:$0xff]  }
 0x4c9   :  { %5817 = vmatprep.mubr.bf16.mxu1 %v15777_v63  ;;  %8558 = vmatprep.subr.bf16.mxu1 %v10178_v17 }
 0x4ca   :  { %7295 = vmatmul.mubr.bf16.gmra.mrb[152].mxu0 %v15812_v31  ;;  %8559 = vmatpush3.bf16.msra.mxu1 %v10179_v3 }
 0x4cb   :  { %7304 = vmatprep.mubr.bf16.mxu0 %v15813_v13  ;;  %7420 = vmatpush1.bf16.msra.mxu0 %v10162_v56  ;;  %v10180_v56 = vld [vmem:[%s14776_s5 + $0x58] sm:$0xff]  }
 0x4cc   :  { %7421 = vmatprep.subr.bf16.mxu0 %v10167_v28  ;;  %8560 = vmatprep.subr.bf16.mxu1 %v10180_v56 }
 0x4cf   :  { %7422 = vmatpush1.bf16.msra.mxu0 %v10165_v45 }
 0x4d0   :  { %7423 = vmatprep.subr.bf16.mxu0 %v10170_v8  ;;  %8400 = vmatmul.mubr.msk.bf16.gmra.mrb[156].mxu1 %vm2771_vm0, %v15814_v60 }
 0x4d1   :  { %5827 = vmatprep.mubr.bf16.mxu1 %v15777_v63 }
 0x4d2   :  { %7305 = vmatmul.mubr.bf16.gmra.mrb[156].mxu0 %v15815_v11  ;;  %v10182_v11 = vld [vmem:[%s14776_s5 + $0x60] sm:$0xff]  }
 0x4d3   :  { %7314 = vmatprep.mubr.bf16.mxu0 %v15816_v20  ;;  %7424 = vmatpush1.bf16.msra.mxu0 %v10168_v9  ;;  %v10181_v9 = vld [vmem:[%s14776_s5 + $0x18] sm:$0xff]  }
 0x4d4   :  { %7425 = vmatprep.subr.bf16.mxu0 %v10173_v12  ;;  %8561 = vmatpush3.bf16.msra.mxu1 %v10181_v9 }
 0x4d5   :  { %8562 = vmatprep.subr.bf16.mxu1 %v10182_v11 }
 0x4d7   :  { %7426 = vmatpush1.bf16.msra.mxu0 %v10171_v57  ;;  %v10188_v57 = vld [vmem:[%s14776_s5 + $0x78] sm:$0xff]  }
 0x4d8   :  { %8401 = vmatmul.mubr.msk.bf16.gmra.mrb[160].mxu1 %vm2771_vm0, %v15817_v51 }
 0x4d9   :  { %5837 = vmatprep.mubr.bf16.mxu1 %v15777_v63 }
 0x4da   :  { %7315 = vmatmul.mubr.bf16.gmra.mrb[160].mxu0 %v15818_v32  ;;  %v10183_v32 = vld [vmem:[%s14776_s5 + $0x20] sm:$0xff]  }
 0x4db   :  { %7324 = vmatprep.mubr.bf16.mxu0 %v15819_v58  ;;  %8563 = vmatpush3.bf16.msra.mxu1 %v10183_v32 }
 0x4e0   :  { %8402 = vmatmul.mubr.msk.bf16.gmra.mrb[164].mxu1 %vm2771_vm0, %v15820_v41  ;;  %v10184_v41 = vld [vmem:[%s14776_s5 + $0x68] sm:$0xff]  }
 0x4e1   :  { %5847 = vmatprep.mubr.bf16.mxu1 %v15777_v63  ;;  %8564 = vmatprep.subr.bf16.mxu1 %v10184_v41 }
 0x4e2   :  { %7325 = vmatmul.mubr.bf16.gmra.mrb[164].mxu0 %v15823_v10 }
 0x4e3   :  { %7334 = vmatprep.mubr.bf16.mxu0 %v15826_v5 }
 0x4e8   :  { %8403 = vmatmul.mubr.msk.bf16.gmra.mrb[168].mxu1 %vm2771_vm0, %v15827_v54  ;;  %v10185_v54 = vld [vmem:[%s14776_s5 + $0x28] sm:$0xff]  }
 0x4e9   :  { %5857 = vmatprep.mubr.bf16.mxu1 %v15777_v63  ;;  %8565 = vmatpush3.bf16.msra.mxu1 %v10185_v54 }
 0x4ea   :  { %7335 = vmatmul.mubr.bf16.gmra.mrb[168].mxu0 %v15830_v19  ;;  %8566 = vmatprep.subr.bf16.mxu1 %v10186_v29 }
 0x4eb   :  { %7344 = vmatprep.mubr.bf16.mxu0 %v15833_v0 }
 0x4ed   :  { %8567 = vmatpush3.bf16.msra.mxu1 %v10187_v37 }
 0x4ee   :  { %8568 = vmatprep.subr.bf16.mxu1 %v10188_v57 }
 0x4f0   :  { %8404 = vmatmul.mubr.msk.bf16.gmra.mrb[172].mxu1 %vm2771_vm0, %v15834_v49 }
 0x4f1   :  { %5867 = vmatprep.mubr.bf16.mxu1 %v15777_v63 }
 0x4f2   :  { %7345 = vmatmul.mubr.bf16.gmra.mrb[172].mxu0 %v15837_v22 }
 0x4f3   :  { %7354 = vmatprep.mubr.bf16.mxu0 %v15838_v27 }
 0x4f8   :  { %8405 = vmatmul.mubr.msk.bf16.gmra.mrb[176].mxu1 %vm2771_vm0, %v15839_v42  ;;  %v10189_v42 = vld [vmem:[%s14776_s5 + $0x38] sm:$0xff]  }
 0x4f9   :  { %5877 = vmatprep.mubr.bf16.mxu1 %v15777_v63  ;;  %8569 = vmatpush3.bf16.msra.mxu1 %v10189_v42 }
 0x4fa   :  { %7355 = vmatmul.mubr.bf16.gmra.mrb[176].mxu0 %v15842_v2 }
 0x4fb   :  { %7364 = vmatprep.mubr.bf16.mxu0 %v15844_v33 }
 0x500   :  { %8406 = vmatmul.mubr.msk.bf16.gmra.mrb[180].mxu1 %vm2771_vm0, %v15845_v52 }
 0x501   :  { %5887 = vmatprep.mubr.bf16.mxu1 %v15777_v63 }
 0x502   :  { %7365 = vmatmul.mubr.bf16.gmra.mrb[180].mxu0 %v15848_v18 }
 0x503   :  { %7374 = vmatprep.mubr.bf16.mxu0 %v15849_v35 }
 0x508   :  { %8407 = vmatmul.mubr.msk.bf16.gmra.mrb[184].mxu1 %vm2771_vm0, %v15850_v38 }
 0x509   :  { %5897 = vmatprep.mubr.bf16.mxu1 %v15777_v63 }
 0x50a   :  { %7375 = vmatmul.mubr.bf16.gmra.mrb[184].mxu0 %v15851_v46 }
 0x50b   :  { %7384 = vmatprep.mubr.bf16.mxu0 %v6033_v55  ;;  %v10191_v55 = vld [vmem:[%s14773_s2] sm:$0xff] }
 0x50c   :  { %v14459_v63 = vrot.slane %v10191_v55, %v797_v47  ;;  %v14461_v23 = vrot.slane %v10191_v55, %v801_v4 }
 0x510   :  { %8408 = vmatmul.mubr.msk.bf16.gmra.mrb[188].mxu1 %vm2771_vm0, %v15852_v61 }
 0x512   :  { %7385 = vmatmul.mubr.bf16.gmra.mrb[188].mxu0 %v15853_v26 }
 0x56b   :  { %v5749_v16 = vpop.f32.mrb[128].mxu1 }
 0x56c   :  { %v5751_v43 = vpop.f32.mrb[129].mxu1  ;;  %v8954_v59 = vadd.f32 %v5749_v16, %v14459_v63 }
 0x56d   :  { %v5753_v28 = vpop.f32.mrb[130].mxu1  ;;  %v8955_v45 = vadd.f32 %v5751_v43, %v14461_v23 }
 0x56e   :  { %v8956_v31 = vadd.f32 %v5753_v28, %v14459_v63  ;;  %v5755_v13 = vpop.f32.mrb[131].mxu1 }
 0x56f   :  { %v8957_v8 = vadd.f32 %v5755_v13, %v14461_v23 }
 0x570   :  { %v5914_v60 = vpack.c.bf16 %v8956_v31, %v8954_v59 }
 0x571   :  { %v5915_v20 = vpack.c.bf16 %v8957_v8, %v8955_v45 }
 0x573   :  { %v5759_v51 = vpop.f32.mrb[132].mxu1  ;;  %7427 = vmatprep.mubr.bf16.mxu0 %v5915_v20 }
 0x574   :  { %v5761_v58 = vpop.f32.mrb[133].mxu1  ;;  %7428 = vmatmul.mubr.bf16.vlgmr.msra.gmra.mrb[128].mxu0 %v5914_v60  ;;  %v8958_v40 = vadd.f32 %v5759_v51, %v14459_v63 }
 0x575   :  { %v5763_v48 = vpop.f32.mrb[134].mxu1  ;;  %v8959_v14 = vadd.f32 %v5761_v58, %v14461_v23 }
 0x576   :  { %v8960_v10 = vadd.f32 %v5763_v48, %v14459_v63  ;;  %v5765_v34 = vpop.f32.mrb[135].mxu1 }
 0x577   :  { %v8961_v5 = vadd.f32 %v5765_v34, %v14461_v23 }
 0x578   :  { %v5922_v62 = vpack.c.bf16 %v8960_v10, %v8958_v40 }
 0x579   :  { %v5923_v19 = vpack.c.bf16 %v8961_v5, %v8959_v14 }
 0x57b   :  { %v5769_v36 = vpop.f32.mrb[136].mxu1  ;;  %7437 = vmatprep.mubr.bf16.mxu0 %v5923_v19 }
 0x57c   :  { %v5771_v0 = vpop.f32.mrb[137].mxu1  ;;  %7438 = vmatmul.mubr.bf16.gmra.mrb[132].mxu0 %v5922_v62  ;;  %v8962_v49 = vadd.f32 %v5769_v36, %v14459_v63 }
 0x57d   :  { %v5773_v12 = vpop.f32.mrb[138].mxu1  ;;  %v8963_v22 = vadd.f32 %v5771_v0, %v14461_v23 }
 0x57e   :  { %v8964_v44 = vadd.f32 %v5773_v12, %v14459_v63  ;;  %v5775_v39 = vpop.f32.mrb[139].mxu1 }
 0x57f   :  { %v8965_v27 = vadd.f32 %v5775_v39, %v14461_v23 }
 0x580   :  { %v5930_v25 = vpack.c.bf16 %v8964_v44, %v8962_v49 }
 0x581   :  { %v5931_v50 = vpack.c.bf16 %v8965_v27, %v8963_v22 }
 0x583   :  { %v5779_v2 = vpop.f32.mrb[140].mxu1  ;;  %7447 = vmatprep.mubr.bf16.mxu0 %v5931_v50 }
 0x584   :  { %v5781_v7 = vpop.f32.mrb[141].mxu1  ;;  %7448 = vmatmul.mubr.bf16.gmra.mrb[136].mxu0 %v5930_v25  ;;  %v8966_v52 = vadd.f32 %v5779_v2, %v14459_v63 }
 0x585   :  { %v5783_v33 = vpop.f32.mrb[142].mxu1  ;;  %v8967_v18 = vadd.f32 %v5781_v7, %v14461_v23 }
 0x586   :  { %v8968_v53 = vadd.f32 %v5783_v33, %v14459_v63  ;;  %v5785_v6 = vpop.f32.mrb[143].mxu1 }
 0x587   :  { %v8969_v35 = vadd.f32 %v5785_v6, %v14461_v23 }
 0x588   :  { %v5938_v38 = vpack.c.bf16 %v8968_v53, %v8966_v52 }
 0x589   :  { %v5939_v46 = vpack.c.bf16 %v8969_v35, %v8967_v18 }
 0x58b   :  { %v5789_v61 = vpop.f32.mrb[144].mxu1  ;;  %7457 = vmatprep.mubr.bf16.mxu0 %v5939_v46 }
 0x58c   :  { %v5791_v26 = vpop.f32.mrb[145].mxu1  ;;  %7458 = vmatmul.mubr.bf16.gmra.mrb[140].mxu0 %v5938_v38  ;;  %v8970_v21 = vadd.f32 %v5789_v61, %v14459_v63 }
 0x58d   :  { %v5793_v24 = vpop.f32.mrb[146].mxu1  ;;  %v8971_v47 = vadd.f32 %v5791_v26, %v14461_v23 }
 0x58e   :  { %v8972_v15 = vadd.f32 %v5793_v24, %v14459_v63  ;;  %v5795_v1 = vpop.f32.mrb[147].mxu1 }
 0x58f   :  { %v8973_v4 = vadd.f32 %v5795_v1, %v14461_v23 }
 0x590   :  { %v5946_v55 = vpack.c.bf16 %v8972_v15, %v8970_v21 }
 0x591   :  { %v5947_v16 = vpack.c.bf16 %v8973_v4, %v8971_v47 }
 0x593   :  { %v5799_v43 = vpop.f32.mrb[148].mxu1  ;;  %7467 = vmatprep.mubr.bf16.mxu0 %v5947_v16 }
 0x594   :  { %v5801_v17 = vpop.f32.mrb[149].mxu1  ;;  %7468 = vmatmul.mubr.bf16.gmra.mrb[144].mxu0 %v5946_v55  ;;  %v8974_v56 = vadd.f32 %v5799_v43, %v14459_v63 }
 0x595   :  { %v5803_v3 = vpop.f32.mrb[150].mxu1  ;;  %v8975_v31 = vadd.f32 %v5801_v17, %v14461_v23 }
 0x596   :  { %v8976_v28 = vadd.f32 %v5803_v3, %v14459_v63  ;;  %v5805_v59 = vpop.f32.mrb[151].mxu1 }
 0x597   :  { %v8977_v13 = vadd.f32 %v5805_v59, %v14461_v23 }
 0x598   :  { %v5954_v45 = vpack.c.bf16 %v8976_v28, %v8974_v56 }
 0x599   :  { %v5955_v8 = vpack.c.bf16 %v8977_v13, %v8975_v31 }
 0x59b   :  { %v5809_v9 = vpop.f32.mrb[152].mxu1  ;;  %7477 = vmatprep.mubr.bf16.mxu0 %v5955_v8 }
 0x59c   :  { %v5811_v60 = vpop.f32.mrb[153].mxu1  ;;  %7478 = vmatmul.mubr.bf16.gmra.mrb[148].mxu0 %v5954_v45  ;;  %v8978_v20 = vadd.f32 %v5809_v9, %v14459_v63 }
 0x59d   :  { %v5813_v11 = vpop.f32.mrb[154].mxu1  ;;  %v8979_v58 = vadd.f32 %v5811_v60, %v14461_v23 }
 0x59e   :  { %v8980_v51 = vadd.f32 %v5813_v11, %v14459_v63  ;;  %v5815_v32 = vpop.f32.mrb[155].mxu1 }
 0x59f   :  { %v8981_v41 = vadd.f32 %v5815_v32, %v14461_v23 }
 0x5a0   :  { %v5962_v48 = vpack.c.bf16 %v8980_v51, %v8978_v20 }
 0x5a1   :  { %v5963_v40 = vpack.c.bf16 %v8981_v41, %v8979_v58 }
 0x5a3   :  { %v5819_v10 = vpop.f32.mrb[156].mxu1  ;;  %7487 = vmatprep.mubr.bf16.mxu0 %v5963_v40 }
 0x5a4   :  { %v5821_v34 = vpop.f32.mrb[157].mxu1  ;;  %7488 = vmatmul.mubr.bf16.gmra.mrb[152].mxu0 %v5962_v48  ;;  %v8982_v5 = vadd.f32 %v5819_v10, %v14459_v63 }
 0x5a5   :  { %v5823_v14 = vpop.f32.mrb[158].mxu1  ;;  %v8983_v29 = vadd.f32 %v5821_v34, %v14461_v23 }
 0x5a6   :  { %v8984_v54 = vadd.f32 %v5823_v14, %v14459_v63  ;;  %v5825_v62 = vpop.f32.mrb[159].mxu1 }
 0x5a7   :  { %v8985_v19 = vadd.f32 %v5825_v62, %v14461_v23 }
 0x5a8   :  { %v5970_v36 = vpack.c.bf16 %v8984_v54, %v8982_v5 }
 0x5a9   :  { %v5971_v37 = vpack.c.bf16 %v8985_v19, %v8983_v29 }
 0x5ab   :  { %v5829_v0 = vpop.f32.mrb[160].mxu1  ;;  %7497 = vmatprep.mubr.bf16.mxu0 %v5971_v37 }
 0x5ac   :  { %v5831_v57 = vpop.f32.mrb[161].mxu1  ;;  %7498 = vmatmul.mubr.bf16.gmra.mrb[156].mxu0 %v5970_v36  ;;  %v8986_v49 = vadd.f32 %v5829_v0, %v14459_v63 }
 0x5ad   :  { %v5833_v12 = vpop.f32.mrb[162].mxu1  ;;  %v8987_v22 = vadd.f32 %v5831_v57, %v14461_v23 }
 0x5ae   :  { %v8988_v44 = vadd.f32 %v5833_v12, %v14459_v63  ;;  %v5835_v39 = vpop.f32.mrb[163].mxu1 }
 0x5af   :  { %v8989_v27 = vadd.f32 %v5835_v39, %v14461_v23 }
 0x5b0   :  { %v5978_v42 = vpack.c.bf16 %v8988_v44, %v8986_v49 }
 0x5b1   :  { %v5979_v25 = vpack.c.bf16 %v8989_v27, %v8987_v22 }
 0x5b3   :  { %v5839_v50 = vpop.f32.mrb[164].mxu1  ;;  %7507 = vmatprep.mubr.bf16.mxu0 %v5979_v25 }
 0x5b4   :  { %v5841_v2 = vpop.f32.mrb[165].mxu1  ;;  %7508 = vmatmul.mubr.bf16.gmra.mrb[160].mxu0 %v5978_v42  ;;  %v8990_v33 = vadd.f32 %v5839_v50, %v14459_v63 }
 0x5b5   :  { %v5843_v7 = vpop.f32.mrb[166].mxu1  ;;  %v8991_v6 = vadd.f32 %v5841_v2, %v14461_v23 }
 0x5b6   :  { %v8992_v52 = vadd.f32 %v5843_v7, %v14459_v63  ;;  %v5845_v53 = vpop.f32.mrb[167].mxu1 }
 0x5b7   :  { %v8993_v18 = vadd.f32 %v5845_v53, %v14461_v23 }
 0x5b8   :  { %v5986_v35 = vpack.c.bf16 %v8992_v52, %v8990_v33 }
 0x5b9   :  { %v5987_v38 = vpack.c.bf16 %v8993_v18, %v8991_v6 }
 0x5bb   :  { %v5849_v46 = vpop.f32.mrb[168].mxu1  ;;  %7517 = vmatprep.mubr.bf16.mxu0 %v5987_v38  ;;  %v6164_v38 = vld [vmem:[%s14775_s4] sm:$0x3] }
 0x5bc   :  { %v5851_v61 = vpop.f32.mrb[169].mxu1  ;;  %7518 = vmatmul.mubr.bf16.gmra.mrb[164].mxu0 %v5986_v35  ;;  %v8994_v24 = vadd.f32 %v5849_v46, %v14459_v63  ;;  %v15855_v46 = vsub.s32 0, %v15854_v30 }
 0x5bd   :  { %v5853_v26 = vpop.f32.mrb[170].mxu1  ;;  %v8995_v1 = vadd.f32 %v5851_v61, %v14461_v23 }
 0x5be   :  { %v8996_v21 = vadd.f32 %v5853_v26, %v14459_v63  ;;  %v5855_v15 = vpop.f32.mrb[171].mxu1  ;;  %v14568_v61 = vrot.slane %v6164_v38, %v15855_v46 }
 0x5bf   :  { %v8997_v47 = vadd.f32 %v5855_v15, %v14461_v23 }
 0x5c0   :  { %v5994_v4 = vpack.c.bf16 %v8996_v21, %v8994_v24 }
 0x5c1   :  { %v5995_v55 = vpack.c.bf16 %v8997_v47, %v8995_v1 }
 0x5c3   :  { %v5859_v16 = vpop.f32.mrb[172].mxu1  ;;  %7527 = vmatprep.mubr.bf16.mxu0 %v5995_v55 }
 0x5c4   :  { %v5861_v43 = vpop.f32.mrb[173].mxu1  ;;  %7528 = vmatmul.mubr.bf16.gmra.mrb[168].mxu0 %v5994_v4  ;;  %v8998_v3 = vadd.f32 %v5859_v16, %v14459_v63 }
 0x5c5   :  { %v5863_v17 = vpop.f32.mrb[174].mxu1  ;;  %v8999_v59 = vadd.f32 %v5861_v43, %v14461_v23 }
 0x5c6   :  { %v9000_v56 = vadd.f32 %v5863_v17, %v14459_v63  ;;  %v5865_v28 = vpop.f32.mrb[175].mxu1 }
 0x5c7   :  { %v9001_v31 = vadd.f32 %v5865_v28, %v14461_v23 }
 0x5c8   :  { %v6002_v13 = vpack.c.bf16 %v9000_v56, %v8998_v3 }
 0x5c9   :  { %v6003_v45 = vpack.c.bf16 %v9001_v31, %v8999_v59 }
 0x5cb   :  { %v5869_v8 = vpop.f32.mrb[176].mxu1  ;;  %7537 = vmatprep.mubr.bf16.mxu0 %v6003_v45 }
 0x5cc   :  { %v5871_v9 = vpop.f32.mrb[177].mxu1  ;;  %7538 = vmatmul.mubr.bf16.gmra.mrb[172].mxu0 %v6002_v13  ;;  %v9002_v11 = vadd.f32 %v5869_v8, %v14459_v63 }
 0x5cd   :  { %v5873_v60 = vpop.f32.mrb[178].mxu1  ;;  %v9003_v32 = vadd.f32 %v5871_v9, %v14461_v23 }
 0x5ce   :  { %v9004_v20 = vadd.f32 %v5873_v60, %v14459_v63  ;;  %v5875_v51 = vpop.f32.mrb[179].mxu1 }
 0x5cf   :  { %v9005_v58 = vadd.f32 %v5875_v51, %v14461_v23 }
 0x5d0   :  { %v6010_v41 = vpack.c.bf16 %v9004_v20, %v9002_v11 }
 0x5d1   :  { %v6011_v48 = vpack.c.bf16 %v9005_v58, %v9003_v32 }
 0x5d3   :  { %v5879_v40 = vpop.f32.mrb[180].mxu1  ;;  %7547 = vmatprep.mubr.bf16.mxu0 %v6011_v48 }
 0x5d4   :  { %v5881_v10 = vpop.f32.mrb[181].mxu1  ;;  %7548 = vmatmul.mubr.bf16.gmra.mrb[176].mxu0 %v6010_v41  ;;  %v9006_v14 = vadd.f32 %v5879_v40, %v14459_v63 }
 0x5d5   :  { %v5883_v34 = vpop.f32.mrb[182].mxu1  ;;  %v9007_v62 = vadd.f32 %v5881_v10, %v14461_v23 }
 0x5d6   :  { %v9008_v5 = vadd.f32 %v5883_v34, %v14459_v63  ;;  %v5885_v54 = vpop.f32.mrb[183].mxu1 }
 0x5d7   :  { %v9009_v29 = vadd.f32 %v5885_v54, %v14461_v23 }
 0x5d8   :  { %v6018_v19 = vpack.c.bf16 %v9008_v5, %v9006_v14 }
 0x5d9   :  { %v6019_v36 = vpack.c.bf16 %v9009_v29, %v9007_v62 }
 0x5db   :  { %v5889_v37 = vpop.f32.mrb[184].mxu1  ;;  %7557 = vmatprep.mubr.bf16.mxu0 %v6019_v36 }
 0x5dc   :  { %v5891_v0 = vpop.f32.mrb[185].mxu1  ;;  %7558 = vmatmul.mubr.bf16.gmra.mrb[180].mxu0 %v6018_v19  ;;  %v9010_v12 = vadd.f32 %v5889_v37, %v14459_v63 }
 0x5dd   :  { %v5893_v57 = vpop.f32.mrb[186].mxu1  ;;  %v9011_v39 = vadd.f32 %v5891_v0, %v14461_v23 }
 0x5de   :  { %v9012_v49 = vadd.f32 %v5893_v57, %v14459_v63  ;;  %v5895_v44 = vpop.f32.mrb[187].mxu1 }
 0x5df   :  { %v9013_v22 = vadd.f32 %v5895_v44, %v14461_v23 }
 0x5e0   :  { %v6026_v27 = vpack.c.bf16 %v9012_v49, %v9010_v12 }
 0x5e1   :  { %v6027_v42 = vpack.c.bf16 %v9013_v22, %v9011_v39 }
 0x5e3   :  { %v5899_v25 = vpop.f32.mrb[188].mxu1  ;;  %7567 = vmatprep.mubr.bf16.mxu0 %v6027_v42 }
 0x5e4   :  { %v5901_v50 = vpop.f32.mrb[189].mxu1  ;;  %7568 = vmatmul.mubr.bf16.gmra.mrb[184].mxu0 %v6026_v27  ;;  %v9014_v7 = vadd.f32 %v5899_v25, %v14459_v63 }
 0x5e5   :  { %v5903_v2 = vpop.f32.mrb[190].mxu1  ;;  %v9015_v53 = vadd.f32 %v5901_v50, %v14461_v23 }
 0x5e6   :  { %v9016_v33 = vadd.f32 %v5903_v2, %v14459_v63  ;;  %v5905_v52 = vpop.f32.mrb[191].mxu1  ;;  %v15856_v63 = vsub.s32 1, %v15854_v30 }
 0x5e7   :  { %v9017_v6 = vadd.f32 %v5905_v52, %v14461_v23 }
 0x5e8   :  { %v6034_v18 = vpack.c.bf16 %v9016_v33, %v9014_v7  ;;  %v14572_v24 = vrot.slane %v6164_v38, %v15856_v63 }
 0x5e9   :  { %v6035_v35 = vpack.c.bf16 %v9017_v6, %v9015_v53 }
 0x5eb   :  { %7577 = vmatprep.mubr.bf16.mxu0 %v6035_v35 }
 0x5ec   :  { %7578 = vmatmul.mubr.bf16.gmra.mrb[188].mxu0 %v6034_v18 }
 0x647   :  { %v7429_v26 = vpop.f32.mrb[128].mxu0 }
 0x648   :  { %v7431_v21 = vpop.f32.mrb[129].mxu0  ;;  %v9018_v23 = vadd.f32 %v7429_v26, %v14568_v61 }
 0x649   :  { %v7433_v15 = vpop.f32.mrb[130].mxu0  ;;  %v9019_v4 = vadd.f32 %v7431_v21, %v14572_v24 }
 0x64a   :  { %v9020_v1 = vadd.f32 %v7433_v15, %v14568_v61  ;;  %v7435_v47 = vpop.f32.mrb[131].mxu0 }
 0x64b   :  { %v9021_v55 = vadd.f32 %v7435_v47, %v14572_v24 }
 0x64c   :  { %v7588_v16 = vpack.c.bf16 %v9020_v1, %v9018_v23 }
 0x64d   :  { %v7589_v43 = vpack.c.bf16 %v9021_v55, %v9019_v4 }
 0x64f   :  { %v7439_v17 = vpop.f32.mrb[132].mxu0  ;;  %7787 = vmatprep.mubr.bf16.mxu1 %v7589_v43 }
 0x650   :  { %v7441_v3 = vpop.f32.mrb[133].mxu0  ;;  %7788 = vmatmul.mubr.bf16.vlgmr.msra.gmra.mrb[192].mxu1 %v7588_v16  ;;  %v9022_v56 = vadd.f32 %v7439_v17, %v14568_v61 }
 0x651   :  { %v7443_v30 = vpop.f32.mrb[134].mxu0  ;;  %v9023_v31 = vadd.f32 %v7441_v3, %v14572_v24 }
 0x652   :  { %v9024_v28 = vadd.f32 %v7443_v30, %v14568_v61  ;;  %v7445_v59 = vpop.f32.mrb[135].mxu0 }
 0x653   :  { %v9025_v13 = vadd.f32 %v7445_v59, %v14572_v24 }
 0x654   :  { %v7590_v45 = vpack.c.bf16 %v9024_v28, %v9022_v56 }
 0x655   :  { %v7591_v8 = vpack.c.bf16 %v9025_v13, %v9023_v31 }
 0x657   :  { %v7449_v9 = vpop.f32.mrb[136].mxu0  ;;  %7795 = vmatprep.mubr.bf16.mxu1 %v7591_v8 }
 0x658   :  { %v7451_v60 = vpop.f32.mrb[137].mxu0  ;;  %7796 = vmatmul.mubr.bf16.gmra.mrb[196].mxu1 %v7590_v45  ;;  %v9026_v20 = vadd.f32 %v7449_v9, %v14568_v61 }
 0x659   :  { %v7453_v11 = vpop.f32.mrb[138].mxu0  ;;  %v9027_v58 = vadd.f32 %v7451_v60, %v14572_v24 }
 0x65a   :  { %v9028_v51 = vadd.f32 %v7453_v11, %v14568_v61  ;;  %v7455_v32 = vpop.f32.mrb[139].mxu0 }
 0x65b   :  { %v9029_v41 = vadd.f32 %v7455_v32, %v14572_v24 }
 0x65c   :  { %v7592_v48 = vpack.c.bf16 %v9028_v51, %v9026_v20 }
 0x65d   :  { %v7593_v40 = vpack.c.bf16 %v9029_v41, %v9027_v58 }
 0x65f   :  { %v7459_v10 = vpop.f32.mrb[140].mxu0  ;;  %7803 = vmatprep.mubr.bf16.mxu1 %v7593_v40 }
 0x660   :  { %v7461_v34 = vpop.f32.mrb[141].mxu0  ;;  %7804 = vmatmul.mubr.bf16.gmra.mrb[200].mxu1 %v7592_v48  ;;  %v9030_v5 = vadd.f32 %v7459_v10, %v14568_v61 }
 0x661   :  { %v7463_v14 = vpop.f32.mrb[142].mxu0  ;;  %v9031_v29 = vadd.f32 %v7461_v34, %v14572_v24 }
 0x662   :  { %v9032_v54 = vadd.f32 %v7463_v14, %v14568_v61  ;;  %v7465_v62 = vpop.f32.mrb[143].mxu0 }
 0x663   :  { %v9033_v19 = vadd.f32 %v7465_v62, %v14572_v24 }
 0x664   :  { %v7594_v36 = vpack.c.bf16 %v9032_v54, %v9030_v5 }
 0x665   :  { %v7595_v37 = vpack.c.bf16 %v9033_v19, %v9031_v29 }
 0x667   :  { %v7469_v0 = vpop.f32.mrb[144].mxu0  ;;  %7811 = vmatprep.mubr.bf16.mxu1 %v7595_v37 }
 0x668   :  { %v7471_v57 = vpop.f32.mrb[145].mxu0  ;;  %7812 = vmatmul.mubr.bf16.gmra.mrb[204].mxu1 %v7594_v36  ;;  %v9034_v49 = vadd.f32 %v7469_v0, %v14568_v61 }
 0x669   :  { %v7473_v12 = vpop.f32.mrb[146].mxu0  ;;  %v9035_v22 = vadd.f32 %v7471_v57, %v14572_v24 }
 0x66a   :  { %v9036_v44 = vadd.f32 %v7473_v12, %v14568_v61  ;;  %v7475_v39 = vpop.f32.mrb[147].mxu0 }
 0x66b   :  { %v9037_v27 = vadd.f32 %v7475_v39, %v14572_v24 }
 0x66c   :  { %v7596_v42 = vpack.c.bf16 %v9036_v44, %v9034_v49 }
 0x66d   :  { %v7597_v25 = vpack.c.bf16 %v9037_v27, %v9035_v22 }
 0x66f   :  { %v7479_v50 = vpop.f32.mrb[148].mxu0  ;;  %7819 = vmatprep.mubr.bf16.mxu1 %v7597_v25 }
 0x670   :  { %v7481_v2 = vpop.f32.mrb[149].mxu0  ;;  %7820 = vmatmul.mubr.bf16.gmra.mrb[208].mxu1 %v7596_v42  ;;  %v9038_v33 = vadd.f32 %v7479_v50, %v14568_v61 }
 0x671   :  { %v7483_v7 = vpop.f32.mrb[150].mxu0  ;;  %v9039_v6 = vadd.f32 %v7481_v2, %v14572_v24 }
 0x672   :  { %v9040_v52 = vadd.f32 %v7483_v7, %v14568_v61  ;;  %v7485_v53 = vpop.f32.mrb[151].mxu0 }
 0x673   :  { %v9041_v18 = vadd.f32 %v7485_v53, %v14572_v24 }
 0x674   :  { %v7598_v35 = vpack.c.bf16 %v9040_v52, %v9038_v33 }
 0x675   :  { %v7599_v38 = vpack.c.bf16 %v9041_v18, %v9039_v6 }
 0x677   :  { %v7489_v46 = vpop.f32.mrb[152].mxu0  ;;  %7827 = vmatprep.mubr.bf16.mxu1 %v7599_v38 }
 0x678   :  { %v7491_v26 = vpop.f32.mrb[153].mxu0  ;;  %7828 = vmatmul.mubr.bf16.gmra.mrb[212].mxu1 %v7598_v35  ;;  %v9042_v21 = vadd.f32 %v7489_v46, %v14568_v61 }
 0x679   :  { %v7493_v63 = vpop.f32.mrb[154].mxu0  ;;  %v9043_v1 = vadd.f32 %v7491_v26, %v14572_v24 }
 0x67a   :  { %v9044_v15 = vadd.f32 %v7493_v63, %v14568_v61  ;;  %v7495_v23 = vpop.f32.mrb[155].mxu0 }
 0x67b   :  { %v9045_v47 = vadd.f32 %v7495_v23, %v14572_v24 }
 0x67c   :  { %v7600_v4 = vpack.c.bf16 %v9044_v15, %v9042_v21 }
 0x67d   :  { %v7601_v55 = vpack.c.bf16 %v9045_v47, %v9043_v1 }
 0x67f   :  { %v7499_v16 = vpop.f32.mrb[156].mxu0  ;;  %7835 = vmatprep.mubr.bf16.mxu1 %v7601_v55 }
 0x680   :  { %v7501_v43 = vpop.f32.mrb[157].mxu0  ;;  %7836 = vmatmul.mubr.bf16.gmra.mrb[216].mxu1 %v7600_v4  ;;  %v9046_v3 = vadd.f32 %v7499_v16, %v14568_v61 }
 0x681   :  { %v7503_v17 = vpop.f32.mrb[158].mxu0  ;;  %v9047_v28 = vadd.f32 %v7501_v43, %v14572_v24 }
 0x682   :  { %v9048_v30 = vadd.f32 %v7503_v17, %v14568_v61  ;;  %v7505_v56 = vpop.f32.mrb[159].mxu0 }
 0x683   :  { %v9049_v59 = vadd.f32 %v7505_v56, %v14572_v24 }
 0x684   :  { %v7602_v31 = vpack.c.bf16 %v9048_v30, %v9046_v3 }
 0x685   :  { %v7603_v13 = vpack.c.bf16 %v9049_v59, %v9047_v28 }
 0x687   :  { %v7509_v45 = vpop.f32.mrb[160].mxu0  ;;  %7843 = vmatprep.mubr.bf16.mxu1 %v7603_v13 }
 0x688   :  { %v7511_v8 = vpop.f32.mrb[161].mxu0  ;;  %7844 = vmatmul.mubr.bf16.gmra.mrb[220].mxu1 %v7602_v31  ;;  %v9050_v60 = vadd.f32 %v7509_v45, %v14568_v61 }
 0x689   :  { %v7513_v9 = vpop.f32.mrb[162].mxu0  ;;  %v9051_v51 = vadd.f32 %v7511_v8, %v14572_v24 }
 0x68a   :  { %v9052_v11 = vadd.f32 %v7513_v9, %v14568_v61  ;;  %v7515_v20 = vpop.f32.mrb[163].mxu0 }
 0x68b   :  { %v9053_v32 = vadd.f32 %v7515_v20, %v14572_v24 }
 0x68c   :  { %v7604_v58 = vpack.c.bf16 %v9052_v11, %v9050_v60 }
 0x68d   :  { %v7605_v41 = vpack.c.bf16 %v9053_v32, %v9051_v51 }
 0x68f   :  { %v7519_v48 = vpop.f32.mrb[164].mxu0  ;;  %7851 = vmatprep.mubr.bf16.mxu1 %v7605_v41 }
 0x690   :  { %v7521_v40 = vpop.f32.mrb[165].mxu0  ;;  %7852 = vmatmul.mubr.bf16.gmra.mrb[224].mxu1 %v7604_v58  ;;  %v9054_v34 = vadd.f32 %v7519_v48, %v14568_v61 }
 0x691   :  { %v7523_v10 = vpop.f32.mrb[166].mxu0  ;;  %v9055_v54 = vadd.f32 %v7521_v40, %v14572_v24 }
 0x692   :  { %v9056_v14 = vadd.f32 %v7523_v10, %v14568_v61  ;;  %v7525_v5 = vpop.f32.mrb[167].mxu0 }
 0x693   :  { %v9057_v62 = vadd.f32 %v7525_v5, %v14572_v24 }
 0x694   :  { %v7606_v29 = vpack.c.bf16 %v9056_v14, %v9054_v34 }
 0x695   :  { %v7607_v19 = vpack.c.bf16 %v9057_v62, %v9055_v54 }
 0x697   :  { %v7529_v36 = vpop.f32.mrb[168].mxu0  ;;  %7859 = vmatprep.mubr.bf16.mxu1 %v7607_v19  ;;  %v14641_v19 = vld [vmem:[%s14777_s6] ss:$0 sm:$0xff] }
 0x698   :  { %v7531_v37 = vpop.f32.mrb[169].mxu0  ;;  %7860 = vmatmul.mubr.bf16.gmra.mrb[228].mxu1 %v7606_v29  ;;  %v9058_v57 = vadd.f32 %v7529_v36, %v14568_v61 }
 0x699   :  { %v7533_v0 = vpop.f32.mrb[170].mxu0  ;;  %v9059_v44 = vadd.f32 %v7531_v37, %v14572_v24 }
 0x69a   :  { %v9060_v12 = vadd.f32 %v7533_v0, %v14568_v61  ;;  %v7535_v49 = vpop.f32.mrb[171].mxu0 }
 0x69b   :  { %v9061_v39 = vadd.f32 %v7535_v49, %v14572_v24 }
 0x69c   :  { %v7608_v22 = vpack.c.bf16 %v9060_v12, %v9058_v57 }
 0x69d   :  { %v7609_v27 = vpack.c.bf16 %v9061_v39, %v9059_v44 }
 0x69f   :  { %v7539_v42 = vpop.f32.mrb[172].mxu0  ;;  %7867 = vmatprep.mubr.bf16.mxu1 %v7609_v27 }
 0x6a0   :  { %v7541_v25 = vpop.f32.mrb[173].mxu0  ;;  %7868 = vmatmul.mubr.bf16.gmra.mrb[232].mxu1 %v7608_v22  ;;  %v9062_v2 = vadd.f32 %v7539_v42, %v14568_v61 }
 0x6a1   :  { %v7543_v50 = vpop.f32.mrb[174].mxu0  ;;  %v9063_v52 = vadd.f32 %v7541_v25, %v14572_v24 }
 0x6a2   :  { %v9064_v7 = vadd.f32 %v7543_v50, %v14568_v61  ;;  %v7545_v33 = vpop.f32.mrb[175].mxu0 }
 0x6a3   :  { %v9065_v53 = vadd.f32 %v7545_v33, %v14572_v24 }
 0x6a4   :  { %v7610_v6 = vpack.c.bf16 %v9064_v7, %v9062_v2 }
 0x6a5   :  { %v7611_v18 = vpack.c.bf16 %v9065_v53, %v9063_v52 }
 0x6a7   :  { %v7549_v35 = vpop.f32.mrb[176].mxu0  ;;  %7875 = vmatprep.mubr.bf16.mxu1 %v7611_v18 }
 0x6a8   :  { %v7551_v38 = vpop.f32.mrb[177].mxu0  ;;  %7876 = vmatmul.mubr.bf16.gmra.mrb[236].mxu1 %v7610_v6  ;;  %v9066_v26 = vadd.f32 %v7549_v35, %v14568_v61 }
 0x6a9   :  { %v7553_v46 = vpop.f32.mrb[178].mxu0  ;;  %v9067_v15 = vadd.f32 %v7551_v38, %v14572_v24 }
 0x6aa   :  { %v9068_v63 = vadd.f32 %v7553_v46, %v14568_v61  ;;  %v7555_v21 = vpop.f32.mrb[179].mxu0 }
 0x6ab   :  { %v9069_v23 = vadd.f32 %v7555_v21, %v14572_v24 }
 0x6ac   :  { %v7612_v1 = vpack.c.bf16 %v9068_v63, %v9066_v26 }
 0x6ad   :  { %v7613_v47 = vpack.c.bf16 %v9069_v23, %v9067_v15 }
 0x6af   :  { %v7559_v4 = vpop.f32.mrb[180].mxu0  ;;  %7883 = vmatprep.mubr.bf16.mxu1 %v7613_v47 }
 0x6b0   :  { %v7561_v55 = vpop.f32.mrb[181].mxu0  ;;  %7884 = vmatmul.mubr.bf16.gmra.mrb[240].mxu1 %v7612_v1  ;;  %v9070_v43 = vadd.f32 %v7559_v4, %v14568_v61 }
 0x6b1   :  { %v7563_v16 = vpop.f32.mrb[182].mxu0  ;;  %v9071_v30 = vadd.f32 %v7561_v55, %v14572_v24 }
 0x6b2   :  { %v9072_v17 = vadd.f32 %v7563_v16, %v14568_v61  ;;  %v7565_v3 = vpop.f32.mrb[183].mxu0 }
 0x6b3   :  { %v9073_v56 = vadd.f32 %v7565_v3, %v14572_v24 }
 0x6b4   :  { %v7614_v28 = vpack.c.bf16 %v9072_v17, %v9070_v43 }
 0x6b5   :  { %v7615_v59 = vpack.c.bf16 %v9073_v56, %v9071_v30 }
 0x6b7   :  { %v7569_v31 = vpop.f32.mrb[184].mxu0  ;;  %7891 = vmatprep.mubr.bf16.mxu1 %v7615_v59 }
 0x6b8   :  { %v7571_v13 = vpop.f32.mrb[185].mxu0  ;;  %7892 = vmatmul.mubr.bf16.gmra.mrb[244].mxu1 %v7614_v28  ;;  %v9074_v8 = vadd.f32 %v7569_v31, %v14568_v61 }
 0x6b9   :  { %v7573_v45 = vpop.f32.mrb[186].mxu0  ;;  %v9075_v11 = vadd.f32 %v7571_v13, %v14572_v24 }
 0x6ba   :  { %v9076_v9 = vadd.f32 %v7573_v45, %v14568_v61  ;;  %v7575_v60 = vpop.f32.mrb[187].mxu0 }
 0x6bb   :  { %v9077_v20 = vadd.f32 %v7575_v60, %v14572_v24 }
 0x6bc   :  { %v7616_v51 = vpack.c.bf16 %v9076_v9, %v9074_v8 }
 0x6bd   :  { %v7617_v32 = vpack.c.bf16 %v9077_v20, %v9075_v11 }
 0x6bf   :  { %v7579_v58 = vpop.f32.mrb[188].mxu0  ;;  %7899 = vmatprep.mubr.bf16.mxu1 %v7617_v32 }
 0x6c0   :  { %v7581_v41 = vpop.f32.mrb[189].mxu0  ;;  %7900 = vmatmul.mubr.bf16.gmra.mrb[248].mxu1 %v7616_v51  ;;  %v9078_v40 = vadd.f32 %v7579_v58, %v14568_v61 }
 0x6c1   :  { %v7583_v48 = vpop.f32.mrb[190].mxu0  ;;  %v9079_v14 = vadd.f32 %v7581_v41, %v14572_v24 }
 0x6c2   :  { %v9080_v10 = vadd.f32 %v7583_v48, %v14568_v61  ;;  %v7585_v34 = vpop.f32.mrb[191].mxu0 }
 0x6c3   :  { %v9081_v5 = vadd.f32 %v7585_v34, %v14572_v24 }
 0x6c4   :  { %v7618_v54 = vpack.c.bf16 %v9080_v10, %v9078_v40 }
 0x6c5   :  { %v7619_v62 = vpack.c.bf16 %v9081_v5, %v9079_v14 }
 0x6c7   :  { %7907 = vmatprep.mubr.bf16.mxu1 %v7619_v62 }
 0x6c8   :  { %7908 = vmatmul.mubr.bf16.gmra.mrb[252].mxu1 %v7618_v54 }
 0x723   :  { %v8570_v29 = vpop.f32.mrb[192].mxu1 }
 0x724   :  { %v8571_v36 = vpop.f32.mrb[193].mxu1 }
 0x725   :  { %v8572_v37 = vadd.f32 %v8571_v36, %v8570_v29  ;;  %v8573_v0 = vpop.f32.mrb[194].mxu1 }
 0x726   :  { %v8574_v57 = vpop.f32.mrb[195].mxu1 }
 0x727   :  { %v7790_v61 = vadd.f32 %v8572_v37, %v14641_v19  ;;  %v8575_v12 = vadd.f32 %v8574_v57, %v8573_v0 }
 0x729   :  { %7916 = vst [vmem:[%s14778_s7] sm:$0xff] %v7790_v61  ;;  %v7793_v24 = vadd.f32 %v8575_v12, %v14641_v19 }
 0x72b   :  { %7917 = vst [vmem:[%s14778_s7 + $0x8] sm:$0xff] %v7793_v24  ;;  %v8576_v49 = vpop.f32.mrb[196].mxu1 }
 0x72c   :  { %v8577_v44 = vpop.f32.mrb[197].mxu1 }
 0x72d   :  { %v8578_v39 = vadd.f32 %v8577_v44, %v8576_v49  ;;  %v8579_v22 = vpop.f32.mrb[198].mxu1 }
 0x72e   :  { %v8580_v27 = vpop.f32.mrb[199].mxu1 }
 0x72f   :  { %v7798_v42 = vadd.f32 %v8578_v39, %v14641_v19  ;;  %v8581_v25 = vadd.f32 %v8580_v27, %v8579_v22 }
 0x731   :  { %7918 = vst [vmem:[%s14778_s7 + $0x10] sm:$0xff] %v7798_v42  ;;  %v7801_v50 = vadd.f32 %v8581_v25, %v14641_v19 }
 0x733   :  { %7919 = vst [vmem:[%s14778_s7 + $0x18] sm:$0xff] %v7801_v50  ;;  %v8582_v2 = vpop.f32.mrb[200].mxu1 }
 0x734   :  { %v8583_v7 = vpop.f32.mrb[201].mxu1 }
 0x735   :  { %v8584_v33 = vadd.f32 %v8583_v7, %v8582_v2  ;;  %v8585_v52 = vpop.f32.mrb[202].mxu1 }
 0x736   :  { %v8586_v53 = vpop.f32.mrb[203].mxu1 }
 0x737   :  { %v7806_v6 = vadd.f32 %v8584_v33, %v14641_v19  ;;  %v8587_v18 = vadd.f32 %v8586_v53, %v8585_v52 }
 0x739   :  { %7920 = vst [vmem:[%s14778_s7 + $0x20] sm:$0xff] %v7806_v6  ;;  %v7809_v35 = vadd.f32 %v8587_v18, %v14641_v19 }
 0x73b   :  { %7921 = vst [vmem:[%s14778_s7 + $0x28] sm:$0xff] %v7809_v35  ;;  %v8588_v38 = vpop.f32.mrb[204].mxu1 }
 0x73c   :  { %v8589_v46 = vpop.f32.mrb[205].mxu1 }
 0x73d   :  { %v8590_v26 = vadd.f32 %v8589_v46, %v8588_v38  ;;  %v8591_v63 = vpop.f32.mrb[206].mxu1 }
 0x73e   :  { %v8592_v21 = vpop.f32.mrb[207].mxu1 }
 0x73f   :  { %v7814_v15 = vadd.f32 %v8590_v26, %v14641_v19  ;;  %v8593_v23 = vadd.f32 %v8592_v21, %v8591_v63 }
 0x741   :  { %7922 = vst [vmem:[%s14778_s7 + $0x30] sm:$0xff] %v7814_v15  ;;  %v7817_v1 = vadd.f32 %v8593_v23, %v14641_v19 }
 0x743   :  { %7923 = vst [vmem:[%s14778_s7 + $0x38] sm:$0xff] %v7817_v1  ;;  %v8594_v47 = vpop.f32.mrb[208].mxu1 }
 0x744   :  { %v8595_v4 = vpop.f32.mrb[209].mxu1 }
 0x745   :  { %v8596_v55 = vadd.f32 %v8595_v4, %v8594_v47  ;;  %v8597_v16 = vpop.f32.mrb[210].mxu1 }
 0x746   :  { %v8598_v43 = vpop.f32.mrb[211].mxu1 }
 0x747   :  { %v7822_v17 = vadd.f32 %v8596_v55, %v14641_v19  ;;  %v8599_v3 = vadd.f32 %v8598_v43, %v8597_v16 }
 0x749   :  { %7924 = vst [vmem:[%s14778_s7 + $0x40] sm:$0xff] %v7822_v17  ;;  %v7825_v30 = vadd.f32 %v8599_v3, %v14641_v19 }
 0x74b   :  { %7925 = vst [vmem:[%s14778_s7 + $0x48] sm:$0xff] %v7825_v30  ;;  %v8600_v56 = vpop.f32.mrb[212].mxu1 }
 0x74c   :  { %v8601_v28 = vpop.f32.mrb[213].mxu1 }
 0x74d   :  { %v8602_v59 = vadd.f32 %v8601_v28, %v8600_v56  ;;  %v8603_v31 = vpop.f32.mrb[214].mxu1 }
 0x74e   :  { %v8604_v13 = vpop.f32.mrb[215].mxu1 }
 0x74f   :  { %v7830_v45 = vadd.f32 %v8602_v59, %v14641_v19  ;;  %v8605_v8 = vadd.f32 %v8604_v13, %v8603_v31 }
 0x751   :  { %7926 = vst [vmem:[%s14778_s7 + $0x50] sm:$0xff] %v7830_v45  ;;  %v7833_v9 = vadd.f32 %v8605_v8, %v14641_v19 }
 0x753   :  { %7927 = vst [vmem:[%s14778_s7 + $0x58] sm:$0xff] %v7833_v9  ;;  %v8606_v60 = vpop.f32.mrb[216].mxu1 }
 0x754   :  { %v8607_v11 = vpop.f32.mrb[217].mxu1 }
 0x755   :  { %v8608_v20 = vadd.f32 %v8607_v11, %v8606_v60  ;;  %v8609_v51 = vpop.f32.mrb[218].mxu1 }
 0x756   :  { %v8610_v32 = vpop.f32.mrb[219].mxu1 }
 0x757   :  { %v7838_v58 = vadd.f32 %v8608_v20, %v14641_v19  ;;  %v8611_v41 = vadd.f32 %v8610_v32, %v8609_v51 }
 0x759   :  { %7928 = vst [vmem:[%s14778_s7 + $0x60] sm:$0xff] %v7838_v58  ;;  %v7841_v48 = vadd.f32 %v8611_v41, %v14641_v19 }
 0x75b   :  { %7929 = vst [vmem:[%s14778_s7 + $0x68] sm:$0xff] %v7841_v48  ;;  %v8612_v40 = vpop.f32.mrb[220].mxu1 }
 0x75c   :  { %v8613_v10 = vpop.f32.mrb[221].mxu1 }
 0x75d   :  { %v8614_v34 = vadd.f32 %v8613_v10, %v8612_v40  ;;  %v8615_v14 = vpop.f32.mrb[222].mxu1 }
 0x75e   :  { %v8616_v5 = vpop.f32.mrb[223].mxu1 }
 0x75f   :  { %v7846_v54 = vadd.f32 %v8614_v34, %v14641_v19  ;;  %v8617_v62 = vadd.f32 %v8616_v5, %v8615_v14 }
 0x761   :  { %7930 = vst [vmem:[%s14778_s7 + $0x70] sm:$0xff] %v7846_v54  ;;  %v7849_v29 = vadd.f32 %v8617_v62, %v14641_v19 }
 0x763   :  { %7931 = vst [vmem:[%s14778_s7 + $0x78] sm:$0xff] %v7849_v29  ;;  %v8618_v36 = vpop.f32.mrb[224].mxu1 }
 0x764   :  { %v8619_v37 = vpop.f32.mrb[225].mxu1 }
 0x765   :  { %v8620_v0 = vadd.f32 %v8619_v37, %v8618_v36  ;;  %v8621_v57 = vpop.f32.mrb[226].mxu1 }
 0x766   :  { %v8622_v61 = vpop.f32.mrb[227].mxu1 }
 0x767   :  { %v7854_v12 = vadd.f32 %v8620_v0, %v14641_v19  ;;  %v8623_v24 = vadd.f32 %v8622_v61, %v8621_v57 }
 0x769   :  { %7932 = vst [vmem:[%s14778_s7 + $0x80] sm:$0xff] %v7854_v12  ;;  %v7857_v49 = vadd.f32 %v8623_v24, %v14641_v19 }
 0x76b   :  { %7933 = vst [vmem:[%s14778_s7 + $0x88] sm:$0xff] %v7857_v49  ;;  %v8624_v44 = vpop.f32.mrb[228].mxu1 }
 0x76c   :  { %v8625_v39 = vpop.f32.mrb[229].mxu1 }
 0x76d   :  { %v8626_v22 = vadd.f32 %v8625_v39, %v8624_v44  ;;  %v8627_v27 = vpop.f32.mrb[230].mxu1 }
 0x76e   :  { %v8628_v42 = vpop.f32.mrb[231].mxu1 }
 0x76f   :  { %v7862_v25 = vadd.f32 %v8626_v22, %v14641_v19  ;;  %v8629_v50 = vadd.f32 %v8628_v42, %v8627_v27 }
 0x771   :  { %7934 = vst [vmem:[%s14778_s7 + $0x90] sm:$0xff] %v7862_v25  ;;  %v7865_v2 = vadd.f32 %v8629_v50, %v14641_v19 }
 0x773   :  { %7935 = vst [vmem:[%s14778_s7 + $0x98] sm:$0xff] %v7865_v2  ;;  %v8630_v7 = vpop.f32.mrb[232].mxu1 }
 0x774   :  { %v8631_v33 = vpop.f32.mrb[233].mxu1 }
 0x775   :  { %v8632_v52 = vadd.f32 %v8631_v33, %v8630_v7  ;;  %v8633_v53 = vpop.f32.mrb[234].mxu1 }
 0x776   :  { %v8634_v6 = vpop.f32.mrb[235].mxu1 }
 0x777   :  { %v7870_v18 = vadd.f32 %v8632_v52, %v14641_v19  ;;  %v8635_v35 = vadd.f32 %v8634_v6, %v8633_v53 }
 0x779   :  { %7936 = vst [vmem:[%s14778_s7 + $0xa0] sm:$0xff] %v7870_v18  ;;  %v7873_v38 = vadd.f32 %v8635_v35, %v14641_v19 }
 0x77b   :  { %7937 = vst [vmem:[%s14778_s7 + $0xa8] sm:$0xff] %v7873_v38  ;;  %v8636_v46 = vpop.f32.mrb[236].mxu1 }
 0x77c   :  { %v8637_v26 = vpop.f32.mrb[237].mxu1 }
 0x77d   :  { %v8638_v63 = vadd.f32 %v8637_v26, %v8636_v46  ;;  %v8639_v21 = vpop.f32.mrb[238].mxu1 }
 0x77e   :  { %v8640_v15 = vpop.f32.mrb[239].mxu1 }
 0x77f   :  { %v7878_v23 = vadd.f32 %v8638_v63, %v14641_v19  ;;  %v8641_v1 = vadd.f32 %v8640_v15, %v8639_v21 }
 0x781   :  { %7938 = vst [vmem:[%s14778_s7 + $0xb0] sm:$0xff] %v7878_v23  ;;  %v7881_v47 = vadd.f32 %v8641_v1, %v14641_v19 }
 0x783   :  { %7939 = vst [vmem:[%s14778_s7 + $0xb8] sm:$0xff] %v7881_v47  ;;  %v8642_v4 = vpop.f32.mrb[240].mxu1 }
 0x784   :  { %v8643_v55 = vpop.f32.mrb[241].mxu1 }
 0x785   :  { %v8644_v16 = vadd.f32 %v8643_v55, %v8642_v4  ;;  %v8645_v43 = vpop.f32.mrb[242].mxu1 }
 0x786   :  { %v8646_v17 = vpop.f32.mrb[243].mxu1 }
 0x787   :  { %v7886_v3 = vadd.f32 %v8644_v16, %v14641_v19  ;;  %v8647_v30 = vadd.f32 %v8646_v17, %v8645_v43 }
 0x789   :  { %7940 = vst [vmem:[%s14778_s7 + $0xc0] sm:$0xff] %v7886_v3  ;;  %v7889_v56 = vadd.f32 %v8647_v30, %v14641_v19 }
 0x78b   :  { %7941 = vst [vmem:[%s14778_s7 + $0xc8] sm:$0xff] %v7889_v56  ;;  %v8648_v28 = vpop.f32.mrb[244].mxu1 }
 0x78c   :  { %v8649_v59 = vpop.f32.mrb[245].mxu1 }
 0x78d   :  { %v8650_v31 = vadd.f32 %v8649_v59, %v8648_v28  ;;  %v8651_v13 = vpop.f32.mrb[246].mxu1 }
 0x78e   :  { %v8652_v45 = vpop.f32.mrb[247].mxu1 }
 0x78f   :  { %v7894_v8 = vadd.f32 %v8650_v31, %v14641_v19  ;;  %v8653_v9 = vadd.f32 %v8652_v45, %v8651_v13 }
 0x791   :  { %7942 = vst [vmem:[%s14778_s7 + $0xd0] sm:$0xff] %v7894_v8  ;;  %v7897_v60 = vadd.f32 %v8653_v9, %v14641_v19 }
 0x793   :  { %7943 = vst [vmem:[%s14778_s7 + $0xd8] sm:$0xff] %v7897_v60  ;;  %v8654_v11 = vpop.f32.mrb[248].mxu1 }
 0x794   :  { %v8655_v20 = vpop.f32.mrb[249].mxu1 }
 0x795   :  { %v8656_v51 = vadd.f32 %v8655_v20, %v8654_v11  ;;  %v8657_v32 = vpop.f32.mrb[250].mxu1 }
 0x796   :  { %v8658_v58 = vpop.f32.mrb[251].mxu1 }
 0x797   :  { %v7902_v41 = vadd.f32 %v8656_v51, %v14641_v19  ;;  %v8659_v48 = vadd.f32 %v8658_v58, %v8657_v32 }
 0x799   :  { %7944 = vst [vmem:[%s14778_s7 + $0xe0] sm:$0xff] %v7902_v41  ;;  %v7905_v40 = vadd.f32 %v8659_v48, %v14641_v19 }
 0x79b   :  { %7945 = vst [vmem:[%s14778_s7 + $0xe8] sm:$0xff] %v7905_v40  ;;  %v8660_v10 = vpop.f32.mrb[252].mxu1 }
 0x79c   :  { %v8661_v34 = vpop.f32.mrb[253].mxu1 }
 0x79d   :  { %v8662_v14 = vadd.f32 %v8661_v34, %v8660_v10  ;;  %v8663_v5 = vpop.f32.mrb[254].mxu1 }
 0x79e   :  { %v8664_v54 = vpop.f32.mrb[255].mxu1 }
 0x79f   :  { %v7910_v62 = vadd.f32 %v8662_v14, %v14641_v19  ;;  %v8665_v29 = vadd.f32 %v8664_v54, %v8663_v5 }
 0x7a1   :  { %7946 = vst [vmem:[%s14778_s7 + $0xf0] sm:$0xff] %v7910_v62  ;;  %v7913_v36 = vadd.f32 %v8665_v29, %v14641_v19 }
 0x7a3   :  { %7947 = vst [vmem:[%s14778_s7 + $0xf8] sm:$0xff] %v7913_v36 }
 0x7a4   :  { %7952 = vsyncpa [#allocation3], 1 }

</bundles_post_ra>
